<compile_context>
chip_gen: v7x
topology: tpu7x:2x2x1
jax: 0.10.0
libtpu: 0.0.40
codegen_flags: <defaults>
</compile_context>

<pallas_src>
import functools
import math

import jax
import jax.numpy as jnp
from jax import lax
from jax.experimental import pallas as pl
from jax.experimental.pallas import tpu as pltpu

F32 = jnp.float32
BF16 = jnp.bfloat16

VMEM_LIMIT = 64 * 1024 * 1024  # raise above the scoped default; <= physical on v5e/v6e/v7x


# ---------------------------------------------------------------------------
# Pallas kernels
# ---------------------------------------------------------------------------

def _conv3x3_kernel(x_ref, w_ref, scale_ref, shift_ref,
                    o_ref, sum_ref, sq_ref,
                    xpad_ref, col_ref, *, pad, pre_bn_relu):
    """3x3 stride-1 conv for one batch item, single K=9*Cin MXU dot, fused BN partials.

    x_ref     : (1, H, W, Cin)      bf16  NHWC input (pre-BN output of previous conv if fused)
    w_ref     : (Cout, 9*Cin)       bf16  weight slab, K index = (kh*3+kw)*Cin + ci
    scale_ref : (1, Cin)            f32   fused BN scale of the *previous* layer
    shift_ref : (1, Cin)            f32   fused BN shift of the *previous* layer
    o_ref     : (1, Cout, Ho*Wo)    bf16  pre-BN conv output, channel-major (lane-dense store)
    sum_ref   : (1, Cout, 1)        f32   per-channel sum   for THIS batch item
    sq_ref    : (1, Cout, 1)        f32   per-channel sumsq for THIS batch item
    xpad_ref  : (Hp, Wp, Cin)       bf16  VMEM scratch: zero-padded (BN+ReLU'd) input
    col_ref   : (Ho*Wo, 9*Cin)      bf16  VMEM scratch: im2col slab
    """
    _, H, W, Cin = x_ref.shape
    Hp, Wp, _ = xpad_ref.shape
    Ho, Wo = Hp - 2, Wp - 2

    x = x_ref[0]
    if pre_bn_relu:
        sc = scale_ref[...].reshape(1, 1, Cin)
        sh = shift_ref[...].reshape(1, 1, Cin)
        x = jnp.maximum(x.astype(F32) * sc + sh, 0.0)
    x = x.astype(BF16)

    # Zero only the border strips of the padded scratch (not the whole buffer).
    if pad > 0:
        zrow = jnp.zeros((pad, Wp, Cin), BF16)
        zcol = jnp.zeros((Hp, pad, Cin), BF16)
        xpad_ref[0:pad, :, :] = zrow
        xpad_ref[Hp - pad:Hp, :, :] = zrow
        xpad_ref[:, 0:pad, :] = zcol
        xpad_ref[:, Wp - pad:Wp, :] = zcol
        xpad_ref[pad:pad + H, pad:pad + W, :] = x
    else:
        xpad_ref[...] = x

    # Build the im2col slab once: col[p, (kh*3+kw)*Cin + ci] = xpad[oh+kh, ow+kw, ci].
    for kh in range(3):
        for kw in range(3):
            j = kh * 3 + kw
            patch = xpad_ref[kh:kh + Ho, kw:kw + Wo, :]
            col_ref[:, j * Cin:(j + 1) * Cin] = patch.reshape(Ho * Wo, Cin)

    # One MXU dot with K = 9*Cin, producing the channel-major (Cout, Ho*Wo) result
    # directly (contraction on the trailing dim of BOTH operands -> no output reshape,
    # full-lane stores since Ho*Wo is a multiple of 128).
    acc = lax.dot_general(w_ref[...], col_ref[...],
                          dimension_numbers=(((1,), (1,)), ((), ())),
                          preferred_element_type=F32)          # (Cout, Ho*Wo) f32

    o_ref[0] = acc.astype(o_ref.dtype)

    # Per-batch-item BN partial statistics (reduced over N outside the kernel;
    # keeps the batch grid axis fully parallel / megacore-shardable).
    sum_ref[0] = jnp.sum(acc, axis=1, keepdims=True)           # (Cout, 1)
    sq_ref[0] = jnp.sum(acc * acc, axis=1, keepdims=True)      # (Cout, 1)


def _bn_relu_kernel(x_ref, scale_ref, shift_ref, o_ref):
    """y = relu(x * scale + shift) on channel-major (C, H*W) blocks (lane-dense)."""
    x = x_ref[0].astype(F32)
    o_ref[0] = jnp.maximum(x * scale_ref[...] + shift_ref[...], 0.0)


# ---------------------------------------------------------------------------
# Wrappers
# ---------------------------------------------------------------------------

def conv3x3_with_bn_stats(x, w_t, pad, pre_scale=None, pre_shift=None):
    """Conv2d(k=3, stride=1, padding=pad, bias=False).

    Input is NHWC bf16; output is the pre-BN conv result in channel-major layout
    (N, Cout, Ho*Wo) bf16, plus per-batch-item per-channel sum / sum-of-squares.
    If pre_scale/pre_shift are given, the previous layer's BN-apply + ReLU is fused
    into this kernel's prologue.
    """
    x = x.astype(BF16)
    N, H, W, Cin = x.shape
    Cout = w_t.shape[0]
    Ho, Wo = H + 2 * pad - 2, W + 2 * pad - 2
    Hp, Wp = H + 2 * pad, W + 2 * pad

    fuse = pre_scale is not None
    if not fuse:
        pre_scale = jnp.ones((1, Cin), F32)
        pre_shift = jnp.zeros((1, Cin), F32)
    else:
        pre_scale = pre_scale.reshape(1, Cin).astype(F32)
        pre_shift = pre_shift.reshape(1, Cin).astype(F32)

    kernel = functools.partial(_conv3x3_kernel, pad=pad, pre_bn_relu=fuse)
    y, s, q = pl.pallas_call(
        kernel,
        out_shape=(jax.ShapeDtypeStruct((N, Cout, Ho * Wo), BF16),
                   jax.ShapeDtypeStruct((N, Cout, 1), F32),
                   jax.ShapeDtypeStruct((N, Cout, 1), F32)),
        grid=(N,),
        in_specs=[
            pl.BlockSpec((1, H, W, Cin), lambda n: (n, 0, 0, 0)),
            pl.BlockSpec((Cout, 9 * Cin), lambda n: (0, 0)),
            pl.BlockSpec((1, Cin), lambda n: (0, 0)),
            pl.BlockSpec((1, Cin), lambda n: (0, 0)),
        ],
        out_specs=(
            pl.BlockSpec((1, Cout, Ho * Wo), lambda n: (n, 0, 0)),
            pl.BlockSpec((1, Cout, 1), lambda n: (n, 0, 0)),
            pl.BlockSpec((1, Cout, 1), lambda n: (n, 0, 0)),
        ),
        scratch_shapes=[pltpu.VMEM((Hp, Wp, Cin), BF16),
                        pltpu.VMEM((Ho * Wo, 9 * Cin), BF16)],
        compiler_params=pltpu.CompilerParams(
            dimension_semantics=("parallel",),      # no cross-step accumulation -> megacore OK
            vmem_limit_bytes=VMEM_LIMIT),
    )(x, w_t, pre_scale, pre_shift)
    return y, s, q


def bn_relu_apply(y, scale, shift):
    """Final BN-apply + ReLU on channel-major (N, C, H*W) activations."""
    N, C, HW = y.shape
    return pl.pallas_call(
        _bn_relu_kernel,
        out_shape=jax.ShapeDtypeStruct((N, C, HW), F32),
        grid=(N,),
        in_specs=[
            pl.BlockSpec((1, C, HW), lambda n: (n, 0, 0)),
            pl.BlockSpec((C, 1), lambda n: (0, 0)),
            pl.BlockSpec((C, 1), lambda n: (0, 0)),
        ],
        out_specs=pl.BlockSpec((1, C, HW), lambda n: (n, 0, 0)),
        compiler_params=pltpu.CompilerParams(
            dimension_semantics=("parallel",),
            vmem_limit_bytes=VMEM_LIMIT),
    )(y, scale.reshape(C, 1).astype(F32), shift.reshape(C, 1).astype(F32))


def _bn_scale_shift(s, q, count, gamma, beta, eps):
    """Fold training-mode BatchNorm (batch stats, biased variance) into scale/shift.

    s, q are per-batch-item partials of shape (N, C, 1); reduce over N here (tiny)."""
    s = jnp.sum(s, axis=0)[:, 0]            # (C,)
    q = jnp.sum(q, axis=0)[:, 0]            # (C,)
    mean = s / count
    var = jnp.maximum(q / count - mean * mean, 0.0)
    # TODO(synk): single-pass E[x^2]-mean^2 can cancel for large-mean/low-variance
    # channels; a shifted / Welford partial reduction would be safer at scale.
    inv = lax.rsqrt(var + eps)
    scale = gamma * inv
    shift = beta - mean * scale
    return scale, shift                      # (C,), (C,)


def double_conv_forward(params, x_nchw, padding2=1, eps=1e-5):
    """DoubleConv forward: (conv3x3 -> BN -> ReLU) x 2, NCHW in / NCHW out."""
    N, Cin, H, W = x_nchw.shape
    x = jnp.transpose(x_nchw, (0, 2, 3, 1)).astype(BF16)       # NCHW -> NHWC, bf16

    # conv1 (padding=1) + fused per-batch BN1 partial statistics.
    y1, s1, q1 = conv3x3_with_bn_stats(x, params["w1"], pad=1)
    Cmid = y1.shape[1]
    cnt1 = float(N * H * W)
    scale1, shift1 = _bn_scale_shift(s1, q1, cnt1, params["g1"], params["b1"], eps)

    # Re-layout y1 (bf16, channel-major) to NHWC for conv2's im2col (cheap XLA transpose).
    y1_nhwc = jnp.transpose(y1.reshape(N, Cmid, H, W), (0, 2, 3, 1))

    # conv2 (padding=padding2) with BN1-apply + ReLU fused into its prologue,
    # plus fused per-batch BN2 partial statistics in its epilogue.
    y2, s2, q2 = conv3x3_with_bn_stats(y1_nhwc, params["w2"], pad=padding2,
                                       pre_scale=scale1, pre_shift=shift1)
    Cout = y2.shape[1]
    Ho2, Wo2 = H + 2 * padding2 - 2, W + 2 * padding2 - 2
    cnt2 = float(N * Ho2 * Wo2)
    scale2, shift2 = _bn_scale_shift(s2, q2, cnt2, params["g2"], params["b2"], eps)

    out = bn_relu_apply(y2, scale2, shift2)                    # (N, Cout, Ho2*Wo2) f32
    return out.reshape(N, Cout, Ho2, Wo2)                      # already NCHW


# ---------------------------------------------------------------------------
# Deterministic synthetic parameters + pure-JAX reference
# ---------------------------------------------------------------------------

def init_double_conv(key, in_channels, out_channels, mid_channels=None):
    if mid_channels is None:
        mid_channels = out_channels
    k1, k2 = jax.random.split(key)
    w1 = jax.random.normal(k1, (3, 3, in_channels, mid_channels), F32) / math.sqrt(9 * in_channels)
    w2 = jax.random.normal(k2, (3, 3, mid_channels, out_channels), F32) / math.sqrt(9 * mid_channels)

    def to_slab(w, cin, cout):
        # (3,3,Cin,Cout) -> (Cout, 9*Cin) bf16, K index = (kh*3+kw)*Cin + ci
        return jnp.transpose(w, (3, 0, 1, 2)).reshape(cout, 9 * cin).astype(BF16)

    params = dict(
        # weight slabs reshaped / cast to bf16 ONCE at init (accuracy/perf trade-off:
        # MXU operands are bf16, accumulation stays f32 inside the kernel)
        w1=to_slab(w1, in_channels, mid_channels),
        w2=to_slab(w2, mid_channels, out_channels),
        g1=jnp.ones((mid_channels,), F32), b1=jnp.zeros((mid_channels,), F32),
        g2=jnp.ones((out_channels,), F32), b2=jnp.zeros((out_channels,), F32),
    )
    ref_weights = dict(w1=w1, w2=w2)   # f32 HWIO copies for the pure-JAX reference only
    return params, ref_weights


def double_conv_reference(ref_w, params, x_nchw, padding2=1, eps=1e-5):
    x = jnp.transpose(x_nchw, (0, 2, 3, 1)).astype(F32)

    def conv(v, w, pad):
        return lax.conv_general_dilated(
            v, w, window_strides=(1, 1), padding=[(pad, pad), (pad, pad)],
            dimension_numbers=("NHWC", "HWIO", "NHWC"))

    def bn_relu(v, g, b):
        mean = jnp.mean(v, axis=(0, 1, 2), keepdims=True)
        var = jnp.mean(jnp.square(v - mean), axis=(0, 1, 2), keepdims=True)
        return jnp.maximum((v - mean) * lax.rsqrt(var + eps) * g + b, 0.0)

    v = bn_relu(conv(x, ref_w["w1"], 1), params["g1"], params["b1"])
    v = bn_relu(conv(v, ref_w["w2"], padding2), params["g2"], params["b2"])
    return jnp.transpose(v, (0, 3, 1, 2))


if __name__ == "__main__":
    # TODO(synk): BatchNorm running_mean/var buffer updates (training side effect) are
    # not modeled; the forward output uses batch statistics, matching train-mode BN.
    key = jax.random.PRNGKey(0)
    kx, kp = jax.random.split(key)
    N, CIN, H, W = 2, 4, 16, 16
    COUT = 8
    x = jax.random.normal(kx, (N, CIN, H, W), F32)
    params, ref_w = init_double_conv(kp, CIN, COUT)

    out = jax.jit(double_conv_forward)(params, x)
    out = jax.block_until_ready(out)

    assert out.shape == (N, COUT, H, W), out.shape
    assert bool(jnp.all(jnp.isfinite(out)))

    ref = double_conv_reference(ref_w, params, x)
    max_err = float(jnp.max(jnp.abs(out - ref)))
    assert max_err < 0.1, f"max abs err vs f32 reference: {max_err}"

    print("KERNEL_OK")
</pallas_src>

<mosaic_0001>
module attributes {stable_mosaic.version = 11 : i64} {
  func.func @_conv3x3_kernel(%arg0: i32, %arg1: memref<1x16x16x4xbf16, #tpu.memory_space<vmem>>, %arg2: memref<8x36xbf16, #tpu.memory_space<vmem>>, %arg3: memref<1x4xf32, #tpu.memory_space<vmem>>, %arg4: memref<1x4xf32, #tpu.memory_space<vmem>>, %arg5: memref<1x8x256xbf16, #tpu.memory_space<vmem>>, %arg6: memref<1x8x1xf32, #tpu.memory_space<vmem>>, %arg7: memref<1x8x1xf32, #tpu.memory_space<vmem>>, %arg8: memref<18x18x4xbf16, #tpu.memory_space<vmem>>, %arg9: memref<256x36xbf16, #tpu.memory_space<vmem>>) attributes {dimension_semantics = [#tpu.dimension_semantics<parallel>], iteration_bounds = array<i64: 2>, scalar_prefetch = 0 : i64, scratch_operands = 2 : i64, tpu.core_type = #tpu.core_type<tc>, window_params = [{transform_indices = @transform_0, window_bounds = array<i64: 1, 16, 16, 4>}, {pipeline_mode = #tpu.pipeline_mode<synchronous>, transform_indices = @transform_1, window_bounds = array<i64: 8, 36>}, {pipeline_mode = #tpu.pipeline_mode<synchronous>, transform_indices = @transform_2, window_bounds = array<i64: 1, 4>}, {pipeline_mode = #tpu.pipeline_mode<synchronous>, transform_indices = @transform_3, window_bounds = array<i64: 1, 4>}, {transform_indices = @transform_4, window_bounds = array<i64: 1, 8, 256>}, {transform_indices = @transform_5, window_bounds = array<i64: 1, 8, 1>}, {transform_indices = @transform_6, window_bounds = array<i64: 1, 8, 1>}]} {
    %c0 = arith.constant 0 : index
    %c0_0 = arith.constant 0 : index
    %c0_1 = arith.constant 0 : index
    %c0_2 = arith.constant 0 : index
    %0 = vector.load %arg1[%c0, %c0_0, %c0_1, %c0_2] : memref<1x16x16x4xbf16, #tpu.memory_space<vmem>>, vector<1x16x16x4xbf16>
    %1 = vector.shape_cast %0 : vector<1x16x16x4xbf16> to vector<16x16x4xbf16>
    %cst = arith.constant 0.000000e+00 : bf16
    %2 = vector.broadcast %cst : bf16 to vector<1x18x4xbf16>
    %cst_3 = arith.constant 0.000000e+00 : bf16
    %3 = vector.broadcast %cst_3 : bf16 to vector<18x1x4xbf16>
    %c0_4 = arith.constant 0 : index
    %c0_5 = arith.constant 0 : index
    %c0_6 = arith.constant 0 : index
    %4 = vector.load %arg8[%c0_4, %c0_5, %c0_6] : memref<18x18x4xbf16, #tpu.memory_space<vmem>>, vector<1x18x4xbf16>
    tpu.vector_store %arg8[%c0_4, %c0_5, %c0_6], %2 {strides = array<i32>} : memref<18x18x4xbf16, #tpu.memory_space<vmem>>, vector<1x18x4xbf16>,
    %c17 = arith.constant 17 : index
    %c0_7 = arith.constant 0 : index
    %c0_8 = arith.constant 0 : index
    %5 = vector.load %arg8[%c17, %c0_7, %c0_8] : memref<18x18x4xbf16, #tpu.memory_space<vmem>>, vector<1x18x4xbf16>
    tpu.vector_store %arg8[%c17, %c0_7, %c0_8], %2 {strides = array<i32>} : memref<18x18x4xbf16, #tpu.memory_space<vmem>>, vector<1x18x4xbf16>,
    %c0_9 = arith.constant 0 : index
    %c0_10 = arith.constant 0 : index
    %c0_11 = arith.constant 0 : index
    %6 = vector.load %arg8[%c0_9, %c0_10, %c0_11] : memref<18x18x4xbf16, #tpu.memory_space<vmem>>, vector<18x1x4xbf16>
    tpu.vector_store %arg8[%c0_9, %c0_10, %c0_11], %3 {strides = array<i32>} : memref<18x18x4xbf16, #tpu.memory_space<vmem>>, vector<18x1x4xbf16>,
    %c0_12 = arith.constant 0 : index
    %c17_13 = arith.constant 17 : index
    %c0_14 = arith.constant 0 : index
    %7 = vector.load %arg8[%c0_12, %c17_13, %c0_14] : memref<18x18x4xbf16, #tpu.memory_space<vmem>>, vector<18x1x4xbf16>
    tpu.vector_store %arg8[%c0_12, %c17_13, %c0_14], %3 {strides = array<i32>} : memref<18x18x4xbf16, #tpu.memory_space<vmem>>, vector<18x1x4xbf16>,
    %c1 = arith.constant 1 : index
    %c1_15 = arith.constant 1 : index
    %c0_16 = arith.constant 0 : index
    %8 = vector.load %arg8[%c1, %c1_15, %c0_16] : memref<18x18x4xbf16, #tpu.memory_space<vmem>>, vector<16x16x4xbf16>
    tpu.vector_store %arg8[%c1, %c1_15, %c0_16], %1 {strides = array<i32>} : memref<18x18x4xbf16, #tpu.memory_space<vmem>>, vector<16x16x4xbf16>,
    %c0_17 = arith.constant 0 : index
    %c0_18 = arith.constant 0 : index
    %c0_19 = arith.constant 0 : index
    %9 = vector.load %arg8[%c0_17, %c0_18, %c0_19] : memref<18x18x4xbf16, #tpu.memory_space<vmem>>, vector<16x16x4xbf16>
    %10 = vector.shape_cast %9 : vector<16x16x4xbf16> to vector<256x4xbf16>
    %c0_20 = arith.constant 0 : index
    %c0_21 = arith.constant 0 : index
    %11 = vector.load %arg9[%c0_20, %c0_21] : memref<256x36xbf16, #tpu.memory_space<vmem>>, vector<256x4xbf16>
    tpu.vector_store %arg9[%c0_20, %c0_21], %10 {strides = array<i32>} : memref<256x36xbf16, #tpu.memory_space<vmem>>, vector<256x4xbf16>,
    %c0_22 = arith.constant 0 : index
    %c1_23 = arith.constant 1 : index
    %c0_24 = arith.constant 0 : index
    %12 = vector.load %arg8[%c0_22, %c1_23, %c0_24] : memref<18x18x4xbf16, #tpu.memory_space<vmem>>, vector<16x16x4xbf16>
    %13 = vector.shape_cast %12 : vector<16x16x4xbf16> to vector<256x4xbf16>
    %c0_25 = arith.constant 0 : index
    %c4 = arith.constant 4 : index
    %14 = vector.load %arg9[%c0_25, %c4] : memref<256x36xbf16, #tpu.memory_space<vmem>>, vector<256x4xbf16>
    tpu.vector_store %arg9[%c0_25, %c4], %13 {strides = array<i32>} : memref<256x36xbf16, #tpu.memory_space<vmem>>, vector<256x4xbf16>,
    %c0_26 = arith.constant 0 : index
    %c2 = arith.constant 2 : index
    %c0_27 = arith.constant 0 : index
    %15 = vector.load %arg8[%c0_26, %c2, %c0_27] : memref<18x18x4xbf16, #tpu.memory_space<vmem>>, vector<16x16x4xbf16>
    %16 = vector.shape_cast %15 : vector<16x16x4xbf16> to vector<256x4xbf16>
    %c0_28 = arith.constant 0 : index
    %c8 = arith.constant 8 : index
    %17 = vector.load %arg9[%c0_28, %c8] : memref<256x36xbf16, #tpu.memory_space<vmem>>, vector<256x4xbf16>
    tpu.vector_store %arg9[%c0_28, %c8], %16 {strides = array<i32>} : memref<256x36xbf16, #tpu.memory_space<vmem>>, vector<256x4xbf16>,
    %c1_29 = arith.constant 1 : index
    %c0_30 = arith.constant 0 : index
    %c0_31 = arith.constant 0 : index
    %18 = vector.load %arg8[%c1_29, %c0_30, %c0_31] : memref<18x18x4xbf16, #tpu.memory_space<vmem>>, vector<16x16x4xbf16>
    %19 = vector.shape_cast %18 : vector<16x16x4xbf16> to vector<256x4xbf16>
    %c0_32 = arith.constant 0 : index
    %c12 = arith.constant 12 : index
    %20 = vector.load %arg9[%c0_32, %c12] : memref<256x36xbf16, #tpu.memory_space<vmem>>, vector<256x4xbf16>
    tpu.vector_store %arg9[%c0_32, %c12], %19 {strides = array<i32>} : memref<256x36xbf16, #tpu.memory_space<vmem>>, vector<256x4xbf16>,
    %c1_33 = arith.constant 1 : index
    %c1_34 = arith.constant 1 : index
    %c0_35 = arith.constant 0 : index
    %21 = vector.load %arg8[%c1_33, %c1_34, %c0_35] : memref<18x18x4xbf16, #tpu.memory_space<vmem>>, vector<16x16x4xbf16>
    %22 = vector.shape_cast %21 : vector<16x16x4xbf16> to vector<256x4xbf16>
    %c0_36 = arith.constant 0 : index
    %c16 = arith.constant 16 : index
    %23 = vector.load %arg9[%c0_36, %c16] : memref<256x36xbf16, #tpu.memory_space<vmem>>, vector<256x4xbf16>
    tpu.vector_store %arg9[%c0_36, %c16], %22 {strides = array<i32>} : memref<256x36xbf16, #tpu.memory_space<vmem>>, vector<256x4xbf16>,
    %c1_37 = arith.constant 1 : index
    %c2_38 = arith.constant 2 : index
    %c0_39 = arith.constant 0 : index
    %24 = vector.load %arg8[%c1_37, %c2_38, %c0_39] : memref<18x18x4xbf16, #tpu.memory_space<vmem>>, vector<16x16x4xbf16>
    %25 = vector.shape_cast %24 : vector<16x16x4xbf16> to vector<256x4xbf16>
    %c0_40 = arith.constant 0 : index
    %c20 = arith.constant 20 : index
    %26 = vector.load %arg9[%c0_40, %c20] : memref<256x36xbf16, #tpu.memory_space<vmem>>, vector<256x4xbf16>
    tpu.vector_store %arg9[%c0_40, %c20], %25 {strides = array<i32>} : memref<256x36xbf16, #tpu.memory_space<vmem>>, vector<256x4xbf16>,
    %c2_41 = arith.constant 2 : index
    %c0_42 = arith.constant 0 : index
    %c0_43 = arith.constant 0 : index
    %27 = vector.load %arg8[%c2_41, %c0_42, %c0_43] : memref<18x18x4xbf16, #tpu.memory_space<vmem>>, vector<16x16x4xbf16>
    %28 = vector.shape_cast %27 : vector<16x16x4xbf16> to vector<256x4xbf16>
    %c0_44 = arith.constant 0 : index
    %c24 = arith.constant 24 : index
    %29 = vector.load %arg9[%c0_44, %c24] : memref<256x36xbf16, #tpu.memory_space<vmem>>, vector<256x4xbf16>
    tpu.vector_store %arg9[%c0_44, %c24], %28 {strides = array<i32>} : memref<256x36xbf16, #tpu.memory_space<vmem>>, vector<256x4xbf16>,
    %c2_45 = arith.constant 2 : index
    %c1_46 = arith.constant 1 : index
    %c0_47 = arith.constant 0 : index
    %30 = vector.load %arg8[%c2_45, %c1_46, %c0_47] : memref<18x18x4xbf16, #tpu.memory_space<vmem>>, vector<16x16x4xbf16>
    %31 = vector.shape_cast %30 : vector<16x16x4xbf16> to vector<256x4xbf16>
    %c0_48 = arith.constant 0 : index
    %c28 = arith.constant 28 : index
    %32 = vector.load %arg9[%c0_48, %c28] : memref<256x36xbf16, #tpu.memory_space<vmem>>, vector<256x4xbf16>
    tpu.vector_store %arg9[%c0_48, %c28], %31 {strides = array<i32>} : memref<256x36xbf16, #tpu.memory_space<vmem>>, vector<256x4xbf16>,
    %c2_49 = arith.constant 2 : index
    %c2_50 = arith.constant 2 : index
    %c0_51 = arith.constant 0 : index
    %33 = vector.load %arg8[%c2_49, %c2_50, %c0_51] : memref<18x18x4xbf16, #tpu.memory_space<vmem>>, vector<16x16x4xbf16>
    %34 = vector.shape_cast %33 : vector<16x16x4xbf16> to vector<256x4xbf16>
    %c0_52 = arith.constant 0 : index
    %c32 = arith.constant 32 : index
    %35 = vector.load %arg9[%c0_52, %c32] : memref<256x36xbf16, #tpu.memory_space<vmem>>, vector<256x4xbf16>
    tpu.vector_store %arg9[%c0_52, %c32], %34 {strides = array<i32>} : memref<256x36xbf16, #tpu.memory_space<vmem>>, vector<256x4xbf16>,
    %c0_53 = arith.constant 0 : index
    %c0_54 = arith.constant 0 : index
    %36 = vector.load %arg2[%c0_53, %c0_54] : memref<8x36xbf16, #tpu.memory_space<vmem>>, vector<8x36xbf16>
    %c0_55 = arith.constant 0 : index
    %c0_56 = arith.constant 0 : index
    %37 = vector.load %arg9[%c0_55, %c0_56] : memref<256x36xbf16, #tpu.memory_space<vmem>>, vector<256x36xbf16>
    %cst_57 = arith.constant dense<0.000000e+00> : vector<8x256xf32>
    %38 = tpu.matmul %36, %37, %cst_57 {dimension_numbers = #tpu.dot_dimension_numbers<[1], [1], [0], [0], [0, 0, 1, 0], [], []>} : vector<8x36xbf16>, vector<256x36xbf16>, vector<8x256xf32> -> vector<8x256xf32>
    %39 = arith.truncf %38 : vector<8x256xf32> to vector<8x256xbf16>
    %c0_58 = arith.constant 0 : index
    %c0_59 = arith.constant 0 : index
    %c0_60 = arith.constant 0 : index
    %40 = vector.load %arg5[%c0_58, %c0_59, %c0_60] : memref<1x8x256xbf16, #tpu.memory_space<vmem>>, vector<1x8x256xbf16>
    %41 = vector.shape_cast %40 : vector<1x8x256xbf16> to vector<8x256xbf16>
    %42 = vector.shape_cast %39 : vector<8x256xbf16> to vector<1x8x256xbf16>
    tpu.vector_store %arg5[%c0_58, %c0_59, %c0_60], %42 {strides = array<i32>} : memref<1x8x256xbf16, #tpu.memory_space<vmem>>, vector<1x8x256xbf16>,
    %cst_61 = arith.constant dense<0.000000e+00> : vector<8xf32>
    %43 = vector.multi_reduction <add>, %38, %cst_61 [1] : vector<8x256xf32> to vector<8xf32>
    %44 = vector.shape_cast %43 : vector<8xf32> to vector<8x1xf32>
    %c0_62 = arith.constant 0 : index
    %c0_63 = arith.constant 0 : index
    %c0_64 = arith.constant 0 : index
    %45 = vector.load %arg6[%c0_62, %c0_63, %c0_64] : memref<1x8x1xf32, #tpu.memory_space<vmem>>, vector<1x8x1xf32>
    %46 = vector.shape_cast %45 : vector<1x8x1xf32> to vector<8x1xf32>
    %47 = vector.shape_cast %44 : vector<8x1xf32> to vector<1x8x1xf32>
    tpu.vector_store %arg6[%c0_62, %c0_63, %c0_64], %47 {strides = array<i32>} : memref<1x8x1xf32, #tpu.memory_space<vmem>>, vector<1x8x1xf32>,
    %48 = arith.mulf %38, %38 : vector<8x256xf32>
    %cst_65 = arith.constant dense<0.000000e+00> : vector<8xf32>
    %49 = vector.multi_reduction <add>, %48, %cst_65 [1] : vector<8x256xf32> to vector<8xf32>
    %50 = vector.shape_cast %49 : vector<8xf32> to vector<8x1xf32>
    %c0_66 = arith.constant 0 : index
    %c0_67 = arith.constant 0 : index
    %c0_68 = arith.constant 0 : index
    %51 = vector.load %arg7[%c0_66, %c0_67, %c0_68] : memref<1x8x1xf32, #tpu.memory_space<vmem>>, vector<1x8x1xf32>
    %52 = vector.shape_cast %51 : vector<1x8x1xf32> to vector<8x1xf32>
    %53 = vector.shape_cast %50 : vector<8x1xf32> to vector<1x8x1xf32>
    tpu.vector_store %arg7[%c0_66, %c0_67, %c0_68], %53 {strides = array<i32>} : memref<1x8x1xf32, #tpu.memory_space<vmem>>, vector<1x8x1xf32>,
    return
  }
  func.func @transform_0(%arg0: i32) -> (i32, i32, i32, i32) {
    %c0_i32 = arith.constant 0 : i32
    %c0_i32_0 = arith.constant 0 : i32
    %c0_i32_1 = arith.constant 0 : i32
    %c0_i32_2 = arith.constant 0 : i32
    return %arg0, %c0_i32, %c0_i32_0, %c0_i32_1 : i32, i32, i32, i32
  }
  func.func @transform_1(%arg0: i32) -> (i32, i32) {
    %c0_i32 = arith.constant 0 : i32
    %c0_i32_0 = arith.constant 0 : i32
    %c0_i32_1 = arith.constant 0 : i32
    return %c0_i32, %c0_i32_0 : i32, i32
  }
  func.func @transform_2(%arg0: i32) -> (i32, i32) {
    %c0_i32 = arith.constant 0 : i32
    %c0_i32_0 = arith.constant 0 : i32
    %c0_i32_1 = arith.constant 0 : i32
    return %c0_i32, %c0_i32_0 : i32, i32
  }
  func.func @transform_3(%arg0: i32) -> (i32, i32) {
    %c0_i32 = arith.constant 0 : i32
    %c0_i32_0 = arith.constant 0 : i32
    %c0_i32_1 = arith.constant 0 : i32
    return %c0_i32, %c0_i32_0 : i32, i32
  }
  func.func @transform_4(%arg0: i32) -> (i32, i32, i32) {
    %c0_i32 = arith.constant 0 : i32
    %c0_i32_0 = arith.constant 0 : i32
    %c0_i32_1 = arith.constant 0 : i32
    return %arg0, %c0_i32, %c0_i32_0 : i32, i32, i32
  }
  func.func @transform_5(%arg0: i32) -> (i32, i32, i32) {
    %c0_i32 = arith.constant 0 : i32
    %c0_i32_0 = arith.constant 0 : i32
    %c0_i32_1 = arith.constant 0 : i32
    return %arg0, %c0_i32, %c0_i32_0 : i32, i32, i32
  }
  func.func @transform_6(%arg0: i32) -> (i32, i32, i32) {
    %c0_i32 = arith.constant 0 : i32
    %c0_i32_0 = arith.constant 0 : i32
    %c0_i32_1 = arith.constant 0 : i32
    return %arg0, %c0_i32, %c0_i32_0 : i32, i32, i32
  }
}

module attributes {stable_mosaic.version = 11 : i64} {
  func.func @_conv3x3_kernel(%arg0: i32, %arg1: memref<1x16x16x8xbf16, #tpu.memory_space<vmem>>, %arg2: memref<8x72xbf16, #tpu.memory_space<vmem>>, %arg3: memref<1x8xf32, #tpu.memory_space<vmem>>, %arg4: memref<1x8xf32, #tpu.memory_space<vmem>>, %arg5: memref<1x8x256xbf16, #tpu.memory_space<vmem>>, %arg6: memref<1x8x1xf32, #tpu.memory_space<vmem>>, %arg7: memref<1x8x1xf32, #tpu.memory_space<vmem>>, %arg8: memref<18x18x8xbf16, #tpu.memory_space<vmem>>, %arg9: memref<256x72xbf16, #tpu.memory_space<vmem>>) attributes {dimension_semantics = [#tpu.dimension_semantics<parallel>], iteration_bounds = array<i64: 2>, scalar_prefetch = 0 : i64, scratch_operands = 2 : i64, tpu.core_type = #tpu.core_type<tc>, window_params = [{transform_indices = @transform_0, window_bounds = array<i64: 1, 16, 16, 8>}, {pipeline_mode = #tpu.pipeline_mode<synchronous>, transform_indices = @transform_1, window_bounds = array<i64: 8, 72>}, {pipeline_mode = #tpu.pipeline_mode<synchronous>, transform_indices = @transform_2, window_bounds = array<i64: 1, 8>}, {pipeline_mode = #tpu.pipeline_mode<synchronous>, transform_indices = @transform_3, window_bounds = array<i64: 1, 8>}, {transform_indices = @transform_4, window_bounds = array<i64: 1, 8, 256>}, {transform_indices = @transform_5, window_bounds = array<i64: 1, 8, 1>}, {transform_indices = @transform_6, window_bounds = array<i64: 1, 8, 1>}]} {
    %c0 = arith.constant 0 : index
    %c0_0 = arith.constant 0 : index
    %c0_1 = arith.constant 0 : index
    %c0_2 = arith.constant 0 : index
    %0 = vector.load %arg1[%c0, %c0_0, %c0_1, %c0_2] : memref<1x16x16x8xbf16, #tpu.memory_space<vmem>>, vector<1x16x16x8xbf16>
    %1 = vector.shape_cast %0 : vector<1x16x16x8xbf16> to vector<16x16x8xbf16>
    %c0_3 = arith.constant 0 : index
    %c0_4 = arith.constant 0 : index
    %2 = vector.load %arg3[%c0_3, %c0_4] : memref<1x8xf32, #tpu.memory_space<vmem>>, vector<1x8xf32>
    %3 = vector.shape_cast %2 : vector<1x8xf32> to vector<1x1x8xf32>
    %c0_5 = arith.constant 0 : index
    %c0_6 = arith.constant 0 : index
    %4 = vector.load %arg4[%c0_5, %c0_6] : memref<1x8xf32, #tpu.memory_space<vmem>>, vector<1x8xf32>
    %5 = vector.shape_cast %4 : vector<1x8xf32> to vector<1x1x8xf32>
    %6 = arith.extf %1 : vector<16x16x8xbf16> to vector<16x16x8xf32>
    %7 = vector.broadcast %3 : vector<1x1x8xf32> to vector<16x16x8xf32>
    %8 = arith.mulf %6, %7 : vector<16x16x8xf32>
    %9 = vector.broadcast %5 : vector<1x1x8xf32> to vector<16x16x8xf32>
    %10 = arith.addf %8, %9 : vector<16x16x8xf32>
    %cst = arith.constant 0.000000e+00 : f32
    %11 = vector.broadcast %cst : f32 to vector<16x16x8xf32>
    %12 = arith.maximumf %10, %11 : vector<16x16x8xf32>
    %13 = arith.truncf %12 : vector<16x16x8xf32> to vector<16x16x8xbf16>
    %cst_7 = arith.constant 0.000000e+00 : bf16
    %14 = vector.broadcast %cst_7 : bf16 to vector<1x18x8xbf16>
    %cst_8 = arith.constant 0.000000e+00 : bf16
    %15 = vector.broadcast %cst_8 : bf16 to vector<18x1x8xbf16>
    %c0_9 = arith.constant 0 : index
    %c0_10 = arith.constant 0 : index
    %c0_11 = arith.constant 0 : index
    %16 = vector.load %arg8[%c0_9, %c0_10, %c0_11] : memref<18x18x8xbf16, #tpu.memory_space<vmem>>, vector<1x18x8xbf16>
    tpu.vector_store %arg8[%c0_9, %c0_10, %c0_11], %14 {strides = array<i32>} : memref<18x18x8xbf16, #tpu.memory_space<vmem>>, vector<1x18x8xbf16>,
    %c17 = arith.constant 17 : index
    %c0_12 = arith.constant 0 : index
    %c0_13 = arith.constant 0 : index
    %17 = vector.load %arg8[%c17, %c0_12, %c0_13] : memref<18x18x8xbf16, #tpu.memory_space<vmem>>, vector<1x18x8xbf16>
    tpu.vector_store %arg8[%c17, %c0_12, %c0_13], %14 {strides = array<i32>} : memref<18x18x8xbf16, #tpu.memory_space<vmem>>, vector<1x18x8xbf16>,
    %c0_14 = arith.constant 0 : index
    %c0_15 = arith.constant 0 : index
    %c0_16 = arith.constant 0 : index
    %18 = vector.load %arg8[%c0_14, %c0_15, %c0_16] : memref<18x18x8xbf16, #tpu.memory_space<vmem>>, vector<18x1x8xbf16>
    tpu.vector_store %arg8[%c0_14, %c0_15, %c0_16], %15 {strides = array<i32>} : memref<18x18x8xbf16, #tpu.memory_space<vmem>>, vector<18x1x8xbf16>,
    %c0_17 = arith.constant 0 : index
    %c17_18 = arith.constant 17 : index
    %c0_19 = arith.constant 0 : index
    %19 = vector.load %arg8[%c0_17, %c17_18, %c0_19] : memref<18x18x8xbf16, #tpu.memory_space<vmem>>, vector<18x1x8xbf16>
    tpu.vector_store %arg8[%c0_17, %c17_18, %c0_19], %15 {strides = array<i32>} : memref<18x18x8xbf16, #tpu.memory_space<vmem>>, vector<18x1x8xbf16>,
    %c1 = arith.constant 1 : index
    %c1_20 = arith.constant 1 : index
    %c0_21 = arith.constant 0 : index
    %20 = vector.load %arg8[%c1, %c1_20, %c0_21] : memref<18x18x8xbf16, #tpu.memory_space<vmem>>, vector<16x16x8xbf16>
    tpu.vector_store %arg8[%c1, %c1_20, %c0_21], %13 {strides = array<i32>} : memref<18x18x8xbf16, #tpu.memory_space<vmem>>, vector<16x16x8xbf16>,
    %c0_22 = arith.constant 0 : index
    %c0_23 = arith.constant 0 : index
    %c0_24 = arith.constant 0 : index
    %21 = vector.load %arg8[%c0_22, %c0_23, %c0_24] : memref<18x18x8xbf16, #tpu.memory_space<vmem>>, vector<16x16x8xbf16>
    %22 = vector.shape_cast %21 : vector<16x16x8xbf16> to vector<256x8xbf16>
    %c0_25 = arith.constant 0 : index
    %c0_26 = arith.constant 0 : index
    %23 = vector.load %arg9[%c0_25, %c0_26] : memref<256x72xbf16, #tpu.memory_space<vmem>>, vector<256x8xbf16>
    tpu.vector_store %arg9[%c0_25, %c0_26], %22 {strides = array<i32>} : memref<256x72xbf16, #tpu.memory_space<vmem>>, vector<256x8xbf16>,
    %c0_27 = arith.constant 0 : index
    %c1_28 = arith.constant 1 : index
    %c0_29 = arith.constant 0 : index
    %24 = vector.load %arg8[%c0_27, %c1_28, %c0_29] : memref<18x18x8xbf16, #tpu.memory_space<vmem>>, vector<16x16x8xbf16>
    %25 = vector.shape_cast %24 : vector<16x16x8xbf16> to vector<256x8xbf16>
    %c0_30 = arith.constant 0 : index
    %c8 = arith.constant 8 : index
    %26 = vector.load %arg9[%c0_30, %c8] : memref<256x72xbf16, #tpu.memory_space<vmem>>, vector<256x8xbf16>
    tpu.vector_store %arg9[%c0_30, %c8], %25 {strides = array<i32>} : memref<256x72xbf16, #tpu.memory_space<vmem>>, vector<256x8xbf16>,
    %c0_31 = arith.constant 0 : index
    %c2 = arith.constant 2 : index
    %c0_32 = arith.constant 0 : index
    %27 = vector.load %arg8[%c0_31, %c2, %c0_32] : memref<18x18x8xbf16, #tpu.memory_space<vmem>>, vector<16x16x8xbf16>
    %28 = vector.shape_cast %27 : vector<16x16x8xbf16> to vector<256x8xbf16>
    %c0_33 = arith.constant 0 : index
    %c16 = arith.constant 16 : index
    %29 = vector.load %arg9[%c0_33, %c16] : memref<256x72xbf16, #tpu.memory_space<vmem>>, vector<256x8xbf16>
    tpu.vector_store %arg9[%c0_33, %c16], %28 {strides = array<i32>} : memref<256x72xbf16, #tpu.memory_space<vmem>>, vector<256x8xbf16>,
    %c1_34 = arith.constant 1 : index
    %c0_35 = arith.constant 0 : index
    %c0_36 = arith.constant 0 : index
    %30 = vector.load %arg8[%c1_34, %c0_35, %c0_36] : memref<18x18x8xbf16, #tpu.memory_space<vmem>>, vector<16x16x8xbf16>
    %31 = vector.shape_cast %30 : vector<16x16x8xbf16> to vector<256x8xbf16>
    %c0_37 = arith.constant 0 : index
    %c24 = arith.constant 24 : index
    %32 = vector.load %arg9[%c0_37, %c24] : memref<256x72xbf16, #tpu.memory_space<vmem>>, vector<256x8xbf16>
    tpu.vector_store %arg9[%c0_37, %c24], %31 {strides = array<i32>} : memref<256x72xbf16, #tpu.memory_space<vmem>>, vector<256x8xbf16>,
    %c1_38 = arith.constant 1 : index
    %c1_39 = arith.constant 1 : index
    %c0_40 = arith.constant 0 : index
    %33 = vector.load %arg8[%c1_38, %c1_39, %c0_40] : memref<18x18x8xbf16, #tpu.memory_space<vmem>>, vector<16x16x8xbf16>
    %34 = vector.shape_cast %33 : vector<16x16x8xbf16> to vector<256x8xbf16>
    %c0_41 = arith.constant 0 : index
    %c32 = arith.constant 32 : index
    %35 = vector.load %arg9[%c0_41, %c32] : memref<256x72xbf16, #tpu.memory_space<vmem>>, vector<256x8xbf16>
    tpu.vector_store %arg9[%c0_41, %c32], %34 {strides = array<i32>} : memref<256x72xbf16, #tpu.memory_space<vmem>>, vector<256x8xbf16>,
    %c1_42 = arith.constant 1 : index
    %c2_43 = arith.constant 2 : index
    %c0_44 = arith.constant 0 : index
    %36 = vector.load %arg8[%c1_42, %c2_43, %c0_44] : memref<18x18x8xbf16, #tpu.memory_space<vmem>>, vector<16x16x8xbf16>
    %37 = vector.shape_cast %36 : vector<16x16x8xbf16> to vector<256x8xbf16>
    %c0_45 = arith.constant 0 : index
    %c40 = arith.constant 40 : index
    %38 = vector.load %arg9[%c0_45, %c40] : memref<256x72xbf16, #tpu.memory_space<vmem>>, vector<256x8xbf16>
    tpu.vector_store %arg9[%c0_45, %c40], %37 {strides = array<i32>} : memref<256x72xbf16, #tpu.memory_space<vmem>>, vector<256x8xbf16>,
    %c2_46 = arith.constant 2 : index
    %c0_47 = arith.constant 0 : index
    %c0_48 = arith.constant 0 : index
    %39 = vector.load %arg8[%c2_46, %c0_47, %c0_48] : memref<18x18x8xbf16, #tpu.memory_space<vmem>>, vector<16x16x8xbf16>
    %40 = vector.shape_cast %39 : vector<16x16x8xbf16> to vector<256x8xbf16>
    %c0_49 = arith.constant 0 : index
    %c48 = arith.constant 48 : index
    %41 = vector.load %arg9[%c0_49, %c48] : memref<256x72xbf16, #tpu.memory_space<vmem>>, vector<256x8xbf16>
    tpu.vector_store %arg9[%c0_49, %c48], %40 {strides = array<i32>} : memref<256x72xbf16, #tpu.memory_space<vmem>>, vector<256x8xbf16>,
    %c2_50 = arith.constant 2 : index
    %c1_51 = arith.constant 1 : index
    %c0_52 = arith.constant 0 : index
    %42 = vector.load %arg8[%c2_50, %c1_51, %c0_52] : memref<18x18x8xbf16, #tpu.memory_space<vmem>>, vector<16x16x8xbf16>
    %43 = vector.shape_cast %42 : vector<16x16x8xbf16> to vector<256x8xbf16>
    %c0_53 = arith.constant 0 : index
    %c56 = arith.constant 56 : index
    %44 = vector.load %arg9[%c0_53, %c56] : memref<256x72xbf16, #tpu.memory_space<vmem>>, vector<256x8xbf16>
    tpu.vector_store %arg9[%c0_53, %c56], %43 {strides = array<i32>} : memref<256x72xbf16, #tpu.memory_space<vmem>>, vector<256x8xbf16>,
    %c2_54 = arith.constant 2 : index
    %c2_55 = arith.constant 2 : index
    %c0_56 = arith.constant 0 : index
    %45 = vector.load %arg8[%c2_54, %c2_55, %c0_56] : memref<18x18x8xbf16, #tpu.memory_space<vmem>>, vector<16x16x8xbf16>
    %46 = vector.shape_cast %45 : vector<16x16x8xbf16> to vector<256x8xbf16>
    %c0_57 = arith.constant 0 : index
    %c64 = arith.constant 64 : index
    %47 = vector.load %arg9[%c0_57, %c64] : memref<256x72xbf16, #tpu.memory_space<vmem>>, vector<256x8xbf16>
    tpu.vector_store %arg9[%c0_57, %c64], %46 {strides = array<i32>} : memref<256x72xbf16, #tpu.memory_space<vmem>>, vector<256x8xbf16>,
    %c0_58 = arith.constant 0 : index
    %c0_59 = arith.constant 0 : index
    %48 = vector.load %arg2[%c0_58, %c0_59] : memref<8x72xbf16, #tpu.memory_space<vmem>>, vector<8x72xbf16>
    %c0_60 = arith.constant 0 : index
    %c0_61 = arith.constant 0 : index
    %49 = vector.load %arg9[%c0_60, %c0_61] : memref<256x72xbf16, #tpu.memory_space<vmem>>, vector<256x72xbf16>
    %cst_62 = arith.constant dense<0.000000e+00> : vector<8x256xf32>
    %50 = tpu.matmul %48, %49, %cst_62 {dimension_numbers = #tpu.dot_dimension_numbers<[1], [1], [0], [0], [0, 0, 1, 0], [], []>} : vector<8x72xbf16>, vector<256x72xbf16>, vector<8x256xf32> -> vector<8x256xf32>
    %51 = arith.truncf %50 : vector<8x256xf32> to vector<8x256xbf16>
    %c0_63 = arith.constant 0 : index
    %c0_64 = arith.constant 0 : index
    %c0_65 = arith.constant 0 : index
    %52 = vector.load %arg5[%c0_63, %c0_64, %c0_65] : memref<1x8x256xbf16, #tpu.memory_space<vmem>>, vector<1x8x256xbf16>
    %53 = vector.shape_cast %52 : vector<1x8x256xbf16> to vector<8x256xbf16>
    %54 = vector.shape_cast %51 : vector<8x256xbf16> to vector<1x8x256xbf16>
    tpu.vector_store %arg5[%c0_63, %c0_64, %c0_65], %54 {strides = array<i32>} : memref<1x8x256xbf16, #tpu.memory_space<vmem>>, vector<1x8x256xbf16>,
    %cst_66 = arith.constant dense<0.000000e+00> : vector<8xf32>
    %55 = vector.multi_reduction <add>, %50, %cst_66 [1] : vector<8x256xf32> to vector<8xf32>
    %56 = vector.shape_cast %55 : vector<8xf32> to vector<8x1xf32>
    %c0_67 = arith.constant 0 : index
    %c0_68 = arith.constant 0 : index
    %c0_69 = arith.constant 0 : index
    %57 = vector.load %arg6[%c0_67, %c0_68, %c0_69] : memref<1x8x1xf32, #tpu.memory_space<vmem>>, vector<1x8x1xf32>
    %58 = vector.shape_cast %57 : vector<1x8x1xf32> to vector<8x1xf32>
    %59 = vector.shape_cast %56 : vector<8x1xf32> to vector<1x8x1xf32>
    tpu.vector_store %arg6[%c0_67, %c0_68, %c0_69], %59 {strides = array<i32>} : memref<1x8x1xf32, #tpu.memory_space<vmem>>, vector<1x8x1xf32>,
    %60 = arith.mulf %50, %50 : vector<8x256xf32>
    %cst_70 = arith.constant dense<0.000000e+00> : vector<8xf32>
    %61 = vector.multi_reduction <add>, %60, %cst_70 [1] : vector<8x256xf32> to vector<8xf32>
    %62 = vector.shape_cast %61 : vector<8xf32> to vector<8x1xf32>
    %c0_71 = arith.constant 0 : index
    %c0_72 = arith.constant 0 : index
    %c0_73 = arith.constant 0 : index
    %63 = vector.load %arg7[%c0_71, %c0_72, %c0_73] : memref<1x8x1xf32, #tpu.memory_space<vmem>>, vector<1x8x1xf32>
    %64 = vector.shape_cast %63 : vector<1x8x1xf32> to vector<8x1xf32>
    %65 = vector.shape_cast %62 : vector<8x1xf32> to vector<1x8x1xf32>
    tpu.vector_store %arg7[%c0_71, %c0_72, %c0_73], %65 {strides = array<i32>} : memref<1x8x1xf32, #tpu.memory_space<vmem>>, vector<1x8x1xf32>,
    return
  }
  func.func @transform_0(%arg0: i32) -> (i32, i32, i32, i32) {
    %c0_i32 = arith.constant 0 : i32
    %c0_i32_0 = arith.constant 0 : i32
    %c0_i32_1 = arith.constant 0 : i32
    %c0_i32_2 = arith.constant 0 : i32
    return %arg0, %c0_i32, %c0_i32_0, %c0_i32_1 : i32, i32, i32, i32
  }
  func.func @transform_1(%arg0: i32) -> (i32, i32) {
    %c0_i32 = arith.constant 0 : i32
    %c0_i32_0 = arith.constant 0 : i32
    %c0_i32_1 = arith.constant 0 : i32
    return %c0_i32, %c0_i32_0 : i32, i32
  }
  func.func @transform_2(%arg0: i32) -> (i32, i32) {
    %c0_i32 = arith.constant 0 : i32
    %c0_i32_0 = arith.constant 0 : i32
    %c0_i32_1 = arith.constant 0 : i32
    return %c0_i32, %c0_i32_0 : i32, i32
  }
  func.func @transform_3(%arg0: i32) -> (i32, i32) {
    %c0_i32 = arith.constant 0 : i32
    %c0_i32_0 = arith.constant 0 : i32
    %c0_i32_1 = arith.constant 0 : i32
    return %c0_i32, %c0_i32_0 : i32, i32
  }
  func.func @transform_4(%arg0: i32) -> (i32, i32, i32) {
    %c0_i32 = arith.constant 0 : i32
    %c0_i32_0 = arith.constant 0 : i32
    %c0_i32_1 = arith.constant 0 : i32
    return %arg0, %c0_i32, %c0_i32_0 : i32, i32, i32
  }
  func.func @transform_5(%arg0: i32) -> (i32, i32, i32) {
    %c0_i32 = arith.constant 0 : i32
    %c0_i32_0 = arith.constant 0 : i32
    %c0_i32_1 = arith.constant 0 : i32
    return %arg0, %c0_i32, %c0_i32_0 : i32, i32, i32
  }
  func.func @transform_6(%arg0: i32) -> (i32, i32, i32) {
    %c0_i32 = arith.constant 0 : i32
    %c0_i32_0 = arith.constant 0 : i32
    %c0_i32_1 = arith.constant 0 : i32
    return %arg0, %c0_i32, %c0_i32_0 : i32, i32, i32
  }
}

module attributes {stable_mosaic.version = 11 : i64} {
  func.func @_bn_relu_kernel(%arg0: i32, %arg1: memref<1x8x256xbf16, #tpu.memory_space<vmem>>, %arg2: memref<8x1xf32, #tpu.memory_space<vmem>>, %arg3: memref<8x1xf32, #tpu.memory_space<vmem>>, %arg4: memref<1x8x256xf32, #tpu.memory_space<vmem>>) attributes {dimension_semantics = [#tpu.dimension_semantics<parallel>], iteration_bounds = array<i64: 2>, scalar_prefetch = 0 : i64, scratch_operands = 0 : i64, tpu.core_type = #tpu.core_type<tc>, window_params = [{transform_indices = @transform_0, window_bounds = array<i64: 1, 8, 256>}, {pipeline_mode = #tpu.pipeline_mode<synchronous>, transform_indices = @transform_1, window_bounds = array<i64: 8, 1>}, {pipeline_mode = #tpu.pipeline_mode<synchronous>, transform_indices = @transform_2, window_bounds = array<i64: 8, 1>}, {transform_indices = @transform_3, window_bounds = array<i64: 1, 8, 256>}]} {
    %c0 = arith.constant 0 : index
    %c0_0 = arith.constant 0 : index
    %c0_1 = arith.constant 0 : index
    %0 = vector.load %arg1[%c0, %c0_0, %c0_1] : memref<1x8x256xbf16, #tpu.memory_space<vmem>>, vector<1x8x256xbf16>
    %1 = vector.shape_cast %0 : vector<1x8x256xbf16> to vector<8x256xbf16>
    %2 = arith.extf %1 : vector<8x256xbf16> to vector<8x256xf32>
    %c0_2 = arith.constant 0 : index
    %c0_3 = arith.constant 0 : index
    %3 = vector.load %arg2[%c0_2, %c0_3] : memref<8x1xf32, #tpu.memory_space<vmem>>, vector<8x1xf32>
    %4 = vector.broadcast %3 : vector<8x1xf32> to vector<8x256xf32>
    %5 = arith.mulf %2, %4 : vector<8x256xf32>
    %c0_4 = arith.constant 0 : index
    %c0_5 = arith.constant 0 : index
    %6 = vector.load %arg3[%c0_4, %c0_5] : memref<8x1xf32, #tpu.memory_space<vmem>>, vector<8x1xf32>
    %7 = vector.broadcast %6 : vector<8x1xf32> to vector<8x256xf32>
    %8 = arith.addf %5, %7 : vector<8x256xf32>
    %cst = arith.constant 0.000000e+00 : f32
    %9 = vector.broadcast %cst : f32 to vector<8x256xf32>
    %10 = arith.maximumf %8, %9 : vector<8x256xf32>
    %c0_6 = arith.constant 0 : index
    %c0_7 = arith.constant 0 : index
    %c0_8 = arith.constant 0 : index
    %11 = vector.load %arg4[%c0_6, %c0_7, %c0_8] : memref<1x8x256xf32, #tpu.memory_space<vmem>>, vector<1x8x256xf32>
    %12 = vector.shape_cast %11 : vector<1x8x256xf32> to vector<8x256xf32>
    %13 = vector.shape_cast %10 : vector<8x256xf32> to vector<1x8x256xf32>
    tpu.vector_store %arg4[%c0_6, %c0_7, %c0_8], %13 {strides = array<i32>} : memref<1x8x256xf32, #tpu.memory_space<vmem>>, vector<1x8x256xf32>,
    return
  }
  func.func @transform_0(%arg0: i32) -> (i32, i32, i32) {
    %c0_i32 = arith.constant 0 : i32
    %c0_i32_0 = arith.constant 0 : i32
    %c0_i32_1 = arith.constant 0 : i32
    return %arg0, %c0_i32, %c0_i32_0 : i32, i32, i32
  }
  func.func @transform_1(%arg0: i32) -> (i32, i32) {
    %c0_i32 = arith.constant 0 : i32
    %c0_i32_0 = arith.constant 0 : i32
    %c0_i32_1 = arith.constant 0 : i32
    return %c0_i32, %c0_i32_0 : i32, i32
  }
  func.func @transform_2(%arg0: i32) -> (i32, i32) {
    %c0_i32 = arith.constant 0 : i32
    %c0_i32_0 = arith.constant 0 : i32
    %c0_i32_1 = arith.constant 0 : i32
    return %c0_i32, %c0_i32_0 : i32, i32
  }
  func.func @transform_3(%arg0: i32) -> (i32, i32, i32) {
    %c0_i32 = arith.constant 0 : i32
    %c0_i32_0 = arith.constant 0 : i32
    %c0_i32_1 = arith.constant 0 : i32
    return %arg0, %c0_i32, %c0_i32_0 : i32, i32, i32
  }
}

</mosaic_0001>

<bundles_post_ra>
// kernel: double_conv_forward.5
= control target key start
LH: loop header
LB: loop body
LE: loop exit
PB: predicated region body
PF: predicated region fallthrough
CT: control target
= control target key end

     0   :  { %8 = vsyncpa [#allocation3], 0  ;;  %s837_s0 = inlined_call_operand.hbm [shape: bf16[2,8,256], index: 0, kind: input, shape index: {}]   ;;  %s838_s1 = inlined_call_operand.hbm [shape: f32[8,1], index: 1, kind: input, shape index: {}]   ;;  %s839_s2 = inlined_call_operand.hbm [shape: f32[8,1], index: 2, kind: input, shape index: {}]   ;;  %s840_s3 = inlined_call_operand.hbm [shape: f32[2,8,256], index: 3, kind: output, shape index: {}]  }
   0x1   :  { %10 = vsyncpa [#allocation3 + $0x1], 0 }
   0x2   :  { %11 = vsyncpa [#allocation6], 0 }
   0x3   :  { %12 = vsyncpa [#allocation4], 0 }
   0x4   :  { %14 = vsyncpa [#allocation4 + $0x1], 0  ;;  %s611_s12 = smov 0   ;;  %s613_s13 = smov 0  }
   0x5   :  { %s615_s14 = smov 0   ;;  %s617_s15 = smov 0  }
   0x6 LB: > { %s632_s16 = sadd.s32 4294967295, %s584_s15   ;;  %s339_s17 = sadd.s32 4294967294, %s584_s15   ;;  %s584_s15 = sphi %s617_s15, %s860_s15   ;;  %s580_s14 = sphi %s615_s14, %s859_s14   ;;  %s576_s13 = sphi %s613_s13, %s858_s13   ;;  %s572_s12 = sphi %s611_s12, %s857_s12  }
   0x7   : > { %p40_p0 = scmp.ne.s32.totalorder %s576_s13, %s572_s12  ;;  %p841_p1 = scmp.eq.s32.totalorder %s632_s16, 0 }
   0x8   : > { %p112_p3 = scmp.eq.s32.totalorder %s339_s17, 1  ;;  %p340_p5 = scmp.ge.s32.totalorder %s584_s15, 1 }
   0x9   : > { %p641_p4 = por %p841_p1, %p40_p0  ;;  %p119_p7 = scmp.lt.s32.totalorder %s584_s15, 3 }
   0xa   : > { %p646_p6 = por %p112_p3, %p40_p0  ;;  %s586_s21 = smov [#allocation5]  }
   0xb   : > { %s844_s18 = scalar_select %p641_p4, 1, 0 }
   0xc   : > { %s845_s19 = scalar_select %p646_p6, 1, 0 }
   0xd   : > { %p651_p8 = pnand %p340_p5, %p119_p7  ;;  %s132_s22 = sshll.u32 %s586_s21, 4  ;;  %s133_s22 = int_to_ptr.vmem [resolvable:$true] %s132_s22 }
   0xe   : > { %s587_s23 = smov [#allocation7]   ;;  %s667_s26 = sadd.s32 1, %s584_s15  }
   0xf   : > { %s846_s20 = scalar_select %p651_p8, 1, 0 }
  0x10   : > { %p371_p10 = pneg %p651_p8  ;;  %s143_s24 = sshll.u32 %s587_s23, 4  ;;  %s664_s24 = int_to_ptr.vmem [resolvable:$true] %s143_s24 }
  0x11   : > { %s24_s27 = ssub.s32 %s584_s15, %s667_s26  ;;  %s428_s30 = scalar_lea.hbm %s838_s1, 128 }
  0x12   : > { %p660_p11 = pnand %p371_p10, %p841_p1  ;;  %p429_p12 = scmp.ne.s32.totalorder %s838_s1, %s428_s30 }
  0x13   : > { %p435_p5 = scmp.lt.u32.totalorder %s428_s30, %s838_s1 }
  0x14   : > { %p430_p13 = pneg %p660_p11 }
  0x16   : > { %p431_p0 = pnand %p430_p13, %p429_p12 }
  0x18   : > { %p432_p3 = pneg %p431_p0 }
  0x1a   : > { %p437_p7 = pnand %p435_p5, %p432_p3 }
  0x1c   : > { %440 = shalt.err (!%p437_p7)
}
  0x1d   : > { %s441_s8 = scalar_lea.vmem %s133_s22, 128  ;;  %p449_p2 = scmp.lt.s32.totalorder %s133_s22, %s133_s22 }
  0x1e   : > { %p442_p10 = scmp.ne.s32.totalorder %s133_s22, %s441_s8  ;;  %p450_p6 = scmp.lt.s32.totalorder %s441_s8, %s441_s8 }
  0x20   : > { %p444_p9 = pnand %p442_p10, %p430_p13  ;;  %p451_p4 = por %p450_p6, %p449_p2 }
  0x22   : > { %p445_p1 = pneg %p444_p9 }
  0x24   : > { %p452_p8 = pnand %p451_p4, %p445_p1 }
  0x26   : > { %455 = shalt.err (!%p452_p8)
}
  0x27   : > { %374 = dma.hbm_to_vmem [thread:$0]  (!%p660_p11), %s838_s1, 128, %s133_s22, [#allocation6]  }
  0x28   : > { %s456_s21 = scalar_lea.hbm %s839_s2, 128 }
  0x29   : > { %p457_p9 = scmp.ne.s32.totalorder %s839_s2, %s456_s21  ;;  %p463_p4 = scmp.lt.u32.totalorder %s456_s21, %s839_s2 }
  0x2b   : > { %p459_p2 = pnand %p457_p9, %p430_p13 }
  0x2d   : > { %p460_p1 = pneg %p459_p2 }
  0x2f   : > { %p465_p6 = pnand %p463_p4, %p460_p1 }
  0x31   : > { %468 = shalt.err (!%p465_p6)
}
  0x32   : > { %s469_s22 = scalar_lea.vmem %s664_s24, 128  ;;  %p477_p3 = scmp.lt.s32.totalorder %s664_s24, %s664_s24 }
  0x33   : > { %p470_p8 = scmp.ne.s32.totalorder %s664_s24, %s469_s22  ;;  %p478_p5 = scmp.lt.s32.totalorder %s469_s22, %s469_s22 }
  0x35   : > { %p472_p12 = pnand %p470_p8, %p430_p13  ;;  %p479_p7 = por %p478_p5, %p477_p3 }
  0x37   : > { %p473_p0 = pneg %p472_p12 }
  0x39   : > { %p480_p10 = pnand %p479_p7, %p473_p0 }
  0x3b   : > { %483 = shalt.err (!%p480_p10)
}
  0x3c   : > { %377 = dma.hbm_to_vmem [thread:$0]  (!%p660_p11), %s839_s2, 128, %s664_s24, [#allocation6]  }
  0x3d   : > { %p25_p13 = scmp.eq.s32.totalorder %s24_s27, 0  ;;  %s27_s6 = sadd.s32 1, %s580_s14 }
  0x3e   : > { %p34_p9 = scmp.ne.s32.totalorder %s580_s14, %s576_s13  ;;  %p35_p2 = scmp.eq.s32.totalorder %s584_s15, 0 }
  0x3f   : > { %s726_s25 = scalar_select %p25_p13, %s580_s14, %s27_s6  }
  0x40   : > { %p36_p1 = por %p35_p2, %p34_p9  ;;  %p848_p4 = scmp.eq.s32.totalorder %s632_s16, 1 }
  0x41   : > { %p388_p8 = scmp.lt.s32.totalorder %s584_s15, 2  ;;  %s154_s8 = sand.u32 1, %s580_s14  }
  0x42   : > { %p730_p6 = por %p848_p4, %p34_p9  ;;  %s344_s9 = sshll.u32 %s154_s8, 3 }
  0x43   : > { %s357_s10 = sshll.u32 %s584_s15, 7  ;;  %s158_s27 = scalar_lea.vmem [#allocation2], %s344_s9 }
  0x44   : > { %s740_s24 = scalar_lea.hbm %s837_s0, %s357_s10  ;;  %s166_s21 = sshll.u32 %s158_s27, 4  ;;  %s742_s21 = int_to_ptr.vmem [resolvable:$true] %s166_s21 }
  0x45   : > { %p744_p11 = pnand %p388_p8, %p36_p1  ;;  %s155_s28 = scalar_lea.sflag [#allocation3], %s154_s8 }
  0x46   : > { %s484_s29 = scalar_lea.hbm %s740_s24, 128  ;;  %s489_s4 = scalar_lea.hbm %s837_s0, 256 }
  0x47   : > { %p485_p12 = scmp.ne.s32.totalorder %s740_s24, %s484_s29  ;;  %p486_p0 = pneg %p744_p11 }
  0x48   : > { %p490_p7 = scmp.lt.u32.totalorder %s740_s24, %s837_s0  ;;  %p491_p10 = scmp.lt.u32.totalorder %s489_s4, %s484_s29 }
  0x49   : > { %p487_p3 = pnand %p486_p0, %p485_p12  ;;  %p493_p9 = scmp.lt.u32.totalorder %s484_s29, %s740_s24 }
  0x4a   : > { %p492_p13 = por %p491_p10, %p490_p7 }
  0x4b   : > { %p488_p5 = pneg %p487_p3 }
  0x4c   : > { %p494_p2 = por %p493_p9, %p492_p13 }
  0x4e   : > { %p495_p1 = pnand %p494_p2, %p488_p5 }
  0x50   : > { %498 = shalt.err (!%p495_p1)
}
  0x51   : > { %s499_s8 = scalar_lea.vmem %s742_s21, 128  ;;  %s588_s9 = smov [#allocation2]  }
  0x52   : > { %p500_p4 = scmp.ne.s32.totalorder %s742_s21, %s499_s8  ;;  %s504_s10 = sshll.u32 %s588_s9, 4  ;;  %s505_s10 = int_to_ptr.vmem [resolvable:$false] %s504_s10 }
  0x53   : > { %s506_s11 = scalar_lea.vmem %s505_s10, 256  ;;  %p507_p3 = scmp.lt.s32.totalorder %s742_s21, %s505_s10 }
  0x54   : > { %p502_p8 = pnand %p500_p4, %p486_p0  ;;  %p508_p7 = scmp.lt.s32.totalorder %s506_s11, %s499_s8 }
  0x56   : > { %p503_p12 = pneg %p502_p8  ;;  %p509_p10 = por %p508_p7, %p507_p3 }
  0x58   : > { %p510_p13 = pnand %p509_p10, %p503_p12 }
  0x5a   : > { %513 = shalt.err (!%p510_p13)
}
  0x5b   : > { %381 = dma.hbm_to_vmem [thread:$0]  (!%p744_p11), %s740_s24, 128, %s742_s21, %s155_s28  }
  0x5c   : > { %p851_p5 = scmp.ne.s32.totalorder %s846_s20, 0 }
  0x5d   : > { %s776_s17 = sand.u32 (!%p851_p5), 1, %s576_s13   ;;  %p852_p0 = scmp.ne.s32.totalorder (!%p851_p5), %s844_s18, 0 }
  0x5e   : > { %175 = sbr.rel (%p851_p5) target bundleno = 257 (0x101), region = 32  ;;  %s348_s27 = sshll.u32 (!%p851_p5), %s776_s17, 3 }
  0x5f   : > { %s178_s29 = scalar_lea.sflag (!%p851_p5), [#allocation3], %s776_s17  ;;  %s181_s30 = scalar_lea.vmem (!%p851_p5), [#allocation2], %s348_s27 }
  0x65   : > { %559 = dma.done.wait (%p852_p0), %s178_s29, 128  }
  0x66   : > { %561 = vsyncadd (%p852_p0), %s178_s29, 4294967168  ;;  %p853_p9 = scmp.eq.s32.totalorder %s632_s16, 0 }
  0x68   : > { %563 = dma.done.wait (%p853_p9), [#allocation6], 256   ;;  %p854_p11 = pmov %p853_p9 }
  0x69   : > { %v589_v0 = vmov 0   ;;  %v215_v1 = vld [vmem:[#allocation5] sm:$0xff]  ;;  %v223_v2 = vld [vmem:[#allocation7] sm:$0xff]  ;;  %v212_v3 = vld [vmem:[%s181_s30] sm:$0xff]  ;;  %s351_s20 = sshll.u32 %s776_s17, 4  ;;  %s358_s18 = sshll.u32 %s632_s16, 8 }
  0x6a   : > { %565 = vsyncadd (%p854_p11), [#allocation6], 4294967040  ;;  %427 = vset.pattern.permute.xlu0 %v589_v0  ;;  %v213_v4 = vunpack.c.l.bf16 %v212_v3  ;;  %v214_v5 = vunpack.c.h.bf16 %v212_v3  ;;  %s211_s24 = scalar_lea.vmem [#allocation8], %s351_s20  ;;  %s793_s22 = scalar_lea.hbm %s840_s3, %s358_s18 }
  0x6b   : > { %218 = vperm.xlu0 %427, %v215_v1   ;;  %s250_s21 = sshll.u32 %s211_s24, 4  ;;  %s236_s4 = scalar_lea.sflag [#allocation4], %s776_s17  ;;  %s795_s21 = int_to_ptr.vmem [resolvable:$true] %s250_s21 }
  0x6c   : > { %s514_s16 = scalar_lea.vmem %s795_s21, 256  ;;  %s590_s5 = smov [#allocation8]  }
  0x6d   : > { %p515_p2 = scmp.ne.s32.totalorder %s795_s21, %s514_s16  ;;  %s518_s6 = sshll.u32 %s590_s5, 4  ;;  %s519_s6 = int_to_ptr.vmem [resolvable:$false] %s518_s6 }
  0x6e   : > { %s520_s8 = scalar_lea.vmem %s519_s6, 512  ;;  %p521_p8 = scmp.lt.s32.totalorder %s795_s21, %s519_s6 }
  0x6f   : > { %226 = vperm.xlu0 %427, %v223_v2   ;;  %p516_p1 = pnand %p515_p2, %p730_p6  ;;  %p522_p12 = scmp.lt.s32.totalorder %s520_s8, %s514_s16 }
  0x71   : > { %p517_p4 = pneg %p516_p1  ;;  %p523_p3 = por %p522_p12, %p521_p8 }
  0x73   : > { %p524_p7 = pnand %p523_p3, %p517_p4 }
  0xea   : > { %v219_v6 = vpop.permute.xlu0 %218 }
  0xeb   : > { %v221_v7 = vmul.f32 %v219_v6, %v213_v4  ;;  %v222_v8 = vmul.f32 %v219_v6, %v214_v5 }
  0xee   : > { %v227_v9 = vpop.permute.xlu0 %226 }
  0xef   : > { %v229_v10 = vadd.f32 %v227_v9, %v221_v7  ;;  %v230_v11 = vadd.f32 %v227_v9, %v222_v8 }
  0xf1   : > { %v231_v12 = vmax.f32 %v229_v10, 0.0  ;;  %v232_v13 = vmax.f32 %v230_v11, 0.0 }
  0xf3   : > { %233 = vst [vmem:[%s211_s24] sm:$0xff] %v231_v12  ;;  %234 = vst [vmem:[%s211_s24 + $0x8] sm:$0xff] %v232_v13 }
  0xf4   : > { %527 = shalt.err (!%p524_p7)
}
  0xf5   : > { %s528_s9 = scalar_lea.hbm %s793_s22, 256  ;;  %s532_s17 = scalar_lea.hbm %s840_s3, 512 }
  0xf6   : > { %p529_p10 = scmp.ne.s32.totalorder %s793_s22, %s528_s9  ;;  %p533_p0 = scmp.lt.u32.totalorder %s793_s22, %s840_s3 }
  0xf7   : > { %p534_p9 = scmp.lt.u32.totalorder %s532_s17, %s528_s9  ;;  %p536_p2 = scmp.lt.u32.totalorder %s528_s9, %s793_s22 }
  0xf8   : > { %p530_p13 = pnand %p529_p10, %p730_p6 }
  0xf9   : > { %p535_p11 = por %p534_p9, %p533_p0 }
  0xfa   : > { %p531_p5 = pneg %p530_p13 }
  0xfb   : > { %p537_p1 = por %p536_p2, %p535_p11 }
  0xfd   : > { %p538_p4 = pnand %p537_p1, %p531_p5 }
  0xff   : > { %541 = shalt.err (!%p538_p4)
}
 0x100   : > { %369 = dma.vmem_to_hbm [thread:$0]  (%p730_p6), %s795_s21, 256, %s793_s22, %s236_s4  }
 0x101 PF: > { %s262_s30 = sand.u32 1, %s572_s12   ;;  %p855_p8 = scmp.ne.s32.totalorder %s845_s19, 0 }
 0x102   : > { %p856_p12 = scmp.ge.s32.totalorder %s584_s15, 2  ;;  %s263_s20 = scalar_lea.sflag [#allocation4], %s262_s30 }
 0x104   : > { %p383_p3 = pnand %p856_p12, %p855_p8 }
 0x106   : > { %567 = dma.done.wait (!%p383_p3), %s263_s20, 256  }
 0x107   : > { %569 = vsyncadd (!%p383_p3), %s263_s20, 4294967040  ;;  %p17_p7 = scmp.ge.s32.totalorder %s667_s26, 4   ;;  %s857_s12 = smov %s576_s13 }
 0x108   : > { %s858_s13 = smov %s580_s14  ;;  %s859_s14 = smov %s726_s25 }
 0x109   : > { %s860_s15 = smov %s667_s26  ;;  %19 = sbr.rel (!%p17_p7) target bundleno = 6 (0x6), region = 85 }
 0x110   :  { %268 = vsyncpa [#allocation3], 1 }
 0x111   :  { %270 = vsyncpa [#allocation3 + $0x1], 1 }
 0x112   :  { %271 = vsyncpa [#allocation6], 1 }
 0x113   :  { %272 = vsyncpa [#allocation4], 1 }
 0x114   :  { %274 = vsyncpa [#allocation4 + $0x1], 1 }

// kernel: double_conv_forward.3
= control target key start
LH: loop header
LB: loop body
LE: loop exit
PB: predicated region body
PF: predicated region fallthrough
CT: control target
= control target key end

     0   :  { %12 = vsyncpa [#allocation5], 0  ;;  %s6747_s0 = inlined_call_operand.hbm [shape: bf16[2,16,16,4], index: 0, kind: input, shape index: {}]   ;;  %s6748_s1 = inlined_call_operand.hbm [shape: bf16[8,36], index: 1, kind: input, shape index: {}]   ;;  %s6749_s2 = inlined_call_operand.hbm [shape: f32[1,4], index: 2, kind: input, shape index: {}]   ;;  %s6750_s3 = inlined_call_operand.hbm [shape: f32[1,4], index: 3, kind: input, shape index: {}]   ;;  %s6751_s4 = inlined_call_operand.hbm [shape: bf16[2,8,256], index: 4, kind: output, shape index: {0}]   ;;  %s6752_s5 = inlined_call_operand.hbm [shape: f32[2,8,1], index: 5, kind: output, shape index: {1}]   ;;  %s6753_s6 = inlined_call_operand.hbm [shape: f32[2,8,1], index: 6, kind: output, shape index: {2}]  }
   0x1   :  { %14 = vsyncpa [#allocation5 + $0x1], 0 }
   0x2   :  { %15 = vsyncpa [#allocation8], 0 }
   0x3   :  { %16 = vsyncpa [#allocation11], 0 }
   0x4   :  { %17 = vsyncpa [#allocation6], 0 }
   0x5   :  { %19 = vsyncpa [#allocation6 + $0x1], 0 }
   0x6   :  { %20 = vsyncpa [#allocation14], 0 }
   0x7   :  { %22 = vsyncpa [#allocation14 + $0x1], 0  ;;  %s5061_s21 = smov 0   ;;  %s5063_s22 = smov 0  }
   0x8   :  { %s5065_s23 = smov 0   ;;  %s5067_s24 = smov 0  }
   0x9 LB: > { %s5082_s25 = sadd.s32 4294967295, %s5006_s24   ;;  %s6759_s26 = sadd.s32 4294967294, %s5006_s24   ;;  %s5006_s24 = sphi %s5067_s24, %s6809_s24   ;;  %s5002_s23 = sphi %s5065_s23, %s6808_s23   ;;  %s4998_s22 = sphi %s5063_s22, %s6807_s22   ;;  %s4994_s21 = sphi %s5061_s21, %s6806_s21  }
   0xa   : > { %p48_p0 = scmp.ne.s32.totalorder %s4998_s22, %s4994_s21  ;;  %p6754_p1 = scmp.eq.s32.totalorder %s5082_s25, 0 }
   0xb   : > { %p141_p3 = scmp.eq.s32.totalorder %s6759_s26, 1  ;;  %p4364_p5 = scmp.ge.s32.totalorder %s5006_s24, 1 }
   0xc   : > { %p5093_p4 = por %p6754_p1, %p48_p0  ;;  %p200_p7 = scmp.lt.s32.totalorder %s5006_s24, 3 }
   0xd   : > { %p5098_p6 = por %p141_p3, %p48_p0  ;;  %s5008_s30 = smov [#allocation7]  }
   0xe   : > { %s6760_s27 = scalar_select %p5093_p4, 1, 0 }
   0xf   : > { %s6761_s28 = scalar_select %p5098_p6, 1, 0 }
  0x10   : > { %p5103_p8 = pnand %p4364_p5, %p200_p7  ;;  %s213_s7 = sshll.u32 %s5008_s30, 4  ;;  %s214_s7 = int_to_ptr.vmem [resolvable:$true] %s213_s7 }
  0x11   : > { %s5009_s8 = smov [#allocation9]   ;;  %s5010_s11 = smov [#allocation10]  }
  0x12   : > { %s6762_s29 = scalar_select %p5103_p8, 1, 0 }
  0x13   : > { %p4632_p10 = pneg %p5103_p8  ;;  %s224_s9 = sshll.u32 %s5009_s8, 4  ;;  %s5116_s9 = int_to_ptr.vmem [resolvable:$true] %s224_s9 }
  0x14   : > { %s235_s12 = sshll.u32 %s5010_s11, 4  ;;  %s4758_s15 = scalar_lea.hbm %s6748_s1, 64  ;;  %s5118_s12 = int_to_ptr.vmem [resolvable:$true] %s235_s12 }
  0x15   : > { %p5112_p11 = pnand %p4632_p10, %p6754_p1  ;;  %p4759_p12 = scmp.ne.s32.totalorder %s6748_s1, %s4758_s15 }
  0x16   : > { %p4765_p5 = scmp.lt.u32.totalorder %s4758_s15, %s6748_s1 }
  0x17   : > { %p5128_p13 = pneg %p5112_p11 }
  0x19   : > { %p4761_p0 = pnand %p5128_p13, %p4759_p12 }
  0x1b   : > { %p4762_p3 = pneg %p4761_p0 }
  0x1d   : > { %p4767_p7 = pnand %p4765_p5, %p4762_p3 }
  0x1f   : > { %4770 = shalt.err (!%p4767_p7)
}
  0x20   : > { %s4771_s30 = scalar_lea.vmem %s214_s7, 64  ;;  %p4779_p2 = scmp.lt.s32.totalorder %s214_s7, %s214_s7 }
  0x21   : > { %p4772_p10 = scmp.ne.s32.totalorder %s214_s7, %s4771_s30  ;;  %p4780_p6 = scmp.lt.s32.totalorder %s4771_s30, %s4771_s30 }
  0x23   : > { %p4774_p9 = pnand %p4772_p10, %p5128_p13  ;;  %p4781_p4 = por %p4780_p6, %p4779_p2 }
  0x25   : > { %p4775_p1 = pneg %p4774_p9 }
  0x27   : > { %p4782_p8 = pnand %p4781_p4, %p4775_p1 }
  0x29   : > { %4785 = shalt.err (!%p4782_p8)
}
  0x2a   : > { %4635 = dma.hbm_to_vmem [thread:$0]  (!%p5112_p11), %s6748_s1, 64, %s214_s7, [#allocation8]  }
  0x2b   : > { %s4786_s15 = scalar_lea.hbm %s6749_s2, 16 }
  0x2c   : > { %p4787_p9 = scmp.ne.s32.totalorder %s6749_s2, %s4786_s15  ;;  %p4793_p1 = scmp.lt.u32.totalorder %s4786_s15, %s6749_s2 }
  0x2e   : > { %p4789_p12 = pnand %p4787_p9, %p5128_p13 }
  0x30   : > { %p4790_p2 = pneg %p4789_p12 }
  0x32   : > { %p4795_p4 = pnand %p4793_p1, %p4790_p2 }
  0x34   : > { %4798 = shalt.err (!%p4795_p4)
}
  0x35   : > { %s4799_s7 = scalar_lea.vmem %s5116_s9, 16  ;;  %s4806_s30 = scalar_lea.vmem %s5116_s9, 32 }
  0x36   : > { %p4800_p6 = scmp.ne.s32.totalorder %s5116_s9, %s4799_s7  ;;  %p4807_p3 = scmp.lt.s32.totalorder %s5116_s9, %s5116_s9 }
  0x37   : > { %p4808_p5 = scmp.lt.s32.totalorder %s4806_s30, %s4799_s7 }
  0x38   : > { %p4802_p8 = pnand %p4800_p6, %p5128_p13 }
  0x39   : > { %p4809_p7 = por %p4808_p5, %p4807_p3 }
  0x3a   : > { %p4803_p0 = pneg %p4802_p8 }
  0x3c   : > { %p4810_p10 = pnand %p4809_p7, %p4803_p0 }
  0x3e   : > { %4813 = shalt.err (!%p4810_p10)
}
  0x3f   : > { %4638 = dma.hbm_to_vmem [thread:$0]  (!%p5112_p11), %s6749_s2, 16, %s5116_s9, [#allocation8]  }
  0x40   : > { %s4814_s15 = scalar_lea.hbm %s6750_s3, 16 }
  0x41   : > { %p4815_p9 = scmp.ne.s32.totalorder %s6750_s3, %s4814_s15  ;;  %p4821_p1 = scmp.lt.u32.totalorder %s4814_s15, %s6750_s3 }
  0x43   : > { %p4817_p12 = pnand %p4815_p9, %p5128_p13 }
  0x45   : > { %p4818_p2 = pneg %p4817_p12 }
  0x47   : > { %p4823_p4 = pnand %p4821_p1, %p4818_p2 }
  0x49   : > { %4826 = shalt.err (!%p4823_p4)
}
  0x4a   : > { %s4827_s9 = scalar_lea.vmem %s5118_s12, 16  ;;  %s4834_s7 = scalar_lea.vmem %s5118_s12, 32 }
  0x4b   : > { %p4828_p6 = scmp.ne.s32.totalorder %s5118_s12, %s4827_s9  ;;  %p4835_p3 = scmp.lt.s32.totalorder %s5118_s12, %s5118_s12 }
  0x4c   : > { %p4836_p5 = scmp.lt.s32.totalorder %s4834_s7, %s4827_s9 }
  0x4d   : > { %p4830_p8 = pnand %p4828_p6, %p5128_p13 }
  0x4e   : > { %p4837_p7 = por %p4836_p5, %p4835_p3 }
  0x4f   : > { %p4831_p0 = pneg %p4830_p8 }
  0x51   : > { %p4838_p10 = pnand %p4837_p7, %p4831_p0 }
  0x53   : > { %4841 = shalt.err (!%p4838_p10)
}
  0x54   : > { %4641 = dma.hbm_to_vmem [thread:$0]  (!%p5112_p11), %s6750_s3, 16, %s5118_s12, [#allocation11]  }
  0x55   : > { %s5193_s18 = sadd.s32 1, %s5006_s24   ;;  %s35_s11 = sadd.s32 1, %s5002_s23 }
  0x56   : > { %s32_s10 = ssub.s32 %s5006_s24, %s5193_s18  ;;  %p42_p9 = scmp.ne.s32.totalorder %s5002_s23, %s4998_s22 }
  0x57   : > { %p33_p13 = scmp.eq.s32.totalorder %s32_s10, 0  ;;  %p43_p12 = scmp.eq.s32.totalorder %s5006_s24, 0 }
  0x58   : > { %p4659_p2 = scmp.lt.s32.totalorder %s5006_s24, 2  ;;  %p6765_p4 = scmp.eq.s32.totalorder %s5082_s25, 1 }
  0x59   : > { %s5203_s13 = scalar_select %p33_p13, %s5002_s23, %s35_s11  }
  0x5a   : > { %p44_p1 = por %p43_p12, %p42_p9  ;;  %p5207_p6 = por %p6765_p4, %p42_p9 }
  0x5b   : > { %s246_s15 = sand.u32 1, %s5002_s23   ;;  %s4583_s16 = sshll.u32 %s5006_s24, 11 }
  0x5c   : > { %s4369_s12 = sshll.u32 %s246_s15, 7  ;;  %s5216_s20 = scalar_lea.hbm %s6747_s0, %s4583_s16 }
  0x5d   : > { %s250_s9 = scalar_lea.vmem [#allocation4], %s4369_s12  ;;  %p5218_p11 = pnand %p4659_p2, %p44_p1 }
  0x5e   : > { %s257_s7 = sshll.u32 %s250_s9, 4  ;;  %s5224_s8 = scalar_lea.sflag [#allocation5], %s246_s15  ;;  %s5222_s7 = int_to_ptr.vmem [resolvable:$true] %s257_s7 }
  0x5f   : > { %s4842_s10 = scalar_lea.hbm %s5216_s20, 2048  ;;  %p4844_p0 = pneg %p5218_p11 }
  0x60   : > { %p4843_p8 = scmp.ne.s32.totalorder %s5216_s20, %s4842_s10  ;;  %s4847_s12 = scalar_lea.hbm %s6747_s0, 4096 }
  0x61   : > { %p4848_p7 = scmp.lt.u32.totalorder %s5216_s20, %s6747_s0  ;;  %p4849_p10 = scmp.lt.u32.totalorder %s4847_s12, %s4842_s10 }
  0x62   : > { %p4845_p3 = pnand %p4844_p0, %p4843_p8  ;;  %p4851_p9 = scmp.lt.u32.totalorder %s4842_s10, %s5216_s20 }
  0x63   : > { %p4850_p13 = por %p4849_p10, %p4848_p7 }
  0x64   : > { %p4846_p5 = pneg %p4845_p3 }
  0x65   : > { %p4852_p12 = por %p4851_p9, %p4850_p13 }
  0x67   : > { %p4853_p2 = pnand %p4852_p12, %p4846_p5 }
  0x69   : > { %4856 = shalt.err (!%p4853_p2)
}
  0x6a   : > { %s4857_s15 = scalar_lea.vmem %s5222_s7, 2048  ;;  %s5011_s9 = smov [#allocation4]  }
  0x6b   : > { %p4858_p1 = scmp.ne.s32.totalorder %s5222_s7, %s4857_s15  ;;  %s4862_s11 = sshll.u32 %s5011_s9, 4  ;;  %s4863_s11 = int_to_ptr.vmem [resolvable:$false] %s4862_s11 }
  0x6c   : > { %s4864_s16 = scalar_lea.vmem %s4863_s11, 4096  ;;  %p4865_p3 = scmp.lt.s32.totalorder %s5222_s7, %s4863_s11 }
  0x6d   : > { %p4860_p4 = pnand %p4858_p1, %p4844_p0  ;;  %p4866_p7 = scmp.lt.s32.totalorder %s4864_s16, %s4857_s15 }
  0x6f   : > { %p4861_p8 = pneg %p4860_p4  ;;  %p4867_p10 = por %p4866_p7, %p4865_p3 }
  0x71   : > { %p4868_p13 = pnand %p4867_p10, %p4861_p8 }
  0x73   : > { %4871 = shalt.err (!%p4868_p13)
}
  0x74   : > { %s5012_s10 = smov 64   ;;  %s5013_s12 = smov 4  }
  0x75   : > { %4645 = dma.hbm_to_vmem [thread:$0]  (!%p5218_p11), %s5216_s20, 2048, %s5222_s7, %s5224_s8, %s5012_s10, %s5012_s10, %s5013_s12  }
  0x76   : > { %p6768_p0 = scmp.ne.s32.totalorder %s6762_s29, 0 }
  0x77   : > { %s5255_s17 = sand.u32 (!%p6768_p0), 1, %s4998_s22   ;;  %p6769_p5 = scmp.ne.s32.totalorder (!%p6768_p0), %s6760_s27, 0 }
  0x78   : > { %269 = sbr.rel (%p6768_p0) target bundleno = 1050 (0x41a), region = 36  ;;  %s4373_s19 = sshll.u32 (!%p6768_p0), %s5255_s17, 7 }
  0x79   : > { %s272_s15 = scalar_lea.sflag (!%p6768_p0), [#allocation5], %s5255_s17  ;;  %s5259_s9 = scalar_lea.vmem (!%p6768_p0), [#allocation4], %s4373_s19 }
  0x7f   : > { %4973 = dma.done.wait (%p6769_p5), %s272_s15, 2048  }
  0x80   : > { %4975 = vsyncadd (%p6769_p5), %s272_s15, 4294965248  ;;  %p6770_p11 = scmp.eq.s32.totalorder %s5082_s25, 0 }
  0x82   : > { %4977 = dma.done.wait (%p6770_p11), [#allocation8], 80   ;;  %p6771_p9 = pmov %p6770_p11 }
  0x84   : > { %4979 = vsyncadd (%p6771_p9), [#allocation8], 4294967216  ;;  %p6772_p12 = pmov %p6771_p9 }
  0x85   : > { %p6773_p2 = pmov %p6771_p9 }
  0x86   : > { %4981 = dma.done.wait (%p6772_p12), [#allocation11], 16  }
  0x87   : > { %4983 = vsyncadd (%p6773_p2), [#allocation11], 4294967280  ;;  %vm359_vm0 = vcmask 27648   ;;  %vm362_vm1 = vcmask 24576   ;;  %v5014_v0 = vmov 0   ;;  %vm1707_vm6 = vcmask 1042432  }
  0x88   : > { %360 = vst.msk [vmem:[#allocation2] sm:$0xf] %vm359_vm0, %v5014_v0  ;;  %361 = vst.msk [vmem:[#allocation2 + $0x4] sm:$0xf] %vm359_vm0, %v5014_v0  ;;  %vm369_vm2 = vsmask.f32 256 }
  0x89   : > { %363 = vst.msk [vmem:[#allocation2 + $0x8] sm:$0x1] %vm362_vm1, %v5014_v0  ;;  %367 = vst.msk [vmem:[#allocation2 + $0xd4] sm:$0x1] %vm362_vm1, %v5014_v0  ;;  %vm425_vm3 = vsmask.f32 7938 }
  0x8a   : > { %365 = vst.msk [vmem:[#allocation2 + $0xcc] sm:$0xf] %vm359_vm0, %v5014_v0  ;;  %366 = vst.msk [vmem:[#allocation2 + $0xd0] sm:$0xf] %vm359_vm0, %v5014_v0  ;;  %vm1708_vm7 = vcmask 1046532   ;;  %s5015_s27 = smov 8  }
  0x8b   : > { %vm5278_vm4 = vmand %vm362_vm1, %vm369_vm2  ;;  %v343_v3 = vld [vmem:[%s5259_s9 + $0x40] sm:$0xf]  ;;  %v344_v4 = vld [vmem:[%s5259_s9 + $0x44] sm:$0xf]  ;;  %vm481_vm8 = vsmask.f32 4368 }
  0x8c   : > { %vm5283_vm5 = vmand %vm362_vm1, %vm425_vm3  ;;  %v398_v5 = vld [vmem:[#allocation2 + $0x6c] sm:$0x1]  ;;  %v327_v11 = vld [vmem:[%s5259_s9] sm:$0xf]  ;;  %v620_v12 = vshrl.u32 %v343_v3, 16  ;;  %v623_v13 = vshll.u32 %v343_v3, 16 }
  0x8d   : > { %v399_v10 = vsel %vm5278_vm4, 0, %v398_v5  ;;  %v628_v14 = vshrl.u32 %v344_v4, 16  ;;  %v631_v15 = vshll.u32 %v344_v4, 16  ;;  %v328_v16 = vld [vmem:[%s5259_s9 + $0x4] sm:$0xf]  ;;  %v484_v20 = vshrl.u32 %v327_v11, 16  ;;  %vm5302_vm9 = vmor %vm369_vm2, %vm481_vm8 }
  0x8e   : > { %400 = vst [vmem:[#allocation2 + $0x6c] sm:$0x1] %v399_v10  ;;  %v374_v19 = vld [vmem:[#allocation2 + $0xc] sm:$0x1]  ;;  %v487_v21 = vshll.u32 %v327_v11, 16  ;;  %v622_v22 = vrot.slane %v620_v12, 7  ;;  %vm5309_vm10 = vmor %vm1707_vm6, %vm1708_vm7 }
  0x8f   : > { %v1611_v7 = vld [vmem:[#allocation2] sm:$0xe]  ;;  %v1612_v8 = vld [vmem:[#allocation2 + $0x4] sm:$0xf]  ;;  %v5295_v23 = vrot.slane %v628_v14, 7  ;;  %v375_v24 = vsel %vm5278_vm4, 0, %v374_v19  ;;  %vm5316_vm11 = vmand %vm359_vm0, %vm425_vm3 }
  0x90   : > { %v427_v6 = vld [vmem:[#allocation2 + $0x8] sm:$0x1]  ;;  %v4412_v17 = vrot.slane %v1611_v7, 9  ;;  %v1712_v18 = vrot.slane %v1612_v8, 5  ;;  %v492_v25 = vshrl.u32 %v328_v16, 16  ;;  %v486_v28 = vrot.slane %v484_v20, 7 }
  0x91   : > { %v428_v9 = vsel %vm5283_vm5, 0, %v427_v6  ;;  %v345_v26 = vld [vmem:[%s5259_s9 + $0x48] sm:$0xf]  ;;  %376 = vst [vmem:[#allocation2 + $0xc] sm:$0x1] %v375_v24  ;;  %v495_v29 = vshll.u32 %v328_v16, 16  ;;  %v625_v33 = vor.u32 %v623_v13, %v622_v22  ;;  %v633_v35 = vor.u32 %v631_v15, %v5295_v23 }
  0x92   : > { %429 = vst [vmem:[#allocation2 + $0x8] sm:$0x1] %v428_v9  ;;  %v346_v30 = vld [vmem:[%s5259_s9 + $0x4c] sm:$0xf]  ;;  %v401_v31 = vld [vmem:[#allocation2 + $0x78] sm:$0x1]  ;;  %v1713_v48 = vsel %vm5309_vm10, %v4412_v17, %v1712_v18  ;;  %v489_v50 = vor.u32 %v487_v21, %v486_v28 }
  0x93   : > { %v626_v34 = vrot.slane %v622_v22, 4  ;;  %v1714_v37 = vrot.slane %v1712_v18, 4  ;;  %v490_v38 = vrot.slane %v486_v28, 4  ;;  %v5320_v39 = vrot.slane %v492_v25, 7  ;;  %v329_v41 = vld [vmem:[%s5259_s9 + $0x8] sm:$0xf] }
  0x94   : > { %v402_v40 = vsel %vm5278_vm4, 0, %v401_v31  ;;  %v637_v43 = vshrl.u32 %v345_v26, 16  ;;  %v640_v44 = vshll.u32 %v345_v26, 16  ;;  %v645_v45 = vshrl.u32 %v346_v30, 16  ;;  %v377_v46 = vld [vmem:[#allocation2 + $0x18] sm:$0x1] }
  0x95   : > { %v634_v42 = vsel %vm5302_vm9, %v626_v34, %v633_v35  ;;  %403 = vst [vmem:[#allocation2 + $0x78] sm:$0x1] %v402_v40  ;;  %v862_v49 = vld [vmem:[#allocation2 + $0x6c] sm:$0xf]  ;;  %v497_v51 = vor.u32 %v495_v29, %v5320_v39  ;;  %v648_v52 = vshll.u32 %v346_v30, 16  ;;  %v378_v60 = vsel %vm5278_vm4, 0, %v377_v46 }
  0x96   : > { %865 = vst.msk [vmem:[#allocation2 + $0x70] sm:$0xf] %vm359_vm0, %v634_v42  ;;  %v330_v53 = vld [vmem:[%s5259_s9 + $0xc] sm:$0xf]  ;;  %v863_v55 = vsel %vm5316_vm11, %v625_v33, %v862_v49  ;;  %v639_v56 = vrot.slane %v637_v43, 7  ;;  %v5334_v57 = vrot.slane %v645_v45, 7 }
  0x97   : > { %v341_v58 = vld [vmem:[%s5259_s9 + $0x38] sm:$0xf]  ;;  %864 = vst [vmem:[#allocation2 + $0x6c] sm:$0xf] %v863_v55  ;;  %v498_v59 = vsel %vm5302_vm9, %v490_v38, %v497_v51  ;;  %v501_v61 = vshrl.u32 %v329_v41, 16  ;;  %v504_v62 = vshll.u32 %v329_v41, 16 }
  0x98   : > { %v395_v63 = vld [vmem:[#allocation2 + $0x60] sm:$0x1]  ;;  %v806_v3 = vld [vmem:[#allocation2 + $0xc] sm:$0xf]  ;;  %809 = vst.msk [vmem:[#allocation2 + $0x10] sm:$0xf] %vm359_vm0, %v498_v59  ;;  %v642_v4 = vor.u32 %v640_v44, %v639_v56  ;;  %v650_v6 = vor.u32 %v648_v52, %v5334_v57 }
  0x99   : > { %v1613_v47 = vld [vmem:[#allocation2 + $0x8] sm:$0x1]  ;;  %v643_v5 = vrot.slane %v639_v56, 4  ;;  %379 = vst [vmem:[#allocation2 + $0x18] sm:$0x1] %v378_v60  ;;  %v807_v9 = vsel %vm5316_vm11, %v489_v50, %v806_v3  ;;  %v503_v10 = vrot.slane %v501_v61, 7 }
  0x9a   : > { %v1715_v54 = vrot.slane %v1613_v47, 5  ;;  %v451_v7 = vld [vmem:[#allocation2 + $0x68] sm:$0x1]  ;;  %v342_v11 = vld [vmem:[%s5259_s9 + $0x3c] sm:$0xf]  ;;  %v509_v14 = vshrl.u32 %v330_v53, 16 }
  0x9b   : > { %v371_v12 = vld [vmem:[#allocation2] sm:$0x1]  ;;  %808 = vst [vmem:[#allocation2 + $0xc] sm:$0xf] %v807_v9  ;;  %v651_v13 = vsel %vm5302_vm9, %v643_v5, %v650_v6  ;;  %v512_v15 = vshll.u32 %v330_v53, 16  ;;  %v396_v16 = vsel %vm5278_vm4, 0, %v395_v63  ;;  %v506_v19 = vor.u32 %v504_v62, %v503_v10 }
  0x9c   : > { %v1716_v0 = vsel %vm5309_vm10, %v1714_v37, %v1715_v54  ;;  %v1064_v17 = vld [vmem:[#allocation2 + $0x4] sm:$0xf]  ;;  %v869_v18 = vld [vmem:[#allocation2 + $0x78] sm:$0xf]  ;;  %872 = vst.msk [vmem:[#allocation2 + $0x7c] sm:$0xf] %vm359_vm0, %v651_v13 }
  0x9d   : > { %v4428_v8 = vcombine.low %v1713_v48, %v1716_v0  ;;  %v507_v20 = vrot.slane %v503_v10, 4  ;;  %397 = vst [vmem:[#allocation2 + $0x60] sm:$0x1] %v396_v16  ;;  %v452_v21 = vsel %vm5283_vm5, 0, %v451_v7  ;;  %v603_v22 = vshrl.u32 %v341_v58, 16  ;;  %s5016_s29 = smov 12  }
  0x9e   : > { %v870_v24 = vsel %vm5316_vm11, %v642_v4, %v869_v18  ;;  %v5358_v25 = vrot.slane %v509_v14, 7  ;;  %453 = vst [vmem:[#allocation2 + $0x68] sm:$0x1] %v452_v21  ;;  %v606_v26 = vshll.u32 %v341_v58, 16  ;;  %v611_v28 = vshrl.u32 %v342_v11, 16  ;;  %v4710_v37 = vld [vmem:[#allocation2 + $0x6c] sm:$0xff]  }
  0x9f   : > { %1870 = vrot.lane.b32.xlu1 %v4428_v8, %s5015_s27  ;;  %v1065_v29 = vld [vmem:[#allocation2 + $0x8] sm:$0x1]  ;;  %871 = vst [vmem:[#allocation2 + $0x78] sm:$0xf] %v870_v24  ;;  %v605_v30 = vrot.slane %v603_v22, 7  ;;  %v614_v31 = vshll.u32 %v342_v11, 16 }
  0xa0   : > { %v372_v33 = vsel %vm5278_vm4, 0, %v371_v12  ;;  %v1124_v34 = vshll.u32 %v1064_v17, 16  ;;  %v454_v35 = vld [vmem:[#allocation2 + $0x74] sm:$0x1]  ;;  %v514_v38 = vor.u32 %v512_v15, %v5358_v25  ;;  %v613_v40 = vrot.slane %v611_v28, 7  ;;  %s5017_s20 = smov 24  }
  0xa1   : > { %373 = vst [vmem:[#allocation2] sm:$0x1] %v372_v33  ;;  %vm1111_vm12 = vsmask.f32 3328  ;;  %vm1112_vm13 = vsmask.f32 7440  ;;  %v608_v43 = vor.u32 %v606_v26, %v605_v30 }
  0xa2   : > { %v1128_v41 = vshrl.u32 %v1064_v17, 16  ;;  %v813_v42 = vld [vmem:[#allocation2 + $0x18] sm:$0xf]  ;;  %v609_v44 = vrot.slane %v605_v30, 4  ;;  %v5363_v45 = vrot.slane %v1124_v34, 5  ;;  %v515_v46 = vsel %vm5302_vm9, %v507_v20, %v514_v38  ;;  %v4711_v51 = vld [vmem:[#allocation2 + $0xc] sm:$0xff]   ;;  %vm5394_vm14 = vmor %vm1111_vm12, %vm1112_vm13 }
  0xa3   : > { %2063 = vrot.lane.b32.xlu1 %v4710_v37, %s5016_s29  ;;  %v814_v47 = vsel %vm5316_vm11, %v506_v19, %v813_v42  ;;  %v616_v48 = vor.u32 %v614_v31, %v613_v40  ;;  %v618_v49 = vrot.slane %v613_v40, 4  ;;  %v5370_v50 = vld [vmem:[#allocation2 + $0x6c] sm:$0xe]  ;;  %816 = vst.msk [vmem:[#allocation2 + $0x1c] sm:$0xf] %vm359_vm0, %v515_v46  ;;  %v1134_v53 = vshll.u32 %v1065_v29, 16  ;;  %2047 = vrot.lane.b32.xlu0 %v4711_v51, %s5016_s29 }
  0xa4   : > { %815 = vst [vmem:[#allocation2 + $0x18] sm:$0xf] %v814_v47  ;;  %v1130_v52 = vrot.slane %v1128_v41, 4  ;;  %v455_v54 = vsel %vm5283_vm5, 0, %v454_v35  ;;  %v855_v56 = vld [vmem:[#allocation2 + $0x60] sm:$0xf] }
  0xa5   : > { %v617_v55 = vsel %vm5302_vm9, %v609_v44, %v616_v48  ;;  %456 = vst [vmem:[#allocation2 + $0x74] sm:$0x1] %v455_v54  ;;  %v2682_v58 = vld [vmem:[#allocation2 + $0x70] sm:$0xf]  ;;  %v635_v59 = vrot.slane %v5295_v23, 4  ;;  %v856_v60 = vsel %vm5316_vm11, %v608_v43, %v855_v56  ;;  %v499_v0 = vrot.slane %v5320_v39, 4 }
  0xa6   : > { %858 = vst.msk [vmem:[#allocation2 + $0x64] sm:$0xf] %vm359_vm0, %v617_v55  ;;  %v859_v61 = vld [vmem:[#allocation2 + $0x68] sm:$0x1]  ;;  %v1131_v62 = vor.u32 %v1130_v52, %v5363_v45  ;;  %v430_v63 = vld [vmem:[#allocation2 + $0x14] sm:$0x1] }
  0xa7   : > { %v652_v3 = vrot.slane %v5334_v57, 4  ;;  %v4712_v4 = vld [vmem:[#allocation2 + $0x78] sm:$0xff]   ;;  %857 = vst [vmem:[#allocation2 + $0x60] sm:$0xf] %v856_v60  ;;  %v860_v23 = vsel %vm5278_vm4, %v618_v49, %v859_v61  ;;  %v431_v5 = vsel %vm5283_vm5, 0, %v430_v63  ;;  %v516_v6 = vrot.slane %v5358_v25, 4 }
  0xa8   : > { %861 = vst [vmem:[#allocation2 + $0x68] sm:$0x1] %v860_v23  ;;  %v1063_v7 = vld [vmem:[#allocation2] sm:$0xf]  ;;  %v1136_v8 = vrot.slane %v1134_v53, 5  ;;  %v4484_v9 = vrot.slane %v5370_v50, 9  ;;  %3107 = vrot.lane.b32.xlu1 %v4712_v4, %s5017_s20 }
  0xa9   : > { %v2811_v10 = vrot.slane %v2682_v58, 5  ;;  %432 = vst [vmem:[#allocation2 + $0x14] sm:$0x1] %v431_v5  ;;  %v1115_v39 = vshrl.u32 %v1063_v7, 16  ;;  %v1118_v11 = vshll.u32 %v1063_v7, 16  ;;  %v1132_v14 = vrot.slane %v1131_v62, 4 }
  0xaa   : > { %v2657_v12 = vld [vmem:[#allocation2 + $0xc] sm:$0xe]  ;;  %v2658_v13 = vld [vmem:[#allocation2 + $0x10] sm:$0xf]  ;;  %v457_v16 = vld [vmem:[#allocation2 + $0x80] sm:$0x1] }
  0xab   : > { %v2755_v15 = vrot.slane %v2658_v13, 5  ;;  %v3725_v17 = vld [vmem:[#allocation2 + $0x78] sm:$0xe]  ;;  %v1117_v19 = vrot.slane %v1115_v39, 4  ;;  %v1120_v21 = vrot.slane %v1118_v11, 5  ;;  %v5398_v24 = vrot.slane %v2811_v10, 4 }
  0xac   : > { %v4713_v18 = vld [vmem:[#allocation2 + $0x18] sm:$0xff]   ;;  %v866_v22 = vld [vmem:[#allocation2 + $0x74] sm:$0x1]  ;;  %v4476_v26 = vrot.slane %v2657_v12, 9  ;;  %v458_v28 = vsel %vm5283_vm5, 0, %v457_v16  ;;  %v4548_v34 = vrot.slane %v3725_v17, 9  ;;  %v1137_v44 = vsel %vm5394_vm14, %v1132_v14, %v1136_v8 }
  0xad   : > { %3091 = vrot.lane.b32.xlu0 %v4713_v18, %s5017_s20  ;;  %v1636_v29 = vld [vmem:[#allocation2 + $0x64] sm:$0xf]  ;;  %v867_v30 = vsel %vm5278_vm4, %v635_v59, %v866_v22  ;;  %v5405_v31 = vrot.slane %v2755_v15, 4  ;;  %459 = vst [vmem:[#allocation2 + $0x80] sm:$0x1] %v458_v28  ;;  %v1121_v38 = vor.u32 %v1120_v21, %v1117_v19  ;;  %v5411_v46 = vsel %vm5309_vm10, %v4484_v9, %v2811_v10  ;;  %s5018_s7 = smov 4  }
  0xae   : > { %v3726_v33 = vld [vmem:[#allocation2 + $0x7c] sm:$0xf]  ;;  %v1635_v35 = vld [vmem:[#allocation2 + $0x60] sm:$0xe]  ;;  %v1768_v37 = vrot.slane %v1636_v29, 5  ;;  %v5421_v55 = vsel %vm5309_vm10, %v4476_v26, %v2755_v15  ;;  %s5019_s30 = smov 20  }
  0xaf   : > { %868 = vst [vmem:[#allocation2 + $0x74] sm:$0x1] %v867_v30  ;;  %v3855_v40 = vrot.slane %v3726_v33, 5  ;;  %v433_v41 = vld [vmem:[#allocation2 + $0x20] sm:$0x1]  ;;  %v4420_v43 = vrot.slane %v1635_v35, 9 }
  0xb0   : > { %v1637_v42 = vld [vmem:[#allocation2 + $0x68] sm:$0x1]  ;;  %v810_v47 = vld [vmem:[#allocation2 + $0x14] sm:$0x1]  ;;  %v434_v48 = vsel %vm5283_vm5, 0, %v433_v41  ;;  %v1770_v49 = vrot.slane %v1768_v37, 4 }
  0xb1   : > { %v1771_v50 = vrot.slane %v1637_v42, 5  ;;  %v1122_v51 = vrot.slane %v1121_v38, 4  ;;  %v811_v52 = vsel %vm5278_vm4, %v499_v0, %v810_v47  ;;  %435 = vst [vmem:[#allocation2 + $0x20] sm:$0x1] %v434_v48  ;;  %v3701_v53 = vld [vmem:[#allocation2 + $0x18] sm:$0xe]  ;;  %v1769_v54 = vsel %vm5309_vm10, %v4420_v43, %v1768_v37 }
  0xb2   : > { %812 = vst [vmem:[#allocation2 + $0x14] sm:$0x1] %v811_v52  ;;  %v5423_v56 = vrot.slane %v3855_v40, 4  ;;  %v3702_v58 = vld [vmem:[#allocation2 + $0x1c] sm:$0xf]  ;;  %v4540_v59 = vrot.slane %v3701_v53, 9  ;;  %v5432_v12 = vsel %vm5309_vm10, %v4548_v34, %v3855_v40 }
  0xb3   : > { %v1638_v60 = vld [vmem:[#allocation2 + $0x6c] sm:$0xe]  ;;  %v1772_v61 = vsel %vm5309_vm10, %v1770_v49, %v1771_v50  ;;  %v1127_v62 = vsel %vm5394_vm14, %v1122_v51, %v5363_v45  ;;  %v3799_v63 = vrot.slane %v3702_v58, 5  ;;  %v1639_v0 = vld [vmem:[#allocation2 + $0x70] sm:$0xf]  ;;  %s5020_s8 = smov 32  }
  0xb4   : > { %v4421_v4 = vrot.slane %v1638_v60, 9  ;;  %v1614_v23 = vld [vmem:[#allocation2 + $0xc] sm:$0xe]  ;;  %v4436_v5 = vcombine.low %v1769_v54, %v1772_v61  ;;  %v4396_v7 = vcombine.low %v1127_v62, %v1137_v44  ;;  %v1775_v8 = vrot.slane %v1639_v0, 5  ;;  %v1615_v9 = vld [vmem:[#allocation2 + $0x10] sm:$0xf] }
  0xb5   : > { %v4413_v10 = vrot.slane %v1614_v23, 9  ;;  %v2136_v39 = vld [vmem:[#allocation2 + $0x6c] sm:$0xf]  ;;  %v873_v11 = vld [vmem:[#allocation2 + $0x80] sm:$0x1]  ;;  %v5436_v13 = vsel %vm5309_vm10, %v4540_v59, %v3799_v63  ;;  %v5438_v45 = vrot.slane %v3799_v63, 4 }
  0xb6   : > { %v1719_v14 = vrot.slane %v1615_v9, 5  ;;  %v2137_v15 = vld [vmem:[#allocation2 + $0x70] sm:$0xf]  ;;  %1886 = vrot.lane.b32.xlu1 %v4436_v5, %s5015_s27  ;;  %1546 = vrot.lane.b32.xlu0 %v4396_v7, %s5018_s7  ;;  %v2683_v16 = vld [vmem:[#allocation2 + $0x74] sm:$0x1]  ;;  %v874_v17 = vsel %vm5278_vm4, %v652_v3, %v873_v11  ;;  %v5448_v19 = vsel %vm5309_vm10, %v4421_v4, %v1775_v8  ;;  %v1777_v21 = vrot.slane %v1775_v8, 4 }
  0xb7   : > { %v1640_v18 = vld [vmem:[#allocation2 + $0x74] sm:$0x1]  ;;  %v2353_v22 = vshrl.u32 %v2136_v39, 16  ;;  %v2814_v26 = vrot.slane %v2683_v16, 5  ;;  %875 = vst [vmem:[#allocation2 + $0x80] sm:$0x1] %v874_v17 }
  0xb8   : > { %v1778_v28 = vrot.slane %v1640_v18, 5  ;;  %v5452_v29 = vsel %vm5309_vm10, %v4413_v10, %v1719_v14  ;;  %v1721_v30 = vrot.slane %v1719_v14, 4  ;;  %v2138_v33 = vld [vmem:[#allocation2 + $0x74] sm:$0x1]  ;;  %v817_v57 = vld [vmem:[#allocation2 + $0x20] sm:$0x1] }
  0xb9   : > { %v2355_v34 = vrot.slane %v2353_v22, 4  ;;  %v2356_v35 = vshll.u32 %v2136_v39, 16  ;;  %v2362_v3 = vshll.u32 %v2137_v15, 16  ;;  %v2366_v37 = vshrl.u32 %v2137_v15, 16  ;;  %v2659_v40 = vld [vmem:[#allocation2 + $0x14] sm:$0x1] }
  0xba   : > { %v2815_v38 = vsel %vm5309_vm10, %v5398_v24, %v2814_v26  ;;  %v818_v41 = vsel %vm5278_vm4, %v516_v6, %v817_v57  ;;  %v5463_v42 = vsel %vm5309_vm10, %v1777_v21, %v1778_v28  ;;  %v1616_v43 = vld [vmem:[#allocation2 + $0x14] sm:$0x1]  ;;  %v2372_v44 = vshll.u32 %v2138_v33, 16  ;;  %v1087_v50 = vld [vmem:[#allocation2 + $0x60] sm:$0xf]  ;;  %s5021_s11 = smov 16  }
  0xbb   : > { %v4500_v47 = vcombine.low %v5411_v46, %v2815_v38  ;;  %v2758_v48 = vrot.slane %v2659_v40, 5  ;;  %819 = vst [vmem:[#allocation2 + $0x20] sm:$0x1] %v818_v41  ;;  %v4437_v49 = vcombine.low %v5448_v19, %v5463_v42  ;;  %v1722_v24 = vrot.slane %v1616_v43, 5  ;;  %v1088_v6 = vld [vmem:[#allocation2 + $0x64] sm:$0xf] }
  0xbc   : > { %v2358_v51 = vrot.slane %v2356_v35, 5  ;;  %v2364_v25 = vrot.slane %v2362_v3, 5  ;;  %v2368_v52 = vrot.slane %v2366_v37, 4  ;;  %v2374_v53 = vrot.slane %v2372_v44, 5  ;;  %v1089_v58 = vld [vmem:[#allocation2 + $0x68] sm:$0x1] }
  0xbd   : > { %2929 = vrot.lane.b32.xlu1 %v4500_v47, %s5019_s30  ;;  %v2759_v54 = vsel %vm5309_vm10, %v5405_v31, %v2758_v48  ;;  %v5474_v46 = vsel %vm5309_vm10, %v1721_v30, %v1722_v24  ;;  %v1307_v59 = vshrl.u32 %v1087_v50, 16  ;;  %v1310_v60 = vshll.u32 %v1087_v50, 16  ;;  %v3180_v4 = vld [vmem:[#allocation2 + $0x78] sm:$0xf]  ;;  %v3181_v16 = vld [vmem:[#allocation2 + $0x7c] sm:$0xf] }
  0xbe   : > { %v4492_v61 = vcombine.low %v5421_v55, %v2759_v54  ;;  %v4429_v62 = vcombine.low %v5452_v29, %v5474_v46  ;;  %v2359_v63 = vor.u32 %v2358_v51, %v2355_v34  ;;  %v2369_v0 = vor.u32 %v2368_v52, %v2364_v25  ;;  %v3727_v23 = vld [vmem:[#allocation2 + $0x80] sm:$0x1]  ;;  %v2112_v41 = vld [vmem:[#allocation2 + $0xc] sm:$0xf]  ;;  %v2113_v47 = vld [vmem:[#allocation2 + $0x10] sm:$0xf] }
  0xbf   : > { %v1309_v5 = vrot.slane %v1307_v59, 4  ;;  %v1312_v7 = vrot.slane %v1310_v60, 5  ;;  %v1316_v8 = vshll.u32 %v1088_v6, 16  ;;  %v1320_v31 = vshrl.u32 %v1088_v6, 16  ;;  %v3182_v30 = vld [vmem:[#allocation2 + $0x80] sm:$0x1] }
  0xc0   : > { %2913 = vrot.lane.b32.xlu0 %v4492_v61, %s5019_s30  ;;  %v3858_v9 = vrot.slane %v3727_v23, 5  ;;  %v2360_v10 = vrot.slane %v2359_v63, 4  ;;  %v2370_v39 = vrot.slane %v2369_v0, 4  ;;  %v1326_v11 = vshll.u32 %v1089_v58, 16  ;;  %v2114_v48 = vld [vmem:[#allocation2 + $0x14] sm:$0x1] }
  0xc1   : > { %v1313_v14 = vor.u32 %v1312_v7, %v1309_v5  ;;  %v1318_v15 = vrot.slane %v1316_v8, 5  ;;  %v1322_v55 = vrot.slane %v1320_v31, 4  ;;  %v3397_v17 = vshrl.u32 %v3180_v4, 16  ;;  %v1090_v52 = vld [vmem:[#allocation2 + $0x6c] sm:$0xf]  ;;  %s5022_s16 = smov 28  }
  0xc2   : > { %v3859_v18 = vsel %vm5309_vm10, %v5423_v56, %v3858_v9  ;;  %v3703_v21 = vld [vmem:[#allocation2 + $0x20] sm:$0x1]  ;;  %v2365_v22 = vsel %vm5394_vm14, %v2360_v10, %v2364_v25  ;;  %v2375_v26 = vsel %vm5394_vm14, %v2370_v39, %v2374_v53  ;;  %v1328_v28 = vrot.slane %v1326_v11, 5  ;;  %v1091_v59 = vld [vmem:[#allocation2 + $0x70] sm:$0xf]  ;;  %s6626_s10 = sshll.u32 %s5255_s17, 3 }
  0xc3   : > { %v4564_v33 = vcombine.low %v5432_v12, %v3859_v18  ;;  %v3802_v57 = vrot.slane %v3703_v21, 5  ;;  %v4468_v34 = vcombine.low %v2365_v22, %v2375_v26  ;;  %v1314_v35 = vrot.slane %v1313_v14, 4  ;;  %v1092_v14 = vld [vmem:[#allocation2 + $0x74] sm:$0x1]  ;;  %v3157_v22 = vld [vmem:[#allocation2 + $0x1c] sm:$0xf] }
  0xc4   : > { %v1323_v3 = vor.u32 %v1322_v55, %v1318_v15  ;;  %v3399_v37 = vrot.slane %v3397_v17, 4  ;;  %v3400_v38 = vshll.u32 %v3180_v4, 16  ;;  %v3406_v40 = vshll.u32 %v3181_v16, 16  ;;  %v3156_v55 = vld [vmem:[#allocation2 + $0x18] sm:$0xf]  ;;  %s311_s12 = scalar_lea.vmem [#allocation12], %s6626_s10 }
  0xc5   : > { %3973 = vrot.lane.b32.xlu1 %v4564_v33, %s5020_s8  ;;  %v3803_v56 = vsel %vm5309_vm10, %v5438_v45, %v3802_v57  ;;  %v1319_v43 = vsel %vm5394_vm14, %v1314_v35, %v1318_v15  ;;  %v3410_v44 = vshrl.u32 %v3181_v16, 16  ;;  %v3416_v12 = vshll.u32 %v3182_v30, 16  ;;  %v3158_v57 = vld [vmem:[#allocation2 + $0x20] sm:$0x1]  ;;  %v6563_v20 = vld [vmem:[#allocation7] sm:$0xf] }
  0xc6   : > { %v4556_v24 = vcombine.low %v5436_v13, %v3803_v56  ;;  %v1324_v50 = vrot.slane %v1323_v3, 4  ;;  %v3402_v51 = vrot.slane %v3400_v38, 5  ;;  %v3408_v25 = vrot.slane %v3406_v40, 5  ;;  %v1066_v40 = vld [vmem:[#allocation2 + $0xc] sm:$0xf]  ;;  %s6630_s19 = sshll.u32 %s5082_s25, 7 }
  0xc7   : > { %v3412_v53 = vrot.slane %v3410_v44, 4  ;;  %v3418_v6 = vrot.slane %v3416_v12, 5  ;;  %v2161_v54 = vshrl.u32 %v2112_v41, 16  ;;  %v2164_v58 = vshll.u32 %v2112_v41, 16  ;;  %v1067_v12 = vld [vmem:[#allocation2 + $0x10] sm:$0xf] }
  0xc8   : > { %3957 = vrot.lane.b32.xlu0 %v4556_v24, %s5020_s8  ;;  %v1329_v45 = vsel %vm5394_vm14, %v1324_v50, %v1328_v28  ;;  %v3403_v60 = vor.u32 %v3402_v51, %v3399_v37  ;;  %v2170_v61 = vshll.u32 %v2113_v47, 16  ;;  %v2174_v63 = vshrl.u32 %v2113_v47, 16 }
  0xc9   : > { %1888 = vrot.lane.b32.xlu1 %v4437_v49, %s5015_s27  ;;  %v4404_v13 = vcombine.low %v1319_v43, %v1329_v45  ;;  %v3413_v0 = vor.u32 %v3412_v53, %v3408_v25  ;;  %v2163_v4 = vrot.slane %v2161_v54, 4  ;;  %v2166_v23 = vrot.slane %v2164_v58, 5 }
  0xca   : > { %v3404_v5 = vrot.slane %v3403_v60, 4  ;;  %v2172_v7 = vrot.slane %v2170_v61, 5  ;;  %v2176_v8 = vrot.slane %v2174_v63, 4  ;;  %v2180_v31 = vshll.u32 %v2114_v48, 16 }
  0xcb   : > { %v3414_v9 = vrot.slane %v3413_v0, 4  ;;  %v2167_v10 = vor.u32 %v2166_v23, %v2163_v4  ;;  %v1331_v39 = vshrl.u32 %v1090_v52, 16  ;;  %v1334_v11 = vshll.u32 %v1090_v52, 16  ;;  %v2139_v0 = vld [vmem:[#allocation2 + $0x78] sm:$0xf] }
  0xcc   : > { %1872 = vrot.lane.b32.xlu0 %v4429_v62, %s5015_s27  ;;  %v3409_v19 = vsel %vm5394_vm14, %v3404_v5, %v3408_v25  ;;  %v2177_v42 = vor.u32 %v2176_v8, %v2172_v7  ;;  %v2182_v49 = vrot.slane %v2180_v31, 5  ;;  %v1340_v15 = vshll.u32 %v1091_v59, 16  ;;  %v2140_v8 = vld [vmem:[#allocation2 + $0x7c] sm:$0xf] }
  0xcd   : > { %2608 = vrot.lane.b32.xlu1 %v4468_v34, %s5021_s11  ;;  %v3419_v16 = vsel %vm5394_vm14, %v3414_v9, %v3418_v6  ;;  %v2168_v17 = vrot.slane %v2167_v10, 4  ;;  %v1333_v18 = vrot.slane %v1331_v39, 4  ;;  %v1336_v21 = vrot.slane %v1334_v11, 5 }
  0xce   : > { %v4532_v29 = vcombine.low %v3409_v19, %v3419_v16  ;;  %v2178_v46 = vrot.slane %v2177_v42, 4  ;;  %v1342_v62 = vrot.slane %v1340_v15, 5  ;;  %v1344_v26 = vshrl.u32 %v1091_v59, 16  ;;  %v1068_v59 = vld [vmem:[#allocation2 + $0x14] sm:$0x1] }
  0xcf   : > { %v2173_v28 = vsel %vm5394_vm14, %v2168_v17, %v2172_v7  ;;  %v1337_v30 = vor.u32 %v1336_v21, %v1333_v18  ;;  %v1350_v33 = vshll.u32 %v1092_v14, 16  ;;  %v3205_v35 = vshrl.u32 %v3156_v55, 16  ;;  %v2141_v42 = vld [vmem:[#allocation2 + $0x80] sm:$0x1]  ;;  %v4714_v17 = vld [vmem:[#allocation2 + $0x78] sm:$0xff]  }
  0xd0   : > { %1562 = vrot.lane.b32.xlu0 %v4404_v13, %s5018_s7  ;;  %v2183_v34 = vsel %vm5394_vm14, %v2178_v46, %v2182_v49  ;;  %v1346_v3 = vrot.slane %v1344_v26, 4  ;;  %v3208_v37 = vshll.u32 %v3156_v55, 16  ;;  %v3214_v38 = vshll.u32 %v3157_v22, 16  ;;  %v2115_v21 = vld [vmem:[#allocation2 + $0x18] sm:$0xf] }
  0xd1   : > { %3652 = vrot.lane.b32.xlu1 %v4532_v29, %s5022_s16  ;;  %v4460_v41 = vcombine.low %v2173_v28, %v2183_v34  ;;  %v1338_v56 = vrot.slane %v1337_v30, 4  ;;  %v1352_v43 = vrot.slane %v1350_v33, 5  ;;  %v3207_v44 = vrot.slane %v3205_v35, 4  ;;  %v2116_v26 = vld [vmem:[#allocation2 + $0x1c] sm:$0xf] }
  0xd2   : > { %v1347_v47 = vor.u32 %v1346_v3, %v1342_v62  ;;  %v3210_v48 = vrot.slane %v3208_v37, 5  ;;  %v3216_v24 = vrot.slane %v3214_v38, 5  ;;  %v3218_v50 = vshrl.u32 %v3157_v22, 16  ;;  %v2117_v35 = vld [vmem:[#allocation2 + $0x20] sm:$0x1] }
  0xd3   : > { %v1343_v51 = vsel %vm5394_vm14, %v1338_v56, %v1342_v62  ;;  %v3224_v25 = vshll.u32 %v3158_v57, 16  ;;  %v1139_v52 = vshrl.u32 %v1066_v40, 16  ;;  %v1142_v53 = vshll.u32 %v1066_v40, 16  ;;  %v2684_v40 = vld [vmem:[#allocation2 + $0x78] sm:$0xe] }
  0xd4   : > { %2592 = vrot.lane.b32.xlu0 %v4460_v41, %s5021_s11  ;;  %v1348_v6 = vrot.slane %v1347_v47, 4  ;;  %v3211_v54 = vor.u32 %v3210_v48, %v3207_v44  ;;  %v3220_v58 = vrot.slane %v3218_v50, 4  ;;  %v1148_v45 = vshll.u32 %v1067_v12, 16 }
  0xd5   : > { %v3226_v60 = vrot.slane %v3224_v25, 5  ;;  %v1141_v61 = vrot.slane %v1139_v52, 4  ;;  %v1144_v63 = vrot.slane %v1142_v53, 5  ;;  %v1152_v13 = vshrl.u32 %v1067_v12, 16  ;;  %v2685_v12 = vld [vmem:[#allocation2 + $0x7c] sm:$0xf] }
  0xd6   : > { %v1353_v4 = vsel %vm5394_vm14, %v1348_v6, %v1352_v43  ;;  %v3212_v23 = vrot.slane %v3211_v54, 4  ;;  %v3221_v5 = vor.u32 %v3220_v58, %v3216_v24  ;;  %v1150_v7 = vrot.slane %v1148_v45, 5  ;;  %v2660_v25 = vld [vmem:[#allocation2 + $0x18] sm:$0xe]  ;;  %v2661_v58 = vld [vmem:[#allocation2 + $0x1c] sm:$0xf] }
  0xd7   : > { %v4405_v31 = vcombine.low %v1343_v51, %v1353_v4  ;;  %v1145_v9 = vor.u32 %v1144_v63, %v1141_v61  ;;  %v1154_v10 = vrot.slane %v1152_v13, 4  ;;  %v1158_v39 = vshll.u32 %v1068_v59, 16  ;;  %v2686_v51 = vld [vmem:[#allocation2 + $0x80] sm:$0x1]  ;;  %v4715_v59 = vld [vmem:[#allocation2 + $0x18] sm:$0xff]  }
  0xd8   : > { %v3217_v11 = vsel %vm5394_vm14, %v3212_v23, %v3216_v24  ;;  %v3222_v19 = vrot.slane %v3221_v5, 4  ;;  %v2377_v49 = vshrl.u32 %v2139_v0, 16  ;;  %v2380_v14 = vshll.u32 %v2139_v0, 16  ;;  %v2662_v5 = vld [vmem:[#allocation2 + $0x20] sm:$0x1] }
  0xd9   : > { %1564 = vrot.lane.b32.xlu1 %v4405_v31, %s5018_s7  ;;  %v1146_v15 = vrot.slane %v1145_v9, 4  ;;  %v1155_v55 = vor.u32 %v1154_v10, %v1150_v7  ;;  %v1160_v16 = vrot.slane %v1158_v39, 5  ;;  %v2386_v18 = vshll.u32 %v2140_v8, 16  ;;  %v404_v39 = vld [vmem:[#allocation2 + $0x84] sm:$0x1] }
  0xda   : > { %v3227_v22 = vsel %vm5394_vm14, %v3222_v19, %v3226_v60  ;;  %v2379_v29 = vrot.slane %v2377_v49, 4  ;;  %v2382_v46 = vrot.slane %v2380_v14, 5  ;;  %v2390_v62 = vshrl.u32 %v2140_v8, 16 }
  0xdb   : > { %v4524_v28 = vcombine.low %v3217_v11, %v3227_v22  ;;  %v1151_v30 = vsel %vm5394_vm14, %v1146_v15, %v1150_v7  ;;  %v1156_v33 = vrot.slane %v1155_v55, 4  ;;  %v2388_v57 = vrot.slane %v2386_v18, 5  ;;  %v347_v7 = vld [vmem:[%s5259_s9 + $0x50] sm:$0xf] }
  0xdc   : > { %v2383_v34 = vor.u32 %v2382_v46, %v2379_v29  ;;  %v2392_v3 = vrot.slane %v2390_v62, 4  ;;  %v2396_v37 = vshll.u32 %v2141_v42, 16  ;;  %v2185_v38 = vshrl.u32 %v2115_v21, 16  ;;  %v331_v46 = vld [vmem:[%s5259_s9 + $0x10] sm:$0xf] }
  0xdd   : > { %3636 = vrot.lane.b32.xlu0 %v4524_v28, %s5022_s16  ;;  %v1161_v41 = vsel %vm5394_vm14, %v1156_v33, %v1160_v16  ;;  %2065 = vrot.lane.b32.xlu1 %v4714_v17, %s5016_s29  ;;  %v2188_v56 = vshll.u32 %v2115_v21, 16  ;;  %v2194_v43 = vshll.u32 %v2116_v26, 16  ;;  %v2198_v44 = vshrl.u32 %v2116_v26, 16  ;;  %v348_v17 = vld [vmem:[%s5259_s9 + $0x54] sm:$0xf] }
  0xde   : > { %v4397_v47 = vcombine.low %v1151_v30, %v1161_v41  ;;  %v2384_v48 = vrot.slane %v2383_v34, 4  ;;  %v2393_v24 = vor.u32 %v2392_v3, %v2388_v57  ;;  %v2398_v50 = vrot.slane %v2396_v37, 5  ;;  %v380_v62 = vld [vmem:[#allocation2 + $0x24] sm:$0x1] }
  0xdf   : > { %v2187_v52 = vrot.slane %v2185_v38, 4  ;;  %v2190_v53 = vrot.slane %v2188_v56, 5  ;;  %v2196_v6 = vrot.slane %v2194_v43, 5  ;;  %v2200_v54 = vrot.slane %v2198_v44, 4  ;;  %v460_v38 = vld [vmem:[#allocation2 + $0x8c] sm:$0x1] }
  0xe0   : > { %v2389_v45 = vsel %vm5394_vm14, %v2384_v48, %v2388_v57  ;;  %v2394_v60 = vrot.slane %v2393_v24, 4  ;;  %v2204_v61 = vshll.u32 %v2117_v35, 16  ;;  %v4485_v63 = vrot.slane %v2684_v40, 9  ;;  %v332_v57 = vld [vmem:[%s5259_s9 + $0x14] sm:$0xf] }
  0xe1   : > { %1548 = vrot.lane.b32.xlu0 %v4397_v47, %s5018_s7  ;;  %v2191_v13 = vor.u32 %v2190_v53, %v2187_v52  ;;  %v2201_v0 = vor.u32 %v2200_v54, %v2196_v6  ;;  %v2818_v4 = vrot.slane %v2685_v12, 5  ;;  %v2821_v23 = vrot.slane %v2686_v51, 5  ;;  %v436_v40 = vld [vmem:[#allocation2 + $0x2c] sm:$0x1]  ;;  %v1093_v12 = vld [vmem:[#allocation2 + $0x78] sm:$0xf] }
  0xe2   : > { %v2399_v8 = vsel %vm5394_vm14, %v2394_v60, %v2398_v50  ;;  %v2206_v31 = vrot.slane %v2204_v61, 5  ;;  %v4477_v9 = vrot.slane %v2660_v25, 9  ;;  %v2762_v10 = vrot.slane %v2661_v58, 5  ;;  %v1094_v51 = vld [vmem:[#allocation2 + $0x7c] sm:$0xf] }
  0xe3   : > { %v4469_v11 = vcombine.low %v2389_v45, %v2399_v8  ;;  %v2192_v19 = vrot.slane %v2191_v13, 4  ;;  %v2202_v42 = vrot.slane %v2201_v0, 4  ;;  %v2819_v49 = vsel %vm5309_vm10, %v4485_v63, %v2818_v4  ;;  %v1095_v45 = vld [vmem:[#allocation2 + $0x80] sm:$0x1] }
  0xe4   : > { %v2820_v14 = vrot.slane %v2818_v4, 4  ;;  %v2763_v15 = vsel %vm5309_vm10, %v4477_v9, %v2762_v10  ;;  %v2764_v55 = vrot.slane %v2762_v10, 4  ;;  %v2765_v16 = vrot.slane %v2662_v5, 5  ;;  %v1069_v4 = vld [vmem:[#allocation2 + $0x18] sm:$0xf] }
  0xe5   : > { %2049 = vrot.lane.b32.xlu0 %v4715_v59, %s5016_s29  ;;  %2610 = vrot.lane.b32.xlu1 %v4469_v11, %s5021_s11  ;;  %v2197_v18 = vsel %vm5394_vm14, %v2192_v19, %v2196_v6  ;;  %v2207_v21 = vsel %vm5394_vm14, %v2202_v42, %v2206_v31  ;;  %v405_v22 = vsel %vm5278_vm4, 0, %v404_v39  ;;  %v654_v29 = vshrl.u32 %v347_v7, 16  ;;  %v1070_v9 = vld [vmem:[#allocation2 + $0x1c] sm:$0xf] }
  0xe6   : > { %v4461_v26 = vcombine.low %v2197_v18, %v2207_v21  ;;  %v2822_v28 = vsel %vm5309_vm10, %v2820_v14, %v2821_v23  ;;  %v2766_v30 = vsel %vm5309_vm10, %v2764_v55, %v2765_v16  ;;  %406 = vst [vmem:[#allocation2 + $0x84] sm:$0x1] %v405_v22  ;;  %v657_v33 = vshll.u32 %v347_v7, 16  ;;  %v5574_v14 = vld [vmem:[#allocation2 + $0x20] sm:$0x1] }
  0xe7   : > { %v4501_v35 = vcombine.low %v2819_v49, %v2822_v28  ;;  %v4493_v34 = vcombine.low %v2763_v15, %v2766_v30  ;;  %v656_v3 = vrot.slane %v654_v29, 7  ;;  %v662_v37 = vshrl.u32 %v348_v17, 16 }
  0xe8   : > { %v665_v41 = vshll.u32 %v348_v17, 16  ;;  %v381_v56 = vsel %vm5278_vm4, 0, %v380_v62  ;;  %v518_v43 = vshrl.u32 %v331_v46, 16  ;;  %v521_v44 = vshll.u32 %v331_v46, 16 }
  0xe9   : > { %2594 = vrot.lane.b32.xlu0 %v4461_v26, %s5021_s11  ;;  %2931 = vrot.lane.b32.xlu1 %v4501_v35, %s5019_s30  ;;  %v659_v47 = vor.u32 %v657_v33, %v656_v3  ;;  %v660_v48 = vrot.slane %v656_v3, 4  ;;  %v664_v24 = vrot.slane %v662_v37, 7  ;;  %382 = vst [vmem:[#allocation2 + $0x24] sm:$0x1] %v381_v56  ;;  %v526_v50 = vshrl.u32 %v332_v57, 16 }
  0xea   : > { %v520_v25 = vrot.slane %v518_v43, 7  ;;  %v529_v52 = vshll.u32 %v332_v57, 16  ;;  %v461_v53 = vsel %vm5283_vm5, 0, %v460_v38  ;;  %v437_v6 = vsel %vm5283_vm5, 0, %v436_v40  ;;  %v5579_v26 = vld [vmem:[#allocation2 + $0x78] sm:$0xe] }
  0xeb   : > { %v667_v54 = vor.u32 %v665_v41, %v664_v24  ;;  %v669_v58 = vrot.slane %v664_v24, 4  ;;  %v528_v59 = vrot.slane %v526_v50, 7  ;;  %462 = vst [vmem:[#allocation2 + $0x8c] sm:$0x1] %v461_v53  ;;  %438 = vst [vmem:[#allocation2 + $0x2c] sm:$0x1] %v437_v6 }
  0xec   : > { %v1355_v60 = vshrl.u32 %v1093_v12, 16  ;;  %v523_v61 = vor.u32 %v521_v44, %v520_v25  ;;  %v524_v63 = vrot.slane %v520_v25, 4  ;;  %v1358_v13 = vshll.u32 %v1093_v12, 16 }
  0xed   : > { %v1364_v0 = vshll.u32 %v1094_v51, 16  ;;  %2915 = vrot.lane.b32.xlu0 %v4493_v34, %s5019_s30  ;;  %v668_v23 = vsel %vm5302_vm9, %v660_v48, %v667_v54  ;;  %v876_v5 = vld [vmem:[#allocation2 + $0x84] sm:$0xf]  ;;  %v531_v7 = vor.u32 %v529_v52, %v528_v59  ;;  %v533_v8 = vrot.slane %v528_v59, 4 }
  0xee   : > { %v1357_v31 = vrot.slane %v1355_v60, 4  ;;  %v877_v10 = vsel %vm5316_vm11, %v659_v47, %v876_v5  ;;  %879 = vst.msk [vmem:[#allocation2 + $0x88] sm:$0xf] %vm359_vm0, %v668_v23  ;;  %v1360_v39 = vrot.slane %v1358_v13, 5  ;;  %v1368_v19 = vshrl.u32 %v1094_v51, 16 }
  0xef   : > { %v1366_v11 = vrot.slane %v1364_v0, 5  ;;  %878 = vst [vmem:[#allocation2 + $0x84] sm:$0xf] %v877_v10  ;;  %v532_v42 = vsel %vm5302_vm9, %v524_v63, %v531_v7  ;;  %v1374_v49 = vshll.u32 %v1095_v45, 16  ;;  %v1163_v15 = vshrl.u32 %v1069_v4, 16 }
  0xf0   : > { %v1166_v55 = vshll.u32 %v1069_v4, 16  ;;  %v820_v16 = vld [vmem:[#allocation2 + $0x24] sm:$0xf]  ;;  %823 = vst.msk [vmem:[#allocation2 + $0x28] sm:$0xf] %vm359_vm0, %v532_v42  ;;  %v1361_v17 = vor.u32 %v1360_v39, %v1357_v31  ;;  %v1370_v18 = vrot.slane %v1368_v19, 4 }
  0xf1   : > { %v1172_v21 = vshll.u32 %v1070_v9, 16  ;;  %v1176_v22 = vshrl.u32 %v1070_v9, 16  ;;  %v821_v29 = vsel %vm5316_vm11, %v523_v61, %v820_v16  ;;  %v1165_v46 = vrot.slane %v1163_v15, 4 }
  0xf2   : > { %v1168_v62 = vrot.slane %v1166_v55, 5  ;;  %822 = vst [vmem:[#allocation2 + $0x24] sm:$0xf] %v821_v29  ;;  %v880_v28 = vld [vmem:[#allocation2 + $0x8c] sm:$0x1]  ;;  %v1362_v33 = vrot.slane %v1361_v17, 4  ;;  %v1371_v57 = vor.u32 %v1370_v18, %v1366_v11 }
  0xf3   : > { %v824_v30 = vld [vmem:[#allocation2 + $0x2c] sm:$0x1]  ;;  %v1376_v35 = vrot.slane %v1374_v49, 5  ;;  %v881_v34 = vsel %vm5278_vm4, %v669_v58, %v880_v28  ;;  %v5585_v38 = vrot.slane %v1172_v21, 5  ;;  %v5587_v41 = vrot.slane %v1176_v22, 4 }
  0xf4   : > { %v825_v3 = vsel %vm5278_vm4, %v533_v8, %v824_v30  ;;  %v1169_v37 = vor.u32 %v1168_v62, %v1165_v46  ;;  %882 = vst [vmem:[#allocation2 + $0x8c] sm:$0x1] %v881_v34  ;;  %v1372_v40 = vrot.slane %v1371_v57, 4  ;;  %v1182_v56 = vshll.u32 %v5574_v14, 16  ;;  %v1642_v34 = vld [vmem:[#allocation2 + $0x7c] sm:$0xf] }
  0xf5   : > { %826 = vst [vmem:[#allocation2 + $0x2c] sm:$0x1] %v825_v3  ;;  %v4422_v43 = vrot.slane %v5579_v26, 9  ;;  %v3184_v44 = vld [vmem:[#allocation2 + $0x88] sm:$0xf]  ;;  %v1367_v50 = vsel %vm5394_vm14, %v1362_v33, %v1366_v11  ;;  %v1179_v60 = vor.u32 %v5587_v41, %v5585_v38  ;;  %vm1046_vm15 = vcmask 31744  }
  0xf6   : > { %v3729_v12 = vld [vmem:[#allocation2 + $0x88] sm:$0xf]  ;;  %v3183_v48 = vld [vmem:[#allocation2 + $0x84] sm:$0xf]  ;;  %v3430_v24 = vshll.u32 %v3184_v44, 16  ;;  %v1377_v51 = vsel %vm5394_vm14, %v1372_v40, %v1376_v35  ;;  %v3434_v53 = vshrl.u32 %v3184_v44, 16 }
  0xf7   : > { %v4716_v47 = vld [vmem:[#allocation2 + $0x84] sm:$0xff]   ;;  %v3421_v25 = vshrl.u32 %v3183_v48, 16  ;;  %v3424_v52 = vshll.u32 %v3183_v48, 16  ;;  %v3862_v6 = vrot.slane %v3729_v12, 5  ;;  %v5596_v45 = vrot.slane %v1169_v37, 4 }
  0xf8   : > { %3109 = vrot.lane.b32.xlu1 %v4716_v47, %s5017_s20  ;;  %v3432_v54 = vrot.slane %v3430_v24, 5  ;;  %v3160_v58 = vld [vmem:[#allocation2 + $0x28] sm:$0xf]  ;;  %v3728_v59 = vld [vmem:[#allocation2 + $0x84] sm:$0xe]  ;;  %v3436_v0 = vrot.slane %v3434_v53, 4  ;;  %v5600_v4 = vcombine.low %v1367_v50, %v1377_v51 }
  0xf9   : > { %v4717_v61 = vld [vmem:[#allocation2 + $0x24] sm:$0xff]   ;;  %v3423_v63 = vrot.slane %v3421_v25, 4  ;;  %v3426_v13 = vrot.slane %v3424_v52, 5  ;;  %v3238_v5 = vshll.u32 %v3160_v58, 16  ;;  %v3242_v7 = vshrl.u32 %v3160_v58, 16 }
  0xfa   : > { %v3159_v23 = vld [vmem:[#allocation2 + $0x24] sm:$0xf]  ;;  %v4549_v8 = vrot.slane %v3728_v59, 9  ;;  %v3864_v31 = vrot.slane %v3862_v6, 4  ;;  %3093 = vrot.lane.b32.xlu0 %v4717_v61, %s5017_s20  ;;  %v3437_v39 = vor.u32 %v3436_v0, %v3432_v54  ;;  %v3705_v57 = vld [vmem:[#allocation2 + $0x28] sm:$0xf]  ;;  %v1175_v52 = vsel %vm5394_vm14, %v5596_v45, %v5585_v38 }
  0xfb   : > { %v3185_v9 = vld [vmem:[#allocation2 + $0x8c] sm:$0x1]  ;;  %v3427_v10 = vor.u32 %v3426_v13, %v3423_v63  ;;  %v3229_v19 = vshrl.u32 %v3159_v23, 16  ;;  %v3232_v42 = vshll.u32 %v3159_v23, 16  ;;  %v3240_v15 = vrot.slane %v3238_v5, 5 }
  0xfc   : > { %v3161_v11 = vld [vmem:[#allocation2 + $0x2c] sm:$0x1]  ;;  %v3440_v49 = vshll.u32 %v3185_v9, 16  ;;  %v3244_v55 = vrot.slane %v3242_v7, 4  ;;  %v3438_v21 = vrot.slane %v3437_v39, 4  ;;  %v3863_v33 = vsel %vm5309_vm10, %v4549_v8, %v3862_v6 }
  0xfd   : > { %v3248_v16 = vshll.u32 %v3161_v11, 16  ;;  %v3730_v17 = vld [vmem:[#allocation2 + $0x8c] sm:$0x1]  ;;  %v3428_v18 = vrot.slane %v3427_v10, 4  ;;  %v3231_v22 = vrot.slane %v3229_v19, 4  ;;  %v3234_v29 = vrot.slane %v3232_v42, 5 }
  0xfe   : > { %v3704_v46 = vld [vmem:[#allocation2 + $0x24] sm:$0xe]  ;;  %v3442_v62 = vrot.slane %v3440_v49, 5  ;;  %v3245_v28 = vor.u32 %v3244_v55, %v3240_v15  ;;  %v3706_v35 = vld [vmem:[#allocation2 + $0x2c] sm:$0x1]  ;;  %v3865_v40 = vrot.slane %v3730_v17, 5 }
  0xff   : > { %v3250_v30 = vrot.slane %v3248_v16, 5  ;;  %v3433_v3 = vsel %vm5394_vm14, %v3428_v18, %v3432_v54  ;;  %v3235_v37 = vor.u32 %v3234_v29, %v3231_v22  ;;  %v4541_v41 = vrot.slane %v3704_v46, 9  ;;  %v1643_v44 = vld [vmem:[#allocation2 + $0x80] sm:$0x1]  ;;  %v1617_v53 = vld [vmem:[#allocation2 + $0x18] sm:$0xe] }
 0x100   : > { %v3443_v12 = vsel %vm5394_vm14, %v3438_v21, %v3442_v62  ;;  %v3246_v47 = vrot.slane %v3245_v28, 4  ;;  %v3806_v48 = vrot.slane %v3705_v57, 5  ;;  %v3809_v24 = vrot.slane %v3706_v35, 5  ;;  %v1618_v61 = vld [vmem:[#allocation2 + $0x1c] sm:$0xf] }
 0x101   : > { %v4533_v50 = vcombine.low %v3433_v3, %v3443_v12  ;;  %v3236_v51 = vrot.slane %v3235_v37, 4  ;;  %v3866_v25 = vsel %vm5309_vm10, %v3864_v31, %v3865_v40  ;;  %v1619_v63 = vld [vmem:[#allocation2 + $0x20] sm:$0x1]  ;;  %v1180_v0 = vrot.slane %v1179_v60, 4  ;;  %v2142_v23 = vld [vmem:[#allocation2 + $0x84] sm:$0xf] }
 0x102   : > { %v3251_v6 = vsel %vm5394_vm14, %v3246_v47, %v3250_v30  ;;  %v4565_v54 = vcombine.low %v3863_v33, %v3866_v25  ;;  %v3807_v58 = vsel %vm5309_vm10, %v4541_v41, %v3806_v48  ;;  %v3808_v59 = vrot.slane %v3806_v48, 4  ;;  %v2143_v9 = vld [vmem:[#allocation2 + $0x88] sm:$0xf]  ;;  %v2120_v33 = vld [vmem:[#allocation2 + $0x2c] sm:$0x1] }
 0x103   : > { %3654 = vrot.lane.b32.xlu1 %v4533_v50, %s5022_s16  ;;  %v3241_v13 = vsel %vm5394_vm14, %v3236_v51, %v3240_v15  ;;  %v1184_v38 = vrot.slane %v1182_v56, 5  ;;  %v1782_v45 = vrot.slane %v1642_v34, 5  ;;  %v1785_v8 = vrot.slane %v1643_v44, 5  ;;  %v2144_v56 = vld [vmem:[#allocation2 + $0x8c] sm:$0x1] }
 0x104   : > { %v4525_v5 = vcombine.low %v3241_v13, %v3251_v6  ;;  %v3810_v7 = vsel %vm5309_vm10, %v3808_v59, %v3809_v24  ;;  %v4414_v31 = vrot.slane %v1617_v53, 9  ;;  %v1726_v19 = vrot.slane %v1618_v61, 5  ;;  %v2118_v15 = vld [vmem:[#allocation2 + $0x24] sm:$0xf]  ;;  %v2119_v18 = vld [vmem:[#allocation2 + $0x28] sm:$0xf] }
 0x105   : > { %v4557_v10 = vcombine.low %v3807_v58, %v3810_v7  ;;  %v1185_v39 = vsel %vm5394_vm14, %v1180_v0, %v1184_v38  ;;  %v1783_v60 = vsel %vm5309_vm10, %v4422_v43, %v1782_v45  ;;  %v1784_v14 = vrot.slane %v1782_v45, 4  ;;  %v2687_v37 = vld [vmem:[#allocation2 + $0x84] sm:$0xe]  ;;  %v2688_v47 = vld [vmem:[#allocation2 + $0x88] sm:$0xf] }
 0x106   : > { %3638 = vrot.lane.b32.xlu0 %v4525_v5, %s5022_s16  ;;  %v4398_v11 = vcombine.low %v1175_v52, %v1185_v39  ;;  %v1729_v42 = vrot.slane %v1619_v63, 5  ;;  %v2401_v49 = vshrl.u32 %v2142_v23, 16  ;;  %v2404_v16 = vshll.u32 %v2142_v23, 16  ;;  %v2689_v48 = vld [vmem:[#allocation2 + $0x8c] sm:$0x1]  ;;  %v4718_v45 = vld [vmem:[#allocation2 + $0x84] sm:$0xff]  }
 0x107   : > { %3975 = vrot.lane.b32.xlu1 %v4565_v54, %s5020_s8  ;;  %v1786_v55 = vsel %vm5309_vm10, %v1784_v14, %v1785_v8  ;;  %v2410_v17 = vshll.u32 %v2143_v9, 16  ;;  %v2414_v26 = vshrl.u32 %v2143_v9, 16  ;;  %v1727_v43 = vsel %vm5309_vm10, %v4414_v31, %v1726_v19  ;;  %v2663_v52 = vld [vmem:[#allocation2 + $0x24] sm:$0xe]  ;;  %v407_v53 = vld [vmem:[#allocation2 + $0x90] sm:$0x1] }
 0x108   : > { %v4438_v21 = vcombine.low %v1783_v60, %v1786_v55  ;;  %v1728_v22 = vrot.slane %v1726_v19, 4  ;;  %v2403_v29 = vrot.slane %v2401_v49, 4  ;;  %v2406_v46 = vrot.slane %v2404_v16, 5  ;;  %v2664_v61 = vld [vmem:[#allocation2 + $0x28] sm:$0xf] }
 0x109   : > { %v2412_v62 = vrot.slane %v2410_v17, 5  ;;  %v2416_v28 = vrot.slane %v2414_v26, 4  ;;  %v2420_v30 = vshll.u32 %v2144_v56, 16  ;;  %v2209_v35 = vshrl.u32 %v2118_v15, 16  ;;  %v2665_v38 = vld [vmem:[#allocation2 + $0x2c] sm:$0x1] }
 0x10a   : > { %3959 = vrot.lane.b32.xlu0 %v4557_v10, %s5020_s8  ;;  %v1730_v57 = vsel %vm5309_vm10, %v1728_v22, %v1729_v42  ;;  %v2212_v34 = vshll.u32 %v2118_v15, 16  ;;  %v2218_v3 = vshll.u32 %v2119_v18, 16  ;;  %v2407_v41 = vor.u32 %v2406_v46, %v2403_v29  ;;  %v349_v31 = vld [vmem:[%s5259_s9 + $0x58] sm:$0xf]  ;;  %v350_v14 = vld [vmem:[%s5259_s9 + $0x5c] sm:$0xf] }
 0x10b   : > { %1566 = vrot.lane.b32.xlu1 %v5600_v4, %s5018_s7  ;;  %v4430_v40 = vcombine.low %v1727_v43, %v1730_v57  ;;  %v2417_v44 = vor.u32 %v2416_v28, %v2412_v62  ;;  %v2422_v12 = vrot.slane %v2420_v30, 5  ;;  %v2211_v24 = vrot.slane %v2209_v35, 4  ;;  %v383_v49 = vld [vmem:[#allocation2 + $0x30] sm:$0x1]  ;;  %v4719_v15 = vld [vmem:[#allocation2 + $0x24] sm:$0xff]  }
 0x10c   : > { %v2214_v50 = vrot.slane %v2212_v34, 5  ;;  %v2220_v51 = vrot.slane %v2218_v3, 5  ;;  %v2222_v25 = vshrl.u32 %v2119_v18, 16  ;;  %v2408_v6 = vrot.slane %v2407_v41, 4  ;;  %v333_v29 = vld [vmem:[%s5259_s9 + $0x18] sm:$0xf] }
 0x10d   : > { %v2418_v54 = vrot.slane %v2417_v44, 4  ;;  %v2228_v58 = vshll.u32 %v2120_v33, 16  ;;  %v4486_v59 = vrot.slane %v2687_v37, 9  ;;  %v2825_v13 = vrot.slane %v2688_v47, 5  ;;  %v334_v46 = vld [vmem:[%s5259_s9 + $0x1c] sm:$0xf] }
 0x10e   : > { %1550 = vrot.lane.b32.xlu0 %v4398_v11, %s5018_s7  ;;  %v2215_v4 = vor.u32 %v2214_v50, %v2211_v24  ;;  %v2224_v63 = vrot.slane %v2222_v25, 4  ;;  %v2828_v0 = vrot.slane %v2689_v48, 5  ;;  %v2413_v23 = vsel %vm5394_vm14, %v2408_v6, %v2412_v62  ;;  %v463_v57 = vld [vmem:[#allocation2 + $0x98] sm:$0x1]  ;;  %v1096_v41 = vld [vmem:[#allocation2 + $0x84] sm:$0xf] }
 0x10f   : > { %1890 = vrot.lane.b32.xlu1 %v4438_v21, %s5015_s27  ;;  %v2423_v5 = vsel %vm5394_vm14, %v2418_v54, %v2422_v12  ;;  %v2230_v7 = vrot.slane %v2228_v58, 5  ;;  %v4478_v8 = vrot.slane %v2663_v52, 9  ;;  %v5652_v60 = vsel %vm5309_vm10, %v4486_v59, %v2825_v13  ;;  %v439_v35 = vld [vmem:[#allocation2 + $0x38] sm:$0x1]  ;;  %v1097_v44 = vld [vmem:[#allocation2 + $0x88] sm:$0xf] }
 0x110   : > { %v4470_v9 = vcombine.low %v2413_v23, %v2423_v5  ;;  %v2216_v10 = vrot.slane %v2215_v4, 4  ;;  %v2225_v39 = vor.u32 %v2224_v63, %v2220_v51  ;;  %v2827_v56 = vrot.slane %v2825_v13, 4  ;;  %v1072_v6 = vld [vmem:[#allocation2 + $0x24] sm:$0xf]  ;;  %v5687_v4 = vld [vmem:[#allocation2 + $0x28] sm:$0xf] }
 0x111   : > { %v2769_v11 = vrot.slane %v2664_v61, 5  ;;  %v2772_v19 = vrot.slane %v2665_v38, 5  ;;  %v408_v42 = vsel %vm5278_vm4, 0, %v407_v53  ;;  %v671_v17 = vshrl.u32 %v349_v31, 16  ;;  %v1098_v53 = vld [vmem:[#allocation2 + $0x8c] sm:$0x1]  ;;  %v5691_v23 = vpop.permute.xlu1 %1870 }
 0x112   : > { %1874 = vrot.lane.b32.xlu0 %v4430_v40, %s5015_s27  ;;  %v2221_v55 = vsel %vm5394_vm14, %v2216_v10, %v2220_v51  ;;  %v2226_v16 = vrot.slane %v2225_v39, 4  ;;  %409 = vst [vmem:[#allocation2 + $0x90] sm:$0x1] %v408_v42  ;;  %v674_v26 = vshll.u32 %v349_v31, 16  ;;  %v2829_v18 = vsel %vm5309_vm10, %v2827_v56, %v2828_v0 }
 0x113   : > { %2067 = vrot.lane.b32.xlu1 %v4718_v45, %s5016_s29  ;;  %v5665_v21 = vsel %vm5309_vm10, %v4478_v8, %v2769_v11  ;;  %v2771_v43 = vrot.slane %v2769_v11, 4  ;;  %v679_v22 = vshrl.u32 %v350_v14, 16  ;;  %v4502_v28 = vcombine.low %v5652_v60, %v2829_v18 }
 0x114   : > { %v2231_v62 = vsel %vm5394_vm14, %v2226_v16, %v2230_v7  ;;  %v673_v30 = vrot.slane %v671_v17, 7  ;;  %v682_v33 = vshll.u32 %v350_v14, 16  ;;  %v384_v40 = vsel %vm5278_vm4, 0, %v383_v49  ;;  %v5698_v14 = vld [vmem:[#allocation2 + $0x2c] sm:$0x1] }
 0x115   : > { %v4462_v34 = vcombine.low %v2221_v55, %v2231_v62  ;;  %v2773_v3 = vsel %vm5309_vm10, %v2771_v43, %v2772_v19  ;;  %v5674_v37 = vrot.slane %v679_v22, 7  ;;  %385 = vst [vmem:[#allocation2 + $0x30] sm:$0x1] %v384_v40  ;;  %v535_v24 = vshrl.u32 %v333_v29, 16 }
 0x116   : > { %2051 = vrot.lane.b32.xlu0 %v4719_v15, %s5016_s29  ;;  %v4494_v12 = vcombine.low %v5665_v21, %v2773_v3  ;;  %v676_v47 = vor.u32 %v674_v26, %v673_v30  ;;  %v677_v48 = vrot.slane %v673_v30, 4  ;;  %v538_v25 = vshll.u32 %v333_v29, 16  ;;  %v5705_v26 = vld [vmem:[#allocation2 + $0x84] sm:$0xe]  ;;  %v5716_v30 = vpop.permute.xlu1 %2063 }
 0x117   : > { %2612 = vrot.lane.b32.xlu1 %v4470_v9, %s5021_s11  ;;  %v684_v50 = vor.u32 %v682_v33, %v5674_v37  ;;  %v686_v51 = vrot.slane %v5674_v37, 4  ;;  %v543_v52 = vshrl.u32 %v334_v46, 16  ;;  %v537_v54 = vrot.slane %v535_v24, 7 }
 0x118   : > { %v546_v58 = vshll.u32 %v334_v46, 16  ;;  %v464_v59 = vsel %vm5283_vm5, 0, %v463_v57  ;;  %v440_v61 = vsel %vm5283_vm5, 0, %v439_v35  ;;  %v1379_v38 = vshrl.u32 %v1096_v41, 16 }
 0x119   : > { %v685_v63 = vsel %vm5302_vm9, %v677_v48, %v684_v50  ;;  %v883_v13 = vld [vmem:[#allocation2 + $0x90] sm:$0xf]  ;;  %v545_v0 = vrot.slane %v543_v52, 7  ;;  %465 = vst [vmem:[#allocation2 + $0x98] sm:$0x1] %v464_v59  ;;  %v1382_v45 = vshll.u32 %v1096_v41, 16  ;;  %v540_v7 = vor.u32 %v538_v25, %v537_v54  ;;  %v5725_v50 = vpop.permute.xlu0 %2047 }
 0x11a   : > { %441 = vst [vmem:[#allocation2 + $0x38] sm:$0x1] %v440_v61  ;;  %2596 = vrot.lane.b32.xlu0 %v4462_v34, %s5021_s11  ;;  %v884_v5 = vsel %vm5316_vm11, %v676_v47, %v883_v13  ;;  %886 = vst.msk [vmem:[#allocation2 + $0x94] sm:$0xf] %vm359_vm0, %v685_v63  ;;  %v541_v8 = vrot.slane %v537_v54, 4  ;;  %v1388_v31 = vshll.u32 %v1097_v44, 16 }
 0x11b   : > { %2933 = vrot.lane.b32.xlu1 %v4502_v28, %s5019_s30  ;;  %885 = vst [vmem:[#allocation2 + $0x90] sm:$0xf] %v884_v5  ;;  %v548_v9 = vor.u32 %v546_v58, %v545_v0  ;;  %v550_v10 = vrot.slane %v545_v0, 4  ;;  %v1381_v39 = vrot.slane %v1379_v38, 4  ;;  %v1384_v60 = vrot.slane %v1382_v45, 5  ;;  %v5732_v38 = vpop.permute.xlu1 %3107 }
 0x11c   : > { %v5700_v56 = vrot.slane %v1388_v31, 5  ;;  %v1392_v11 = vshrl.u32 %v1097_v44, 16  ;;  %v1398_v19 = vshll.u32 %v1098_v53, 16  ;;  %v1187_v42 = vshrl.u32 %v1072_v6, 16  ;;  %v827_v15 = vld [vmem:[#allocation2 + $0x30] sm:$0xf] }
 0x11d   : > { %v549_v49 = vsel %vm5302_vm9, %v541_v8, %v548_v9  ;;  %v1385_v55 = vor.u32 %v1384_v60, %v1381_v39  ;;  %v1190_v16 = vshll.u32 %v1072_v6, 16  ;;  %v1196_v17 = vshll.u32 %v5687_v4, 16 }
 0x11e   : > { %2917 = vrot.lane.b32.xlu0 %v4494_v12, %s5019_s30  ;;  %v828_v18 = vsel %vm5316_vm11, %v540_v7, %v827_v15  ;;  %830 = vst.msk [vmem:[#allocation2 + $0x34] sm:$0xf] %vm359_vm0, %v549_v49  ;;  %v1394_v21 = vrot.slane %v1392_v11, 4  ;;  %v5711_v43 = vrot.slane %v1398_v19, 5  ;;  %v1189_v22 = vrot.slane %v1187_v42, 4 }
 0x11f   : > { %829 = vst [vmem:[#allocation2 + $0x30] sm:$0xf] %v828_v18  ;;  %v1386_v29 = vrot.slane %v1385_v55, 4  ;;  %v1192_v46 = vrot.slane %v1190_v16, 5  ;;  %v5713_v62 = vrot.slane %v1196_v17, 5  ;;  %v1200_v28 = vshrl.u32 %v5687_v4, 16  ;;  %v5750_v17 = vpop.permute.xlu0 %3091 }
 0x120   : > { %v887_v33 = vld [vmem:[#allocation2 + $0x98] sm:$0x1]  ;;  %v1395_v35 = vor.u32 %v1394_v21, %v5700_v56  ;;  %v1206_v34 = vshll.u32 %v5698_v14, 16  ;;  %v4423_v3 = vrot.slane %v5705_v26, 9  ;;  %vm1594_vm1 = vcmask 64544  }
 0x121   : > { %v831_v57 = vld [vmem:[#allocation2 + $0x38] sm:$0x1]  ;;  %v888_v37 = vsel %vm5278_vm4, %v686_v51, %v887_v33  ;;  %v3187_v40 = vld [vmem:[#allocation2 + $0x94] sm:$0xf]  ;;  %v1193_v12 = vor.u32 %v1192_v46, %v1189_v22  ;;  %v1391_v8 = vsel %vm5394_vm14, %v1386_v29, %v5700_v56  ;;  %v1202_v9 = vrot.slane %v1200_v28, 4 }
 0x122   : > { %v832_v41 = vsel %vm5278_vm4, %v550_v10, %v831_v57  ;;  %v3732_v44 = vld [vmem:[#allocation2 + $0x94] sm:$0xf]  ;;  %889 = vst [vmem:[#allocation2 + $0x98] sm:$0x1] %v888_v37  ;;  %v3186_v48 = vld [vmem:[#allocation2 + $0x90] sm:$0xf] }
 0x123   : > { %v4720_v47 = vld [vmem:[#allocation2 + $0x90] sm:$0xff]   ;;  %v3454_v24 = vshll.u32 %v3187_v40, 16  ;;  %833 = vst [vmem:[#allocation2 + $0x38] sm:$0x1] %v832_v41  ;;  %v3445_v25 = vshrl.u32 %v3186_v48, 16  ;;  %v3448_v52 = vshll.u32 %v3186_v48, 16  ;;  %v1203_v46 = vor.u32 %v1202_v9, %v5713_v62 }
 0x124   : > { %v3458_v53 = vshrl.u32 %v3187_v40, 16  ;;  %v3731_v6 = vld [vmem:[#allocation2 + $0x90] sm:$0xe]  ;;  %v3869_v54 = vrot.slane %v3732_v44, 5  ;;  %3111 = vrot.lane.b32.xlu1 %v4720_v47, %s5017_s20  ;;  %v1396_v59 = vrot.slane %v1395_v35, 4  ;;  %v5730_v61 = vrot.slane %v1193_v12, 4 }
 0x125   : > { %v5728_v51 = vrot.slane %v3454_v24, 5  ;;  %v4550_v58 = vrot.slane %v3731_v6, 9  ;;  %v3447_v4 = vrot.slane %v3445_v25, 4  ;;  %v3450_v63 = vrot.slane %v3448_v52, 5  ;;  %v3163_v60 = vld [vmem:[#allocation2 + $0x34] sm:$0xf] }
 0x126   : > { %v3460_v13 = vrot.slane %v3458_v53, 4  ;;  %v3871_v0 = vrot.slane %v3869_v54, 4  ;;  %v4721_v45 = vld [vmem:[#allocation2 + $0x30] sm:$0xff]   ;;  %v1401_v31 = vsel %vm5394_vm14, %v1396_v59, %v5711_v43  ;;  %v3262_v49 = vshll.u32 %v3163_v60, 16  ;;  %v1645_v48 = vld [vmem:[#allocation2 + $0x88] sm:$0xf] }
 0x127   : > { %v3162_v5 = vld [vmem:[#allocation2 + $0x30] sm:$0xf]  ;;  %v5736_v7 = vsel %vm5309_vm10, %v4550_v58, %v3869_v54  ;;  %v3451_v10 = vor.u32 %v3450_v63, %v3447_v4  ;;  %3095 = vrot.lane.b32.xlu0 %v4721_v45, %s5017_s20  ;;  %v3266_v15 = vshrl.u32 %v3163_v60, 16  ;;  %v3708_v55 = vld [vmem:[#allocation2 + $0x34] sm:$0xf]  ;;  %v1199_v56 = vsel %vm5394_vm14, %v5730_v61, %v5713_v62 }
 0x128   : > { %v3461_v39 = vor.u32 %v3460_v13, %v5728_v51  ;;  %v3253_v11 = vshrl.u32 %v3162_v5, 16  ;;  %v3256_v19 = vshll.u32 %v3162_v5, 16  ;;  %v3707_v42 = vld [vmem:[#allocation2 + $0x30] sm:$0xe]  ;;  %v5752_v29 = vcombine.low %v1391_v8, %v1401_v31  ;;  %v1646_v24 = vld [vmem:[#allocation2 + $0x8c] sm:$0x1]  ;;  %v5758_v52 = vpop.permute.xlu1 %1886  ;;  %v5767_v8 = vpop.permute.xlu0 %1546 }
 0x129   : > { %v4542_v16 = vrot.slane %v3707_v42, 9  ;;  %v3188_v18 = vld [vmem:[#allocation2 + $0x98] sm:$0x1]  ;;  %v3452_v21 = vrot.slane %v3451_v10, 4  ;;  %v3264_v35 = vrot.slane %v3262_v49, 5  ;;  %v3268_v41 = vrot.slane %v3266_v15, 4 }
 0x12a   : > { %v3462_v43 = vrot.slane %v3461_v39, 4  ;;  %v3164_v22 = vld [vmem:[#allocation2 + $0x38] sm:$0x1]  ;;  %v3464_v28 = vshll.u32 %v3188_v18, 16  ;;  %v3255_v33 = vrot.slane %v3253_v11, 4  ;;  %v3258_v57 = vrot.slane %v3256_v19, 5 }
 0x12b   : > { %v3733_v37 = vld [vmem:[#allocation2 + $0x98] sm:$0x1]  ;;  %v3457_v40 = vsel %vm5394_vm14, %v3452_v21, %v5728_v51  ;;  %v3272_v44 = vshll.u32 %v3164_v22, 16  ;;  %v1620_v25 = vld [vmem:[#allocation2 + $0x24] sm:$0xe]  ;;  %v3813_v6 = vrot.slane %v3708_v55, 5  ;;  %v3269_v58 = vor.u32 %v3268_v41, %v3264_v35 }
 0x12c   : > { %v3872_v12 = vrot.slane %v3733_v37, 5  ;;  %v3709_v47 = vld [vmem:[#allocation2 + $0x38] sm:$0x1]  ;;  %v3466_v53 = vrot.slane %v3464_v28, 5  ;;  %v3259_v62 = vor.u32 %v3258_v57, %v3255_v33  ;;  %v1204_v4 = vrot.slane %v1203_v46, 4 }
 0x12d   : > { %v3816_v54 = vrot.slane %v3709_v47, 5  ;;  %v3274_v59 = vrot.slane %v3272_v44, 5  ;;  %v3814_v45 = vsel %vm5309_vm10, %v4542_v16, %v3813_v6  ;;  %v1621_v5 = vld [vmem:[#allocation2 + $0x28] sm:$0xf]  ;;  %v3270_v9 = vrot.slane %v3269_v58, 4 }
 0x12e   : > { %v3873_v61 = vsel %vm5309_vm10, %v3871_v0, %v3872_v12  ;;  %v3467_v51 = vsel %vm5394_vm14, %v3462_v43, %v3466_v53  ;;  %v3260_v63 = vrot.slane %v3259_v62, 4  ;;  %v3815_v10 = vrot.slane %v3813_v6, 4  ;;  %v1622_v19 = vld [vmem:[#allocation2 + $0x2c] sm:$0x1]  ;;  %v2146_v55 = vld [vmem:[#allocation2 + $0x94] sm:$0xf] }
 0x12f   : > { %v4566_v13 = vcombine.low %v5736_v7, %v3873_v61  ;;  %v4534_v31 = vcombine.low %v3457_v40, %v3467_v51  ;;  %v1208_v39 = vrot.slane %v1206_v34, 5  ;;  %v1789_v60 = vrot.slane %v1645_v48, 5  ;;  %v2145_v34 = vld [vmem:[#allocation2 + $0x90] sm:$0xf]  ;;  %v5780_v16 = vpop.permute.xlu1 %2929  ;;  %v2147_v46 = vld [vmem:[#allocation2 + $0x98] sm:$0x1] }
 0x130   : > { %v3265_v0 = vsel %vm5394_vm14, %v3260_v63, %v3264_v35  ;;  %v1792_v11 = vrot.slane %v1646_v24, 5  ;;  %v4415_v42 = vrot.slane %v1620_v25, 9  ;;  %v3275_v7 = vsel %vm5394_vm14, %v3270_v9, %v3274_v59  ;;  %v2121_v28 = vld [vmem:[#allocation2 + $0x30] sm:$0xf]  ;;  %v2122_v48 = vld [vmem:[#allocation2 + $0x34] sm:$0xf] }
 0x131   : > { %3656 = vrot.lane.b32.xlu1 %v4534_v31, %s5022_s16  ;;  %v3817_v49 = vsel %vm5309_vm10, %v3815_v10, %v3816_v54  ;;  %v1209_v15 = vsel %vm5394_vm14, %v1204_v4, %v1208_v39  ;;  %v1733_v14 = vrot.slane %v1621_v5, 5  ;;  %v4526_v18 = vcombine.low %v3265_v0, %v3275_v7  ;;  %v2123_v24 = vld [vmem:[#allocation2 + $0x38] sm:$0x1]  ;;  %v2690_v58 = vld [vmem:[#allocation2 + $0x90] sm:$0xe] }
 0x132   : > { %v4558_v21 = vcombine.low %v3814_v45, %v3817_v49  ;;  %v4399_v43 = vcombine.low %v1199_v56, %v1209_v15  ;;  %v1790_v22 = vsel %vm5309_vm10, %v4423_v3, %v1789_v60  ;;  %v1791_v33 = vrot.slane %v1789_v60, 4  ;;  %v5791_v12 = vpop.permute.xlu0 %2913  ;;  %v2691_v59 = vld [vmem:[#allocation2 + $0x94] sm:$0xf]  ;;  %v2666_v39 = vld [vmem:[#allocation2 + $0x30] sm:$0xe] }
 0x133   : > { %v5788_v57 = vsel %vm5309_vm10, %v4415_v42, %v1733_v14  ;;  %v1735_v35 = vrot.slane %v1733_v14, 4  ;;  %v1736_v37 = vrot.slane %v1622_v19, 5  ;;  %3640 = vrot.lane.b32.xlu0 %v4526_v18, %s5022_s16  ;;  %v2425_v40 = vshrl.u32 %v2145_v34, 16  ;;  %v2667_v42 = vld [vmem:[#allocation2 + $0x34] sm:$0xf] }
 0x134   : > { %v2428_v41 = vshll.u32 %v2145_v34, 16  ;;  %v2434_v44 = vshll.u32 %v2146_v55, 16  ;;  %v2438_v56 = vshrl.u32 %v2146_v55, 16  ;;  %v1793_v26 = vsel %vm5309_vm10, %v1791_v33, %v1792_v11  ;;  %v2668_v34 = vld [vmem:[#allocation2 + $0x38] sm:$0x1] }
 0x135   : > { %3977 = vrot.lane.b32.xlu1 %v4566_v13, %s5020_s8  ;;  %v5798_v3 = vsel %vm5309_vm10, %v1735_v35, %v1736_v37  ;;  %v2444_v47 = vshll.u32 %v2147_v46, 16  ;;  %v2233_v25 = vshrl.u32 %v2121_v28, 16  ;;  %v4439_v53 = vcombine.low %v1790_v22, %v1793_v26  ;;  %v2692_v13 = vld [vmem:[#allocation2 + $0x98] sm:$0x1] }
 0x136   : > { %v4431_v62 = vcombine.low %v5788_v57, %v5798_v3  ;;  %v2427_v6 = vrot.slane %v2425_v40, 4  ;;  %v2430_v54 = vrot.slane %v2428_v41, 5  ;;  %v2436_v61 = vrot.slane %v2434_v44, 5  ;;  %v351_v37 = vld [vmem:[%s5259_s9 + $0x60] sm:$0xf]  ;;  %v4722_v41 = vld [vmem:[#allocation2 + $0x90] sm:$0xff]  }
 0x137   : > { %v2440_v4 = vrot.slane %v2438_v56, 4  ;;  %v2446_v51 = vrot.slane %v2444_v47, 5  ;;  %v2235_v63 = vrot.slane %v2233_v25, 4  ;;  %v5802_v45 = vpop.permute.xlu1 %3973  ;;  %3961 = vrot.lane.b32.xlu0 %v4558_v21, %s5020_s8  ;;  %v2236_v31 = vshll.u32 %v2121_v28, 16  ;;  %v410_v40 = vld [vmem:[#allocation2 + $0x9c] sm:$0x1] }
 0x138   : > { %v2431_v5 = vor.u32 %v2430_v54, %v2427_v6  ;;  %v2242_v9 = vshll.u32 %v2122_v48, 16  ;;  %v2246_v10 = vshrl.u32 %v2122_v48, 16  ;;  %v2252_v60 = vshll.u32 %v2123_v24, 16  ;;  %v335_v6 = vld [vmem:[%s5259_s9 + $0x20] sm:$0xf] }
 0x139   : > { %1568 = vrot.lane.b32.xlu1 %v5752_v29, %s5018_s7  ;;  %v2441_v0 = vor.u32 %v2440_v4, %v2436_v61  ;;  %v4487_v11 = vrot.slane %v2690_v58, 9  ;;  %v2832_v19 = vrot.slane %v2691_v59, 5  ;;  %v2238_v49 = vrot.slane %v2236_v31, 5  ;;  %v336_v54 = vld [vmem:[%s5259_s9 + $0x24] sm:$0xf] }
 0x13a   : > { %v2432_v7 = vrot.slane %v2431_v5, 4  ;;  %v2244_v15 = vrot.slane %v2242_v9, 5  ;;  %v2248_v14 = vrot.slane %v2246_v10, 4  ;;  %v5807_v55 = vpop.permute.xlu0 %3957  ;;  %v2254_v21 = vrot.slane %v2252_v60, 5  ;;  %v4723_v5 = vld [vmem:[#allocation2 + $0x30] sm:$0xff]  }
 0x13b   : > { %v2442_v18 = vrot.slane %v2441_v0, 4  ;;  %v5811_v22 = vsel %vm5309_vm10, %v4487_v11, %v2832_v19  ;;  %v2834_v29 = vrot.slane %v2832_v19, 4  ;;  %v5813_v46 = vpop.permute.xlu1 %1888  ;;  %1552 = vrot.lane.b32.xlu0 %v4399_v43, %s5018_s7  ;;  %v2239_v33 = vor.u32 %v2238_v49, %v2235_v63  ;;  %v352_v43 = vld [vmem:[%s5259_s9 + $0x64] sm:$0xf]  ;;  %v466_v63 = vld [vmem:[#allocation2 + $0xa4] sm:$0x1] }
 0x13c   : > { %v2437_v28 = vsel %vm5394_vm14, %v2432_v7, %v2436_v61  ;;  %v2249_v57 = vor.u32 %v2248_v14, %v2244_v15  ;;  %v2835_v35 = vrot.slane %v2692_v13, 5  ;;  %v4479_v56 = vrot.slane %v2666_v39, 9  ;;  %v442_v0 = vld [vmem:[#allocation2 + $0x44] sm:$0x1]  ;;  %v4730_v49 = vld [vmem:[#allocation2 + $0x6c] sm:$0xff]   ;;  %v4736_v14 = vld [vmem:[#allocation2 + $0x78] sm:$0xff]  }
 0x13d   : > { %1892 = vrot.lane.b32.xlu1 %v4439_v53, %s5015_s27  ;;  %v2447_v44 = vsel %vm5394_vm14, %v2442_v18, %v2446_v51  ;;  %v2776_v26 = vrot.slane %v2667_v42, 5  ;;  %v2779_v3 = vrot.slane %v2668_v34, 5  ;;  %v2240_v48 = vrot.slane %v2239_v33, 4  ;;  %v386_v51 = vld [vmem:[#allocation2 + $0x3c] sm:$0x1]  ;;  %v4726_v42 = vld [vmem:[#allocation2] sm:$0xff]  }
 0x13e   : > { %v4471_v47 = vcombine.low %v2437_v28, %v2447_v44  ;;  %v2250_v24 = vrot.slane %v2249_v57, 4  ;;  %v5825_v25 = vsel %vm5309_vm10, %v2834_v29, %v2835_v35  ;;  %v5829_v58 = vpop.permute.xlu0 %1872  ;;  %v411_v4 = vsel %vm5278_vm4, 0, %v410_v40  ;;  %v4729_v7 = vld [vmem:[#allocation2 + $0x60] sm:$0xff]   ;;  %v4737_v28 = vld [vmem:[#allocation2 + $0x18] sm:$0xff]   ;;  %v1099_v40 = vld [vmem:[#allocation2 + $0x90] sm:$0xf] }
 0x13f   : > { %v4503_v53 = vcombine.low %v5811_v22, %v5825_v25  ;;  %v5835_v59 = vsel %vm5309_vm10, %v4479_v56, %v2776_v26  ;;  %v2778_v61 = vrot.slane %v2776_v26, 4  ;;  %v5839_v13 = vpop.permute.xlu1 %2608  ;;  %1876 = vrot.lane.b32.xlu0 %v4431_v62, %s5015_s27  ;;  %v2245_v31 = vsel %vm5394_vm14, %v2240_v48, %v2244_v15  ;;  %412 = vst [vmem:[#allocation2 + $0x9c] sm:$0x1] %v411_v4  ;;  %v4733_v15 = vld [vmem:[#allocation2 + $0xc] sm:$0xff]  }
 0x140   : > { %v2255_v9 = vsel %vm5394_vm14, %v2250_v24, %v2254_v21  ;;  %v688_v10 = vshrl.u32 %v351_v37, 16  ;;  %v691_v39 = vshll.u32 %v351_v37, 16  ;;  %v696_v19 = vshrl.u32 %v352_v43, 16  ;;  %1047 = vst.msk [vmem:[#allocation3] sm:$0xff] %vm1046_vm15, %v4726_v42  ;;  %1055 = vst.msk [vmem:[#allocation3 + $0x40] sm:$0xff] %vm1046_vm15, %v4729_v7 }
 0x141   : > { %2069 = vrot.lane.b32.xlu1 %v4722_v41, %s5016_s29  ;;  %v4463_v60 = vcombine.low %v2245_v31, %v2255_v9  ;;  %v5849_v11 = vsel %vm5309_vm10, %v2778_v61, %v2779_v3  ;;  %v699_v62 = vshll.u32 %v352_v43, 16  ;;  %v387_v21 = vsel %vm5278_vm4, 0, %v386_v51  ;;  %v1100_v43 = vld [vmem:[#allocation2 + $0x94] sm:$0xf]  ;;  %v1101_v61 = vld [vmem:[#allocation2 + $0x98] sm:$0x1] }
 0x142   : > { %v4495_v34 = vcombine.low %v5835_v59, %v5849_v11  ;;  %v690_v18 = vrot.slane %v688_v10, 7  ;;  %v552_v29 = vshrl.u32 %v335_v6, 16  ;;  %v5855_v33 = vrot.slane %v696_v19, 7  ;;  %388 = vst [vmem:[#allocation2 + $0x3c] sm:$0x1] %v387_v21  ;;  %v1563_v41 = vpop.permute.xlu0 %1562  ;;  %1056 = vst.msk [vmem:[#allocation3 + $0x48] sm:$0xff] %vm1046_vm15, %v4730_v49 }
 0x143   : > { %v555_v57 = vshll.u32 %v335_v6, 16  ;;  %v560_v35 = vshrl.u32 %v336_v54, 16  ;;  %v563_v37 = vshll.u32 %v336_v54, 16  ;;  %2053 = vrot.lane.b32.xlu0 %v4723_v5, %s5016_s29  ;;  %v467_v3 = vsel %vm5283_vm5, 0, %v466_v63  ;;  %v5867_v4 = vpop.permute.xlu1 %3652  ;;  %v1075_v63 = vld [vmem:[#allocation2 + $0x30] sm:$0xf] }
 0x144   : > { %v693_v44 = vor.u32 %v691_v39, %v690_v18  ;;  %v694_v56 = vrot.slane %v690_v18, 4  ;;  %v554_v26 = vrot.slane %v552_v29, 7  ;;  %v701_v48 = vor.u32 %v699_v62, %v5855_v33  ;;  %468 = vst [vmem:[#allocation2 + $0xa4] sm:$0x1] %v467_v3  ;;  %v5874_v39 = vld [vmem:[#allocation2 + $0x34] sm:$0xf] }
 0x145   : > { %2614 = vrot.lane.b32.xlu1 %v4471_v47, %s5021_s11  ;;  %v703_v24 = vrot.slane %v5855_v33, 4  ;;  %v5863_v6 = vrot.slane %v560_v35, 7  ;;  %v443_v54 = vsel %vm5283_vm5, 0, %v442_v0  ;;  %vm1918_vm2 = vcmask 97344   ;;  %1048 = vst.msk [vmem:[#allocation3 + $0x8] sm:$0xff] %vm1046_vm15, %v4733_v15  ;;  %1057 = vst.msk [vmem:[#allocation3 + $0x50] sm:$0xff] %vm1046_vm15, %v4736_v14 }
 0x146   : > { %v557_v51 = vor.u32 %v555_v57, %v554_v26  ;;  %v558_v5 = vrot.slane %v554_v26, 4  ;;  %444 = vst [vmem:[#allocation2 + $0x44] sm:$0x1] %v443_v54  ;;  %v702_v47 = vsel %vm5302_vm9, %v694_v56, %v701_v48  ;;  %v890_v31 = vld [vmem:[#allocation2 + $0x9c] sm:$0xf]  ;;  %1049 = vst.msk [vmem:[#allocation3 + $0x10] sm:$0xff] %vm1046_vm15, %v4737_v28  ;;  %v5900_v14 = vpop.permute.xlu0 %2592 }
 0x147   : > { %v565_v9 = vor.u32 %v563_v37, %v5863_v6  ;;  %v567_v10 = vrot.slane %v5863_v6, 4  ;;  %2598 = vrot.lane.b32.xlu0 %v4463_v60, %s5021_s11  ;;  %v891_v0 = vsel %vm5316_vm11, %v693_v44, %v890_v31  ;;  %893 = vst.msk [vmem:[#allocation2 + $0xa0] sm:$0xf] %vm359_vm0, %v702_v47  ;;  %v1403_v19 = vshrl.u32 %v1099_v40, 16  ;;  %v5887_v7 = vld [vmem:[#allocation2 + $0x38] sm:$0x1] }
 0x148   : > { %1595 = vst.msk [vmem:[#allocation3] sm:$0xff] %vm1594_vm1, %v5767_v8  ;;  %v1406_v62 = vshll.u32 %v1099_v40, 16  ;;  %v1412_v42 = vshll.u32 %v1100_v43, 16  ;;  %1603 = vst.msk [vmem:[#allocation3 + $0x40] sm:$0xff] %vm1594_vm1, %v1563_v41  ;;  %v1416_v8 = vshrl.u32 %v1100_v43, 16  ;;  %v1422_v49 = vshll.u32 %v1101_v61, 16 }
 0x149   : > { %2935 = vrot.lane.b32.xlu1 %v4503_v53, %s5019_s30  ;;  %892 = vst [vmem:[#allocation2 + $0x9c] sm:$0xf] %v891_v0  ;;  %v566_v60 = vsel %vm5302_vm9, %v558_v5, %v565_v9  ;;  %1919 = vst.msk [vmem:[#allocation3] sm:$0xff] %vm1918_vm2, %v5691_v23  ;;  %v1211_v15 = vshrl.u32 %v1075_v63, 16  ;;  %v834_v18 = vld [vmem:[#allocation2 + $0x3c] sm:$0xf] }
 0x14a   : > { %1927 = vst.msk [vmem:[#allocation3 + $0x40] sm:$0xff] %vm1918_vm2, %v5758_v52  ;;  %v1405_v22 = vrot.slane %v1403_v19, 4  ;;  %v1408_v25 = vrot.slane %v1406_v62, 5  ;;  %v5903_v53 = vrot.slane %v1412_v42, 5  ;;  %v1214_v21 = vshll.u32 %v1075_v63, 16 }
 0x14b   : > { %837 = vst.msk [vmem:[#allocation2 + $0x40] sm:$0xf] %vm359_vm0, %v566_v60  ;;  %v835_v29 = vsel %vm5316_vm11, %v557_v51, %v834_v18  ;;  %v1418_v23 = vrot.slane %v1416_v8, 4  ;;  %v5907_v28 = vrot.slane %v1422_v49, 5  ;;  %v5909_v33 = vld [vmem:[#allocation2 + $0x90] sm:$0xe]  ;;  %v1565_v57 = vpop.permute.xlu1 %1564  ;;  %2919 = vrot.lane.b32.xlu0 %v4495_v34, %s5019_s30 }
 0x14c   : > { %836 = vst [vmem:[#allocation2 + $0x3c] sm:$0xf] %v835_v29  ;;  %v894_v52 = vld [vmem:[#allocation2 + $0xa4] sm:$0x1]  ;;  %v1409_v35 = vor.u32 %v1408_v25, %v1405_v22  ;;  %v5915_v37 = vrot.slane %v1211_v15, 4  ;;  %v5917_v40 = vrot.slane %v1214_v21, 5 }
 0x14d   : > { %v1220_v41 = vshll.u32 %v5874_v39, 16  ;;  %1604 = vst.msk [vmem:[#allocation3 + $0x48] sm:$0xff] %vm1594_vm1, %v1565_v57  ;;  %v895_v44 = vsel %vm5278_vm4, %v703_v24, %v894_v52  ;;  %v838_v56 = vld [vmem:[#allocation2 + $0x44] sm:$0x1]  ;;  %v1419_v26 = vor.u32 %v1418_v23, %v5903_v53  ;;  %v1224_v59 = vshrl.u32 %v5874_v39, 16 }
 0x14e   : > { %v1230_v11 = vshll.u32 %v5887_v7, 16  ;;  %1928 = vst.msk [vmem:[#allocation3 + $0x48] sm:$0xff] %vm1918_vm2, %v5813_v46  ;;  %896 = vst [vmem:[#allocation2 + $0xa4] sm:$0x1] %v895_v44  ;;  %v839_v34 = vsel %vm5278_vm4, %v567_v10, %v838_v56  ;;  %v5930_v3 = vrot.slane %v1409_v35, 4  ;;  %v4424_v48 = vrot.slane %v5909_v33, 9 }
 0x14f   : > { %v5932_v43 = vrot.slane %v1220_v41, 5  ;;  %v3190_v24 = vld [vmem:[#allocation2 + $0xa0] sm:$0xf]  ;;  %840 = vst [vmem:[#allocation2 + $0x44] sm:$0x1] %v839_v34  ;;  %v5935_v54 = vpop.permute.xlu0 %3636  ;;  %v1420_v19 = vrot.slane %v1419_v26, 4  ;;  %v1217_v62 = vor.u32 %v5917_v40, %v5915_v37 }
 0x150   : > { %v3735_v6 = vld [vmem:[#allocation2 + $0xa0] sm:$0xf]  ;;  %v3189_v51 = vld [vmem:[#allocation2 + $0x9c] sm:$0xf]  ;;  %v3478_v5 = vshll.u32 %v3190_v24, 16  ;;  %v3482_v47 = vshrl.u32 %v3190_v24, 16  ;;  %v1415_v15 = vsel %vm5394_vm14, %v5930_v3, %v5903_v53 }
 0x151   : > { %v4724_v61 = vld [vmem:[#allocation2 + $0x9c] sm:$0xff]   ;;  %v3469_v63 = vshrl.u32 %v3189_v51, 16  ;;  %v3472_v46 = vshll.u32 %v3189_v51, 16  ;;  %v3876_v31 = vrot.slane %v3735_v6, 5  ;;  %vm2095_vm3 = vcmask 130144  }
 0x152   : > { %3113 = vrot.lane.b32.xlu1 %v4724_v61, %s5017_s20  ;;  %v3480_v9 = vrot.slane %v3478_v5, 5  ;;  %v3166_v10 = vld [vmem:[#allocation2 + $0x40] sm:$0xf]  ;;  %v3734_v0 = vld [vmem:[#allocation2 + $0x9c] sm:$0xe]  ;;  %v3484_v49 = vrot.slane %v3482_v47, 4 }
 0x153   : > { %v4725_v42 = vld [vmem:[#allocation2 + $0x3c] sm:$0xff]   ;;  %v3471_v60 = vrot.slane %v3469_v63, 4  ;;  %v3474_v8 = vrot.slane %v3472_v46, 5  ;;  %v1549_v18 = vpop.permute.xlu0 %1548  ;;  %v3286_v25 = vshll.u32 %v3166_v10, 16  ;;  %v3290_v21 = vshrl.u32 %v3166_v10, 16  ;;  %2104 = vst.msk [vmem:[#allocation3 + $0x40] sm:$0xff] %vm2095_vm3, %v5716_v30 }
 0x154   : > { %v3165_v22 = vld [vmem:[#allocation2 + $0x3c] sm:$0xf]  ;;  %v4551_v29 = vrot.slane %v3734_v0, 9  ;;  %v3878_v23 = vrot.slane %v3876_v31, 4  ;;  %1596 = vst.msk [vmem:[#allocation3 + $0x8] sm:$0xff] %vm1594_vm1, %v1549_v18  ;;  %3097 = vrot.lane.b32.xlu0 %v4725_v42, %s5017_s20  ;;  %v3485_v35 = vor.u32 %v3484_v49, %v3480_v9  ;;  %v5950_v0 = vpop.permute.xlu1 %2065  ;;  %vm2640_vm6 = vcmask 162944  }
 0x155   : > { %v3191_v57 = vld [vmem:[#allocation2 + $0xa4] sm:$0x1]  ;;  %v3475_v52 = vor.u32 %v3474_v8, %v3471_v60  ;;  %v3277_v37 = vshrl.u32 %v3165_v22, 16  ;;  %v3280_v40 = vshll.u32 %v3165_v22, 16  ;;  %1920 = vst.msk [vmem:[#allocation3 + $0x8] sm:$0xff] %vm1918_vm2, %v5829_v58  ;;  %v3288_v56 = vrot.slane %v3286_v25, 5 }
 0x156   : > { %v3736_v41 = vld [vmem:[#allocation2 + $0xa4] sm:$0x1]  ;;  %v3488_v53 = vshll.u32 %v3191_v57, 16  ;;  %v3292_v26 = vrot.slane %v3290_v21, 4  ;;  %v3877_v34 = vsel %vm5309_vm10, %v4551_v29, %v3876_v31  ;;  %v3486_v24 = vrot.slane %v3485_v35, 4  ;;  %2096 = vst.msk [vmem:[#allocation3] sm:$0xff] %vm2095_vm3, %v5725_v50 }
 0x157   : > { %v3167_v44 = vld [vmem:[#allocation2 + $0x44] sm:$0x1]  ;;  %v3476_v3 = vrot.slane %v3475_v52, 4  ;;  %v3279_v6 = vrot.slane %v3277_v37, 4  ;;  %v3282_v61 = vrot.slane %v3280_v40, 5  ;;  %v3879_v47 = vrot.slane %v3736_v41, 5 }
 0x158   : > { %v3710_v51 = vld [vmem:[#allocation2 + $0x3c] sm:$0xe]  ;;  %v3490_v5 = vrot.slane %v3488_v53, 5  ;;  %v3293_v63 = vor.u32 %v3292_v26, %v3288_v56  ;;  %v3296_v46 = vshll.u32 %v3167_v44, 16  ;;  %v3711_v10 = vld [vmem:[#allocation2 + $0x40] sm:$0xf]  ;;  %v1425_v44 = vsel %vm5394_vm14, %v1420_v19, %v5907_v28 }
 0x159   : > { %v3481_v58 = vsel %vm5394_vm14, %v3476_v3, %v3480_v9  ;;  %v3283_v42 = vor.u32 %v3282_v61, %v3279_v6  ;;  %v3712_v60 = vld [vmem:[#allocation2 + $0x44] sm:$0x1]  ;;  %v4543_v8 = vrot.slane %v3710_v51, 9  ;;  %v3820_v49 = vrot.slane %v3711_v10, 5  ;;  %v1648_v35 = vld [vmem:[#allocation2 + $0x94] sm:$0xf]  ;;  %v2050_v9 = vpop.permute.xlu0 %2049 }
 0x15a   : > { %v3491_v31 = vsel %vm5394_vm14, %v3486_v24, %v3490_v5  ;;  %v3294_v18 = vrot.slane %v3293_v63, 4  ;;  %v3298_v22 = vrot.slane %v3296_v46, 5  ;;  %v3880_v25 = vsel %vm5309_vm10, %v3878_v23, %v3879_v47  ;;  %v4742_v37 = vld [vmem:[#allocation2 + $0x84] sm:$0xff]   ;;  %v1649_v26 = vld [vmem:[#allocation2 + $0x98] sm:$0x1]  ;;  %2105 = vst.msk [vmem:[#allocation3 + $0x48] sm:$0xff] %vm2095_vm3, %v5950_v0 }
 0x15b   : > { %v4535_v21 = vcombine.low %v3481_v58, %v3491_v31  ;;  %v3284_v29 = vrot.slane %v3283_v42, 4  ;;  %v4567_v57 = vcombine.low %v3877_v34, %v3880_v25  ;;  %v3821_v52 = vsel %vm5309_vm10, %v4543_v8, %v3820_v49  ;;  %v1623_v6 = vld [vmem:[#allocation2 + $0x30] sm:$0xe]  ;;  %v1624_v61 = vld [vmem:[#allocation2 + $0x34] sm:$0xf]  ;;  %1058 = vst.msk [vmem:[#allocation3 + $0x58] sm:$0xff] %vm1046_vm15, %v4742_v37 }
 0x15c   : > { %v3299_v40 = vsel %vm5394_vm14, %v3294_v18, %v3298_v22  ;;  %v3822_v41 = vrot.slane %v3820_v49, 4  ;;  %v3823_v53 = vrot.slane %v3712_v60, 5  ;;  %v4408_v34 = vcombine.low %v1415_v15, %v1425_v44  ;;  %v1625_v63 = vld [vmem:[#allocation2 + $0x38] sm:$0x1]  ;;  %v2148_v46 = vld [vmem:[#allocation2 + $0x9c] sm:$0xf] }
 0x15d   : > { %3658 = vrot.lane.b32.xlu1 %v4535_v21, %s5022_s16  ;;  %v3289_v23 = vsel %vm5394_vm14, %v3284_v29, %v3288_v56  ;;  %v1218_v3 = vrot.slane %v1217_v62, 4  ;;  %v1226_v24 = vrot.slane %v1224_v59, 4  ;;  %v1232_v28 = vrot.slane %v1230_v11, 5  ;;  %v5975_v56 = vpop.permute.xlu1 %2610  ;;  %v4743_v47 = vld [vmem:[#allocation2 + $0x24] sm:$0xff]   ;;  %v2149_v42 = vld [vmem:[#allocation2 + $0xa0] sm:$0xf] }
 0x15e   : > { %v4527_v51 = vcombine.low %v3289_v23, %v3299_v40  ;;  %v3824_v5 = vsel %vm5309_vm10, %v3822_v41, %v3823_v53  ;;  %v1796_v19 = vrot.slane %v1648_v35, 5  ;;  %v1799_v15 = vrot.slane %v1649_v26, 5  ;;  %1050 = vst.msk [vmem:[#allocation3 + $0x18] sm:$0xff] %vm1046_vm15, %v4743_v47  ;;  %v2150_v18 = vld [vmem:[#allocation2 + $0xa4] sm:$0x1] }
 0x15f   : > { %v4559_v62 = vcombine.low %v3821_v52, %v3824_v5  ;;  %v1223_v39 = vsel %vm5394_vm14, %v1218_v3, %v5932_v43  ;;  %v1227_v59 = vor.u32 %v1226_v24, %v5932_v43  ;;  %v4416_v10 = vrot.slane %v1623_v6, 9  ;;  %v2595_v43 = vpop.permute.xlu0 %2594  ;;  %v2124_v25 = vld [vmem:[#allocation2 + $0x3c] sm:$0xf]  ;;  %2097 = vst.msk [vmem:[#allocation3 + $0x8] sm:$0xff] %vm2095_vm3, %v2050_v9  ;;  %v2125_v35 = vld [vmem:[#allocation2 + $0x40] sm:$0xf] }
 0x160   : > { %3642 = vrot.lane.b32.xlu0 %v4527_v51, %s5022_s16  ;;  %v1797_v7 = vsel %vm5309_vm10, %v4424_v48, %v1796_v19  ;;  %v1798_v11 = vrot.slane %v1796_v19, 4  ;;  %v1740_v58 = vrot.slane %v1624_v61, 5  ;;  %v1743_v8 = vrot.slane %v1625_v63, 5  ;;  %v2126_v41 = vld [vmem:[#allocation2 + $0x44] sm:$0x1]  ;;  %2649 = vst.msk [vmem:[#allocation3 + $0x40] sm:$0xff] %vm2640_vm6, %v5839_v13 }
 0x161   : > { %3979 = vrot.lane.b32.xlu1 %v4567_v57, %s5020_s8  ;;  %v1228_v60 = vrot.slane %v1227_v59, 4  ;;  %v2449_v49 = vshrl.u32 %v2148_v46, 16  ;;  %v2452_v22 = vshll.u32 %v2148_v46, 16  ;;  %v2458_v52 = vshll.u32 %v2149_v42, 16  ;;  %v2932_v53 = vpop.permute.xlu1 %2931  ;;  %v2693_v19 = vld [vmem:[#allocation2 + $0x9c] sm:$0xe] }
 0x162   : > { %v1800_v31 = vsel %vm5309_vm10, %v1798_v11, %v1799_v15  ;;  %v5992_v33 = vsel %vm5309_vm10, %v4416_v10, %v1740_v58  ;;  %v1742_v48 = vrot.slane %v1740_v58, 4  ;;  %v2462_v40 = vshrl.u32 %v2149_v42, 16  ;;  %v4727_v46 = vld [vmem:[#allocation2 + $0x9c] sm:$0xff]   ;;  %v2695_v11 = vld [vmem:[#allocation2 + $0xa4] sm:$0x1]  ;;  %2641 = vst.msk [vmem:[#allocation3] sm:$0xff] %vm2640_vm6, %v5900_v14 }
 0x163   : > { %v1233_v21 = vsel %vm5394_vm14, %v1228_v60, %v1232_v28  ;;  %v4440_v29 = vcombine.low %v1797_v7, %v1800_v31  ;;  %v2451_v57 = vrot.slane %v2449_v49, 4  ;;  %v2454_v37 = vrot.slane %v2452_v22, 5  ;;  %v2916_v63 = vpop.permute.xlu0 %2915  ;;  %v2694_v15 = vld [vmem:[#allocation2 + $0xa0] sm:$0xf]  ;;  %v2669_v60 = vld [vmem:[#allocation2 + $0x3c] sm:$0xe] }
 0x164   : > { %3963 = vrot.lane.b32.xlu0 %v4559_v62, %s5020_s8  ;;  %v4400_v30 = vcombine.low %v1223_v39, %v1233_v21  ;;  %v1744_v50 = vsel %vm5309_vm10, %v1742_v48, %v1743_v8  ;;  %v2460_v9 = vrot.slane %v2458_v52, 5  ;;  %v2468_v44 = vshll.u32 %v2150_v18, 16  ;;  %v2670_v8 = vld [vmem:[#allocation2 + $0x40] sm:$0xf]  ;;  %2650 = vst.msk [vmem:[#allocation3 + $0x48] sm:$0xff] %vm2640_vm6, %v5975_v56  ;;  %2642 = vst.msk [vmem:[#allocation3 + $0x8] sm:$0xff] %vm2640_vm6, %v2595_v43 }
 0x165   : > { %1570 = vrot.lane.b32.xlu1 %v4408_v34, %s5018_s7  ;;  %v4432_v0 = vcombine.low %v5992_v33, %v1744_v50  ;;  %v2257_v26 = vshrl.u32 %v2124_v25, 16  ;;  %v2455_v23 = vor.u32 %v2454_v37, %v2451_v57  ;;  %v2464_v3 = vrot.slane %v2462_v40, 4  ;;  %v2671_v14 = vld [vmem:[#allocation2 + $0x44] sm:$0x1]  ;;  %v353_v33 = vld [vmem:[%s5259_s9 + $0x68] sm:$0xf] }
 0x166   : > { %v2260_v24 = vshll.u32 %v2124_v25, 16  ;;  %v2266_v6 = vshll.u32 %v2125_v35, 16  ;;  %v2470_v61 = vrot.slane %v2468_v44, 5  ;;  %v2270_v5 = vshrl.u32 %v2125_v35, 16  ;;  %v4728_v56 = vld [vmem:[#allocation2 + $0x3c] sm:$0xff]  }
 0x167   : > { %v2259_v51 = vrot.slane %v2257_v26, 4  ;;  %v2276_v28 = vshll.u32 %v2126_v41, 16  ;;  %v2456_v62 = vrot.slane %v2455_v23, 4  ;;  %v2465_v34 = vor.u32 %v2464_v3, %v2460_v9  ;;  %v413_v18 = vld [vmem:[#allocation2 + $0xa8] sm:$0x1] }
 0x168   : > { %1554 = vrot.lane.b32.xlu0 %v4400_v30, %s5018_s7  ;;  %v2262_v39 = vrot.slane %v2260_v24, 5  ;;  %v6009_v59 = vrot.slane %v2266_v6, 5  ;;  %v2272_v47 = vrot.slane %v2270_v5, 4  ;;  %vm6758_vm7 = vcmask 195744   ;;  %v338_v50 = vld [vmem:[%s5259_s9 + $0x2c] sm:$0xf] }
 0x169   : > { %1894 = vrot.lane.b32.xlu1 %v4440_v29, %s5015_s27  ;;  %v2278_v7 = vrot.slane %v2276_v28, 5  ;;  %v2461_v10 = vsel %vm5394_vm14, %v2456_v62, %v2460_v9  ;;  %v2466_v58 = vrot.slane %v2465_v34, 4  ;;  %vm6757_vm8 = vcmask 228544   ;;  %2970 = vst.msk [vmem:[#allocation3 + $0x40] sm:$0xff] %vm6758_vm7, %v5780_v16  ;;  %2962 = vst.msk [vmem:[#allocation3] sm:$0xff] %vm6758_vm7, %v5791_v12 }
 0x16a   : > { %v2263_v42 = vor.u32 %v2262_v39, %v2259_v51  ;;  %v3110_v49 = vpop.permute.xlu1 %3109  ;;  %v2273_v31 = vor.u32 %v2272_v47, %v6009_v59  ;;  %vm3684_vm12 = vcmask 261344   ;;  %vm4005_vm13 = vcmask 294144   ;;  %2971 = vst.msk [vmem:[#allocation3 + $0x48] sm:$0xff] %vm6758_vm7, %v2932_v53  ;;  %2963 = vst.msk [vmem:[#allocation3 + $0x8] sm:$0xff] %vm6758_vm7, %v2916_v63  ;;  %v389_v41 = vld [vmem:[#allocation2 + $0x48] sm:$0x1] }
 0x16b   : > { %v4488_v13 = vrot.slane %v2693_v19, 9  ;;  %v2471_v43 = vsel %vm5394_vm14, %v2466_v58, %v2470_v61  ;;  %3148 = vst.msk [vmem:[#allocation3 + $0x40] sm:$0xff] %vm6757_vm8, %v5732_v38  ;;  %3140 = vst.msk [vmem:[#allocation3] sm:$0xff] %vm6757_vm8, %v5750_v17  ;;  %v2839_v16 = vrot.slane %v2694_v15, 5  ;;  %v2842_v12 = vrot.slane %v2695_v11, 5 }
 0x16c   : > { %1878 = vrot.lane.b32.xlu0 %v4432_v0, %s5015_s27  ;;  %v2264_v48 = vrot.slane %v2263_v42, 4  ;;  %3149 = vst.msk [vmem:[#allocation3 + $0x48] sm:$0xff] %vm6757_vm8, %v3110_v49  ;;  %v4472_v22 = vcombine.low %v2461_v10, %v2471_v43  ;;  %v2274_v25 = vrot.slane %v2273_v31, 4  ;;  %v4480_v21 = vrot.slane %v2669_v60, 9  ;;  %v354_v38 = vld [vmem:[%s5259_s9 + $0x6c] sm:$0xf]  ;;  %v3094_v17 = vpop.permute.xlu0 %3093 }
 0x16d   : > { %2071 = vrot.lane.b32.xlu1 %v4727_v46, %s5016_s29  ;;  %3693 = vst.msk [vmem:[#allocation3 + $0x40] sm:$0xff] %vm3684_vm12, %v5867_v4  ;;  %v2783_v29 = vrot.slane %v2670_v8, 5  ;;  %3685 = vst.msk [vmem:[#allocation3] sm:$0xff] %vm3684_vm12, %v5935_v54  ;;  %v2840_v52 = vsel %vm5309_vm10, %v4488_v13, %v2839_v16  ;;  %v2841_v35 = vrot.slane %v2839_v16, 4  ;;  %v2786_v30 = vrot.slane %v2671_v14, 5 }
 0x16e   : > { %v2269_v57 = vsel %vm5394_vm14, %v2264_v48, %v6009_v59  ;;  %4014 = vst.msk [vmem:[#allocation3 + $0x40] sm:$0xff] %vm4005_vm13, %v5802_v45  ;;  %4006 = vst.msk [vmem:[#allocation3] sm:$0xff] %vm4005_vm13, %v5807_v55  ;;  %v337_v4 = vld [vmem:[%s5259_s9 + $0x28] sm:$0xf]  ;;  %v2279_v54 = vsel %vm5394_vm14, %v2274_v25, %v2278_v7  ;;  %v414_v45 = vsel %vm5278_vm4, 0, %v413_v18  ;;  %v705_v0 = vshrl.u32 %v353_v33, 16 }
 0x16f   : > { %3141 = vst.msk [vmem:[#allocation3 + $0x8] sm:$0xff] %vm6757_vm8, %v3094_v17  ;;  %v2784_v37 = vsel %vm5309_vm10, %v4480_v21, %v2783_v29  ;;  %v2785_v40 = vrot.slane %v2783_v29, 4  ;;  %v4464_v53 = vcombine.low %v2269_v57, %v2279_v54  ;;  %v2843_v55 = vsel %vm5309_vm10, %v2841_v35, %v2842_v12  ;;  %415 = vst [vmem:[#allocation2 + $0xa8] sm:$0x1] %v414_v45  ;;  %v469_v44 = vld [vmem:[#allocation2 + $0xb0] sm:$0x1] }
 0x170   : > { %2055 = vrot.lane.b32.xlu0 %v4728_v56, %s5016_s29  ;;  %v708_v9 = vshll.u32 %v353_v33, 16  ;;  %v445_v26 = vld [vmem:[#allocation2 + $0x50] sm:$0x1]  ;;  %v4504_v23 = vcombine.low %v2840_v52, %v2843_v55  ;;  %v713_v24 = vshrl.u32 %v354_v38, 16  ;;  %v716_v6 = vshll.u32 %v354_v38, 16 }
 0x171   : > { %2616 = vrot.lane.b32.xlu1 %v4472_v22, %s5021_s11  ;;  %v2787_v3 = vsel %vm5309_vm10, %v2785_v40, %v2786_v30  ;;  %v1102_v61 = vld [vmem:[#allocation2 + $0x9c] sm:$0xf]  ;;  %v707_v5 = vrot.slane %v705_v0, 7  ;;  %v390_v28 = vsel %vm5278_vm4, 0, %v389_v41  ;;  %v569_v19 = vshrl.u32 %v337_v4, 16 }
 0x172   : > { %v4496_v51 = vcombine.low %v2784_v37, %v2787_v3  ;;  %v6069_v63 = vrot.slane %v713_v24, 7  ;;  %391 = vst [vmem:[#allocation2 + $0x48] sm:$0x1] %v390_v28  ;;  %v572_v46 = vshll.u32 %v337_v4, 16  ;;  %v577_v62 = vshrl.u32 %v338_v50, 16 }
 0x173   : > { %v580_v34 = vshll.u32 %v338_v50, 16  ;;  %v1103_v39 = vld [vmem:[#allocation2 + $0xa0] sm:$0xf]  ;;  %v710_v59 = vor.u32 %v708_v9, %v707_v5  ;;  %v711_v15 = vrot.slane %v707_v5, 4  ;;  %v571_v47 = vrot.slane %v569_v19, 7 }
 0x174   : > { %2600 = vrot.lane.b32.xlu0 %v4464_v53, %s5021_s11  ;;  %v470_v7 = vsel %vm5283_vm5, 0, %v469_v44  ;;  %v1104_v11 = vld [vmem:[#allocation2 + $0xa4] sm:$0x1]  ;;  %v1078_v10 = vld [vmem:[#allocation2 + $0x3c] sm:$0xf]  ;;  %v718_v58 = vor.u32 %v716_v6, %v6069_v63  ;;  %v720_v42 = vrot.slane %v6069_v63, 4 }
 0x175   : > { %2937 = vrot.lane.b32.xlu1 %v4504_v23, %s5019_s30  ;;  %v6077_v60 = vrot.slane %v577_v62, 7  ;;  %471 = vst [vmem:[#allocation2 + $0xb0] sm:$0x1] %v470_v7  ;;  %v446_v8 = vsel %vm5283_vm5, 0, %v445_v26  ;;  %v4031_v49 = vld [vmem:[#allocation3 + $0x40] sm:$0xff]  ;;  %v3655_v14 = vpop.permute.xlu1 %3654  ;;  %v574_v33 = vor.u32 %v572_v46, %v571_v47  ;;  %v575_v56 = vrot.slane %v571_v47, 4 }
 0x176   : > { %v4023_v31 = vld [vmem:[#allocation3] sm:$0xff]  ;;  %v1079_v13 = vld [vmem:[#allocation2 + $0x40] sm:$0xf]  ;;  %447 = vst [vmem:[#allocation2 + $0x50] sm:$0x1] %v446_v8  ;;  %vm4039_vm8 = vcmask 293888   ;;  %v719_v48 = vsel %vm5302_vm9, %v711_v15, %v718_v58 }
 0x177   : > { %v1427_v43 = vshrl.u32 %v1102_v61, 16  ;;  %3694 = vst.msk [vmem:[#allocation3 + $0x48] sm:$0xff] %vm3684_vm12, %v3655_v14  ;;  %v897_v16 = vld [vmem:[#allocation2 + $0xa8] sm:$0xf]  ;;  %v582_v12 = vor.u32 %v580_v34, %v6077_v60  ;;  %v584_v18 = vrot.slane %v6077_v60, 4  ;;  %4604 = vmatprep.subr.msk.bf16.mxu0 %vm4039_vm8, %v4031_v49  ;;  %v4044_v22 = vsel %vm4039_vm8, %v4023_v31, 0  ;;  %4602 = vmatprep.mubr.msk.bf16.mxu0 %vm4039_vm8, %v6563_v20 }
 0x178   : > { %2921 = vrot.lane.b32.xlu0 %v4496_v51, %s5019_s30  ;;  %v898_v25 = vsel %vm5316_vm11, %v710_v59, %v897_v16  ;;  %900 = vst.msk [vmem:[#allocation2 + $0xac] sm:$0xf] %vm359_vm0, %v719_v48  ;;  %4587 = vmatpush3.bf16.xpose.msra.mxu0 %v4044_v22  ;;  %v1430_v29 = vshll.u32 %v1102_v61, 16  ;;  %v1436_v38 = vshll.u32 %v1103_v39, 16  ;;  %v3639_v17 = vpop.permute.xlu0 %3638  ;;  %v1440_v52 = vshrl.u32 %v1103_v39, 16 }
 0x179   : > { %v1429_v21 = vrot.slane %v1427_v43, 4  ;;  %899 = vst [vmem:[#allocation2 + $0xa8] sm:$0xf] %v898_v25  ;;  %v583_v57 = vsel %vm5302_vm9, %v575_v56, %v582_v12  ;;  %v1446_v35 = vshll.u32 %v1104_v11, 16  ;;  %v6094_v30 = vld [vmem:[#allocation2 + $0x44] sm:$0x1]  ;;  %v3976_v50 = vpop.permute.xlu1 %3975 }
 0x17a   : > { %v1235_v4 = vshrl.u32 %v1078_v10, 16  ;;  %3686 = vst.msk [vmem:[#allocation3 + $0x8] sm:$0xff] %vm3684_vm12, %v3639_v17  ;;  %v841_v54 = vld [vmem:[#allocation2 + $0x48] sm:$0xf]  ;;  %v1432_v37 = vrot.slane %v1430_v29, 5  ;;  %v6098_v40 = vrot.slane %v1436_v38, 5 }
 0x17b   : > { %844 = vst.msk [vmem:[#allocation2 + $0x4c] sm:$0xf] %vm359_vm0, %v583_v57  ;;  %v1238_v45 = vshll.u32 %v1078_v10, 16  ;;  %v1244_v41 = vshll.u32 %v1079_v13, 16  ;;  %v842_v53 = vsel %vm5316_vm11, %v574_v33, %v841_v54  ;;  %v1442_v55 = vrot.slane %v1440_v52, 4 }
 0x17c   : > { %4015 = vst.msk [vmem:[#allocation3 + $0x48] sm:$0xff] %vm4005_vm13, %v3976_v50  ;;  %v6103_v0 = vrot.slane %v1446_v35, 5  ;;  %v6105_v9 = vld [vmem:[#allocation2 + $0x9c] sm:$0xe]  ;;  %843 = vst [vmem:[#allocation2 + $0x48] sm:$0xf] %v842_v53  ;;  %v1433_v26 = vor.u32 %v1432_v37, %v1429_v21  ;;  %v3960_v6 = vpop.permute.xlu0 %3959 }
 0x17d   : > { %v901_v44 = vld [vmem:[#allocation2 + $0xb0] sm:$0x1]  ;;  %v6107_v23 = vrot.slane %v1235_v4, 4  ;;  %v6109_v3 = vrot.slane %v1238_v45, 5  ;;  %v1248_v24 = vshrl.u32 %v1079_v13, 16  ;;  %v1443_v5 = vor.u32 %v1442_v55, %v6098_v40  ;;  %4007 = vst.msk [vmem:[#allocation3 + $0x8] sm:$0xff] %vm4005_vm13, %v3960_v6  ;;  %v1567_v63 = vpop.permute.xlu1 %1566 }
 0x17e   : > { %v902_v61 = vsel %vm5278_vm4, %v720_v42, %v901_v44  ;;  %v845_v51 = vld [vmem:[#allocation2 + $0x50] sm:$0x1]  ;;  %v6114_v28 = vrot.slane %v1244_v41, 5  ;;  %v1254_v19 = vshll.u32 %v6094_v30, 16  ;;  %v6120_v62 = vrot.slane %v1433_v26, 4  ;;  %1605 = vst.msk [vmem:[#allocation3 + $0x50] sm:$0xff] %vm1594_vm1, %v1567_v63 }
 0x17f   : > { %903 = vst [vmem:[#allocation2 + $0xb0] sm:$0x1] %v902_v61  ;;  %v846_v46 = vsel %vm5278_vm4, %v584_v18, %v845_v51  ;;  %v6122_v34 = vrot.slane %v1248_v24, 4  ;;  %v4425_v39 = vrot.slane %v6105_v9, 9  ;;  %v3193_v59 = vld [vmem:[#allocation2 + $0xac] sm:$0xf]  ;;  %v1241_v43 = vor.u32 %v6109_v3, %v6107_v23 }
 0x180   : > { %847 = vst [vmem:[#allocation2 + $0x50] sm:$0x1] %v846_v46  ;;  %v3738_v15 = vld [vmem:[#allocation2 + $0xac] sm:$0xf]  ;;  %v3192_v7 = vld [vmem:[#allocation2 + $0xa8] sm:$0xf]  ;;  %v1551_v10 = vpop.permute.xlu0 %1550  ;;  %v1439_v33 = vsel %vm5394_vm14, %v6120_v62, %v6098_v40 }
 0x181   : > { %v4731_v47 = vld [vmem:[#allocation2 + $0xa8] sm:$0xff]   ;;  %v3502_v11 = vshll.u32 %v3193_v59, 16  ;;  %v3493_v58 = vshrl.u32 %v3192_v7, 16  ;;  %v3496_v42 = vshll.u32 %v3192_v7, 16  ;;  %v3506_v60 = vshrl.u32 %v3193_v59, 16  ;;  %1597 = vst.msk [vmem:[#allocation3 + $0x10] sm:$0xff] %vm1594_vm1, %v1551_v10  ;;  %v1891_v49 = vpop.permute.xlu1 %1890 }
 0x182   : > { %v3883_v8 = vrot.slane %v3738_v15, 5  ;;  %3115 = vrot.lane.b32.xlu1 %v4731_v47, %s5017_s20  ;;  %v3169_v13 = vld [vmem:[#allocation2 + $0x4c] sm:$0xf]  ;;  %v3737_v14 = vld [vmem:[#allocation2 + $0xa8] sm:$0xe]  ;;  %v6132_v56 = vrot.slane %v1443_v5, 4  ;;  %v1251_v22 = vor.u32 %v6122_v34, %v6114_v28 }
 0x183   : > { %v3504_v31 = vrot.slane %v3502_v11, 5  ;;  %1929 = vst.msk [vmem:[#allocation3 + $0x50] sm:$0xff] %vm1918_vm2, %v1891_v49  ;;  %v4732_v48 = vld [vmem:[#allocation2 + $0x48] sm:$0xff]   ;;  %v3495_v16 = vrot.slane %v3493_v58, 4  ;;  %v3498_v12 = vrot.slane %v3496_v42, 5  ;;  %v3508_v18 = vrot.slane %v3506_v60, 4 }
 0x184   : > { %v3168_v25 = vld [vmem:[#allocation2 + $0x48] sm:$0xf]  ;;  %v3310_v21 = vshll.u32 %v3169_v13, 16  ;;  %v3314_v29 = vshrl.u32 %v3169_v13, 16  ;;  %v4552_v38 = vrot.slane %v3737_v14, 9  ;;  %v3885_v17 = vrot.slane %v3883_v8, 4  ;;  %v1875_v57 = vpop.permute.xlu0 %1874  ;;  %3099 = vrot.lane.b32.xlu0 %v4732_v48, %s5017_s20 }
 0x185   : > { %v3499_v35 = vor.u32 %v3498_v12, %v3495_v16  ;;  %v3509_v4 = vor.u32 %v3508_v18, %v3504_v31  ;;  %v3301_v50 = vshrl.u32 %v3168_v25, 16  ;;  %v3304_v54 = vshll.u32 %v3168_v25, 16  ;;  %1921 = vst.msk [vmem:[#allocation3 + $0x10] sm:$0xff] %vm1918_vm2, %v1875_v57  ;;  %v2068_v45 = vpop.permute.xlu1 %2067  ;;  %v3713_v5 = vld [vmem:[#allocation2 + $0x48] sm:$0xe]  ;;  %v4032_v25 = vld [vmem:[#allocation3 + $0x48] sm:$0xff] }
 0x186   : > { %v3194_v52 = vld [vmem:[#allocation2 + $0xb0] sm:$0x1]  ;;  %v3312_v55 = vrot.slane %v3310_v21, 5  ;;  %v3316_v44 = vrot.slane %v3314_v29, 4  ;;  %v6143_v26 = vsel %vm5309_vm10, %v4552_v38, %v3883_v8  ;;  %2106 = vst.msk [vmem:[#allocation3 + $0x50] sm:$0xff] %vm2095_vm3, %v2068_v45  ;;  %v4544_v58 = vrot.slane %v3713_v5, 9  ;;  %4605 = vmatprep.subr.msk.bf16.mxu0 %vm4039_vm8, %v4032_v25 }
 0x187   : > { %v3739_v37 = vld [vmem:[#allocation2 + $0xb0] sm:$0x1]  ;;  %v3512_v41 = vshll.u32 %v3194_v52, 16  ;;  %v3500_v24 = vrot.slane %v3499_v35, 4  ;;  %v3510_v6 = vrot.slane %v3509_v4, 4  ;;  %v3303_v61 = vrot.slane %v3301_v50, 4 }
 0x188   : > { %v3170_v53 = vld [vmem:[#allocation2 + $0x50] sm:$0x1]  ;;  %v3306_v51 = vrot.slane %v3304_v54, 5  ;;  %v3317_v46 = vor.u32 %v3316_v44, %v3312_v55  ;;  %v3886_v59 = vrot.slane %v3739_v37, 5  ;;  %v3714_v15 = vld [vmem:[#allocation2 + $0x4c] sm:$0xf]  ;;  %v2052_v47 = vpop.permute.xlu0 %2051 }
 0x189   : > { %v3514_v63 = vrot.slane %v3512_v41, 5  ;;  %v3320_v34 = vshll.u32 %v3170_v53, 16  ;;  %v3505_v7 = vsel %vm5394_vm14, %v3500_v24, %v3504_v31  ;;  %v3715_v10 = vld [vmem:[#allocation2 + $0x50] sm:$0x1]  ;;  %v3827_v42 = vrot.slane %v3714_v15, 5  ;;  %2098 = vst.msk [vmem:[#allocation3 + $0x10] sm:$0xff] %vm2095_vm3, %v2052_v47  ;;  %v2613_v60 = vpop.permute.xlu1 %2612 }
 0x18a   : > { %v3307_v11 = vor.u32 %v3306_v51, %v3303_v61  ;;  %v3318_v49 = vrot.slane %v3317_v46, 4  ;;  %v3887_v14 = vsel %vm5309_vm10, %v3885_v17, %v3886_v59  ;;  %2651 = vst.msk [vmem:[#allocation3 + $0x50] sm:$0xff] %vm2640_vm6, %v2613_v60  ;;  %v1651_v18 = vld [vmem:[#allocation2 + $0xa0] sm:$0xf]  ;;  %v3830_v38 = vrot.slane %v3715_v10, 5  ;;  %v4748_v10 = vld [vmem:[#allocation2 + $0x90] sm:$0xff]  }
 0x18b   : > { %v3515_v8 = vsel %vm5394_vm14, %v3510_v6, %v3514_v63  ;;  %v3322_v13 = vrot.slane %v3320_v34, 5  ;;  %v4568_v31 = vcombine.low %v6143_v26, %v3887_v14  ;;  %v3828_v12 = vsel %vm5309_vm10, %v4544_v58, %v3827_v42  ;;  %v1652_v57 = vld [vmem:[#allocation2 + $0xa4] sm:$0x1]  ;;  %v1626_v52 = vld [vmem:[#allocation2 + $0x3c] sm:$0xe]  ;;  %1059 = vst.msk [vmem:[#allocation3 + $0x60] sm:$0xff] %vm1046_vm15, %v4748_v10 }
 0x18c   : > { %v4536_v48 = vcombine.low %v3505_v7, %v3515_v8  ;;  %v3308_v16 = vrot.slane %v3307_v11, 4  ;;  %v3829_v29 = vrot.slane %v3827_v42, 4  ;;  %v1449_v17 = vsel %vm5394_vm14, %v6132_v56, %v6103_v0  ;;  %v2597_v35 = vpop.permute.xlu0 %2596  ;;  %v1627_v54 = vld [vmem:[#allocation2 + $0x40] sm:$0xf]  ;;  %v1628_v44 = vld [vmem:[#allocation2 + $0x44] sm:$0x1] }
 0x18d   : > { %v3323_v21 = vsel %vm5394_vm14, %v3318_v49, %v3322_v13  ;;  %v4409_v50 = vcombine.low %v1439_v33, %v1449_v17  ;;  %v1242_v0 = vrot.slane %v1241_v43, 4  ;;  %v1252_v56 = vrot.slane %v1251_v22, 4  ;;  %2643 = vst.msk [vmem:[#allocation3 + $0x10] sm:$0xff] %vm2640_vm6, %v2597_v35  ;;  %v2934_v37 = vpop.permute.xlu1 %2933  ;;  %v2151_v40 = vld [vmem:[#allocation2 + $0xa8] sm:$0xf]  ;;  %v4749_v13 = vld [vmem:[#allocation2 + $0x30] sm:$0xff]  }
 0x18e   : > { %3660 = vrot.lane.b32.xlu1 %v4536_v48, %s5022_s16  ;;  %v3313_v4 = vsel %vm5394_vm14, %v3308_v16, %v3312_v55  ;;  %v3831_v41 = vsel %vm5309_vm10, %v3829_v29, %v3830_v38  ;;  %v1256_v53 = vrot.slane %v1254_v19, 5  ;;  %v1803_v55 = vrot.slane %v1651_v18, 5  ;;  %2972 = vst.msk [vmem:[#allocation3 + $0x50] sm:$0xff] %vm6758_vm7, %v2934_v37  ;;  %v2152_v43 = vld [vmem:[#allocation2 + $0xac] sm:$0xf] }
 0x18f   : > { %v4528_v45 = vcombine.low %v3313_v4, %v3323_v21  ;;  %v4560_v62 = vcombine.low %v3828_v12, %v3831_v41  ;;  %v1247_v23 = vsel %vm5394_vm14, %v1242_v0, %v6114_v28  ;;  %v1806_v3 = vrot.slane %v1652_v57, 5  ;;  %v2153_v24 = vld [vmem:[#allocation2 + $0xb0] sm:$0x1]  ;;  %v2127_v63 = vld [vmem:[#allocation2 + $0x48] sm:$0xf]  ;;  %1051 = vst.msk [vmem:[#allocation3 + $0x20] sm:$0xff] %vm1046_vm15, %v4749_v13 }
 0x190   : > { %v4417_v33 = vrot.slane %v1626_v52, 9  ;;  %v1257_v22 = vsel %vm5394_vm14, %v1252_v56, %v1256_v53  ;;  %v1804_v30 = vsel %vm5309_vm10, %v4425_v39, %v1803_v55  ;;  %v1805_v19 = vrot.slane %v1803_v55, 4  ;;  %v2918_v6 = vpop.permute.xlu0 %2917  ;;  %v2128_v11 = vld [vmem:[#allocation2 + $0x4c] sm:$0xf]  ;;  %v2129_v8 = vld [vmem:[#allocation2 + $0x50] sm:$0x1] }
 0x191   : > { %3644 = vrot.lane.b32.xlu0 %v4528_v45, %s5022_s16  ;;  %v1747_v26 = vrot.slane %v1627_v54, 5  ;;  %v4401_v28 = vcombine.low %v1247_v23, %v1257_v22  ;;  %v1750_v61 = vrot.slane %v1628_v44, 5  ;;  %v2473_v51 = vshrl.u32 %v2151_v40, 16  ;;  %2964 = vst.msk [vmem:[#allocation3 + $0x10] sm:$0xff] %vm6758_vm7, %v2918_v6  ;;  %v2696_v12 = vld [vmem:[#allocation2 + $0xa8] sm:$0xe] }
 0x192   : > { %3981 = vrot.lane.b32.xlu1 %v4568_v31, %s5020_s8  ;;  %v2476_v5 = vshll.u32 %v2151_v40, 16  ;;  %v1807_v46 = vsel %vm5309_vm10, %v1805_v19, %v1806_v3  ;;  %v2482_v34 = vshll.u32 %v2152_v43, 16  ;;  %v2486_v7 = vshrl.u32 %v2152_v43, 16  ;;  %v2697_v18 = vld [vmem:[#allocation2 + $0xac] sm:$0xf] }
 0x193   : > { %v6197_v9 = vsel %vm5309_vm10, %v4417_v33, %v1747_v26  ;;  %v1749_v39 = vrot.slane %v1747_v26, 4  ;;  %v4441_v59 = vcombine.low %v1804_v30, %v1807_v46  ;;  %v2475_v15 = vrot.slane %v2473_v51, 4  ;;  %v2698_v17 = vld [vmem:[#allocation2 + $0xb0] sm:$0x1]  ;;  %v2672_v0 = vld [vmem:[#allocation2 + $0x48] sm:$0xe] }
 0x194   : > { %v2478_v47 = vrot.slane %v2476_v5, 5  ;;  %v2484_v42 = vrot.slane %v2482_v34, 5  ;;  %v2492_v60 = vshll.u32 %v2153_v24, 16  ;;  %v2281_v49 = vshrl.u32 %v2127_v63, 16  ;;  %v2673_v41 = vld [vmem:[#allocation2 + $0x4c] sm:$0xf] }
 0x195   : > { %3965 = vrot.lane.b32.xlu0 %v4560_v62, %s5020_s8  ;;  %v1751_v58 = vsel %vm5309_vm10, %v1749_v39, %v1750_v61  ;;  %v2488_v16 = vrot.slane %v2486_v7, 4  ;;  %v2284_v31 = vshll.u32 %v2127_v63, 16  ;;  %v2290_v29 = vshll.u32 %v2128_v11, 16  ;;  %v4734_v53 = vld [vmem:[#allocation2 + $0xa8] sm:$0xff]   ;;  %v2674_v23 = vld [vmem:[#allocation2 + $0x50] sm:$0x1] }
 0x196   : > { %1572 = vrot.lane.b32.xlu1 %v4409_v50, %s5018_s7  ;;  %v4433_v14 = vcombine.low %v6197_v9, %v1751_v58  ;;  %v2479_v48 = vor.u32 %v2478_v47, %v2475_v15  ;;  %v2494_v25 = vrot.slane %v2492_v60, 5  ;;  %v2283_v21 = vrot.slane %v2281_v49, 4  ;;  %v3112_v57 = vpop.permute.xlu1 %3111  ;;  %v355_v3 = vld [vmem:[%s5259_s9 + $0x70] sm:$0xf]  ;;  %v356_v19 = vld [vmem:[%s5259_s9 + $0x74] sm:$0xf] }
 0x197   : > { %v2294_v38 = vshrl.u32 %v2128_v11, 16  ;;  %v2489_v35 = vor.u32 %v2488_v16, %v2484_v42  ;;  %v2286_v4 = vrot.slane %v2284_v31, 5  ;;  %v2300_v50 = vshll.u32 %v2129_v8, 16  ;;  %v416_v26 = vld [vmem:[#allocation2 + $0xb4] sm:$0x1]  ;;  %v4752_v63 = vld [vmem:[#allocation2 + $0x9c] sm:$0xff]  }
 0x198   : > { %v2480_v52 = vrot.slane %v2479_v48, 4  ;;  %vm6786_vm7 = vcmask 228544   ;;  %v2292_v56 = vrot.slane %v2290_v29, 5  ;;  %v4489_v37 = vrot.slane %v2696_v12, 9  ;;  %v339_v5 = vld [vmem:[%s5259_s9 + $0x30] sm:$0xf] }
 0x199   : > { %3150 = vst.msk [vmem:[#allocation3 + $0x50] sm:$0xff] %vm6786_vm7, %v3112_v57  ;;  %1556 = vrot.lane.b32.xlu0 %v4401_v28, %s5018_s7  ;;  %v2296_v54 = vrot.slane %v2294_v38, 4  ;;  %v2846_v45 = vrot.slane %v2697_v18, 5  ;;  %v2490_v44 = vrot.slane %v2489_v35, 4  ;;  %v2287_v40 = vor.u32 %v2286_v4, %v2283_v21  ;;  %v3096_v24 = vpop.permute.xlu0 %3095  ;;  %v4735_v46 = vld [vmem:[#allocation2 + $0x48] sm:$0xff]   ;;  %v4753_v60 = vld [vmem:[#allocation2 + $0x3c] sm:$0xff]  }
 0x19a   : > { %1896 = vrot.lane.b32.xlu1 %v4441_v59, %s5015_s27  ;;  %v2485_v55 = vsel %vm5394_vm14, %v2480_v52, %v2484_v42  ;;  %v2302_v62 = vrot.slane %v2300_v50, 5  ;;  %v2849_v30 = vrot.slane %v2698_v17, 5  ;;  %v4481_v61 = vrot.slane %v2672_v0, 9  ;;  %3142 = vst.msk [vmem:[#allocation3 + $0x10] sm:$0xff] %vm6786_vm7, %v3096_v24  ;;  %v340_v15 = vld [vmem:[%s5259_s9 + $0x34] sm:$0xf] }
 0x19b   : > { %v2297_v33 = vor.u32 %v2296_v54, %v2292_v56  ;;  %v6214_v43 = vsel %vm5309_vm10, %v4489_v37, %v2846_v45  ;;  %v2848_v22 = vrot.slane %v2846_v45, 4  ;;  %v2495_v6 = vsel %vm5394_vm14, %v2490_v44, %v2494_v25  ;;  %v392_v58 = vld [vmem:[#allocation2 + $0x54] sm:$0x1]  ;;  %v472_v42 = vld [vmem:[#allocation2 + $0xbc] sm:$0x1]  ;;  %1060 = vst.msk [vmem:[#allocation3 + $0x68] sm:$0xff] %vm1046_vm15, %v4752_v63 }
 0x19c   : > { %v2288_v28 = vrot.slane %v2287_v40, 4  ;;  %v2790_v51 = vrot.slane %v2673_v41, 5  ;;  %v4473_v9 = vcombine.low %v2485_v55, %v2495_v6  ;;  %v2793_v59 = vrot.slane %v2674_v23, 5  ;;  %v448_v48 = vld [vmem:[#allocation2 + $0x5c] sm:$0x1]  ;;  %1052 = vst.msk [vmem:[#allocation3 + $0x28] sm:$0xff] %vm1046_vm15, %v4753_v60 }
 0x19d   : > { %1880 = vrot.lane.b32.xlu0 %v4433_v14, %s5015_s27  ;;  %v2298_v39 = vrot.slane %v2297_v33, 4  ;;  %v2850_v34 = vsel %vm5309_vm10, %v2848_v22, %v2849_v30  ;;  %v417_v49 = vsel %vm5278_vm4, 0, %v416_v26  ;;  %v722_v13 = vshrl.u32 %v355_v3, 16  ;;  %v1105_v25 = vld [vmem:[#allocation2 + $0xa8] sm:$0xf]  ;;  %v4024_v57 = vld [vmem:[#allocation3 + $0x8] sm:$0xff] }
 0x19e   : > { %2073 = vrot.lane.b32.xlu1 %v4734_v53, %s5016_s29  ;;  %v2293_v47 = vsel %vm5394_vm14, %v2288_v28, %v2292_v56  ;;  %v4505_v7 = vcombine.low %v6214_v43, %v2850_v34  ;;  %v6231_v11 = vsel %vm5309_vm10, %v4481_v61, %v2790_v51  ;;  %v2792_v10 = vrot.slane %v2790_v51, 4  ;;  %418 = vst [vmem:[#allocation2 + $0xb4] sm:$0x1] %v417_v49  ;;  %v1106_v0 = vld [vmem:[#allocation2 + $0xac] sm:$0xf] }
 0x19f   : > { %v2303_v8 = vsel %vm5394_vm14, %v2298_v39, %v2302_v62  ;;  %v725_v14 = vshll.u32 %v355_v3, 16  ;;  %v730_v12 = vshrl.u32 %v356_v19, 16  ;;  %v733_v18 = vshll.u32 %v356_v19, 16  ;;  %v1107_v56 = vld [vmem:[#allocation2 + $0xb0] sm:$0x1] }
 0x1a0   : > { %v4465_v16 = vcombine.low %v2293_v47, %v2303_v8  ;;  %v2794_v31 = vsel %vm5309_vm10, %v2792_v10, %v2793_v59  ;;  %v724_v29 = vrot.slane %v722_v13, 7  ;;  %v393_v38 = vsel %vm5278_vm4, 0, %v392_v58  ;;  %v1081_v53 = vld [vmem:[#allocation2 + $0x48] sm:$0xf]  ;;  %v1082_v6 = vld [vmem:[#allocation2 + $0x4c] sm:$0xf] }
 0x1a1   : > { %2057 = vrot.lane.b32.xlu0 %v4735_v46, %s5016_s29  ;;  %v4497_v21 = vcombine.low %v6231_v11, %v2794_v31  ;;  %v586_v17 = vshrl.u32 %v339_v5, 16  ;;  %v6246_v52 = vrot.slane %v730_v12, 7  ;;  %394 = vst [vmem:[#allocation2 + $0x54] sm:$0x1] %v393_v38  ;;  %v589_v35 = vshll.u32 %v339_v5, 16 }
 0x1a2   : > { %2618 = vrot.lane.b32.xlu1 %v4473_v9, %s5021_s11  ;;  %v594_v4 = vshrl.u32 %v340_v15, 16  ;;  %v597_v50 = vshll.u32 %v340_v15, 16  ;;  %v727_v54 = vor.u32 %v725_v14, %v724_v29  ;;  %v728_v37 = vrot.slane %v724_v29, 4  ;;  %v6269_v59 = vld [vmem:[#allocation2 + $0x50] sm:$0x1] }
 0x1a3   : > { %v588_v45 = vrot.slane %v586_v17, 7  ;;  %v473_v41 = vsel %vm5283_vm5, 0, %v472_v42  ;;  %v735_v55 = vor.u32 %v733_v18, %v6246_v52  ;;  %v737_v44 = vrot.slane %v6246_v52, 4  ;;  %v3657_v23 = vpop.permute.xlu1 %3656  ;;  %v6271_v47 = vld [vmem:[#allocation2 + $0xa8] sm:$0xe] }
 0x1a4   : > { %v6252_v40 = vrot.slane %v594_v4, 7  ;;  %474 = vst [vmem:[#allocation2 + $0xbc] sm:$0x1] %v473_v41  ;;  %v449_v62 = vsel %vm5283_vm5, 0, %v448_v48  ;;  %v4047_v43 = vsel %vm4039_vm8, %v4024_v57, 0  ;;  %v1451_v22 = vshrl.u32 %v1105_v25, 16 }
 0x1a5   : > { %2602 = vrot.lane.b32.xlu0 %v4465_v16, %s5021_s11  ;;  %v591_v3 = vor.u32 %v589_v35, %v588_v45  ;;  %v592_v33 = vrot.slane %v588_v45, 4  ;;  %450 = vst [vmem:[#allocation2 + $0x5c] sm:$0x1] %v449_v62  ;;  %3695 = vst.msk [vmem:[#allocation3 + $0x50] sm:$0xff] %vm3684_vm12, %v3657_v23  ;;  %v736_v30 = vsel %vm5302_vm9, %v728_v37, %v735_v55  ;;  %4589 = vmatpush3.bf16.xpose.msra.mxu0 %v4047_v43  ;;  %v904_v28 = vld [vmem:[#allocation2 + $0xb4] sm:$0xf]  ;;  %v3641_v46 = vpop.permute.xlu0 %3640 }
 0x1a6   : > { %2939 = vrot.lane.b32.xlu1 %v4505_v7, %s5019_s30  ;;  %v599_v19 = vor.u32 %v597_v50, %v6252_v40  ;;  %v601_v26 = vrot.slane %v6252_v40, 4  ;;  %v1454_v24 = vshll.u32 %v1105_v25, 16  ;;  %907 = vst.msk [vmem:[#allocation2 + $0xb8] sm:$0xf] %vm359_vm0, %v736_v30  ;;  %v1453_v61 = vrot.slane %v1451_v22, 4 }
 0x1a7   : > { %v1460_v51 = vshll.u32 %v1106_v0, 16  ;;  %v1464_v5 = vshrl.u32 %v1106_v0, 16  ;;  %v1470_v63 = vshll.u32 %v1107_v56, 16  ;;  %v905_v9 = vsel %vm5316_vm11, %v727_v54, %v904_v28  ;;  %3687 = vst.msk [vmem:[#allocation3 + $0x10] sm:$0xff] %vm3684_vm12, %v3641_v46  ;;  %v3978_v7 = vpop.permute.xlu1 %3977 }
 0x1a8   : > { %v600_v39 = vsel %vm5302_vm9, %v592_v33, %v599_v19  ;;  %v1456_v34 = vrot.slane %v1454_v24, 5  ;;  %v1259_v15 = vshrl.u32 %v1081_v53, 16  ;;  %906 = vst [vmem:[#allocation2 + $0xb4] sm:$0xf] %v905_v9  ;;  %v848_v11 = vld [vmem:[#allocation2 + $0x54] sm:$0xf] }
 0x1a9   : > { %2923 = vrot.lane.b32.xlu0 %v4497_v21, %s5019_s30  ;;  %851 = vst.msk [vmem:[#allocation2 + $0x58] sm:$0xf] %vm359_vm0, %v600_v39  ;;  %v1462_v10 = vrot.slane %v1460_v51, 5  ;;  %v1466_v58 = vrot.slane %v1464_v5, 4  ;;  %v1472_v42 = vrot.slane %v1470_v63, 5  ;;  %v1262_v60 = vshll.u32 %v1081_v53, 16  ;;  %v3962_v25 = vpop.permute.xlu0 %3961 }
 0x1aa   : > { %4016 = vst.msk [vmem:[#allocation3 + $0x50] sm:$0xff] %vm4005_vm13, %v3978_v7  ;;  %v849_v8 = vsel %vm5316_vm11, %v591_v3, %v848_v11  ;;  %v1457_v49 = vor.u32 %v1456_v34, %v1453_v61  ;;  %v1261_v13 = vrot.slane %v1259_v15, 4  ;;  %v1268_v14 = vshll.u32 %v1082_v6, 16  ;;  %4008 = vst.msk [vmem:[#allocation3 + $0x10] sm:$0xff] %vm4005_vm13, %v3962_v25 }
 0x1ab   : > { %850 = vst [vmem:[#allocation2 + $0x54] sm:$0xf] %v849_v8  ;;  %v908_v48 = vld [vmem:[#allocation2 + $0xbc] sm:$0x1]  ;;  %v1467_v16 = vor.u32 %v1466_v58, %v1462_v10  ;;  %v1264_v31 = vrot.slane %v1262_v60, 5  ;;  %v1272_v12 = vshrl.u32 %v1082_v6, 16  ;;  %v1569_v52 = vpop.permute.xlu1 %1568 }
 0x1ac   : > { %v1278_v18 = vshll.u32 %v6269_v59, 16  ;;  %v909_v21 = vsel %vm5278_vm4, %v737_v44, %v908_v48  ;;  %v852_v29 = vld [vmem:[#allocation2 + $0x5c] sm:$0x1]  ;;  %v1458_v38 = vrot.slane %v1457_v49, 4  ;;  %v6282_v17 = vrot.slane %v1268_v14, 5  ;;  %1606 = vst.msk [vmem:[#allocation3 + $0x58] sm:$0xff] %vm1594_vm1, %v1569_v52 }
 0x1ad   : > { %v4426_v57 = vrot.slane %v6271_v47, 9  ;;  %910 = vst [vmem:[#allocation2 + $0xbc] sm:$0x1] %v909_v21  ;;  %v853_v35 = vsel %vm5278_vm4, %v601_v26, %v852_v29  ;;  %v1468_v4 = vrot.slane %v1467_v16, 4  ;;  %v1265_v50 = vor.u32 %v1264_v31, %v1261_v13  ;;  %v3196_v56 = vld [vmem:[#allocation2 + $0xb8] sm:$0xf]  ;;  %v1553_v44 = vpop.permute.xlu0 %1552 }
 0x1ae   : > { %v6288_v0 = vrot.slane %v1272_v12, 4  ;;  %854 = vst [vmem:[#allocation2 + $0x5c] sm:$0x1] %v853_v35  ;;  %v6291_v54 = vld [vmem:[#allocation2 + $0xb8] sm:$0xf]  ;;  %v1463_v37 = vsel %vm5394_vm14, %v1458_v38, %v1462_v10  ;;  %v3526_v45 = vshll.u32 %v3196_v56, 16 }
 0x1af   : > { %v3530_v41 = vshrl.u32 %v3196_v56, 16  ;;  %v3890_v53 = vrot.slane %v6291_v54, 5  ;;  %v1473_v55 = vsel %vm5394_vm14, %v1468_v4, %v1472_v42  ;;  %v4738_v40 = vld [vmem:[#allocation2 + $0xb4] sm:$0xff]   ;;  %v6298_v62 = vrot.slane %v1265_v50, 4  ;;  %1598 = vst.msk [vmem:[#allocation3 + $0x18] sm:$0xff] %vm1594_vm1, %v1553_v44  ;;  %v1893_v23 = vpop.permute.xlu1 %1892 }
 0x1b0   : > { %v3195_v3 = vld [vmem:[#allocation2 + $0xb4] sm:$0xf]  ;;  %v6301_v33 = vrot.slane %v3526_v45, 5  ;;  %v3172_v22 = vld [vmem:[#allocation2 + $0x58] sm:$0xf]  ;;  %1930 = vst.msk [vmem:[#allocation3 + $0x58] sm:$0xff] %vm1918_vm2, %v1893_v23  ;;  %3117 = vrot.lane.b32.xlu1 %v4738_v40, %s5017_s20  ;;  %v6305_v6 = vcombine.low %v1463_v37, %v1473_v55  ;;  %v1275_v46 = vor.u32 %v6288_v0, %v6282_v17 }
 0x1b1   : > { %v3532_v43 = vrot.slane %v3530_v41, 4  ;;  %v3517_v19 = vshrl.u32 %v3195_v3, 16  ;;  %v3520_v26 = vshll.u32 %v3195_v3, 16  ;;  %v3334_v24 = vshll.u32 %v3172_v22, 16  ;;  %v3740_v5 = vld [vmem:[#allocation2 + $0xb4] sm:$0xe]  ;;  %v1877_v9 = vpop.permute.xlu0 %1876 }
 0x1b2   : > { %v4739_v30 = vld [vmem:[#allocation2 + $0x54] sm:$0xff]   ;;  %v3338_v51 = vshrl.u32 %v3172_v22, 16  ;;  %v3892_v63 = vrot.slane %v3890_v53, 4  ;;  %1922 = vst.msk [vmem:[#allocation3 + $0x18] sm:$0xff] %vm1918_vm2, %v1877_v9  ;;  %v4553_v21 = vrot.slane %v3740_v5, 9  ;;  %v1271_v37 = vsel %vm5394_vm14, %v6298_v62, %v6282_v17  ;;  %v4033_v23 = vld [vmem:[#allocation3 + $0x50] sm:$0xff] }
 0x1b3   : > { %v3533_v28 = vor.u32 %v3532_v43, %v6301_v33  ;;  %v3171_v61 = vld [vmem:[#allocation2 + $0x54] sm:$0xf]  ;;  %3101 = vrot.lane.b32.xlu0 %v4739_v30, %s5017_s20  ;;  %v3519_v34 = vrot.slane %v3517_v19, 4  ;;  %v3522_v15 = vrot.slane %v3520_v26, 5  ;;  %v2070_v10 = vpop.permute.xlu1 %2069  ;;  %v3336_v8 = vrot.slane %v3334_v24, 5  ;;  %4606 = vmatprep.subr.msk.bf16.mxu0 %vm4039_vm8, %v4033_v23 }
 0x1b4   : > { %v3197_v39 = vld [vmem:[#allocation2 + $0xbc] sm:$0x1]  ;;  %v3325_v7 = vshrl.u32 %v3171_v61, 16  ;;  %v3328_v11 = vshll.u32 %v3171_v61, 16  ;;  %v3340_v49 = vrot.slane %v3338_v51, 4  ;;  %2107 = vst.msk [vmem:[#allocation3 + $0x58] sm:$0xff] %vm2095_vm3, %v2070_v10  ;;  %v3891_v44 = vsel %vm5309_vm10, %v4553_v21, %v3890_v53 }
 0x1b5   : > { %v3534_v58 = vrot.slane %v3533_v28, 4  ;;  %v3536_v42 = vshll.u32 %v3197_v39, 16  ;;  %v3173_v60 = vld [vmem:[#allocation2 + $0x5c] sm:$0x1]  ;;  %v3523_v13 = vor.u32 %v3522_v15, %v3519_v34  ;;  %v3716_v38 = vld [vmem:[#allocation2 + $0x54] sm:$0xe]  ;;  %v2054_v35 = vpop.permute.xlu0 %2053 }
 0x1b6   : > { %v3327_v14 = vrot.slane %v3325_v7, 4  ;;  %v3330_v48 = vrot.slane %v3328_v11, 5  ;;  %v3344_v16 = vshll.u32 %v3173_v60, 16  ;;  %v3742_v31 = vld [vmem:[#allocation2 + $0xbc] sm:$0x1]  ;;  %v3341_v25 = vor.u32 %v3340_v49, %v3336_v8  ;;  %2099 = vst.msk [vmem:[#allocation3 + $0x18] sm:$0xff] %vm2095_vm3, %v2054_v35 }
 0x1b7   : > { %v3538_v12 = vrot.slane %v3536_v42, 5  ;;  %v3893_v29 = vrot.slane %v3742_v31, 5  ;;  %v1654_v52 = vld [vmem:[#allocation2 + $0xac] sm:$0xf]  ;;  %v3524_v4 = vrot.slane %v3523_v13, 4  ;;  %v2615_v45 = vpop.permute.xlu1 %2614  ;;  %v4545_v43 = vrot.slane %v3716_v38, 9 }
 0x1b8   : > { %v3331_v50 = vor.u32 %v3330_v48, %v3327_v14  ;;  %v3346_v0 = vrot.slane %v3344_v16, 5  ;;  %v3717_v56 = vld [vmem:[#allocation2 + $0x58] sm:$0xf]  ;;  %v3718_v54 = vld [vmem:[#allocation2 + $0x5c] sm:$0x1]  ;;  %v3342_v55 = vrot.slane %v3341_v25, 4 }
 0x1b9   : > { %v3539_v41 = vsel %vm5394_vm14, %v3534_v58, %v3538_v12  ;;  %v3894_v40 = vsel %vm5309_vm10, %v3892_v63, %v3893_v29  ;;  %2652 = vst.msk [vmem:[#allocation3 + $0x58] sm:$0xff] %vm2640_vm6, %v2615_v45  ;;  %v3529_v17 = vsel %vm5394_vm14, %v3524_v4, %v6301_v33  ;;  %v1655_v22 = vld [vmem:[#allocation2 + $0xb0] sm:$0x1]  ;;  %v3834_v19 = vrot.slane %v3717_v56, 5  ;;  %v1629_v24 = vld [vmem:[#allocation2 + $0x48] sm:$0xe]  ;;  %v2599_v61 = vpop.permute.xlu0 %2598 }
 0x1ba   : > { %v3332_v62 = vrot.slane %v3331_v50, 4  ;;  %v4569_v3 = vcombine.low %v3891_v44, %v3894_v40  ;;  %v4537_v30 = vcombine.low %v3529_v17, %v3539_v41  ;;  %v3347_v53 = vsel %vm5394_vm14, %v3342_v55, %v3346_v0  ;;  %v1630_v28 = vld [vmem:[#allocation2 + $0x4c] sm:$0xf]  ;;  %v1631_v9 = vld [vmem:[#allocation2 + $0x50] sm:$0x1]  ;;  %2644 = vst.msk [vmem:[#allocation3 + $0x18] sm:$0xff] %vm2640_vm6, %v2599_v61 }
 0x1bb   : > { %v3837_v26 = vrot.slane %v3718_v54, 5  ;;  %v1276_v5 = vrot.slane %v1275_v46, 4  ;;  %v1280_v33 = vrot.slane %v1278_v18, 5  ;;  %v1810_v63 = vrot.slane %v1654_v52, 5  ;;  %v2936_v39 = vpop.permute.xlu1 %2935  ;;  %v2154_v10 = vld [vmem:[#allocation2 + $0xb4] sm:$0xf] }
 0x1bc   : > { %v3337_v51 = vsel %vm5394_vm14, %v3332_v62, %v3336_v8  ;;  %3662 = vrot.lane.b32.xlu1 %v4537_v30, %s5022_s16  ;;  %v3835_v15 = vsel %vm5309_vm10, %v4545_v43, %v3834_v19  ;;  %v3836_v7 = vrot.slane %v3834_v19, 4  ;;  %v1813_v11 = vrot.slane %v1655_v22, 5  ;;  %v2155_v42 = vld [vmem:[#allocation2 + $0xb8] sm:$0xf]  ;;  %v2156_v14 = vld [vmem:[#allocation2 + $0xbc] sm:$0x1] }
 0x1bd   : > { %v4529_v34 = vcombine.low %v3337_v51, %v3347_v53  ;;  %vm6787_vm7 = vcmask 195744   ;;  %v1281_v59 = vsel %vm5394_vm14, %v1276_v5, %v1280_v33  ;;  %v6346_v18 = vsel %vm5309_vm10, %v4426_v57, %v1810_v63  ;;  %v2920_v48 = vpop.permute.xlu0 %2919  ;;  %v2130_v12 = vld [vmem:[#allocation2 + $0x54] sm:$0xf]  ;;  %v2131_v52 = vld [vmem:[#allocation2 + $0x58] sm:$0xf]  ;;  %v4754_v44 = vld [vmem:[#allocation2 + $0xa8] sm:$0xff]  }
 0x1be   : > { %2973 = vst.msk [vmem:[#allocation3 + $0x58] sm:$0xff] %vm6787_vm7, %v2936_v39  ;;  %v1812_v46 = vrot.slane %v1810_v63, 4  ;;  %v4418_v58 = vrot.slane %v1629_v24, 9  ;;  %v3838_v60 = vsel %vm5309_vm10, %v3836_v7, %v3837_v26  ;;  %v4402_v8 = vcombine.low %v1271_v37, %v1281_v59  ;;  %2965 = vst.msk [vmem:[#allocation3 + $0x18] sm:$0xff] %vm6787_vm7, %v2920_v48  ;;  %v2132_v56 = vld [vmem:[#allocation2 + $0x5c] sm:$0x1] }
 0x1bf   : > { %3646 = vrot.lane.b32.xlu0 %v4529_v34, %s5022_s16  ;;  %v1754_v49 = vrot.slane %v1630_v28, 5  ;;  %v1757_v13 = vrot.slane %v1631_v9, 5  ;;  %v4561_v16 = vcombine.low %v3835_v15, %v3838_v60  ;;  %v2497_v31 = vshrl.u32 %v2154_v10, 16  ;;  %v2699_v55 = vld [vmem:[#allocation2 + $0xb4] sm:$0xe]  ;;  %1061 = vst.msk [vmem:[#allocation3 + $0x70] sm:$0xff] %vm1046_vm15, %v4754_v44 }
 0x1c0   : > { %v1814_v47 = vsel %vm5309_vm10, %v1812_v46, %v1813_v11  ;;  %v2500_v57 = vshll.u32 %v2154_v10, 16  ;;  %3983 = vrot.lane.b32.xlu1 %v4569_v3, %s5020_s8  ;;  %v2506_v38 = vshll.u32 %v2155_v42, 16  ;;  %v2510_v50 = vshrl.u32 %v2155_v42, 16  ;;  %v2700_v3 = vld [vmem:[#allocation2 + $0xb8] sm:$0xf]  ;;  %v4755_v33 = vld [vmem:[#allocation2 + $0x48] sm:$0xff]  }
 0x1c1   : > { %v4442_v25 = vcombine.low %v6346_v18, %v1814_v47  ;;  %v6358_v21 = vsel %vm5309_vm10, %v4418_v58, %v1754_v49  ;;  %v1756_v29 = vrot.slane %v1754_v49, 4  ;;  %v2499_v35 = vrot.slane %v2497_v31, 4  ;;  %v2701_v19 = vld [vmem:[#allocation2 + $0xbc] sm:$0x1]  ;;  %v2675_v5 = vld [vmem:[#allocation2 + $0x54] sm:$0xe] }
 0x1c2   : > { %v2502_v4 = vrot.slane %v2500_v57, 5  ;;  %v2516_v0 = vshll.u32 %v2156_v14, 16  ;;  %v2508_v37 = vrot.slane %v2506_v38, 5  ;;  %v2305_v45 = vshrl.u32 %v2130_v12, 16  ;;  %v2676_v34 = vld [vmem:[#allocation2 + $0x58] sm:$0xf] }
 0x1c3   : > { %3967 = vrot.lane.b32.xlu0 %v4561_v16, %s5020_s8  ;;  %v1758_v54 = vsel %vm5309_vm10, %v1756_v29, %v1757_v13  ;;  %v2308_v41 = vshll.u32 %v2130_v12, 16  ;;  %v2512_v17 = vrot.slane %v2510_v50, 4  ;;  %v2314_v30 = vshll.u32 %v2131_v52, 16  ;;  %v2677_v10 = vld [vmem:[#allocation2 + $0x5c] sm:$0x1]  ;;  %1053 = vst.msk [vmem:[#allocation3 + $0x30] sm:$0xff] %vm1046_vm15, %v4755_v33 }
 0x1c4   : > { %v4434_v40 = vcombine.low %v6358_v21, %v1758_v54  ;;  %v2503_v23 = vor.u32 %v2502_v4, %v2499_v35  ;;  %v2518_v62 = vrot.slane %v2516_v0, 5  ;;  %1574 = vrot.lane.b32.xlu1 %v6305_v6, %s5018_s7  ;;  %v2307_v43 = vrot.slane %v2305_v45, 4  ;;  %v3114_v26 = vpop.permute.xlu1 %3113  ;;  %v357_v59 = vld [vmem:[%s5259_s9 + $0x78] sm:$0xf]  ;;  %v358_v18 = vld [vmem:[%s5259_s9 + $0x7c] sm:$0xf] }
 0x1c5   : > { %v2310_v22 = vrot.slane %v2308_v41, 5  ;;  %v2318_v53 = vshrl.u32 %v2131_v52, 16  ;;  %v2513_v28 = vor.u32 %v2512_v17, %v2508_v37  ;;  %v2324_v61 = vshll.u32 %v2132_v56, 16  ;;  %v419_v46 = vld [vmem:[#allocation2 + $0xc0] sm:$0x1]  ;;  %v4740_v42 = vld [vmem:[#allocation2 + $0xb4] sm:$0xff]  }
 0x1c6   : > { %v2504_v24 = vrot.slane %v2503_v23, 4  ;;  %v4490_v51 = vrot.slane %v2699_v55, 9  ;;  %vm6788_vm7 = vcmask 228544   ;;  %v2316_v63 = vrot.slane %v2314_v30, 5  ;;  %v3098_v58 = vpop.permute.xlu0 %3097  ;;  %v475_v14 = vld [vmem:[#allocation2 + $0xc8] sm:$0x1] }
 0x1c7   : > { %3151 = vst.msk [vmem:[#allocation3 + $0x58] sm:$0xff] %vm6788_vm7, %v3114_v26  ;;  %1558 = vrot.lane.b32.xlu0 %v4402_v8, %s5018_s7  ;;  %v2311_v6 = vor.u32 %v2310_v22, %v2307_v43  ;;  %v2320_v9 = vrot.slane %v2318_v53, 4  ;;  %v2853_v39 = vrot.slane %v2700_v3, 5  ;;  %v2514_v7 = vrot.slane %v2513_v28, 4  ;;  %3143 = vst.msk [vmem:[#allocation3 + $0x18] sm:$0xff] %vm6788_vm7, %v3098_v58  ;;  %v4741_v48 = vld [vmem:[#allocation2 + $0x54] sm:$0xff]  }
 0x1c8   : > { %v2509_v15 = vsel %vm5394_vm14, %v2504_v24, %v2508_v37  ;;  %v2856_v11 = vrot.slane %v2701_v19, 5  ;;  %1898 = vrot.lane.b32.xlu1 %v4442_v25, %s5015_s27  ;;  %v2326_v49 = vrot.slane %v2324_v61, 5  ;;  %v4482_v47 = vrot.slane %v2675_v5, 9  ;;  %v3174_v57 = vld [vmem:[#allocation2 + $0x60] sm:$0xf]  ;;  %v4025_v19 = vld [vmem:[#allocation3 + $0x10] sm:$0xff] }
 0x1c9   : > { %v2312_v60 = vrot.slane %v2311_v6, 4  ;;  %v2321_v8 = vor.u32 %v2320_v9, %v2316_v63  ;;  %v2855_v13 = vrot.slane %v2853_v39, 4  ;;  %v2519_v16 = vsel %vm5394_vm14, %v2514_v7, %v2518_v62  ;;  %v3175_v50 = vld [vmem:[#allocation2 + $0x64] sm:$0xf]  ;;  %v3176_v45 = vld [vmem:[#allocation2 + $0x68] sm:$0x1] }
 0x1ca   : > { %v2797_v31 = vrot.slane %v2676_v34, 5  ;;  %v2854_v21 = vsel %vm5309_vm10, %v4490_v51, %v2853_v39  ;;  %v2800_v29 = vrot.slane %v2677_v10, 5  ;;  %v4474_v38 = vcombine.low %v2509_v15, %v2519_v16  ;;  %v6398_v5 = vld [vmem:[#allocation2 + $0x64] sm:$0xf]  ;;  %v1108_v33 = vld [vmem:[#allocation2 + $0xb4] sm:$0xf] }
 0x1cb   : > { %1882 = vrot.lane.b32.xlu0 %v4434_v40, %s5015_s27  ;;  %v2317_v12 = vsel %vm5394_vm14, %v2312_v60, %v2316_v63  ;;  %v2322_v25 = vrot.slane %v2321_v8, 4  ;;  %v2857_v52 = vsel %vm5309_vm10, %v2855_v13, %v2856_v11  ;;  %v420_v4 = vsel %vm5278_vm4, 0, %v419_v46  ;;  %v1109_v34 = vld [vmem:[#allocation2 + $0xb8] sm:$0xf]  ;;  %v1110_v13 = vld [vmem:[#allocation2 + $0xbc] sm:$0x1] }
 0x1cc   : > { %v2799_v35 = vrot.slane %v2797_v31, 4  ;;  %2075 = vrot.lane.b32.xlu1 %v4740_v42, %s5016_s29  ;;  %421 = vst [vmem:[#allocation2 + $0xc0] sm:$0x1] %v420_v4  ;;  %v739_v56 = vshrl.u32 %v357_v59, 16  ;;  %v742_v54 = vshll.u32 %v357_v59, 16  ;;  %v747_v37 = vshrl.u32 %v358_v18, 16 }
 0x1cd   : > { %v2327_v0 = vsel %vm5394_vm14, %v2322_v25, %v2326_v49  ;;  %v2798_v55 = vsel %vm5309_vm10, %v4482_v47, %v2797_v31  ;;  %v750_v44 = vshll.u32 %v358_v18, 16  ;;  %v476_v40 = vsel %vm5283_vm5, 0, %v475_v14  ;;  %v3719_v59 = vld [vmem:[#allocation2 + $0x60] sm:$0xe]  ;;  %v3721_v18 = vld [vmem:[#allocation2 + $0x68] sm:$0x1] }
 0x1ce   : > { %v4466_v41 = vcombine.low %v2317_v12, %v2327_v0  ;;  %v2801_v23 = vsel %vm5309_vm10, %v2799_v35, %v2800_v29  ;;  %v741_v17 = vrot.slane %v739_v56, 7  ;;  %v749_v62 = vrot.slane %v747_v37, 7  ;;  %477 = vst [vmem:[#allocation2 + $0xc8] sm:$0x1] %v476_v40  ;;  %v6411_v31 = vld [vmem:[#allocation2 + $0x54] sm:$0xf] }
 0x1cf   : > { %2059 = vrot.lane.b32.xlu0 %v4741_v48, %s5016_s29  ;;  %v3349_v3 = vshrl.u32 %v3174_v57, 16  ;;  %v3352_v43 = vshll.u32 %v3174_v57, 16  ;;  %v3358_v22 = vshll.u32 %v3175_v50, 16  ;;  %v3362_v30 = vshrl.u32 %v3175_v50, 16  ;;  %v3659_v26 = vpop.permute.xlu1 %3658  ;;  %v6417_v50 = vld [vmem:[#allocation2 + $0x58] sm:$0xf] }
 0x1d0   : > { %v3368_v53 = vshll.u32 %v3176_v45, 16  ;;  %2620 = vrot.lane.b32.xlu1 %v4474_v38, %s5021_s11  ;;  %v4506_v24 = vcombine.low %v2854_v21, %v2857_v52  ;;  %v744_v28 = vor.u32 %v742_v54, %v741_v17  ;;  %v745_v61 = vrot.slane %v741_v17, 4  ;;  %3696 = vst.msk [vmem:[#allocation3 + $0x58] sm:$0xff] %vm3684_vm12, %v3659_v26  ;;  %v4745_v38 = vld [vmem:[#allocation2 + $0x60] sm:$0xff]  }
 0x1d1   : > { %v752_v51 = vor.u32 %v750_v44, %v749_v62  ;;  %v3351_v6 = vrot.slane %v3349_v3, 4  ;;  %v3354_v63 = vrot.slane %v3352_v43, 5  ;;  %v3360_v9 = vrot.slane %v3358_v22, 5 }
 0x1d2   : > { %v3364_v39 = vrot.slane %v3362_v30, 4  ;;  %v4498_v15 = vcombine.low %v2798_v55, %v2801_v23  ;;  %v754_v11 = vrot.slane %v749_v62, 4  ;;  %v4050_v10 = vsel %vm4039_vm8, %v4025_v19, 0  ;;  %v3643_v46 = vpop.permute.xlu0 %3642 }
 0x1d3   : > { %2604 = vrot.lane.b32.xlu0 %v4466_v41, %s5021_s11  ;;  %v753_v7 = vsel %vm5302_vm9, %v745_v61, %v752_v51  ;;  %v911_v58 = vld [vmem:[#allocation2 + $0xc0] sm:$0xf]  ;;  %v3355_v42 = vor.u32 %v3354_v63, %v3351_v6  ;;  %v3370_v8 = vrot.slane %v3368_v53, 5  ;;  %4591 = vmatpush3.bf16.xpose.msra.mxu0 %v4050_v10  ;;  %v3841_v49 = vrot.slane %v6398_v5, 5  ;;  %3688 = vst.msk [vmem:[#allocation3 + $0x18] sm:$0xff] %vm3684_vm12, %v3643_v46  ;;  %v3980_v27 = vpop.permute.xlu1 %3979 }
 0x1d4   : > { %914 = vst.msk [vmem:[#allocation2 + $0xc4] sm:$0xf] %vm359_vm0, %v753_v7  ;;  %v3365_v60 = vor.u32 %v3364_v39, %v3360_v9  ;;  %2941 = vrot.lane.b32.xlu1 %v4506_v24, %s5019_s30  ;;  %v912_v14 = vsel %vm5316_vm11, %v744_v28, %v911_v58  ;;  %v1475_v48 = vshrl.u32 %v1108_v33, 16  ;;  %v1478_v16 = vshll.u32 %v1108_v33, 16  ;;  %vm6791_vm11 = vmmov %vm6788_vm7 }
 0x1d5   : > { %v1484_v47 = vshll.u32 %v1109_v34, 16  ;;  %4017 = vst.msk [vmem:[#allocation3 + $0x58] sm:$0xff] %vm4005_vm13, %v3980_v27  ;;  %913 = vst [vmem:[#allocation2 + $0xc0] sm:$0xf] %v912_v14  ;;  %v915_v57 = vld [vmem:[#allocation2 + $0xc8] sm:$0x1] }
 0x1d6   : > { %v3356_v12 = vrot.slane %v3355_v42, 4  ;;  %v3366_v25 = vrot.slane %v3365_v60, 4  ;;  %v4546_v21 = vrot.slane %v3719_v59, 9  ;;  %v3844_v29 = vrot.slane %v3721_v18, 5  ;;  %v3964_v0 = vpop.permute.xlu0 %3963  ;;  %v1086_v27 = vld [vmem:[#allocation2 + $0x5c] sm:$0x1] }
 0x1d7   : > { %2925 = vrot.lane.b32.xlu0 %v4498_v15, %s5019_s30  ;;  %v916_v36 = vsel %vm5278_vm4, %v754_v11, %v915_v57  ;;  %v3843_v52 = vrot.slane %v3841_v49, 4  ;;  %v1477_v35 = vrot.slane %v1475_v48, 4  ;;  %v1480_v4 = vrot.slane %v1478_v16, 5  ;;  %4009 = vst.msk [vmem:[#allocation3 + $0x18] sm:$0xff] %vm4005_vm13, %v3964_v0  ;;  %v1571_v45 = vpop.permute.xlu1 %1570  ;;  %v1656_v57 = vld [vmem:[#allocation2 + $0xb4] sm:$0xe] }
 0x1d8   : > { %917 = vst [vmem:[#allocation2 + $0xc8] sm:$0x1] %v916_v36  ;;  %v3361_v56 = vsel %vm5394_vm14, %v3356_v12, %v3360_v9  ;;  %v3371_v54 = vsel %vm5394_vm14, %v3366_v25, %v3370_v8  ;;  %v1488_v37 = vshrl.u32 %v1109_v34, 16  ;;  %v6424_v55 = vrot.slane %v1484_v47, 5  ;;  %1607 = vst.msk [vmem:[#allocation3 + $0x60] sm:$0xff] %vm1594_vm1, %v1571_v45 }
 0x1d9   : > { %v1481_v41 = vor.u32 %v1480_v4, %v1477_v35  ;;  %v1494_v44 = vshll.u32 %v1110_v13, 16  ;;  %v1283_v23 = vshrl.u32 %v6411_v31, 16  ;;  %v1286_v17 = vshll.u32 %v6411_v31, 16  ;;  %v1657_v36 = vld [vmem:[#allocation2 + $0xb8] sm:$0xf] }
 0x1da   : > { %v1490_v40 = vrot.slane %v1488_v37, 4  ;;  %v1292_v62 = vshll.u32 %v6417_v50, 16  ;;  %v4530_v43 = vcombine.low %v3361_v56, %v3371_v54  ;;  %v3842_v30 = vsel %vm5309_vm10, %v4546_v21, %v3841_v49  ;;  %v1555_v19 = vpop.permute.xlu0 %1554  ;;  %v1658_v56 = vld [vmem:[#allocation2 + $0xbc] sm:$0x1]  ;;  %v1632_v54 = vld [vmem:[#allocation2 + $0x54] sm:$0xe] }
 0x1db   : > { %3103 = vrot.lane.b32.xlu0 %v4745_v38, %s5017_s20  ;;  %v3199_v3 = vld [vmem:[#allocation2 + $0xc4] sm:$0xf]  ;;  %v3845_v53 = vsel %vm5309_vm10, %v3843_v52, %v3844_v29  ;;  %v1482_v61 = vrot.slane %v1481_v41, 4  ;;  %1599 = vst.msk [vmem:[#allocation3 + $0x20] sm:$0xff] %vm1594_vm1, %v1555_v19  ;;  %v1895_v51 = vpop.permute.xlu1 %1894  ;;  %v1496_v63 = vrot.slane %v1494_v44, 5  ;;  %v1285_v31 = vrot.slane %v1283_v23, 4 }
 0x1dc   : > { %v3744_v22 = vld [vmem:[#allocation2 + $0xc4] sm:$0xf]  ;;  %v3550_v26 = vshll.u32 %v3199_v3, 16  ;;  %v3554_v24 = vshrl.u32 %v3199_v3, 16  ;;  %v3198_v33 = vld [vmem:[#allocation2 + $0xc0] sm:$0xf]  ;;  %v1491_v6 = vor.u32 %v1490_v40, %v6424_v55  ;;  %v4562_v46 = vcombine.low %v3842_v30, %v3845_v53 }
 0x1dd   : > { %v3897_v28 = vrot.slane %v3744_v22, 5  ;;  %v4744_v5 = vld [vmem:[#allocation2 + $0xc0] sm:$0xff]   ;;  %1931 = vst.msk [vmem:[#allocation3 + $0x60] sm:$0xff] %vm1918_vm2, %v1895_v51  ;;  %v3541_v9 = vshrl.u32 %v3198_v33, 16  ;;  %v3544_v39 = vshll.u32 %v3198_v33, 16  ;;  %v1487_v58 = vsel %vm5394_vm14, %v1482_v61, %v6424_v55  ;;  %v4034_v12 = vld [vmem:[#allocation3 + $0x58] sm:$0xff] }
 0x1de   : > { %v3552_v34 = vrot.slane %v3550_v26, 5  ;;  %v3556_v15 = vrot.slane %v3554_v24, 4  ;;  %v3743_v7 = vld [vmem:[#allocation2 + $0xc0] sm:$0xe]  ;;  %3119 = vrot.lane.b32.xlu1 %v4744_v5, %s5017_s20  ;;  %v1879_v42 = vpop.permute.xlu0 %1878  ;;  %v1492_v47 = vrot.slane %v1491_v6, 4  ;;  %v1288_v38 = vrot.slane %v1286_v17, 5  ;;  %4607 = vmatprep.subr.msk.bf16.mxu0 %vm4039_vm8, %v4034_v12 }
 0x1df   : > { %v3200_v11 = vld [vmem:[#allocation2 + $0xc8] sm:$0x1]  ;;  %3648 = vrot.lane.b32.xlu0 %v4530_v43, %s5022_s16  ;;  %v4554_v59 = vrot.slane %v3743_v7, 9  ;;  %v3899_v18 = vrot.slane %v3897_v28, 4  ;;  %v3543_v60 = vrot.slane %v3541_v9, 4  ;;  %v3546_v8 = vrot.slane %v3544_v39, 5  ;;  %v2072_v14 = vpop.permute.xlu1 %2071 }
 0x1e0   : > { %v3745_v10 = vld [vmem:[#allocation2 + $0xc8] sm:$0x1]  ;;  %v3557_v49 = vor.u32 %v3556_v15, %v3552_v34  ;;  %v3560_v13 = vshll.u32 %v3200_v11, 16  ;;  %1923 = vst.msk [vmem:[#allocation3 + $0x20] sm:$0xff] %vm1918_vm2, %v1879_v42  ;;  %v1497_v35 = vsel %vm5394_vm14, %v1492_v47, %v1496_v63  ;;  %v1294_v4 = vrot.slane %v1292_v62, 5  ;;  %v4756_v17 = vld [vmem:[#allocation2 + $0xb4] sm:$0xff]  }
 0x1e1   : > { %v6446_v48 = vsel %vm5309_vm10, %v4554_v59, %v3897_v28  ;;  %v3900_v16 = vrot.slane %v3745_v10, 5  ;;  %2108 = vst.msk [vmem:[#allocation3 + $0x60] sm:$0xff] %vm2095_vm3, %v2072_v14  ;;  %v3547_v25 = vor.u32 %v3546_v8, %v3543_v60  ;;  %v1296_v0 = vshrl.u32 %v6417_v50, 16  ;;  %v1633_v40 = vld [vmem:[#allocation2 + $0x58] sm:$0xf] }
 0x1e2   : > { %v3558_v21 = vrot.slane %v3557_v49, 4  ;;  %v3562_v29 = vrot.slane %v3560_v13, 5  ;;  %v2056_v37 = vpop.permute.xlu0 %2055  ;;  %v6462_v44 = vcombine.low %v1487_v58, %v1497_v35  ;;  %v1289_v62 = vor.u32 %v1288_v38, %v1285_v31  ;;  %v1634_v22 = vld [vmem:[#allocation2 + $0x5c] sm:$0x1]  ;;  %v4757_v30 = vld [vmem:[#allocation2 + $0x54] sm:$0xff]   ;;  %1062 = vst.msk [vmem:[#allocation3 + $0x78] sm:$0xff] %vm1046_vm15, %v4756_v17 }
 0x1e3   : > { %v6452_v52 = vsel %vm5309_vm10, %v3899_v18, %v3900_v16  ;;  %3969 = vrot.lane.b32.xlu0 %v4562_v46, %s5020_s8  ;;  %v3548_v45 = vrot.slane %v3547_v25, 4  ;;  %2100 = vst.msk [vmem:[#allocation3 + $0x20] sm:$0xff] %vm2095_vm3, %v2056_v37  ;;  %v2617_v23 = vpop.permute.xlu1 %2616  ;;  %v1298_v3 = vrot.slane %v1296_v0, 4  ;;  %v1302_v50 = vshll.u32 %v1086_v27, 16  ;;  %v2157_v28 = vld [vmem:[#allocation2 + $0xc0] sm:$0xf] }
 0x1e4   : > { %v3563_v41 = vsel %vm5394_vm14, %v3558_v21, %v3562_v29  ;;  %v4570_v55 = vcombine.low %v6446_v48, %v6452_v52  ;;  %v4427_v43 = vrot.slane %v1656_v57, 9  ;;  %2653 = vst.msk [vmem:[#allocation3 + $0x60] sm:$0xff] %vm2640_vm6, %v2617_v23  ;;  %v1817_v19 = vrot.slane %v1657_v36, 5  ;;  %v2158_v6 = vld [vmem:[#allocation2 + $0xc4] sm:$0xf] }
 0x1e5   : > { %v3553_v53 = vsel %vm5394_vm14, %v3548_v45, %v3552_v34  ;;  %v1820_v26 = vrot.slane %v1658_v56, 5  ;;  %v4419_v24 = vrot.slane %v1632_v54, 9  ;;  %v1290_v51 = vrot.slane %v1289_v62, 4  ;;  %1054 = vst.msk [vmem:[#allocation3 + $0x38] sm:$0xff] %vm1046_vm15, %v4757_v30  ;;  %v2159_v60 = vld [vmem:[#allocation2 + $0xc8] sm:$0x1] }
 0x1e6   : > { %v4538_v61 = vcombine.low %v3553_v53, %v3563_v41  ;;  %v1299_v5 = vor.u32 %v1298_v3, %v1294_v4  ;;  %v1304_v33 = vrot.slane %v1302_v50, 5  ;;  %v2601_v63 = vpop.permute.xlu0 %2600  ;;  %v6472_v9 = vsel %vm5309_vm10, %v4427_v43, %v1817_v19  ;;  %v2133_v49 = vld [vmem:[#allocation2 + $0x60] sm:$0xf]  ;;  %v2134_v16 = vld [vmem:[#allocation2 + $0x64] sm:$0xf] }
 0x1e7   : > { %v1819_v39 = vrot.slane %v1817_v19, 4  ;;  %v1761_v34 = vrot.slane %v1633_v40, 5  ;;  %v1764_v15 = vrot.slane %v1634_v22, 5  ;;  %2645 = vst.msk [vmem:[#allocation3 + $0x20] sm:$0xff] %vm2640_vm6, %v2601_v63  ;;  %v2938_v7 = vpop.permute.xlu1 %2937  ;;  %v1295_v11 = vsel %vm5394_vm14, %v1290_v51, %v1294_v4  ;;  %v2135_v21 = vld [vmem:[#allocation2 + $0x68] sm:$0x1] }
 0x1e8   : > { %3664 = vrot.lane.b32.xlu1 %v4538_v61, %s5022_s16  ;;  %v1300_v10 = vrot.slane %v1299_v5, 4  ;;  %v2521_v59 = vshrl.u32 %v2157_v28, 16  ;;  %v2524_v18 = vshll.u32 %v2157_v28, 16  ;;  %vm6789_vm0 = vcmask 195744   ;;  %v2702_v35 = vld [vmem:[#allocation2 + $0xc0] sm:$0xe] }
 0x1e9   : > { %2974 = vst.msk [vmem:[#allocation3 + $0x60] sm:$0xff] %vm6789_vm0, %v2938_v7  ;;  %v6481_v46 = vsel %vm5309_vm10, %v1819_v39, %v1820_v26  ;;  %v1762_v58 = vsel %vm5309_vm10, %v4419_v24, %v1761_v34  ;;  %v1763_v42 = vrot.slane %v1761_v34, 4  ;;  %v2530_v8 = vshll.u32 %v2158_v6, 16  ;;  %vm6790_vm9 = vmmov %vm6789_vm0  ;;  %v2703_v37 = vld [vmem:[#allocation2 + $0xc4] sm:$0xf] }
 0x1ea   : > { %v1305_v13 = vsel %vm5394_vm14, %v1300_v10, %v1304_v33  ;;  %v4443_v27 = vcombine.low %v6472_v9, %v6481_v46  ;;  %v2523_v14 = vrot.slane %v2521_v59, 4  ;;  %v2526_v48 = vrot.slane %v2524_v18, 5  ;;  %v2922_v47 = vpop.permute.xlu0 %2921  ;;  %v2679_v45 = vld [vmem:[#allocation2 + $0x64] sm:$0xf]  ;;  %v2704_v62 = vld [vmem:[#allocation2 + $0xc8] sm:$0x1] }
 0x1eb   : > { %v4403_v31 = vcombine.low %v1295_v11, %v1305_v13  ;;  %v1765_v57 = vsel %vm5309_vm10, %v1763_v42, %v1764_v15  ;;  %v2532_v12 = vrot.slane %v2530_v8, 5  ;;  %v2534_v25 = vshrl.u32 %v2158_v6, 16  ;;  %2966 = vst.msk [vmem:[#allocation3 + $0x20] sm:$0xff] %vm6790_vm9, %v2922_v47  ;;  %v2678_v22 = vld [vmem:[#allocation2 + $0x60] sm:$0xe] }
 0x1ec   : > { %3985 = vrot.lane.b32.xlu1 %v4570_v55, %s5020_s8  ;;  %v4435_v29 = vcombine.low %v1762_v58, %v1765_v57  ;;  %v2527_v38 = vor.u32 %v2526_v48, %v2523_v14  ;;  %v2540_v36 = vshll.u32 %v2159_v60, 16  ;;  %v2329_v52 = vshrl.u32 %v2133_v49, 16  ;;  %v2680_v24 = vld [vmem:[#allocation2 + $0x68] sm:$0x1]  ;;  %v4747_v28 = vld [vmem:[#allocation2 + $0x60] sm:$0xff]  }
 0x1ed   : > { %1560 = vrot.lane.b32.xlu0 %v4403_v31, %s5018_s7  ;;  %v2536_v4 = vrot.slane %v2534_v25, 4  ;;  %v2332_v0 = vshll.u32 %v2133_v49, 16  ;;  %v2338_v56 = vshll.u32 %v2134_v16, 16  ;;  %v2342_v54 = vshrl.u32 %v2134_v16, 16  ;;  %v422_v6 = vld [vmem:[#allocation2 + $0xcc] sm:$0x1] }
 0x1ee   : > { %v2528_v41 = vrot.slane %v2527_v38, 4  ;;  %v2542_v40 = vrot.slane %v2540_v36, 5  ;;  %v2331_v23 = vrot.slane %v2329_v52, 4  ;;  %v2348_v17 = vshll.u32 %v2135_v21, 16  ;;  %v478_v34 = vld [vmem:[#allocation2 + $0xd4] sm:$0x1] }
 0x1ef   : > { %v2537_v3 = vor.u32 %v2536_v4, %v2532_v12  ;;  %v2334_v55 = vrot.slane %v2332_v0, 5  ;;  %v2340_v50 = vrot.slane %v2338_v56, 5  ;;  %v2344_v43 = vrot.slane %v2342_v54, 4  ;;  %v3202_v10 = vld [vmem:[#allocation2 + $0xd0] sm:$0xf]  ;;  %v4746_v59 = vld [vmem:[#allocation2 + $0xc0] sm:$0xff]  }
 0x1f0   : > { %1576 = vrot.lane.b32.xlu1 %v6462_v44, %s5018_s7  ;;  %v2533_v30 = vsel %vm5394_vm14, %v2528_v41, %v2532_v12  ;;  %v2350_v53 = vrot.slane %v2348_v17, 5  ;;  %v4491_v19 = vrot.slane %v2702_v35, 9  ;;  %v2860_v26 = vrot.slane %v2703_v37, 5  ;;  %v3177_v60 = vld [vmem:[#allocation2 + $0x6c] sm:$0xf]  ;;  %v4026_v25 = vld [vmem:[#allocation3 + $0x18] sm:$0xff] }
 0x1f1   : > { %1884 = vrot.lane.b32.xlu0 %v4435_v29, %s5015_s27  ;;  %v2538_v61 = vrot.slane %v2537_v3, 4  ;;  %v2335_v51 = vor.u32 %v2334_v55, %v2331_v23  ;;  %v2345_v5 = vor.u32 %v2344_v43, %v2340_v50  ;;  %v2863_v33 = vrot.slane %v2704_v62, 5  ;;  %v3178_v48 = vld [vmem:[#allocation2 + $0x70] sm:$0xf]  ;;  %v3179_v16 = vld [vmem:[#allocation2 + $0x74] sm:$0x1] }
 0x1f2   : > { %v2862_v63 = vrot.slane %v2860_v26, 4  ;;  %v4483_v9 = vrot.slane %v2678_v22, 9  ;;  %v2804_v39 = vrot.slane %v2679_v45, 5  ;;  %v2807_v11 = vrot.slane %v2680_v24, 5  ;;  %v6525_v56 = vld [vmem:[#allocation2 + $0xd0] sm:$0xf] }
 0x1f3   : > { %v2543_v44 = vsel %vm5394_vm14, %v2538_v61, %v2542_v40  ;;  %v2336_v15 = vrot.slane %v2335_v51, 4  ;;  %v2346_v7 = vrot.slane %v2345_v5, 4  ;;  %v6504_v46 = vsel %vm5309_vm10, %v4491_v19, %v2860_v26  ;;  %v3723_v41 = vld [vmem:[#allocation2 + $0x70] sm:$0xf]  ;;  %v3722_v17 = vld [vmem:[#allocation2 + $0x6c] sm:$0xe] }
 0x1f4   : > { %1900 = vrot.lane.b32.xlu1 %v4443_v27, %s5015_s27  ;;  %v4475_v18 = vcombine.low %v2533_v30, %v2543_v44  ;;  %v2805_v58 = vsel %vm5309_vm10, %v4483_v9, %v2804_v39  ;;  %v2806_v42 = vrot.slane %v2804_v39, 4  ;;  %v3116_v8 = vpop.permute.xlu1 %3115  ;;  %v2864_v27 = vsel %vm5309_vm10, %v2862_v63, %v2863_v33  ;;  %v3724_v62 = vld [vmem:[#allocation2 + $0x74] sm:$0x1]  ;;  %v4751_v43 = vld [vmem:[#allocation2 + $0x6c] sm:$0xff]   ;;  %s6636_s27 = scalar_lea.hbm %s6751_s4, %s6630_s19 }
 0x1f5   : > { %2061 = vrot.lane.b32.xlu0 %v4747_v28, %s5016_s29  ;;  %v2341_v49 = vsel %vm5394_vm14, %v2336_v15, %v2340_v50  ;;  %v2351_v13 = vsel %vm5394_vm14, %v2346_v7, %v2350_v53  ;;  %v423_v14 = vsel %vm5278_vm4, 0, %v422_v6  ;;  %3152 = vst.msk [vmem:[#allocation3 + $0x60] sm:$0xff] %vm6791_vm11, %v3116_v8  ;;  %v479_v57 = vsel %vm5283_vm5, 0, %v478_v34  ;;  %vm6792_vm4 = vmmov %vm6788_vm7  ;;  %v3746_v53 = vld [vmem:[#allocation2 + $0xcc] sm:$0xe] }
 0x1f6   : > { %v4467_v47 = vcombine.low %v2341_v49, %v2351_v13  ;;  %v2808_v31 = vsel %vm5309_vm10, %v2806_v42, %v2807_v11  ;;  %424 = vst [vmem:[#allocation2 + $0xcc] sm:$0x1] %v423_v14  ;;  %v3574_v12 = vshll.u32 %v3202_v10, 16  ;;  %480 = vst [vmem:[#allocation2 + $0xd4] sm:$0x1] %v479_v57  ;;  %v3578_v29 = vshrl.u32 %v3202_v10, 16  ;;  %v3100_v36 = vpop.permute.xlu0 %3099 }
 0x1f7   : > { %v4499_v21 = vcombine.low %v2805_v58, %v2808_v31  ;;  %v3373_v38 = vshrl.u32 %v3177_v60, 16  ;;  %v3376_v1 = vshll.u32 %v3177_v60, 16  ;;  %v3382_v35 = vshll.u32 %v3178_v48, 16  ;;  %3144 = vst.msk [vmem:[#allocation3 + $0x20] sm:$0xff] %vm6792_vm4, %v3100_v36  ;;  %vm6793_vm5 = vmmov %vm6789_vm0 }
 0x1f8   : > { %2077 = vrot.lane.b32.xlu1 %v4746_v59, %s5016_s29  ;;  %v6523_v52 = vrot.slane %v3574_v12, 5  ;;  %v3386_v4 = vshrl.u32 %v3178_v48, 16  ;;  %v3392_v0 = vshll.u32 %v3179_v16, 16  ;;  %v3580_v2 = vrot.slane %v3578_v29, 4  ;;  %vm6796_vm15 = vmmov %vm6792_vm4  ;;  %s4177_s29 = sshll.u32 %s311_s12, 4  ;;  %s4178_s29 = int_to_ptr.vmem [resolvable:$true] %s4177_s29 }
 0x1f9   : > { %2606 = vrot.lane.b32.xlu0 %v4467_v47, %s5021_s11  ;;  %v3375_v54 = vrot.slane %v3373_v38, 4  ;;  %v3378_v37 = vrot.slane %v3376_v1, 5  ;;  %v4053_v45 = vsel %vm4039_vm8, %v4026_v25, 0  ;;  %v3384_v40 = vrot.slane %v3382_v35, 5  ;;  %vm6797_vm7 = vmmov %vm6789_vm0  ;;  %s4872_s7 = scalar_lea.vmem %s4178_s29, 128 }
 0x1fa   : > { %v3388_v23 = vrot.slane %v3386_v4, 4  ;;  %4593 = vmatpush3.bf16.xpose.msra.mxu0 %v4053_v45  ;;  %v4507_v3 = vcombine.low %v6504_v46, %v2864_v27  ;;  %v3581_v55 = vor.u32 %v3580_v2, %v6523_v52  ;;  %v3394_v30 = vrot.slane %v3392_v0, 5  ;;  %vm6798_vm9 = vmmov %vm6792_vm4  ;;  %p4873_p1 = scmp.ne.s32.totalorder %s4178_s29, %s4872_s7 }
 0x1fb   : > { %v3379_v50 = vor.u32 %v3378_v37, %v3375_v54  ;;  %v3904_v19 = vrot.slane %v6525_v56, 5  ;;  %v3848_v26 = vrot.slane %v3723_v41, 5  ;;  %v4547_v28 = vrot.slane %v3722_v17, 9  ;;  %vm6799_vm11 = vmmov %vm6792_vm4 }
 0x1fc   : > { %2622 = vrot.lane.b32.xlu1 %v4475_v18, %s5021_s11  ;;  %v3389_v22 = vor.u32 %v3388_v23, %v3384_v40  ;;  %v3851_v61 = vrot.slane %v3724_v62, 5  ;;  %v3582_v9 = vrot.slane %v3581_v55, 4  ;;  %v4555_v42 = vrot.slane %v3746_v53, 9  ;;  %p4874_p4 = pnand %p4873_p1, %p5207_p6 }
 0x1fd   : > { %2927 = vrot.lane.b32.xlu0 %v4499_v21, %s5019_s30  ;;  %v3201_v24 = vld [vmem:[#allocation2 + $0xcc] sm:$0xf]  ;;  %v3203_v51 = vld [vmem:[#allocation2 + $0xd4] sm:$0x1]  ;;  %v3380_v6 = vrot.slane %v3379_v50, 4  ;;  %v3850_v44 = vrot.slane %v3848_v26, 4  ;;  %v3849_v13 = vsel %vm5309_vm10, %v4547_v28, %v3848_v26 }
 0x1fe   : > { %v3565_v5 = vshrl.u32 %v3201_v24, 16  ;;  %v3568_v33 = vshll.u32 %v3201_v24, 16  ;;  %v3390_v63 = vrot.slane %v3389_v22, 4  ;;  %v3584_v39 = vshll.u32 %v3203_v51, 16  ;;  %v3748_v34 = vld [vmem:[#allocation2 + $0xd4] sm:$0x1]  ;;  %p4875_p8 = pneg %p4874_p4 }
 0x1ff   : > { %v4750_v7 = vld [vmem:[#allocation2 + $0xcc] sm:$0xff]   ;;  %v3385_v59 = vsel %vm5394_vm14, %v3380_v6, %v3384_v40  ;;  %v3906_v60 = vrot.slane %v3904_v19, 4  ;;  %v3907_v49 = vrot.slane %v3748_v34, 5  ;;  %v3852_v27 = vsel %vm5309_vm10, %v3850_v44, %v3851_v61 }
 0x200   : > { %v3661_v15 = vpop.permute.xlu1 %3660  ;;  %2943 = vrot.lane.b32.xlu1 %v4507_v3, %s5019_s30  ;;  %v3567_v11 = vrot.slane %v3565_v5, 4  ;;  %v3570_v10 = vrot.slane %v3568_v33, 5  ;;  %v3395_v18 = vsel %vm5394_vm14, %v3390_v63, %v3394_v30  ;;  %v3586_v46 = vrot.slane %v3584_v39, 5  ;;  %s5023_s30 = smov [#allocation12]  }
 0x201   : > { %3697 = vst.msk [vmem:[#allocation3 + $0x60] sm:$0xff] %vm3684_vm12, %v3661_v15  ;;  %3105 = vrot.lane.b32.xlu0 %v4751_v43, %s5017_s20  ;;  %v4531_v58 = vcombine.low %v3385_v59, %v3395_v18  ;;  %v4563_v31 = vcombine.low %v3849_v13, %v3852_v27  ;;  %v3905_v12 = vsel %vm5309_vm10, %v4555_v42, %v3904_v19 }
 0x202   : > { %v3571_v8 = vor.u32 %v3570_v10, %v3567_v11  ;;  %v3587_v47 = vsel %vm5394_vm14, %v3582_v9, %v3586_v46  ;;  %v3908_v25 = vsel %vm5309_vm10, %v3906_v60, %v3907_v49  ;;  %vm6794_vm10 = vmmov %vm6789_vm0 }
 0x203   : > { %v3645_v14 = vpop.permute.xlu0 %3644  ;;  %v4571_v1 = vcombine.low %v3905_v12, %v3908_v25 }
 0x204   : > { %3689 = vst.msk [vmem:[#allocation3 + $0x20] sm:$0xff] %vm3684_vm12, %v3645_v14  ;;  %v3982_v48 = vpop.permute.xlu1 %3981  ;;  %3121 = vrot.lane.b32.xlu1 %v4750_v7, %s5017_s20  ;;  %v3572_v16 = vrot.slane %v3571_v8, 4  ;;  %s4153_s20 = scalar_lea.sflag [#allocation6], %s5255_s17 }
 0x205   : > { %4018 = vst.msk [vmem:[#allocation3 + $0x60] sm:$0xff] %vm4005_vm13, %v3982_v48  ;;  %3650 = vrot.lane.b32.xlu0 %v4531_v58, %s5022_s16 }
 0x206   : > { %v3577_v57 = vsel %vm5394_vm14, %v3572_v16, %v6523_v52  ;;  %vm6795_vm14 = vmmov %vm6792_vm4 }
 0x207   : > { %v3966_v21 = vpop.permute.xlu0 %3965  ;;  %v4539_v29 = vcombine.low %v3577_v57, %v3587_v47 }
 0x208   : > { %4010 = vst.msk [vmem:[#allocation3 + $0x20] sm:$0xff] %vm4005_vm13, %v3966_v21  ;;  %v1573_v38 = vpop.permute.xlu1 %1572 }
 0x209   : > { %1608 = vst.msk [vmem:[#allocation3 + $0x68] sm:$0xff] %vm1594_vm1, %v1573_v38  ;;  %3666 = vrot.lane.b32.xlu1 %v4539_v29, %s5022_s16  ;;  %3971 = vrot.lane.b32.xlu0 %v4563_v31, %s5020_s8 }
 0x20b   : > { %v1557_v36 = vpop.permute.xlu0 %1556 }
 0x20c   : > { %1600 = vst.msk [vmem:[#allocation3 + $0x28] sm:$0xff] %vm1594_vm1, %v1557_v36  ;;  %v1897_v32 = vpop.permute.xlu1 %1896  ;;  %v4035_v52 = vld [vmem:[#allocation3 + $0x60] sm:$0xff] }
 0x20d   : > { %1932 = vst.msk [vmem:[#allocation3 + $0x68] sm:$0xff] %vm1918_vm2, %v1897_v32  ;;  %4608 = vmatprep.subr.msk.bf16.mxu0 %vm4039_vm8, %v4035_v52  ;;  %3987 = vrot.lane.b32.xlu1 %v4571_v1, %s5020_s8  ;;  %s4876_s8 = sshll.u32 %s5023_s30, 4  ;;  %s4877_s8 = int_to_ptr.vmem [resolvable:$false] %s4876_s8 }
 0x20e   : > { %s4878_s11 = scalar_lea.vmem %s4877_s8, 256  ;;  %p4879_p3 = scmp.lt.s32.totalorder %s4178_s29, %s4877_s8 }
 0x20f   : > { %v1881_v35 = vpop.permute.xlu0 %1880  ;;  %v4027_v4 = vld [vmem:[#allocation3 + $0x20] sm:$0xff]  ;;  %p4880_p7 = scmp.lt.s32.totalorder %s4878_s11, %s4872_s7 }
 0x210   : > { %1924 = vst.msk [vmem:[#allocation3 + $0x28] sm:$0xff] %vm1918_vm2, %v1881_v35  ;;  %v4056_v0 = vsel %vm4039_vm8, %v4027_v4, 0  ;;  %v2074_v56 = vpop.permute.xlu1 %2073 }
 0x211   : > { %4595 = vmatpush3.bf16.xpose.msra.mxu0 %v4056_v0  ;;  %2109 = vst.msk [vmem:[#allocation3 + $0x68] sm:$0xff] %vm2095_vm3, %v2074_v56  ;;  %p4881_p10 = por %p4880_p7, %p4879_p3 }
 0x213   : > { %v2058_v2 = vpop.permute.xlu0 %2057  ;;  %p4882_p13 = pnand %p4881_p10, %p4875_p8 }
 0x214   : > { %2101 = vst.msk [vmem:[#allocation3 + $0x28] sm:$0xff] %vm2095_vm3, %v2058_v2  ;;  %v2619_v54 = vpop.permute.xlu1 %2618 }
 0x215   : > { %2654 = vst.msk [vmem:[#allocation3 + $0x68] sm:$0xff] %vm2640_vm6, %v2619_v54 }
 0x217   : > { %v2603_v37 = vpop.permute.xlu0 %2602 }
 0x218   : > { %2646 = vst.msk [vmem:[#allocation3 + $0x28] sm:$0xff] %vm2640_vm6, %v2603_v37  ;;  %v2940_v45 = vpop.permute.xlu1 %2939 }
 0x219   : > { %2975 = vst.msk [vmem:[#allocation3 + $0x68] sm:$0xff] %vm6793_vm5, %v2940_v45  ;;  %vm6802_vm5 = vmmov %vm6792_vm4 }
 0x21b   : > { %v2924_v41 = vpop.permute.xlu0 %2923 }
 0x21c   : > { %2967 = vst.msk [vmem:[#allocation3 + $0x28] sm:$0xff] %vm6794_vm10, %v2924_v41 }
 0x222   : > { %v3118_v40 = vpop.permute.xlu1 %3117 }
 0x223   : > { %3153 = vst.msk [vmem:[#allocation3 + $0x68] sm:$0xff] %vm6795_vm14, %v3118_v40 }
 0x225   : > { %v3102_v23 = vpop.permute.xlu0 %3101 }
 0x226   : > { %3145 = vst.msk [vmem:[#allocation3 + $0x28] sm:$0xff] %vm6796_vm15, %v3102_v23 }
 0x22e   : > { %v3663_v17 = vpop.permute.xlu1 %3662 }
 0x22f   : > { %3698 = vst.msk [vmem:[#allocation3 + $0x68] sm:$0xff] %vm3684_vm12, %v3663_v17 }
 0x231   : > { %v3647_v62 = vpop.permute.xlu0 %3646 }
 0x232   : > { %3690 = vst.msk [vmem:[#allocation3 + $0x28] sm:$0xff] %vm3684_vm12, %v3647_v62  ;;  %v3984_v3 = vpop.permute.xlu1 %3983 }
 0x233   : > { %4019 = vst.msk [vmem:[#allocation3 + $0x68] sm:$0xff] %vm4005_vm13, %v3984_v3 }
 0x235   : > { %v3968_v55 = vpop.permute.xlu0 %3967 }
 0x236   : > { %4011 = vst.msk [vmem:[#allocation3 + $0x28] sm:$0xff] %vm4005_vm13, %v3968_v55  ;;  %v1575_v50 = vpop.permute.xlu1 %1574 }
 0x237   : > { %1609 = vst.msk [vmem:[#allocation3 + $0x70] sm:$0xff] %vm1594_vm1, %v1575_v50 }
 0x239   : > { %v1559_v43 = vpop.permute.xlu0 %1558 }
 0x23a   : > { %1601 = vst.msk [vmem:[#allocation3 + $0x30] sm:$0xff] %vm1594_vm1, %v1559_v43  ;;  %v1899_v22 = vpop.permute.xlu1 %1898  ;;  %v4036_v30 = vld [vmem:[#allocation3 + $0x68] sm:$0xff] }
 0x23b   : > { %1933 = vst.msk [vmem:[#allocation3 + $0x70] sm:$0xff] %vm1918_vm2, %v1899_v22  ;;  %4609 = vmatprep.subr.msk.bf16.mxu0 %vm4039_vm8, %v4036_v30 }
 0x23d   : > { %v1883_v53 = vpop.permute.xlu0 %1882  ;;  %v4028_v19 = vld [vmem:[#allocation3 + $0x28] sm:$0xff] }
 0x23e   : > { %1925 = vst.msk [vmem:[#allocation3 + $0x30] sm:$0xff] %vm1918_vm2, %v1883_v53  ;;  %v4059_v26 = vsel %vm4039_vm8, %v4028_v19, 0  ;;  %v2076_v24 = vpop.permute.xlu1 %2075 }
 0x23f   : > { %4597 = vmatpush3.bf16.xpose.msra.mxu0 %v4059_v26  ;;  %2110 = vst.msk [vmem:[#allocation3 + $0x70] sm:$0xff] %vm2095_vm3, %v2076_v24 }
 0x241   : > { %v2060_v28 = vpop.permute.xlu0 %2059 }
 0x242   : > { %2102 = vst.msk [vmem:[#allocation3 + $0x30] sm:$0xff] %vm2095_vm3, %v2060_v28  ;;  %v2621_v61 = vpop.permute.xlu1 %2620 }
 0x243   : > { %2655 = vst.msk [vmem:[#allocation3 + $0x70] sm:$0xff] %vm2640_vm6, %v2621_v61 }
 0x245   : > { %v2605_v51 = vpop.permute.xlu0 %2604 }
 0x246   : > { %2647 = vst.msk [vmem:[#allocation3 + $0x30] sm:$0xff] %vm2640_vm6, %v2605_v51  ;;  %v2942_v5 = vpop.permute.xlu1 %2941 }
 0x247   : > { %2976 = vst.msk [vmem:[#allocation3 + $0x70] sm:$0xff] %vm6797_vm7, %v2942_v5 }
 0x249   : > { %v2926_v33 = vpop.permute.xlu0 %2925 }
 0x24a   : > { %2968 = vst.msk [vmem:[#allocation3 + $0x30] sm:$0xff] %vm6789_vm0, %v2926_v33 }
 0x24d   : > { %v3104_v6 = vpop.permute.xlu0 %3103 }
 0x24e   : > { %3146 = vst.msk [vmem:[#allocation3 + $0x30] sm:$0xff] %vm6798_vm9, %v3104_v6 }
 0x250   : > { %v3120_v63 = vpop.permute.xlu1 %3119 }
 0x251   : > { %v3649_v9 = vpop.permute.xlu0 %3648  ;;  %3154 = vst.msk [vmem:[#allocation3 + $0x70] sm:$0xff] %vm6799_vm11, %v3120_v63 }
 0x252   : > { %3691 = vst.msk [vmem:[#allocation3 + $0x30] sm:$0xff] %vm3684_vm12, %v3649_v9 }
 0x255   : > { %v3970_v39 = vpop.permute.xlu0 %3969 }
 0x256   : > { %4012 = vst.msk [vmem:[#allocation3 + $0x30] sm:$0xff] %vm4005_vm13, %v3970_v39 }
 0x25a   : > { %v3665_v34 = vpop.permute.xlu1 %3664 }
 0x25b   : > { %3699 = vst.msk [vmem:[#allocation3 + $0x70] sm:$0xff] %vm3684_vm12, %v3665_v34 }
 0x25d   : > { %v4029_v11 = vld [vmem:[#allocation3 + $0x30] sm:$0xff] }
 0x25e   : > { %v3986_v44 = vpop.permute.xlu1 %3985  ;;  %v4062_v59 = vsel %vm4039_vm8, %v4029_v11, 0 }
 0x25f   : > { %4020 = vst.msk [vmem:[#allocation3 + $0x70] sm:$0xff] %vm4005_vm13, %v3986_v44  ;;  %v1561_v15 = vpop.permute.xlu0 %1560 }
 0x260   : > { %1602 = vst.msk [vmem:[#allocation3 + $0x38] sm:$0xff] %vm1594_vm1, %v1561_v15 }
 0x262   : > { %v1577_v7 = vpop.permute.xlu1 %1576 }
 0x263   : > { %1610 = vst.msk [vmem:[#allocation3 + $0x78] sm:$0xff] %vm1594_vm1, %v1577_v7  ;;  %v1885_v10 = vpop.permute.xlu0 %1884  ;;  %vm6800_vm1 = vmmov %vm6789_vm0 }
 0x264   : > { %1926 = vst.msk [vmem:[#allocation3 + $0x38] sm:$0xff] %vm1918_vm2, %v1885_v10 }
 0x266   : > { %v1901_v18 = vpop.permute.xlu1 %1900  ;;  %v4037_v46 = vld [vmem:[#allocation3 + $0x70] sm:$0xff] }
 0x267   : > { %1934 = vst.msk [vmem:[#allocation3 + $0x78] sm:$0xff] %vm1918_vm2, %v1901_v18  ;;  %4610 = vmatprep.subr.msk.bf16.mxu0 %vm4039_vm8, %v4037_v46  ;;  %v2062_v58 = vpop.permute.xlu0 %2061  ;;  %vm6801_vm2 = vmmov %vm6789_vm0 }
 0x268   : > { %4599 = vmatpush3.bf16.xpose.msra.mxu0 %v4062_v59  ;;  %2103 = vst.msk [vmem:[#allocation3 + $0x38] sm:$0xff] %vm2095_vm3, %v2062_v58 }
 0x26a   : > { %v2078_v42 = vpop.permute.xlu1 %2077 }
 0x26b   : > { %2111 = vst.msk [vmem:[#allocation3 + $0x78] sm:$0xff] %vm2095_vm3, %v2078_v42  ;;  %v2607_v60 = vpop.permute.xlu0 %2606 }
 0x26c   : > { %2648 = vst.msk [vmem:[#allocation3 + $0x38] sm:$0xff] %vm2640_vm6, %v2607_v60 }
 0x26e   : > { %v2623_v8 = vpop.permute.xlu1 %2622 }
 0x26f   : > { %2656 = vst.msk [vmem:[#allocation3 + $0x78] sm:$0xff] %vm2640_vm6, %v2623_v8  ;;  %v2928_v49 = vpop.permute.xlu0 %2927 }
 0x270   : > { %2969 = vst.msk [vmem:[#allocation3 + $0x38] sm:$0xff] %vm6800_vm1, %v2928_v49 }
 0x272   : > { %v2944_v13 = vpop.permute.xlu1 %2943 }
 0x273   : > { %2977 = vst.msk [vmem:[#allocation3 + $0x78] sm:$0xff] %vm6801_vm2, %v2944_v13  ;;  %v3106_v27 = vpop.permute.xlu0 %3105 }
 0x274   : > { %3147 = vst.msk [vmem:[#allocation3 + $0x38] sm:$0xff] %vm6792_vm4, %v3106_v27 }
 0x276   : > { %v3122_v14 = vpop.permute.xlu1 %3121 }
 0x277   : > { %3155 = vst.msk [vmem:[#allocation3 + $0x78] sm:$0xff] %vm6802_vm5, %v3122_v14  ;;  %v3651_v48 = vpop.permute.xlu0 %3650 }
 0x278   : > { %3692 = vst.msk [vmem:[#allocation3 + $0x38] sm:$0xff] %vm3684_vm12, %v3651_v48 }
 0x27b   : > { %v3667_v16 = vpop.permute.xlu1 %3666  ;;  %v3972_v47 = vpop.permute.xlu0 %3971 }
 0x27c   : > { %3700 = vst.msk [vmem:[#allocation3 + $0x78] sm:$0xff] %vm3684_vm12, %v3667_v16 }
 0x27d   : > { %4013 = vst.msk [vmem:[#allocation3 + $0x38] sm:$0xff] %vm4005_vm13, %v3972_v47 }
 0x27f   : > { %v3988_v31 = vpop.permute.xlu1 %3987 }
 0x280   : > { %4021 = vst.msk [vmem:[#allocation3 + $0x78] sm:$0xff] %vm4005_vm13, %v3988_v31 }
 0x284   : > { %v4030_v57 = vld [vmem:[#allocation3 + $0x38] sm:$0xff] }
 0x285   : > { %v4065_v12 = vsel %vm4039_vm8, %v4030_v57, 0 }
 0x287   : > { %v4038_v25 = vld [vmem:[#allocation3 + $0x78] sm:$0xff] }
 0x288   : > { %4611 = vmatprep.subr.msk.bf16.mxu0 %vm4039_vm8, %v4038_v25 }
 0x289   : > { %4601 = vmatpush3.bf16.xpose.msra.mxu0 %v4065_v12 }
 0x290   : > { %4603 = vmatmul.mubr.msk.bf16.vlgmr.msra.gmra.mrb[0].mxu0 %vm4039_vm8, %v6563_v20 }
 0x363   : > { %v4125_v21 = vpop.f32.mrb[0].mxu0 }
 0x364   : > { %v4146_v29 = vmul.f32 %v4125_v21, %v4125_v21  ;;  %v4127_v38 = vpop.f32.mrb[1].mxu0 }
 0x365   : > { %v4584_v1 = vpack.c.bf16 %v4127_v38, %v4125_v21  ;;  %v4141_v36 = vadd.f32 %v4127_v38, %v4125_v21  ;;  %v4147_v32 = vmul.f32 %v4127_v38, %v4127_v38  ;;  %v4129_v52 = vpop.f32.mrb[2].mxu0 }
 0x366   : > { %v4130_v35 = vpop.f32.mrb[3].mxu0 }
 0x367   : > { %4142 = vadd.xlane.f32.xlu0 %v4141_v36  ;;  %v4148_v4 = vadd.f32 %v4147_v32, %v4146_v29  ;;  %4140 = vst [vmem:[%s311_s12] sm:$0xff] %v4584_v1 }
 0x369   : > { %4149 = vadd.xlane.f32.xlu1 %v4148_v4 }
 0x36a   : > { %4885 = shalt.err (!%p4882_p13)
}
 0x36b   : > { %s4886_s17 = scalar_lea.hbm %s6636_s27, 128  ;;  %s4890_s15 = scalar_lea.hbm %s6751_s4, 256 }
 0x36c   : > { %p4887_p0 = scmp.ne.s32.totalorder %s6636_s27, %s4886_s17  ;;  %p4891_p9 = scmp.lt.u32.totalorder %s6636_s27, %s6751_s4 }
 0x36d   : > { %p4892_p12 = scmp.lt.u32.totalorder %s4890_s15, %s4886_s17  ;;  %p4894_p1 = scmp.lt.u32.totalorder %s4886_s17, %s6636_s27 }
 0x36e   : > { %p4888_p5 = pnand %p4887_p0, %p5207_p6 }
 0x36f   : > { %p4893_p2 = por %p4892_p12, %p4891_p9 }
 0x370   : > { %p4889_p11 = pneg %p4888_p5 }
 0x371   : > { %p4895_p4 = por %p4894_p1, %p4893_p2 }
 0x373   : > { %p4896_p8 = pnand %p4895_p4, %p4889_p11 }
 0x375   : > { %4899 = shalt.err (!%p4896_p8)
}
 0x376   : > { %4626 = dma.vmem_to_hbm [thread:$0]  (%p5207_p6), %s4178_s29, 128, %s6636_s27, %s4153_s20   ;;  %vm4144_vm3 = vcmask 7168  }
 0x377   : > { %s4157_s7 = sand.u32 1, %s5082_s25   ;;  %s318_s8 = scalar_lea.vmem [#allocation13], %s6626_s10 }
 0x378   : > { %s4190_s11 = sshll.u32 %s318_s8, 4  ;;  %s325_s16 = scalar_lea.vmem [#allocation15], %s6626_s10  ;;  %s6667_s11 = int_to_ptr.vmem [resolvable:$true] %s4190_s11 }
 0x379   : > { %s4203_s17 = sshll.u32 %s325_s16, 4  ;;  %s6665_s9 = scalar_lea.hbm %s6752_s5, %s6630_s19  ;;  %s6676_s17 = int_to_ptr.vmem [resolvable:$true] %s4203_s17 }
 0x37a   : > { %s6674_s29 = scalar_lea.hbm %s6753_s6, %s6630_s19  ;;  %s6678_s20 = scalar_lea.sflag [#allocation14], %s4157_s7 }
 0x37b   : > { %s4900_s30 = scalar_lea.vmem %s6667_s11, 128  ;;  %s5024_s12 = smov [#allocation13]  }
 0x37c   : > { %p4901_p3 = scmp.ne.s32.totalorder %s6667_s11, %s4900_s30  ;;  %s4904_s15 = sshll.u32 %s5024_s12, 4  ;;  %s4905_s15 = int_to_ptr.vmem [resolvable:$false] %s4904_s15 }
 0x37d   : > { %s4906_s26 = scalar_lea.vmem %s4905_s15, 256  ;;  %p4907_p13 = scmp.lt.s32.totalorder %s6667_s11, %s4905_s15 }
 0x37e   : > { %p4902_p7 = pnand %p4901_p3, %p5207_p6  ;;  %p4908_p0 = scmp.lt.s32.totalorder %s4906_s26, %s4900_s30 }
 0x380   : > { %p4903_p10 = pneg %p4902_p7  ;;  %p4909_p5 = por %p4908_p0, %p4907_p13 }
 0x382   : > { %p4910_p11 = pnand %p4909_p5, %p4903_p10 }
 0x3f4   : > { %v4143_v20 = vpop.xlane.xlu0 %4142 }
 0x3f5   : > { %4145 = vst.msk [vmem:[%s318_s8] sm:$0xff] %vm4144_vm3, %v4143_v20 }
 0x3f6   : > { %v4150_v0 = vpop.xlane.xlu1 %4149 }
 0x3f7   : > { %4913 = shalt.err (!%p4910_p11)
}
 0x3f8   : > { %s4914_s19 = scalar_lea.hbm %s6665_s9, 128  ;;  %s4918_s25 = scalar_lea.hbm %s6752_s5, 256 }
 0x3f9   : > { %p4915_p9 = scmp.ne.s32.totalorder %s6665_s9, %s4914_s19  ;;  %p4919_p1 = scmp.lt.u32.totalorder %s6665_s9, %s6752_s5 }
 0x3fa   : > { %p4920_p4 = scmp.lt.u32.totalorder %s4918_s25, %s4914_s19  ;;  %p4922_p3 = scmp.lt.u32.totalorder %s4914_s19, %s6665_s9 }
 0x3fb   : > { %p4916_p12 = pnand %p4915_p9, %p5207_p6 }
 0x3fc   : > { %p4921_p8 = por %p4920_p4, %p4919_p1 }
 0x3fd   : > { %p4917_p2 = pneg %p4916_p12 }
 0x3fe   : > { %p4923_p7 = por %p4922_p3, %p4921_p8 }
 0x400   : > { %p4924_p10 = pnand %p4923_p7, %p4917_p2 }
 0x402   : > { %4927 = shalt.err (!%p4924_p10)
}
 0x403   : > { %4627 = dma.vmem_to_hbm [thread:$0]  (%p5207_p6), %s6667_s11, 128, %s6665_s9, %s6678_s20   ;;  %4151 = vst.msk [vmem:[%s325_s16] sm:$0xff] %vm4144_vm3, %v4150_v0 }
 0x404   : > { %s4928_s26 = scalar_lea.vmem %s6676_s17, 128  ;;  %s5025_s30 = smov [#allocation15]  }
 0x405   : > { %p4929_p13 = scmp.ne.s32.totalorder %s6676_s17, %s4928_s26  ;;  %s4932_s15 = sshll.u32 %s5025_s30, 4  ;;  %s4933_s15 = int_to_ptr.vmem [resolvable:$false] %s4932_s15 }
 0x406   : > { %s4934_s19 = scalar_lea.vmem %s4933_s15, 256  ;;  %p4935_p11 = scmp.lt.s32.totalorder %s6676_s17, %s4933_s15 }
 0x407   : > { %p4930_p0 = pnand %p4929_p13, %p5207_p6  ;;  %p4936_p9 = scmp.lt.s32.totalorder %s4934_s19, %s4928_s26 }
 0x409   : > { %p4931_p5 = pneg %p4930_p0  ;;  %p4937_p12 = por %p4936_p9, %p4935_p11 }
 0x40b   : > { %p4938_p2 = pnand %p4937_p12, %p4931_p5 }
 0x40d   : > { %4941 = shalt.err (!%p4938_p2)
}
 0x40e   : > { %s4942_s10 = scalar_lea.hbm %s6674_s29, 128  ;;  %s4946_s9 = scalar_lea.hbm %s6753_s6, 256 }
 0x40f   : > { %p4943_p1 = scmp.ne.s32.totalorder %s6674_s29, %s4942_s10  ;;  %p4947_p3 = scmp.lt.u32.totalorder %s6674_s29, %s6753_s6 }
 0x410   : > { %p4948_p7 = scmp.lt.u32.totalorder %s4946_s9, %s4942_s10  ;;  %p4950_p13 = scmp.lt.u32.totalorder %s4942_s10, %s6674_s29 }
 0x411   : > { %p4944_p4 = pnand %p4943_p1, %p5207_p6 }
 0x412   : > { %p4949_p10 = por %p4948_p7, %p4947_p3 }
 0x413   : > { %p4945_p8 = pneg %p4944_p4 }
 0x414   : > { %p4951_p0 = por %p4950_p13, %p4949_p10 }
 0x416   : > { %p4952_p5 = pnand %p4951_p0, %p4945_p8 }
 0x418   : > { %4955 = shalt.err (!%p4952_p5)
}
 0x419   : > { %4628 = dma.vmem_to_hbm [thread:$0]  (%p5207_p6), %s6676_s17, 128, %s6674_s29, %s6678_s20  }
 0x41a PF: > { %s4215_s25 = sand.u32 1, %s4994_s21   ;;  %p6803_p11 = scmp.ne.s32.totalorder %s6761_s28, 0 }
 0x41b   : > { %p6804_p9 = scmp.ge.s32.totalorder %s5006_s24, 2  ;;  %s4216_s27 = scalar_lea.sflag [#allocation6], %s4215_s25 }
 0x41d   : > { %p4647_p12 = pnand %p6804_p9, %p6803_p11 }
 0x41f   : > { %4985 = dma.done.wait (!%p4647_p12), %s4216_s27, 128  }
 0x420   : > { %4987 = vsyncadd (!%p4647_p12), %s4216_s27, 4294967168  ;;  %s6805_s12 = sadd.s32 4294967294, %s5006_s24  }
 0x421   : > { %s4224_s26 = sand.u32 1, %s6805_s12  }
 0x422   : > { %s4225_s30 = scalar_lea.sflag [#allocation14], %s4224_s26 }
 0x423   : > { %4989 = dma.done.wait (!%p4647_p12), %s4225_s30, 256  }
 0x424   : > { %4991 = vsyncadd (!%p4647_p12), %s4225_s30, 4294967040  ;;  %p25_p6 = scmp.ge.s32.totalorder %s5193_s18, 4   ;;  %s6806_s21 = smov %s4998_s22 }
 0x425   : > { %s6807_s22 = smov %s5002_s23  ;;  %s6808_s23 = smov %s5203_s13 }
 0x426   : > { %s6809_s24 = smov %s5193_s18  ;;  %27 = sbr.rel (!%p25_p6) target bundleno = 9 (0x9), region = 128 }
 0x42d   :  { %4239 = vsyncpa [#allocation5], 1 }
 0x42e   :  { %4241 = vsyncpa [#allocation5 + $0x1], 1 }
 0x42f   :  { %4242 = vsyncpa [#allocation8], 1 }
 0x430   :  { %4243 = vsyncpa [#allocation11], 1 }
 0x431   :  { %4244 = vsyncpa [#allocation6], 1 }
 0x432   :  { %4246 = vsyncpa [#allocation6 + $0x1], 1 }
 0x433   :  { %4247 = vsyncpa [#allocation14], 1 }
 0x434   :  { %4249 = vsyncpa [#allocation14 + $0x1], 1 }

// kernel: double_conv_forward.4
= control target key start
LH: loop header
LB: loop body
LE: loop exit
PB: predicated region body
PF: predicated region fallthrough
CT: control target
= control target key end

     0   :  { %12 = vsyncpa [#allocation5], 0  ;;  %s7285_s0 = inlined_call_operand.hbm [shape: bf16[2,16,16,8], index: 0, kind: input, shape index: {}]   ;;  %s7286_s1 = inlined_call_operand.hbm [shape: bf16[8,72], index: 1, kind: input, shape index: {}]   ;;  %s7287_s2 = inlined_call_operand.hbm [shape: f32[1,8], index: 2, kind: input, shape index: {}]   ;;  %s7288_s3 = inlined_call_operand.hbm [shape: f32[1,8], index: 3, kind: input, shape index: {}]   ;;  %s7289_s4 = inlined_call_operand.hbm [shape: bf16[2,8,256], index: 4, kind: output, shape index: {0}]   ;;  %s7290_s5 = inlined_call_operand.hbm [shape: f32[2,8,1], index: 5, kind: output, shape index: {1}]   ;;  %s7291_s6 = inlined_call_operand.hbm [shape: f32[2,8,1], index: 6, kind: output, shape index: {2}]  }
   0x1   :  { %14 = vsyncpa [#allocation5 + $0x1], 0 }
   0x2   :  { %15 = vsyncpa [#allocation8], 0 }
   0x3   :  { %16 = vsyncpa [#allocation11], 0 }
   0x4   :  { %17 = vsyncpa [#allocation6], 0 }
   0x5   :  { %19 = vsyncpa [#allocation6 + $0x1], 0 }
   0x6   :  { %20 = vsyncpa [#allocation14], 0 }
   0x7   :  { %22 = vsyncpa [#allocation14 + $0x1], 0  ;;  %s5450_s21 = smov 0   ;;  %s5452_s22 = smov 0  }
   0x8   :  { %s5454_s23 = smov 0   ;;  %s5456_s24 = smov 0  }
   0x9 LB: > { %s5471_s25 = sadd.s32 4294967295, %s5395_s24   ;;  %s7298_s26 = sadd.s32 4294967294, %s5395_s24   ;;  %s5395_s24 = sphi %s5456_s24, %s7355_s24   ;;  %s5391_s23 = sphi %s5454_s23, %s7354_s23   ;;  %s5387_s22 = sphi %s5452_s22, %s7353_s22   ;;  %s5383_s21 = sphi %s5450_s21, %s7352_s21  }
   0xa   : > { %p48_p0 = scmp.ne.s32.totalorder %s5387_s22, %s5383_s21  ;;  %p7292_p1 = scmp.eq.s32.totalorder %s5471_s25, 0 }
   0xb   : > { %p141_p3 = scmp.eq.s32.totalorder %s7298_s26, 1  ;;  %p4602_p5 = scmp.ge.s32.totalorder %s5395_s24, 1 }
   0xc   : > { %p5482_p4 = por %p7292_p1, %p48_p0  ;;  %p200_p7 = scmp.lt.s32.totalorder %s5395_s24, 3 }
   0xd   : > { %p5487_p6 = por %p141_p3, %p48_p0  ;;  %s5397_s30 = smov [#allocation7]  }
   0xe   : > { %s7299_s27 = scalar_select %p5482_p4, 1, 0 }
   0xf   : > { %s7300_s28 = scalar_select %p5487_p6, 1, 0 }
  0x10   : > { %p5492_p8 = pnand %p4602_p5, %p200_p7  ;;  %s213_s7 = sshll.u32 %s5397_s30, 4  ;;  %s214_s7 = int_to_ptr.vmem [resolvable:$true] %s213_s7 }
  0x11   : > { %s5398_s8 = smov [#allocation9]   ;;  %s5399_s11 = smov [#allocation10]  }
  0x12   : > { %s7301_s29 = scalar_select %p5492_p8, 1, 0 }
  0x13   : > { %p5015_p10 = pneg %p5492_p8  ;;  %s224_s9 = sshll.u32 %s5398_s8, 4  ;;  %s5505_s9 = int_to_ptr.vmem [resolvable:$true] %s224_s9 }
  0x14   : > { %s235_s12 = sshll.u32 %s5399_s11, 4  ;;  %s5147_s15 = scalar_lea.hbm %s7286_s1, 64  ;;  %s5507_s12 = int_to_ptr.vmem [resolvable:$true] %s235_s12 }
  0x15   : > { %p5501_p11 = pnand %p5015_p10, %p7292_p1  ;;  %p5148_p12 = scmp.ne.s32.totalorder %s7286_s1, %s5147_s15 }
  0x16   : > { %p5154_p5 = scmp.lt.u32.totalorder %s5147_s15, %s7286_s1 }
  0x17   : > { %p5517_p13 = pneg %p5501_p11 }
  0x19   : > { %p5150_p0 = pnand %p5517_p13, %p5148_p12 }
  0x1b   : > { %p5151_p3 = pneg %p5150_p0 }
  0x1d   : > { %p5156_p7 = pnand %p5154_p5, %p5151_p3 }
  0x1f   : > { %5159 = shalt.err (!%p5156_p7)
}
  0x20   : > { %s5160_s30 = scalar_lea.vmem %s214_s7, 64  ;;  %p5168_p2 = scmp.lt.s32.totalorder %s214_s7, %s214_s7 }
  0x21   : > { %p5161_p10 = scmp.ne.s32.totalorder %s214_s7, %s5160_s30  ;;  %p5169_p6 = scmp.lt.s32.totalorder %s5160_s30, %s5160_s30 }
  0x23   : > { %p5163_p9 = pnand %p5161_p10, %p5517_p13  ;;  %p5170_p4 = por %p5169_p6, %p5168_p2 }
  0x25   : > { %p5164_p1 = pneg %p5163_p9 }
  0x27   : > { %p5171_p8 = pnand %p5170_p4, %p5164_p1 }
  0x29   : > { %5174 = shalt.err (!%p5171_p8)
}
  0x2a   : > { %5018 = dma.hbm_to_vmem [thread:$0]  (!%p5501_p11), %s7286_s1, 64, %s214_s7, [#allocation8]  }
  0x2b   : > { %s5175_s15 = scalar_lea.hbm %s7287_s2, 16 }
  0x2c   : > { %p5176_p9 = scmp.ne.s32.totalorder %s7287_s2, %s5175_s15  ;;  %p5182_p1 = scmp.lt.u32.totalorder %s5175_s15, %s7287_s2 }
  0x2e   : > { %p5178_p12 = pnand %p5176_p9, %p5517_p13 }
  0x30   : > { %p5179_p2 = pneg %p5178_p12 }
  0x32   : > { %p5184_p4 = pnand %p5182_p1, %p5179_p2 }
  0x34   : > { %5187 = shalt.err (!%p5184_p4)
}
  0x35   : > { %s5188_s7 = scalar_lea.vmem %s5505_s9, 16  ;;  %s5195_s30 = scalar_lea.vmem %s5505_s9, 32 }
  0x36   : > { %p5189_p6 = scmp.ne.s32.totalorder %s5505_s9, %s5188_s7  ;;  %p5196_p3 = scmp.lt.s32.totalorder %s5505_s9, %s5505_s9 }
  0x37   : > { %p5197_p5 = scmp.lt.s32.totalorder %s5195_s30, %s5188_s7 }
  0x38   : > { %p5191_p8 = pnand %p5189_p6, %p5517_p13 }
  0x39   : > { %p5198_p7 = por %p5197_p5, %p5196_p3 }
  0x3a   : > { %p5192_p0 = pneg %p5191_p8 }
  0x3c   : > { %p5199_p10 = pnand %p5198_p7, %p5192_p0 }
  0x3e   : > { %5202 = shalt.err (!%p5199_p10)
}
  0x3f   : > { %5021 = dma.hbm_to_vmem [thread:$0]  (!%p5501_p11), %s7287_s2, 16, %s5505_s9, [#allocation8]  }
  0x40   : > { %s5203_s15 = scalar_lea.hbm %s7288_s3, 16 }
  0x41   : > { %p5204_p9 = scmp.ne.s32.totalorder %s7288_s3, %s5203_s15  ;;  %p5210_p1 = scmp.lt.u32.totalorder %s5203_s15, %s7288_s3 }
  0x43   : > { %p5206_p12 = pnand %p5204_p9, %p5517_p13 }
  0x45   : > { %p5207_p2 = pneg %p5206_p12 }
  0x47   : > { %p5212_p4 = pnand %p5210_p1, %p5207_p2 }
  0x49   : > { %5215 = shalt.err (!%p5212_p4)
}
  0x4a   : > { %s5216_s9 = scalar_lea.vmem %s5507_s12, 16  ;;  %s5223_s7 = scalar_lea.vmem %s5507_s12, 32 }
  0x4b   : > { %p5217_p6 = scmp.ne.s32.totalorder %s5507_s12, %s5216_s9  ;;  %p5224_p3 = scmp.lt.s32.totalorder %s5507_s12, %s5507_s12 }
  0x4c   : > { %p5225_p5 = scmp.lt.s32.totalorder %s5223_s7, %s5216_s9 }
  0x4d   : > { %p5219_p8 = pnand %p5217_p6, %p5517_p13 }
  0x4e   : > { %p5226_p7 = por %p5225_p5, %p5224_p3 }
  0x4f   : > { %p5220_p0 = pneg %p5219_p8 }
  0x51   : > { %p5227_p10 = pnand %p5226_p7, %p5220_p0 }
  0x53   : > { %5230 = shalt.err (!%p5227_p10)
}
  0x54   : > { %5024 = dma.hbm_to_vmem [thread:$0]  (!%p5501_p11), %s7288_s3, 16, %s5507_s12, [#allocation11]  }
  0x55   : > { %s5582_s18 = sadd.s32 1, %s5395_s24   ;;  %s35_s11 = sadd.s32 1, %s5391_s23 }
  0x56   : > { %s32_s10 = ssub.s32 %s5395_s24, %s5582_s18  ;;  %p42_p9 = scmp.ne.s32.totalorder %s5391_s23, %s5387_s22 }
  0x57   : > { %p33_p13 = scmp.eq.s32.totalorder %s32_s10, 0  ;;  %p43_p12 = scmp.eq.s32.totalorder %s5395_s24, 0 }
  0x58   : > { %p5042_p2 = scmp.lt.s32.totalorder %s5395_s24, 2  ;;  %p7304_p4 = scmp.eq.s32.totalorder %s5471_s25, 1 }
  0x59   : > { %s5592_s13 = scalar_select %p33_p13, %s5391_s23, %s35_s11  }
  0x5a   : > { %p44_p1 = por %p43_p12, %p42_p9  ;;  %p5596_p6 = por %p7304_p4, %p42_p9 }
  0x5b   : > { %s246_s15 = sand.u32 1, %s5391_s23   ;;  %s4855_s16 = sshll.u32 %s5395_s24, 11 }
  0x5c   : > { %s4607_s12 = sshll.u32 %s246_s15, 7  ;;  %s5605_s20 = scalar_lea.hbm %s7285_s0, %s4855_s16 }
  0x5d   : > { %s250_s9 = scalar_lea.vmem [#allocation4], %s4607_s12  ;;  %p5607_p11 = pnand %p5042_p2, %p44_p1 }
  0x5e   : > { %s257_s7 = sshll.u32 %s250_s9, 4  ;;  %s5613_s8 = scalar_lea.sflag [#allocation5], %s246_s15  ;;  %s5611_s7 = int_to_ptr.vmem [resolvable:$true] %s257_s7 }
  0x5f   : > { %s5231_s10 = scalar_lea.hbm %s5605_s20, 2048  ;;  %p5233_p0 = pneg %p5607_p11 }
  0x60   : > { %p5232_p8 = scmp.ne.s32.totalorder %s5605_s20, %s5231_s10  ;;  %s5236_s12 = scalar_lea.hbm %s7285_s0, 4096 }
  0x61   : > { %p5237_p7 = scmp.lt.u32.totalorder %s5605_s20, %s7285_s0  ;;  %p5238_p10 = scmp.lt.u32.totalorder %s5236_s12, %s5231_s10 }
  0x62   : > { %p5234_p3 = pnand %p5233_p0, %p5232_p8  ;;  %p5240_p9 = scmp.lt.u32.totalorder %s5231_s10, %s5605_s20 }
  0x63   : > { %p5239_p13 = por %p5238_p10, %p5237_p7 }
  0x64   : > { %p5235_p5 = pneg %p5234_p3 }
  0x65   : > { %p5241_p12 = por %p5240_p9, %p5239_p13 }
  0x67   : > { %p5242_p2 = pnand %p5241_p12, %p5235_p5 }
  0x69   : > { %5245 = shalt.err (!%p5242_p2)
}
  0x6a   : > { %s5246_s15 = scalar_lea.vmem %s5611_s7, 2048  ;;  %s5400_s9 = smov [#allocation4]  }
  0x6b   : > { %p5247_p1 = scmp.ne.s32.totalorder %s5611_s7, %s5246_s15  ;;  %s5251_s11 = sshll.u32 %s5400_s9, 4  ;;  %s5252_s11 = int_to_ptr.vmem [resolvable:$false] %s5251_s11 }
  0x6c   : > { %s5253_s16 = scalar_lea.vmem %s5252_s11, 4096  ;;  %p5254_p3 = scmp.lt.s32.totalorder %s5611_s7, %s5252_s11 }
  0x6d   : > { %p5249_p4 = pnand %p5247_p1, %p5233_p0  ;;  %p5255_p7 = scmp.lt.s32.totalorder %s5253_s16, %s5246_s15 }
  0x6f   : > { %p5250_p8 = pneg %p5249_p4  ;;  %p5256_p10 = por %p5255_p7, %p5254_p3 }
  0x71   : > { %p5257_p13 = pnand %p5256_p10, %p5250_p8 }
  0x73   : > { %5260 = shalt.err (!%p5257_p13)
}
  0x74   : > { %s5401_s10 = smov 64   ;;  %s5402_s12 = smov 4  }
  0x75   : > { %5028 = dma.hbm_to_vmem [thread:$0]  (!%p5607_p11), %s5605_s20, 2048, %s5611_s7, %s5613_s8, %s5401_s10, %s5401_s10, %s5402_s12  }
  0x76   : > { %p7307_p0 = scmp.ne.s32.totalorder %s7301_s29, 0 }
  0x77   : > { %s5644_s17 = sand.u32 (!%p7307_p0), 1, %s5387_s22   ;;  %p7308_p5 = scmp.ne.s32.totalorder (!%p7307_p0), %s7299_s27, 0 }
  0x78   : > { %269 = sbr.rel (%p7307_p0) target bundleno = 1077 (0x435), region = 36  ;;  %s4611_s19 = sshll.u32 (!%p7307_p0), %s5644_s17, 7 }
  0x79   : > { %s272_s15 = scalar_lea.sflag (!%p7307_p0), [#allocation5], %s5644_s17  ;;  %s5648_s9 = scalar_lea.vmem (!%p7307_p0), [#allocation4], %s4611_s19 }
  0x7f   : > { %5362 = dma.done.wait (%p7308_p5), %s272_s15, 2048  }
  0x80   : > { %5364 = vsyncadd (%p7308_p5), %s272_s15, 4294965248  ;;  %p7309_p11 = scmp.eq.s32.totalorder %s5471_s25, 0 }
  0x82   : > { %5366 = dma.done.wait (%p7309_p11), [#allocation8], 80   ;;  %p7310_p9 = pmov %p7309_p11 }
  0x84   : > { %5368 = vsyncadd (%p7310_p9), [#allocation8], 4294967216  ;;  %p7311_p12 = pmov %p7310_p9 }
  0x85   : > { %p7312_p2 = pmov %p7310_p9 }
  0x86   : > { %5370 = dma.done.wait (%p7311_p12), [#allocation11], 16  }
  0x87   : > { %5372 = vsyncadd (%p7312_p2), [#allocation11], 4294967280  ;;  %vm517_vm0 = vcmask 60416   ;;  %vm520_vm1 = vcmask 57344   ;;  %v5403_v0 = vmov 0   ;;  %vm1945_vm6 = vcmask 1042432  }
  0x88   : > { %518 = vst.msk [vmem:[#allocation2] sm:$0xf] %vm517_vm0, %v5403_v0  ;;  %519 = vst.msk [vmem:[#allocation2 + $0x4] sm:$0xf] %vm517_vm0, %v5403_v0  ;;  %vm527_vm2 = vsmask.f32 256 }
  0x89   : > { %521 = vst.msk [vmem:[#allocation2 + $0x8] sm:$0x1] %vm520_vm1, %v5403_v0  ;;  %525 = vst.msk [vmem:[#allocation2 + $0xd4] sm:$0x1] %vm520_vm1, %v5403_v0  ;;  %vm583_vm3 = vsmask.f32 7938 }
  0x8a   : > { %523 = vst.msk [vmem:[#allocation2 + $0xcc] sm:$0xf] %vm517_vm0, %v5403_v0  ;;  %524 = vst.msk [vmem:[#allocation2 + $0xd0] sm:$0xf] %vm517_vm0, %v5403_v0  ;;  %vm1946_vm7 = vcmask 1046532   ;;  %v4961_v3 = vld [vmem:[%s5648_s9 + $0x40] sm:$0xff]  }
  0x8b   : > { %vm5667_vm4 = vmand %vm520_vm1, %vm527_vm2  ;;  %v5677_v4 = vld [vmem:[#allocation9] ss:$0 sm:$0xff]  ;;  %v5679_v5 = vld [vmem:[#allocation10] ss:$0 sm:$0xff]  ;;  %vm1349_vm8 = vsmask.f32 3328  ;;  %v4924_v9 = vunpack.c.l.bf16 %v4961_v3  ;;  %v4925_v10 = vunpack.c.h.bf16 %v4961_v3 }
  0x8c   : > { %vm5672_vm5 = vmand %vm520_vm1, %vm583_vm3  ;;  %vm1350_vm9 = vsmask.f32 7440  ;;  %v556_v21 = vld [vmem:[#allocation2 + $0x6c] sm:$0x1]  ;;  %v4891_v22 = vld [vmem:[%s5648_s9] sm:$0xff]   ;;  %s5404_s27 = smov 16  }
  0x8d   : > { %vm5687_vm10 = vmor %vm1945_vm6, %vm1946_vm7  ;;  %v415_v19 = vmul.f32 %v4924_v9, %v5677_v4  ;;  %v416_v20 = vmul.f32 %v4925_v10, %v5677_v4  ;;  %v557_v26 = vsel %vm5667_vm4, 0, %v556_v21  ;;  %vm719_vm11 = vsmask.f32 4368  ;;  %v532_v27 = vld [vmem:[#allocation2 + $0xc] sm:$0x1]  ;;  %v4962_v32 = vld [vmem:[%s5648_s9 + $0x48] sm:$0xff]  }
  0x8e   : > { %558 = vst [vmem:[#allocation2 + $0x6c] sm:$0x1] %v557_v26  ;;  %v4892_v30 = vunpack.c.l.bf16 %v4891_v22  ;;  %v4893_v31 = vunpack.c.h.bf16 %v4891_v22  ;;  %v559_v33 = vld [vmem:[#allocation2 + $0x78] sm:$0x1]  ;;  %v533_v37 = vsel %vm5667_vm4, 0, %v532_v27  ;;  %v5709_v42 = vld [vmem:[%s5648_s9 + $0x8] sm:$0xff]   ;;  %v4928_v44 = vunpack.c.l.bf16 %v4962_v32  ;;  %vm5721_vm12 = vmor %vm1349_vm8, %vm1350_vm9 }
  0x8f   : > { %v529_v6 = vld [vmem:[#allocation2] sm:$0x1]  ;;  %v1302_v8 = vld [vmem:[#allocation2 + $0x4] sm:$0xf]  ;;  %v1849_v15 = vld [vmem:[#allocation2] sm:$0xe]  ;;  %v453_v28 = vadd.f32 %v5679_v5, %v415_v19  ;;  %v454_v29 = vadd.f32 %v5679_v5, %v416_v20  ;;  %v4929_v45 = vunpack.c.h.bf16 %v4962_v32  ;;  %v4896_v56 = vunpack.c.l.bf16 %v5709_v42 }
  0x90   : > { %v585_v7 = vld [vmem:[#allocation2 + $0x8] sm:$0x1]  ;;  %v530_v11 = vsel %vm5667_vm4, 0, %v529_v6  ;;  %v1362_v13 = vshll.u32 %v1302_v8, 16  ;;  %v1366_v14 = vshrl.u32 %v1302_v8, 16  ;;  %v4684_v18 = vrot.slane %v1849_v15, 9  ;;  %vm5729_vm13 = vmand %vm517_vm0, %vm583_vm3 }
  0x91   : > { %v586_v12 = vsel %vm5672_vm5, 0, %v585_v7  ;;  %531 = vst [vmem:[#allocation2] sm:$0x1] %v530_v11  ;;  %v1850_v17 = vld [vmem:[#allocation2 + $0x4] sm:$0xf]  ;;  %v485_v38 = vmax.f32 %v453_v28, 0.0  ;;  %v399_v40 = vmul.f32 %v4892_v30, %v5677_v4  ;;  %v400_v41 = vmul.f32 %v4893_v31, %v5677_v4  ;;  %vm5739_vm14 = vmor %vm527_vm2, %vm719_vm11 }
  0x92   : > { %587 = vst [vmem:[#allocation2 + $0x8] sm:$0x1] %v586_v12  ;;  %v5694_v23 = vrot.slane %v1362_v13, 5  ;;  %v1368_v24 = vrot.slane %v1366_v14, 4  ;;  %v1950_v25 = vrot.slane %v1850_v17, 5  ;;  %v486_v39 = vmax.f32 %v454_v29, 0.0 }
  0x93   : > { %534 = vst [vmem:[#allocation2 + $0xc] sm:$0x1] %v533_v37  ;;  %v560_v46 = vsel %vm5667_vm4, 0, %v559_v33  ;;  %v4872_v47 = vpack.c.bf16 %v485_v38, %v485_v38  ;;  %v437_v49 = vadd.f32 %v5679_v5, %v399_v40  ;;  %v438_v50 = vadd.f32 %v5679_v5, %v400_v41  ;;  %v535_v40 = vld [vmem:[#allocation2 + $0x18] sm:$0x1]  ;;  %s5405_s29 = smov 8  }
  0x94   : > { %v1369_v34 = vor.u32 %v1368_v24, %v5694_v23  ;;  %v1951_v35 = vsel %vm5687_vm10, %v4684_v18, %v1950_v25  ;;  %v1952_v36 = vrot.slane %v1950_v25, 4  ;;  %v4873_v48 = vpack.c.bf16 %v486_v39, %v486_v39  ;;  %561 = vst [vmem:[#allocation2 + $0x78] sm:$0x1] %v560_v46  ;;  %s5406_s20 = smov 24   ;;  %s5407_s7 = smov 48  }
  0x95   : > { %v417_v54 = vmul.f32 %v4928_v44, %v5677_v4  ;;  %v418_v55 = vmul.f32 %v4929_v45, %v5677_v4  ;;  %v4897_v57 = vunpack.c.h.bf16 %v5709_v42  ;;  %v858_v63 = vshrl.u32 %v4872_v47, 16  ;;  %v1100_v20 = vld [vmem:[#allocation2 + $0x6c] sm:$0xf]  ;;  %s5408_s30 = smov 40   ;;  %s5409_s8 = smov 64  }
  0x96   : > { %v1370_v43 = vrot.slane %v1369_v34, 4  ;;  %v861_v0 = vshll.u32 %v4872_v47, 16  ;;  %v866_v3 = vshrl.u32 %v4873_v48, 16  ;;  %v869_v6 = vshll.u32 %v4873_v48, 16  ;;  %s5410_s11 = smov 32   ;;  %s5411_s16 = smov 56  }
  0x97   : > { %v860_v13 = vrot.slane %v858_v63, 7  ;;  %v469_v15 = vmax.f32 %v437_v49, 0.0  ;;  %v470_v21 = vmax.f32 %v438_v50, 0.0  ;;  %v455_v22 = vadd.f32 %v5679_v5, %v417_v54  ;;  %s7164_s10 = sshll.u32 %s5644_s17, 3  ;;  %s7168_s19 = sshll.u32 %s5471_s25, 7 }
  0x98   : > { %v1301_v51 = vld [vmem:[#allocation2] sm:$0xf]  ;;  %v5733_v14 = vrot.slane %v866_v3, 7  ;;  %v456_v31 = vadd.f32 %v5679_v5, %v418_v55  ;;  %v402_v47 = vmul.f32 %v4897_v57, %v5677_v4  ;;  %v5768_v57 = vld [vmem:[%s5648_s9 + $0x50] sm:$0xff]   ;;  %vm7297_vm15 = vcmask 64512   ;;  %s311_s12 = scalar_lea.vmem [#allocation12], %s7164_s10 }
  0x99   : > { %v1303_v52 = vld [vmem:[#allocation2 + $0x8] sm:$0x1]  ;;  %v1353_v58 = vshrl.u32 %v1301_v51, 16  ;;  %v1356_v59 = vshll.u32 %v1301_v51, 16  ;;  %v863_v24 = vor.u32 %v861_v0, %v860_v13  ;;  %v864_v25 = vrot.slane %v860_v13, 4 }
  0x9a   : > { %v1851_v53 = vld [vmem:[#allocation2 + $0x8] sm:$0x1]  ;;  %v1372_v60 = vshll.u32 %v1303_v52, 16  ;;  %v871_v26 = vor.u32 %v869_v6, %v5733_v14  ;;  %v873_v27 = vrot.slane %v5733_v14, 4  ;;  %v4856_v29 = vpack.c.bf16 %v469_v15, %v469_v15  ;;  %v1044_v48 = vld [vmem:[#allocation2 + $0xc] sm:$0xf] }
  0x9b   : > { %v1953_v61 = vrot.slane %v1851_v53, 5  ;;  %v1355_v7 = vrot.slane %v1353_v58, 4  ;;  %v1358_v8 = vrot.slane %v1356_v59, 5  ;;  %v4857_v30 = vpack.c.bf16 %v470_v21, %v470_v21  ;;  %v4960_v53 = vld [vmem:[%s5648_s9 + $0x38] sm:$0xff]   ;;  %v553_v0 = vld [vmem:[#allocation2 + $0x60] sm:$0x1] }
  0x9c   : > { %v1374_v9 = vrot.slane %v1372_v60, 5  ;;  %v872_v32 = vsel %vm5739_vm14, %v864_v25, %v871_v26  ;;  %v1101_v33 = vsel %vm5729_vm13, %v863_v24, %v1100_v20  ;;  %v487_v34 = vmax.f32 %v455_v22, 0.0  ;;  %v588_v25 = vld [vmem:[#allocation2 + $0x14] sm:$0x1] }
  0x9d   : > { %v1954_v10 = vsel %vm5687_vm10, %v1952_v36, %v1953_v61  ;;  %v1359_v17 = vor.u32 %v1358_v8, %v1355_v7  ;;  %1102 = vst [vmem:[#allocation2 + $0x6c] sm:$0xf] %v1101_v33  ;;  %1103 = vst.msk [vmem:[#allocation2 + $0x70] sm:$0xf] %vm517_vm0, %v872_v32  ;;  %v722_v37 = vshrl.u32 %v4856_v29, 16  ;;  %v725_v38 = vshll.u32 %v4856_v29, 16 }
  0x9e   : > { %v4700_v12 = vcombine.low %v1951_v35, %v1954_v10  ;;  %v1375_v18 = vsel %vm5721_vm12, %v1370_v43, %v1374_v9  ;;  %v401_v35 = vmul.f32 %v4896_v56, %v5677_v4  ;;  %v730_v39 = vshrl.u32 %v4857_v30, 16  ;;  %v1107_v7 = vld [vmem:[#allocation2 + $0x78] sm:$0xf]  ;;  %v609_v10 = vld [vmem:[#allocation2 + $0x68] sm:$0x1] }
  0x9f   : > { %v1360_v28 = vrot.slane %v1359_v17, 4  ;;  %v733_v42 = vshll.u32 %v4857_v30, 16  ;;  %v488_v43 = vmax.f32 %v456_v31, 0.0  ;;  %v4874_v44 = vpack.c.bf16 %v487_v34, %v487_v34 }
  0xa0   : > { %2108 = vrot.lane.b32.xlu1 %v4700_v12, %s5404_s27  ;;  %v724_v45 = vrot.slane %v722_v37, 7  ;;  %v5757_v46 = vrot.slane %v730_v39, 7  ;;  %v536_v52 = vsel %vm5667_vm4, 0, %v535_v40  ;;  %v440_v63 = vadd.f32 %v5679_v5, %v402_v47 }
  0xa1   : > { %v1365_v36 = vsel %vm5721_vm12, %v1360_v28, %v5694_v23  ;;  %v439_v23 = vadd.f32 %v5679_v5, %v401_v35  ;;  %v4875_v49 = vpack.c.bf16 %v488_v43, %v488_v43  ;;  %v875_v50 = vshrl.u32 %v4874_v44, 16  ;;  %537 = vst [vmem:[#allocation2 + $0x18] sm:$0x1] %v536_v52  ;;  %v612_v35 = vld [vmem:[#allocation2 + $0x74] sm:$0x1] }
  0xa2   : > { %v4668_v41 = vcombine.low %v1365_v36, %v1375_v18  ;;  %v878_v51 = vshll.u32 %v4874_v44, 16  ;;  %v727_v54 = vor.u32 %v725_v38, %v724_v45  ;;  %v728_v55 = vrot.slane %v724_v45, 4 }
  0xa3   : > { %v735_v56 = vor.u32 %v733_v42, %v5757_v46  ;;  %v737_v58 = vrot.slane %v5757_v46, 4  ;;  %v877_v59 = vrot.slane %v875_v50, 7  ;;  %v883_v60 = vshrl.u32 %v4875_v49, 16  ;;  %v591_v42 = vld [vmem:[#allocation2 + $0x20] sm:$0x1] }
  0xa4   : > { %1784 = vrot.lane.b32.xlu0 %v4668_v41, %s5405_s29  ;;  %v886_v61 = vshll.u32 %v4875_v49, 16  ;;  %v1045_v6 = vsel %vm5729_vm13, %v727_v54, %v1044_v48  ;;  %v471_v8 = vmax.f32 %v439_v23, 0.0  ;;  %v4920_v9 = vunpack.c.l.bf16 %v4960_v53  ;;  %v5093_v12 = vld [vmem:[#allocation2 + $0x6c] sm:$0xff]  }
  0xa5   : > { %v736_v3 = vsel %vm5739_vm14, %v728_v55, %v735_v56  ;;  %1046 = vst [vmem:[#allocation2 + $0xc] sm:$0xf] %v1045_v6  ;;  %v880_v13 = vor.u32 %v878_v51, %v877_v59  ;;  %v881_v15 = vrot.slane %v877_v59, 4  ;;  %v4921_v17 = vunpack.c.h.bf16 %v4960_v53  ;;  %2301 = vrot.lane.b32.xlu1 %v5093_v12, %s5406_s20  ;;  %v2919_v36 = vld [vmem:[#allocation2 + $0x6c] sm:$0xe] }
  0xa6   : > { %1047 = vst.msk [vmem:[#allocation2 + $0x10] sm:$0xf] %vm517_vm0, %v736_v3  ;;  %v4932_v18 = vunpack.c.l.bf16 %v5768_v57  ;;  %v5777_v20 = vrot.slane %v883_v60, 7  ;;  %v472_v21 = vmax.f32 %v440_v63, 0.0  ;;  %v4858_v22 = vpack.c.bf16 %v471_v8, %v471_v8  ;;  %v2920_v41 = vld [vmem:[#allocation2 + $0x70] sm:$0xf] }
  0xa7   : > { %v413_v24 = vmul.f32 %v4920_v9, %v5677_v4  ;;  %v1108_v26 = vsel %vm5729_vm13, %v880_v13, %v1107_v7  ;;  %v414_v28 = vmul.f32 %v4921_v17, %v5677_v4  ;;  %v554_v29 = vsel %vm5667_vm4, 0, %v553_v0  ;;  %v5843_v46 = vld [vmem:[#allocation2 + $0x6c] sm:$0xf] }
  0xa8   : > { %v610_v30 = vsel %vm5672_vm5, 0, %v609_v10  ;;  %v888_v31 = vor.u32 %v886_v61, %v5777_v20  ;;  %v890_v32 = vrot.slane %v5777_v20, 4  ;;  %1109 = vst [vmem:[#allocation2 + $0x78] sm:$0xf] %v1108_v26  ;;  %v4859_v33 = vpack.c.bf16 %v472_v21, %v472_v21  ;;  %555 = vst [vmem:[#allocation2 + $0x60] sm:$0x1] %v554_v29 }
  0xa9   : > { %v739_v34 = vshrl.u32 %v4858_v22, 16  ;;  %611 = vst [vmem:[#allocation2 + $0x68] sm:$0x1] %v610_v30  ;;  %v742_v37 = vshll.u32 %v4858_v22, 16  ;;  %v451_v38 = vadd.f32 %v5679_v5, %v413_v24  ;;  %v452_v39 = vadd.f32 %v5679_v5, %v414_v28  ;;  %v1051_v23 = vld [vmem:[#allocation2 + $0x18] sm:$0xf] }
  0xaa   : > { %v589_v40 = vsel %vm5672_vm5, 0, %v588_v25  ;;  %v889_v43 = vsel %vm5739_vm14, %v881_v15, %v888_v31  ;;  %v747_v45 = vshrl.u32 %v4859_v33, 16  ;;  %v750_v47 = vshll.u32 %v4859_v33, 16  ;;  %v5809_v10 = vld [vmem:[%s5648_s9 + $0x10] sm:$0xff]  }
  0xab   : > { %v741_v44 = vrot.slane %v739_v34, 7  ;;  %590 = vst [vmem:[#allocation2 + $0x14] sm:$0x1] %v589_v40  ;;  %1110 = vst.msk [vmem:[#allocation2 + $0x7c] sm:$0xf] %vm517_vm0, %v889_v43  ;;  %v483_v48 = vmax.f32 %v451_v38, 0.0  ;;  %v4933_v55 = vunpack.c.h.bf16 %v5768_v57  ;;  %v419_v56 = vmul.f32 %v4932_v18, %v5677_v4 }
  0xac   : > { %v484_v49 = vmax.f32 %v452_v39, 0.0  ;;  %v613_v50 = vsel %vm5672_vm5, 0, %v612_v35  ;;  %v4756_v51 = vrot.slane %v2919_v36, 9  ;;  %v5801_v59 = vrot.slane %v747_v45, 7  ;;  %v2895_v63 = vld [vmem:[#allocation2 + $0xc] sm:$0xe] }
  0xad   : > { %v5094_v52 = vld [vmem:[#allocation2 + $0xc] sm:$0xff]   ;;  %v744_v53 = vor.u32 %v742_v37, %v741_v44  ;;  %v745_v54 = vrot.slane %v741_v44, 4  ;;  %614 = vst [vmem:[#allocation2 + $0x74] sm:$0x1] %v613_v50  ;;  %v4870_v60 = vpack.c.bf16 %v483_v48, %v483_v48  ;;  %v3049_v3 = vrot.slane %v2920_v41, 5 }
  0xae   : > { %v4871_v61 = vpack.c.bf16 %v484_v49, %v484_v49  ;;  %v2896_v0 = vld [vmem:[#allocation2 + $0x10] sm:$0xf]  ;;  %2285 = vrot.lane.b32.xlu0 %v5094_v52, %s5406_s20  ;;  %v4748_v7 = vrot.slane %v2895_v63, 9  ;;  %v592_v9 = vsel %vm5672_vm5, 0, %v591_v42  ;;  %v615_v57 = vld [vmem:[#allocation2 + $0x80] sm:$0x1]  ;;  %v752_v12 = vor.u32 %v750_v47, %v5801_v59 }
  0xaf   : > { %v1052_v6 = vsel %vm5729_vm13, %v744_v53, %v1051_v23  ;;  %v2993_v8 = vrot.slane %v2896_v0, 5  ;;  %v754_v13 = vrot.slane %v5801_v59, 4  ;;  %v841_v15 = vshrl.u32 %v4870_v60, 16  ;;  %593 = vst [vmem:[#allocation2 + $0x20] sm:$0x1] %v592_v9  ;;  %v5872_v9 = vld [vmem:[%s5648_s9 + $0x58] sm:$0xff]  }
  0xb0   : > { %1053 = vst [vmem:[#allocation2 + $0x18] sm:$0xf] %v1052_v6  ;;  %v5815_v17 = vsel %vm5687_vm10, %v4756_v51, %v3049_v3  ;;  %v5817_v18 = vld [vmem:[#allocation2 + $0xc] sm:$0xe]  ;;  %v844_v21 = vshll.u32 %v4870_v60, 16  ;;  %v849_v22 = vshrl.u32 %v4871_v61, 16  ;;  %v753_v29 = vsel %vm5739_vm14, %v745_v54, %v752_v12 }
  0xb1   : > { %v852_v24 = vshll.u32 %v4871_v61, 16  ;;  %v1093_v25 = vld [vmem:[#allocation2 + $0x60] sm:$0xf]  ;;  %v5821_v26 = vsel %vm5687_vm10, %v4748_v7, %v2993_v8  ;;  %v5823_v28 = vld [vmem:[#allocation2 + $0x6c] sm:$0xe]  ;;  %v843_v30 = vrot.slane %v841_v15, 7  ;;  %v420_v35 = vmul.f32 %v4933_v55, %v5677_v4 }
  0xb2   : > { %v1097_v31 = vld [vmem:[#allocation2 + $0x68] sm:$0x1]  ;;  %v1048_v33 = vld [vmem:[#allocation2 + $0x14] sm:$0x1]  ;;  %v5827_v34 = vrot.slane %v2993_v8, 4  ;;  %v5095_v36 = vld [vmem:[#allocation2 + $0x78] sm:$0xff]   ;;  %v5836_v39 = vadd.f32 %v5679_v5, %v419_v56  ;;  %v4900_v40 = vunpack.c.l.bf16 %v5809_v10  ;;  %v4901_v63 = vunpack.c.h.bf16 %v5809_v10 }
  0xb3   : > { %1054 = vst.msk [vmem:[#allocation2 + $0x1c] sm:$0xf] %vm517_vm0, %v753_v29  ;;  %v851_v37 = vrot.slane %v849_v22, 7  ;;  %v1049_v38 = vsel %vm5667_vm4, %v737_v58, %v1048_v33  ;;  %v5097_v41 = vld [vmem:[#allocation2 + $0x78] sm:$0xff]   ;;  %v846_v42 = vor.u32 %v844_v21, %v843_v30  ;;  %v847_v43 = vrot.slane %v843_v30, 4  ;;  %3345 = vrot.lane.b32.xlu1 %v5095_v36, %s5407_s7 }
  0xb4   : > { %1050 = vst [vmem:[#allocation2 + $0x14] sm:$0x1] %v1049_v38  ;;  %v1104_v44 = vld [vmem:[#allocation2 + $0x74] sm:$0x1]  ;;  %v5839_v45 = vrot.slane %v3049_v3, 4  ;;  %v616_v47 = vsel %vm5672_vm5, 0, %v615_v57  ;;  %v5859_v61 = vadd.f32 %v5679_v5, %v420_v35  ;;  %v403_v22 = vmul.f32 %v4900_v40, %v5677_v4 }
  0xb5   : > { %v1877_v23 = vld [vmem:[#allocation2 + $0x70] sm:$0xf]  ;;  %v854_v58 = vor.u32 %v852_v24, %v851_v37  ;;  %v856_v48 = vrot.slane %v851_v37, 4  ;;  %v1105_v49 = vsel %vm5667_vm4, %v873_v27, %v1104_v44  ;;  %617 = vst [vmem:[#allocation2 + $0x80] sm:$0x1] %v616_v47  ;;  %v4685_v52 = vrot.slane %v5817_v18, 9 }
  0xb6   : > { %v3963_v50 = vld [vmem:[#allocation2 + $0x78] sm:$0xe]  ;;  %v3964_v51 = vld [vmem:[#allocation2 + $0x7c] sm:$0xf]  ;;  %v1094_v53 = vsel %vm5729_vm13, %v846_v42, %v1093_v25  ;;  %1106 = vst [vmem:[#allocation2 + $0x74] sm:$0x1] %v1105_v49  ;;  %v404_v24 = vmul.f32 %v4901_v63, %v5677_v4  ;;  %v4936_v33 = vunpack.c.l.bf16 %v5872_v9  ;;  %v4937_v35 = vunpack.c.h.bf16 %v5872_v9 }
  0xb7   : > { %v4820_v54 = vrot.slane %v3963_v50, 9  ;;  %v4093_v55 = vrot.slane %v3964_v51, 5  ;;  %v1853_v56 = vld [vmem:[#allocation2 + $0x10] sm:$0xf]  ;;  %v4693_v59 = vrot.slane %v5823_v28, 9  ;;  %v855_v14 = vsel %vm5739_vm14, %v847_v43, %v854_v58  ;;  %2303 = vrot.lane.b32.xlu1 %v5097_v41, %s5406_s20 }
  0xb8   : > { %1095 = vst [vmem:[#allocation2 + $0x60] sm:$0xf] %v1094_v53  ;;  %v1098_v27 = vsel %vm5667_vm4, %v856_v48, %v1097_v31  ;;  %v1055_v60 = vld [vmem:[#allocation2 + $0x20] sm:$0x1]  ;;  %1096 = vst.msk [vmem:[#allocation2 + $0x64] sm:$0xf] %vm517_vm0, %v855_v14  ;;  %v5891_v41 = vadd.f32 %v5679_v5, %v403_v22  ;;  %v5894_v42 = vadd.f32 %v5679_v5, %v404_v24 }
  0xb9   : > { %1099 = vst [vmem:[#allocation2 + $0x68] sm:$0x1] %v1098_v27  ;;  %v1056_v0 = vsel %vm5667_vm4, %v754_v13, %v1055_v60  ;;  %v3939_v3 = vld [vmem:[#allocation2 + $0x18] sm:$0xe]  ;;  %v5867_v6 = vsel %vm5687_vm10, %v4820_v54, %v4093_v55  ;;  %v5869_v7 = vrot.slane %v4093_v55, 4  ;;  %v1957_v8 = vrot.slane %v1853_v56, 5 }
  0xba   : > { %1057 = vst [vmem:[#allocation2 + $0x20] sm:$0x1] %v1056_v0  ;;  %v4812_v57 = vrot.slane %v3939_v3, 9  ;;  %v2013_v10 = vrot.slane %v1877_v23, 5  ;;  %v2591_v12 = vshrl.u32 %v5843_v46, 16  ;;  %v2594_v15 = vshll.u32 %v5843_v46, 16 }
  0xbb   : > { %v5096_v13 = vld [vmem:[#allocation2 + $0x18] sm:$0xff]   ;;  %v5879_v18 = vsel %vm5687_vm10, %v4685_v52, %v1957_v8  ;;  %v1959_v21 = vrot.slane %v1957_v8, 4  ;;  %v2897_v28 = vld [vmem:[#allocation2 + $0x14] sm:$0x1]  ;;  %v5903_v48 = vmul.f32 %v4936_v33, %v5677_v4  ;;  %v2375_v24 = vld [vmem:[#allocation2 + $0x70] sm:$0xf] }
  0xbc   : > { %v5098_v25 = vld [vmem:[#allocation2 + $0x18] sm:$0xff]   ;;  %v5885_v30 = vsel %vm5687_vm10, %v4693_v59, %v2013_v10  ;;  %v2015_v31 = vrot.slane %v2013_v10, 4  ;;  %3329 = vrot.lane.b32.xlu0 %v5096_v13, %s5407_s7  ;;  %v2996_v36 = vrot.slane %v2897_v28, 5  ;;  %v1111_v38 = vld [vmem:[#allocation2 + $0x80] sm:$0x1]  ;;  %v5900_v58 = vrot.slane %v2591_v12, 4 }
  0xbd   : > { %v3940_v29 = vld [vmem:[#allocation2 + $0x1c] sm:$0xf]  ;;  %v1854_v40 = vld [vmem:[#allocation2 + $0x14] sm:$0x1]  ;;  %v1112_v44 = vsel %vm5667_vm4, %v890_v32, %v1111_v38  ;;  %vm1832_vm1 = vcmask 130112   ;;  %vm2156_vm2 = vcmask 195712  }
  0xbe   : > { %v4037_v37 = vrot.slane %v3940_v29, 5  ;;  %v2921_v43 = vld [vmem:[#allocation2 + $0x74] sm:$0x1]  ;;  %v1960_v47 = vrot.slane %v1854_v40, 5  ;;  %v2997_v50 = vsel %vm5687_vm10, %v5827_v34, %v2996_v36  ;;  %1113 = vst [vmem:[#allocation2 + $0x80] sm:$0x1] %v1112_v44 }
  0xbf   : > { %v1878_v23 = vld [vmem:[#allocation2 + $0x74] sm:$0x1]  ;;  %v1873_v49 = vld [vmem:[#allocation2 + $0x60] sm:$0xe]  ;;  %v3052_v5 = vrot.slane %v2921_v43, 5  ;;  %v4764_v55 = vcombine.low %v5821_v26, %v2997_v50  ;;  %v2596_v44 = vrot.slane %v2594_v15, 5 }
  0xc0   : > { %v4038_v51 = vsel %vm5687_vm10, %v4812_v57, %v4037_v37  ;;  %v4039_v20 = vrot.slane %v4037_v37, 4  ;;  %v1325_v52 = vld [vmem:[#allocation2 + $0x60] sm:$0xf]  ;;  %v1874_v32 = vld [vmem:[#allocation2 + $0x64] sm:$0xf]  ;;  %v4692_v54 = vrot.slane %v1873_v49, 9  ;;  %v5913_v4 = vsel %vm5687_vm10, %v1959_v21, %v1960_v47  ;;  %2287 = vrot.lane.b32.xlu0 %v5098_v25, %s5406_s20 }
  0xc1   : > { %v1875_v53 = vld [vmem:[#allocation2 + $0x68] sm:$0x1]  ;;  %v2016_v56 = vrot.slane %v1878_v23, 5  ;;  %v2006_v34 = vrot.slane %v1874_v32, 5  ;;  %v3053_v14 = vsel %vm5687_vm10, %v5839_v45, %v3052_v5  ;;  %v3941_v27 = vld [vmem:[#allocation2 + $0x20] sm:$0x1]  ;;  %v4701_v60 = vcombine.low %v5879_v18, %v5913_v4 }
  0xc2   : > { %v2009_v59 = vrot.slane %v1875_v53, 5  ;;  %v1326_v63 = vld [vmem:[#allocation2 + $0x64] sm:$0xf]  ;;  %v4772_v26 = vcombine.low %v5815_v17, %v3053_v14  ;;  %v4040_v0 = vrot.slane %v3941_v27, 5  ;;  %v1327_v8 = vld [vmem:[#allocation2 + $0x68] sm:$0x1] }
  0xc3   : > { %v5924_v3 = vsel %vm5687_vm10, %v2015_v31, %v2016_v56  ;;  %v1545_v57 = vshrl.u32 %v1325_v52, 16  ;;  %v2007_v10 = vsel %vm5687_vm10, %v4692_v54, %v2006_v34  ;;  %v2008_v12 = vrot.slane %v2006_v34, 4  ;;  %v2376_v33 = vld [vmem:[#allocation2 + $0x74] sm:$0x1]  ;;  %v2350_v36 = vld [vmem:[#allocation2 + $0xc] sm:$0xf] }
  0xc4   : > { %v4709_v45 = vcombine.low %v5885_v30, %v5924_v3  ;;  %v1548_v13 = vshll.u32 %v1325_v52, 16  ;;  %v4041_v18 = vsel %vm5687_vm10, %v4039_v20, %v4040_v0  ;;  %v1554_v17 = vshll.u32 %v1326_v63, 16  ;;  %3151 = vrot.lane.b32.xlu0 %v4764_v55, %s5408_s30  ;;  %v2351_v53 = vld [vmem:[#allocation2 + $0x10] sm:$0xf]  ;;  %v3418_v0 = vld [vmem:[#allocation2 + $0x78] sm:$0xf] }
  0xc5   : > { %v1547_v21 = vrot.slane %v1545_v57, 4  ;;  %v1558_v22 = vshrl.u32 %v1326_v63, 16  ;;  %v2010_v25 = vsel %vm5687_vm10, %v2008_v12, %v2009_v59  ;;  %v4828_v28 = vcombine.low %v4038_v51, %v4041_v18  ;;  %v3965_v38 = vld [vmem:[#allocation2 + $0x80] sm:$0x1]  ;;  %v2352_v59 = vld [vmem:[#allocation2 + $0x14] sm:$0x1] }
  0xc6   : > { %v1550_v29 = vrot.slane %v1548_v13, 5  ;;  %v1564_v31 = vshll.u32 %v1327_v8, 16  ;;  %v4708_v37 = vcombine.low %v2007_v10, %v2010_v25  ;;  %v1556_v40 = vrot.slane %v1554_v17, 5  ;;  %v3419_v10 = vld [vmem:[#allocation2 + $0x7c] sm:$0xf] }
  0xc7   : > { %v1560_v43 = vrot.slane %v1558_v22, 4  ;;  %v4096_v47 = vrot.slane %v3965_v38, 5  ;;  %v2600_v50 = vshll.u32 %v2375_v24, 16  ;;  %v2597_v51 = vor.u32 %v2596_v44, %v5900_v58 }
  0xc8   : > { %v1551_v23 = vor.u32 %v1550_v29, %v1547_v21  ;;  %v1566_v49 = vrot.slane %v1564_v31, 5  ;;  %2124 = vrot.lane.b32.xlu1 %v4708_v37, %s5404_s27  ;;  %v2604_v20 = vshrl.u32 %v2375_v24, 16  ;;  %v2610_v52 = vshll.u32 %v2376_v33, 16  ;;  %4195 = vrot.lane.b32.xlu0 %v4828_v28, %s5409_s8  ;;  %v3420_v33 = vld [vmem:[#allocation2 + $0x80] sm:$0x1] }
  0xc9   : > { %v1561_v5 = vor.u32 %v1560_v43, %v1556_v40  ;;  %v4097_v32 = vsel %vm5687_vm10, %v5869_v7, %v4096_v47  ;;  %v2602_v15 = vrot.slane %v2600_v50, 5  ;;  %v2399_v54 = vshrl.u32 %v2350_v36, 16  ;;  %v3395_v43 = vld [vmem:[#allocation2 + $0x1c] sm:$0xf] }
  0xca   : > { %v1552_v46 = vrot.slane %v1551_v23, 4  ;;  %v4836_v55 = vcombine.low %v5867_v6, %v4097_v32  ;;  %v2598_v56 = vrot.slane %v2597_v51, 4  ;;  %v2606_v34 = vrot.slane %v2604_v20, 4 }
  0xcb   : > { %v1562_v4 = vrot.slane %v1561_v5, 4  ;;  %v2612_v14 = vrot.slane %v2610_v52, 5  ;;  %v2401_v27 = vrot.slane %v2399_v54, 4  ;;  %v2402_v63 = vshll.u32 %v2350_v36, 16 }
  0xcc   : > { %v1557_v58 = vsel %vm5721_vm12, %v1552_v46, %v1556_v40  ;;  %3167 = vrot.lane.b32.xlu1 %v4772_v26, %s5408_s30  ;;  %v2603_v8 = vsel %vm5721_vm12, %v2598_v56, %v2602_v15  ;;  %v2607_v6 = vor.u32 %v2606_v34, %v2602_v15  ;;  %v2408_v57 = vshll.u32 %v2351_v53, 16  ;;  %2110 = vrot.lane.b32.xlu0 %v4701_v60, %s5404_s27  ;;  %v3394_v26 = vld [vmem:[#allocation2 + $0x18] sm:$0xf]  ;;  %v3396_v46 = vld [vmem:[#allocation2 + $0x20] sm:$0x1] }
  0xcd   : > { %v1567_v7 = vsel %vm5721_vm12, %v1562_v4, %v1566_v49  ;;  %v2404_v13 = vrot.slane %v2402_v63, 5  ;;  %v2412_v18 = vshrl.u32 %v2351_v53, 16  ;;  %v2418_v21 = vshll.u32 %v2352_v59, 16  ;;  %v1328_v34 = vld [vmem:[#allocation2 + $0x6c] sm:$0xf] }
  0xce   : > { %v4676_v12 = vcombine.low %v1557_v58, %v1567_v7  ;;  %v2608_v17 = vrot.slane %v2607_v6, 4  ;;  %v2410_v22 = vrot.slane %v2408_v57, 5  ;;  %v3635_v24 = vshrl.u32 %v3418_v0, 16  ;;  %v1329_v63 = vld [vmem:[#allocation2 + $0x70] sm:$0xf] }
  0xcf   : > { %v3638_v25 = vshll.u32 %v3418_v0, 16  ;;  %v2405_v28 = vor.u32 %v2404_v13, %v2401_v27  ;;  %v2414_v29 = vrot.slane %v2412_v18, 4  ;;  %v2420_v31 = vrot.slane %v2418_v21, 5 }
  0xd0   : > { %v3644_v36 = vshll.u32 %v3419_v10, 16  ;;  %4211 = vrot.lane.b32.xlu1 %v4836_v55, %s5409_s8  ;;  %v2613_v37 = vsel %vm5721_vm12, %v2608_v17, %v2612_v14  ;;  %v3637_v60 = vrot.slane %v3635_v24, 4  ;;  %v3648_v40 = vshrl.u32 %v3419_v10, 16  ;;  %1800 = vrot.lane.b32.xlu0 %v4676_v12, %s5405_s29  ;;  %v1304_v17 = vld [vmem:[#allocation2 + $0xc] sm:$0xf] }
  0xd1   : > { %v3640_v38 = vrot.slane %v3638_v25, 5  ;;  %v4740_v44 = vcombine.low %v2603_v8, %v2613_v37  ;;  %v2406_v47 = vrot.slane %v2405_v28, 4  ;;  %v2415_v23 = vor.u32 %v2414_v29, %v2410_v22  ;;  %v1305_v28 = vld [vmem:[#allocation2 + $0x10] sm:$0xf] }
  0xd2   : > { %v3646_v49 = vrot.slane %v3644_v36, 5  ;;  %v3650_v5 = vrot.slane %v3648_v40, 4  ;;  %v3654_v51 = vshll.u32 %v3420_v33, 16  ;;  %v3443_v20 = vshrl.u32 %v3394_v26, 16 }
  0xd3   : > { %v3641_v50 = vor.u32 %v3640_v38, %v3637_v60  ;;  %v2411_v52 = vsel %vm5721_vm12, %v2406_v47, %v2410_v22  ;;  %v2416_v32 = vrot.slane %v2415_v23, 4  ;;  %v3446_v15 = vshll.u32 %v3394_v26, 16  ;;  %v1306_v23 = vld [vmem:[#allocation2 + $0x14] sm:$0x1] }
  0xd4   : > { %v3452_v53 = vshll.u32 %v3395_v43, 16  ;;  %2126 = vrot.lane.b32.xlu1 %v4709_v45, %s5404_s27  ;;  %v3651_v55 = vor.u32 %v3650_v5, %v3646_v49  ;;  %v3656_v4 = vrot.slane %v3654_v51, 5  ;;  %v3445_v56 = vrot.slane %v3443_v20, 4  ;;  %v1330_v45 = vld [vmem:[#allocation2 + $0x74] sm:$0x1] }
  0xd5   : > { %v3642_v54 = vrot.slane %v3641_v50, 4  ;;  %v2421_v59 = vsel %vm5721_vm12, %v2416_v32, %v2420_v31  ;;  %v3448_v58 = vrot.slane %v3446_v15, 5  ;;  %v3456_v27 = vshrl.u32 %v3395_v43, 16  ;;  %v2377_v50 = vld [vmem:[#allocation2 + $0x78] sm:$0xf] }
  0xd6   : > { %v3454_v14 = vrot.slane %v3452_v53, 5  ;;  %v4732_v0 = vcombine.low %v2411_v52, %v2421_v59  ;;  %v3652_v8 = vrot.slane %v3651_v55, 4  ;;  %v3462_v6 = vshll.u32 %v3396_v46, 16  ;;  %v2378_v32 = vld [vmem:[#allocation2 + $0x7c] sm:$0xf] }
  0xd7   : > { %v3647_v7 = vsel %vm5721_vm12, %v3642_v54, %v3646_v49  ;;  %v3449_v30 = vor.u32 %v3448_v58, %v3445_v56  ;;  %v3458_v3 = vrot.slane %v3456_v27, 4  ;;  %v1569_v57 = vshrl.u32 %v1328_v34, 16 }
  0xd8   : > { %v1572_v10 = vshll.u32 %v1328_v34, 16  ;;  %2846 = vrot.lane.b32.xlu1 %v4740_v44, %s5410_s11  ;;  %2830 = vrot.lane.b32.xlu0 %v4732_v0, %s5410_s11  ;;  %v3657_v12 = vsel %vm5721_vm12, %v3652_v8, %v3656_v4  ;;  %v3464_v13 = vrot.slane %v3462_v6, 5  ;;  %v1578_v18 = vshll.u32 %v1329_v63, 16  ;;  %v2353_v0 = vld [vmem:[#allocation2 + $0x18] sm:$0xf] }
  0xd9   : > { %v1582_v21 = vshrl.u32 %v1329_v63, 16  ;;  %v4804_v22 = vcombine.low %v3647_v7, %v3657_v12  ;;  %v3450_v24 = vrot.slane %v3449_v30, 4  ;;  %v3459_v25 = vor.u32 %v3458_v3, %v3454_v14  ;;  %v2354_v3 = vld [vmem:[#allocation2 + $0x1c] sm:$0xf] }
  0xda   : > { %v1571_v26 = vrot.slane %v1569_v57, 4  ;;  %v1574_v29 = vrot.slane %v1572_v10, 5  ;;  %v1580_v31 = vrot.slane %v1578_v18, 5  ;;  %v1588_v36 = vshll.u32 %v1330_v45, 16  ;;  %v2922_v18 = vld [vmem:[#allocation2 + $0x78] sm:$0xe] }
  0xdb   : > { %v1584_v33 = vrot.slane %v1582_v21, 4  ;;  %v3455_v37 = vsel %vm5721_vm12, %v3450_v24, %v3454_v14  ;;  %v3460_v60 = vrot.slane %v3459_v25, 4  ;;  %v1377_v38 = vshrl.u32 %v1304_v17, 16  ;;  %v2379_v14 = vld [vmem:[#allocation2 + $0x80] sm:$0x1] }
  0xdc   : > { %v1380_v40 = vshll.u32 %v1304_v17, 16  ;;  %3890 = vrot.lane.b32.xlu1 %v4804_v22, %s5411_s16  ;;  %v1575_v43 = vor.u32 %v1574_v29, %v1571_v26  ;;  %v1590_v47 = vrot.slane %v1588_v36, 5  ;;  %v1386_v49 = vshll.u32 %v1305_v28, 16  ;;  %v2923_v25 = vld [vmem:[#allocation2 + $0x7c] sm:$0xf] }
  0xdd   : > { %v1585_v44 = vor.u32 %v1584_v33, %v1580_v31  ;;  %v3465_v5 = vsel %vm5721_vm12, %v3460_v60, %v3464_v13  ;;  %v1379_v51 = vrot.slane %v1377_v38, 4  ;;  %v1390_v52 = vshrl.u32 %v1305_v28, 16  ;;  %v2355_v13 = vld [vmem:[#allocation2 + $0x20] sm:$0x1]  ;;  %v2898_v36 = vld [vmem:[#allocation2 + $0x18] sm:$0xe] }
  0xde   : > { %v1382_v20 = vrot.slane %v1380_v40, 5  ;;  %v4796_v46 = vcombine.low %v3455_v37, %v3465_v5  ;;  %v1576_v15 = vrot.slane %v1575_v43, 4  ;;  %v1388_v54 = vrot.slane %v1386_v49, 5  ;;  %v2924_v33 = vld [vmem:[#allocation2 + $0x80] sm:$0x1] }
  0xdf   : > { %v1586_v53 = vrot.slane %v1585_v44, 4  ;;  %v1392_v4 = vrot.slane %v1390_v52, 4  ;;  %v1396_v56 = vshll.u32 %v1306_v23, 16  ;;  %v2615_v34 = vshrl.u32 %v2377_v50, 16  ;;  %v2899_v49 = vld [vmem:[#allocation2 + $0x1c] sm:$0xf] }
  0xe0   : > { %v1383_v55 = vor.u32 %v1382_v20, %v1379_v51  ;;  %3874 = vrot.lane.b32.xlu0 %v4796_v46, %s5411_s16  ;;  %v1581_v59 = vsel %vm5721_vm12, %v1576_v15, %v1580_v31  ;;  %v2618_v27 = vshll.u32 %v2377_v50, 16  ;;  %v2624_v63 = vshll.u32 %v2378_v32, 16  ;;  %v2900_v50 = vld [vmem:[#allocation2 + $0x20] sm:$0x1] }
  0xe1   : > { %v1591_v58 = vsel %vm5721_vm12, %v1586_v53, %v1590_v47  ;;  %v1393_v6 = vor.u32 %v1392_v4, %v1388_v54  ;;  %v1398_v30 = vrot.slane %v1396_v56, 5  ;;  %v2617_v45 = vrot.slane %v2615_v34, 4  ;;  %v562_v34 = vld [vmem:[#allocation2 + $0x84] sm:$0x1] }
  0xe2   : > { %v4677_v7 = vcombine.low %v1581_v59, %v1591_v58  ;;  %v1384_v8 = vrot.slane %v1383_v55, 4  ;;  %v2620_v57 = vrot.slane %v2618_v27, 5  ;;  %v2626_v10 = vrot.slane %v2624_v63, 5 }
  0xe3   : > { %v2628_v12 = vshrl.u32 %v2378_v32, 16  ;;  %v1394_v17 = vrot.slane %v1393_v6, 4  ;;  %v2634_v22 = vshll.u32 %v2379_v14, 16  ;;  %v2423_v24 = vshrl.u32 %v2353_v0, 16 }
  0xe4   : > { %1802 = vrot.lane.b32.xlu1 %v4677_v7, %s5405_s29  ;;  %v1389_v21 = vsel %vm5721_vm12, %v1384_v8, %v1388_v54  ;;  %v2621_v26 = vor.u32 %v2620_v57, %v2617_v45  ;;  %v2426_v29 = vshll.u32 %v2353_v0, 16  ;;  %v2432_v31 = vshll.u32 %v2354_v3, 16  ;;  %v538_v57 = vld [vmem:[#allocation2 + $0x24] sm:$0x1] }
  0xe5   : > { %v2630_v28 = vrot.slane %v2628_v12, 4  ;;  %v1399_v37 = vsel %vm5721_vm12, %v1394_v17, %v1398_v30  ;;  %v2636_v60 = vrot.slane %v2634_v22, 5  ;;  %v2425_v38 = vrot.slane %v2423_v24, 4 }
  0xe6   : > { %v2436_v40 = vshrl.u32 %v2354_v3, 16  ;;  %v4669_v43 = vcombine.low %v1389_v21, %v1399_v37  ;;  %v2622_v44 = vrot.slane %v2621_v26, 4  ;;  %v2428_v23 = vrot.slane %v2426_v29, 5 }
  0xe7   : > { %v2631_v47 = vor.u32 %v2630_v28, %v2626_v10  ;;  %v2434_v5 = vrot.slane %v2432_v31, 5  ;;  %v2442_v20 = vshll.u32 %v2355_v13, 16  ;;  %v4757_v52 = vrot.slane %v2922_v18, 9  ;;  %v1331_v31 = vld [vmem:[#allocation2 + $0x78] sm:$0xf] }
  0xe8   : > { %v2438_v51 = vrot.slane %v2436_v40, 4  ;;  %1786 = vrot.lane.b32.xlu0 %v4669_v43, %s5405_s29  ;;  %v2627_v32 = vsel %vm5721_vm12, %v2622_v44, %v2626_v10  ;;  %v2429_v15 = vor.u32 %v2428_v23, %v2425_v38  ;;  %v3056_v53 = vrot.slane %v2923_v25, 5  ;;  %v594_v25 = vld [vmem:[#allocation2 + $0x2c] sm:$0x1]  ;;  %v1332_v23 = vld [vmem:[#allocation2 + $0x7c] sm:$0xf] }
  0xe9   : > { %v2632_v46 = vrot.slane %v2631_v47, 4  ;;  %v2444_v55 = vrot.slane %v2442_v20, 5  ;;  %v3059_v4 = vrot.slane %v2924_v33, 5  ;;  %v4749_v56 = vrot.slane %v2898_v36, 9 }
  0xea   : > { %v2439_v54 = vor.u32 %v2438_v51, %v2434_v5  ;;  %v2430_v58 = vrot.slane %v2429_v15, 4  ;;  %v3057_v14 = vsel %vm5687_vm10, %v4757_v52, %v3056_v53  ;;  %v3058_v27 = vrot.slane %v3056_v53, 4  ;;  %v1333_v52 = vld [vmem:[#allocation2 + $0x80] sm:$0x1] }
  0xeb   : > { %v2637_v59 = vsel %vm5721_vm12, %v2632_v46, %v2636_v60  ;;  %v3000_v7 = vrot.slane %v2899_v49, 5  ;;  %v3003_v8 = vrot.slane %v2900_v50, 5  ;;  %v489_v3 = vmax.f32 %v5836_v39, 0.0  ;;  %v618_v39 = vld [vmem:[#allocation2 + $0x8c] sm:$0x1] }
  0xec   : > { %v4741_v63 = vcombine.low %v2627_v32, %v2637_v59  ;;  %v2440_v0 = vrot.slane %v2439_v54, 4  ;;  %v2435_v6 = vsel %vm5721_vm12, %v2430_v58, %v2434_v5  ;;  %v3060_v30 = vsel %vm5687_vm10, %v3058_v27, %v3059_v4 }
  0xed   : > { %v490_v45 = vmax.f32 %v5859_v61, 0.0  ;;  %v4773_v12 = vcombine.low %v3057_v14, %v3060_v30  ;;  %v3001_v13 = vsel %vm5687_vm10, %v4749_v56, %v3000_v7  ;;  %v3002_v18 = vrot.slane %v3000_v7, 4 }
  0xee   : > { %2848 = vrot.lane.b32.xlu1 %v4741_v63, %s5410_s11  ;;  %v2445_v10 = vsel %vm5721_vm12, %v2440_v0, %v2444_v55  ;;  %v563_v17 = vsel %vm5667_vm4, 0, %v562_v34  ;;  %v4876_v22 = vpack.c.bf16 %v489_v3, %v489_v3  ;;  %v473_v26 = vmax.f32 %v5891_v41, 0.0  ;;  %v1307_v34 = vld [vmem:[#allocation2 + $0x18] sm:$0xf]  ;;  %v1308_v3 = vld [vmem:[#allocation2 + $0x1c] sm:$0xf] }
  0xef   : > { %v4733_v21 = vcombine.low %v2435_v6, %v2445_v10  ;;  %v4877_v24 = vpack.c.bf16 %v490_v45, %v490_v45  ;;  %v3004_v61 = vsel %vm5687_vm10, %v3002_v18, %v3003_v8  ;;  %564 = vst [vmem:[#allocation2 + $0x84] sm:$0x1] %v563_v17  ;;  %v474_v28 = vmax.f32 %v5894_v42, 0.0 }
  0xf0   : > { %v539_v29 = vsel %vm5667_vm4, 0, %v538_v57  ;;  %v4765_v33 = vcombine.low %v3001_v13, %v3004_v61  ;;  %v892_v36 = vshrl.u32 %v4876_v22, 16  ;;  %v895_v37 = vshll.u32 %v4876_v22, 16  ;;  %v6023_v13 = vld [vmem:[#allocation2 + $0x20] sm:$0x1] }
  0xf1   : > { %2832 = vrot.lane.b32.xlu0 %v4733_v21, %s5410_s11  ;;  %v900_v60 = vshrl.u32 %v4877_v24, 16  ;;  %540 = vst [vmem:[#allocation2 + $0x24] sm:$0x1] %v539_v29  ;;  %v903_v38 = vshll.u32 %v4877_v24, 16  ;;  %v4860_v40 = vpack.c.bf16 %v473_v26, %v473_v26  ;;  %v4861_v43 = vpack.c.bf16 %v474_v28, %v474_v28 }
  0xf2   : > { %3169 = vrot.lane.b32.xlu1 %v4773_v12, %s5408_s30  ;;  %v619_v41 = vsel %vm5672_vm5, 0, %v618_v39  ;;  %v894_v42 = vrot.slane %v892_v36, 7  ;;  %v595_v47 = vsel %vm5672_vm5, 0, %v594_v25  ;;  %v1593_v49 = vshrl.u32 %v1331_v31, 16  ;;  %v1879_v39 = vld [vmem:[#allocation2 + $0x78] sm:$0xe] }
  0xf3   : > { %v902_v44 = vrot.slane %v900_v60, 7  ;;  %620 = vst [vmem:[#allocation2 + $0x8c] sm:$0x1] %v619_v41  ;;  %v756_v50 = vshrl.u32 %v4860_v40, 16  ;;  %v759_v5 = vshll.u32 %v4860_v40, 16  ;;  %v764_v51 = vshrl.u32 %v4861_v43, 16 }
  0xf4   : > { %v767_v20 = vshll.u32 %v4861_v43, 16  ;;  %596 = vst [vmem:[#allocation2 + $0x2c] sm:$0x1] %v595_v47  ;;  %v897_v32 = vor.u32 %v895_v37, %v894_v42  ;;  %v898_v46 = vrot.slane %v894_v42, 4  ;;  %v1595_v4 = vrot.slane %v1593_v49, 4  ;;  %v6047_v49 = vld [vmem:[%s5648_s9 + $0x18] sm:$0xff]  }
  0xf5   : > { %3153 = vrot.lane.b32.xlu0 %v4765_v33, %s5408_s30  ;;  %v905_v15 = vor.u32 %v903_v38, %v902_v44  ;;  %v907_v53 = vrot.slane %v902_v44, 4  ;;  %v758_v54 = vrot.slane %v756_v50, 7  ;;  %v766_v55 = vrot.slane %v764_v51, 7 }
  0xf6   : > { %v1596_v56 = vshll.u32 %v1331_v31, 16  ;;  %v1114_v58 = vld [vmem:[#allocation2 + $0x84] sm:$0xf]  ;;  %v1602_v14 = vshll.u32 %v1332_v23, 16  ;;  %v1606_v27 = vshrl.u32 %v1332_v23, 16  ;;  %v1612_v63 = vshll.u32 %v1333_v52, 16 }
  0xf7   : > { %v906_v59 = vsel %vm5739_vm14, %v898_v46, %v905_v15  ;;  %v1115_v0 = vsel %vm5729_vm13, %v897_v32, %v1114_v58  ;;  %v761_v7 = vor.u32 %v759_v5, %v758_v54  ;;  %v762_v8 = vrot.slane %v758_v54, 4  ;;  %v6032_v31 = vld [vmem:[#allocation2 + $0x7c] sm:$0xf] }
  0xf8   : > { %1117 = vst.msk [vmem:[#allocation2 + $0x88] sm:$0xf] %vm517_vm0, %v906_v59  ;;  %v769_v6 = vor.u32 %v767_v20, %v766_v55  ;;  %v1058_v30 = vld [vmem:[#allocation2 + $0x24] sm:$0xf]  ;;  %1116 = vst [vmem:[#allocation2 + $0x84] sm:$0xf] %v1115_v0 }
  0xf9   : > { %v771_v45 = vrot.slane %v766_v55, 4  ;;  %v1598_v57 = vrot.slane %v1596_v56, 5  ;;  %v1604_v10 = vrot.slane %v1602_v14, 5  ;;  %v1608_v12 = vrot.slane %v1606_v27, 4  ;;  %v6055_v32 = vld [vmem:[#allocation9] ss:$0 sm:$0xff] }
  0xfa   : > { %v770_v18 = vsel %vm5739_vm14, %v762_v8, %v769_v6  ;;  %v1059_v21 = vsel %vm5729_vm13, %v761_v7, %v1058_v30  ;;  %v1118_v17 = vld [vmem:[#allocation2 + $0x8c] sm:$0x1]  ;;  %v1614_v22 = vrot.slane %v1612_v63, 5  ;;  %v1401_v24 = vshrl.u32 %v1307_v34, 16  ;;  %v6071_v63 = vld [vmem:[#allocation10] ss:$0 sm:$0xff] }
  0xfb   : > { %1060 = vst [vmem:[#allocation2 + $0x24] sm:$0xf] %v1059_v21  ;;  %1061 = vst.msk [vmem:[#allocation2 + $0x28] sm:$0xf] %vm517_vm0, %v770_v18  ;;  %v1119_v25 = vsel %vm5667_vm4, %v907_v53, %v1118_v17  ;;  %v1062_v61 = vld [vmem:[#allocation2 + $0x2c] sm:$0x1]  ;;  %v1599_v26 = vor.u32 %v1598_v57, %v1595_v4  ;;  %v1609_v28 = vor.u32 %v1608_v12, %v1604_v10  ;;  %v4904_v8 = vunpack.c.l.bf16 %v6047_v49 }
  0xfc   : > { %v1404_v29 = vshll.u32 %v1307_v34, 16  ;;  %1120 = vst [vmem:[#allocation2 + $0x8c] sm:$0x1] %v1119_v25  ;;  %v1063_v33 = vsel %vm5667_vm4, %v771_v45, %v1062_v61  ;;  %v6036_v36 = vrot.slane %v1401_v24, 4  ;;  %v1410_v37 = vshll.u32 %v1308_v3, 16 }
  0xfd   : > { %v1414_v60 = vshrl.u32 %v1308_v3, 16  ;;  %1064 = vst [vmem:[#allocation2 + $0x2c] sm:$0x1] %v1063_v33  ;;  %v1600_v38 = vrot.slane %v1599_v26, 4  ;;  %v1610_v40 = vrot.slane %v1609_v28, 4  ;;  %v1420_v41 = vshll.u32 %v6023_v13, 16 }
  0xfe   : > { %v6038_v43 = vrot.slane %v1404_v29, 5  ;;  %v6041_v42 = vrot.slane %v1410_v37, 5  ;;  %v4694_v47 = vrot.slane %v1879_v39, 9  ;;  %v2020_v23 = vrot.slane %v6032_v31, 5 }
  0xff   : > { %v6043_v44 = vrot.slane %v1414_v60, 4  ;;  %v3422_v50 = vld [vmem:[#allocation2 + $0x88] sm:$0xf]  ;;  %v1605_v51 = vsel %vm5721_vm12, %v1600_v38, %v1604_v10  ;;  %v1615_v20 = vsel %vm5721_vm12, %v1610_v40, %v1614_v22  ;;  %v422_v46 = vmul.f32 %v6055_v32, %v4937_v35  ;;  %v3421_v53 = vld [vmem:[#allocation2 + $0x84] sm:$0xf] }
 0x100   : > { %v3967_v5 = vld [vmem:[#allocation2 + $0x88] sm:$0xf]  ;;  %v1407_v52 = vor.u32 %v6038_v43, %v6036_v36  ;;  %v3668_v54 = vshll.u32 %v3422_v50, 16  ;;  %v6060_v55 = vcombine.low %v1605_v51, %v1615_v20  ;;  %v6068_v56 = vsel %vm5687_vm10, %v4694_v47, %v2020_v23  ;;  %v3966_v9 = vld [vmem:[#allocation2 + $0x84] sm:$0xe] }
 0x101   : > { %v5099_v15 = vld [vmem:[#allocation2 + $0x84] sm:$0xff]   ;;  %v1417_v4 = vor.u32 %v6043_v44, %v6041_v42  ;;  %v3659_v34 = vshrl.u32 %v3421_v53, 16  ;;  %v3662_v59 = vshll.u32 %v3421_v53, 16  ;;  %v3672_v58 = vshrl.u32 %v3422_v50, 16 }
 0x102   : > { %v4100_v14 = vrot.slane %v3967_v5, 5  ;;  %3347 = vrot.lane.b32.xlu1 %v5099_v15, %s5407_s7  ;;  %v5100_v35 = vld [vmem:[#allocation2 + $0x24] sm:$0xff]   ;;  %v3670_v27 = vrot.slane %v3668_v54, 5  ;;  %v6075_v0 = vadd.f32 %v6071_v63, %v5903_v48  ;;  %v6078_v7 = vadd.f32 %v6071_v63, %v422_v46 }
 0x103   : > { %v3423_v6 = vld [vmem:[#allocation2 + $0x8c] sm:$0x1]  ;;  %v3661_v30 = vrot.slane %v3659_v34, 4  ;;  %v3664_v3 = vrot.slane %v3662_v59, 5  ;;  %v3674_v45 = vrot.slane %v3672_v58, 4  ;;  %v4821_v57 = vrot.slane %v3966_v9, 9  ;;  %3331 = vrot.lane.b32.xlu0 %v5100_v35, %s5407_s7 }
 0x104   : > { %v3678_v10 = vshll.u32 %v3423_v6, 16  ;;  %v3397_v12 = vld [vmem:[#allocation2 + $0x24] sm:$0xf]  ;;  %v3398_v18 = vld [vmem:[#allocation2 + $0x28] sm:$0xf]  ;;  %v4102_v21 = vrot.slane %v4100_v14, 4  ;;  %v4905_v17 = vunpack.c.h.bf16 %v6047_v49  ;;  %v6084_v48 = vmul.f32 %v6055_v32, %v4904_v8 }
 0x105   : > { %v3665_v22 = vor.u32 %v3664_v3, %v3661_v30  ;;  %v3675_v24 = vor.u32 %v3674_v45, %v3670_v27  ;;  %v3399_v39 = vld [vmem:[#allocation2 + $0x2c] sm:$0x1]  ;;  %v3467_v25 = vshrl.u32 %v3397_v12, 16  ;;  %v3470_v61 = vshll.u32 %v3397_v12, 16  ;;  %v3942_v60 = vld [vmem:[#allocation2 + $0x24] sm:$0xe] }
 0x106   : > { %v3968_v26 = vld [vmem:[#allocation2 + $0x8c] sm:$0x1]  ;;  %v3680_v28 = vrot.slane %v3678_v10, 5  ;;  %v3476_v29 = vshll.u32 %v3398_v18, 16  ;;  %v3480_v33 = vshrl.u32 %v3398_v18, 16  ;;  %v3486_v37 = vshll.u32 %v3399_v39, 16 }
 0x107   : > { %v3666_v38 = vrot.slane %v3665_v22, 4  ;;  %v3676_v40 = vrot.slane %v3675_v24, 4  ;;  %v3469_v47 = vrot.slane %v3467_v25, 4  ;;  %v3472_v50 = vrot.slane %v3470_v61, 5  ;;  %v3943_v5 = vld [vmem:[#allocation2 + $0x28] sm:$0xf] }
 0x108   : > { %v3478_v51 = vrot.slane %v3476_v29, 5  ;;  %v3482_v20 = vrot.slane %v3480_v33, 4  ;;  %v3488_v46 = vrot.slane %v3486_v37, 5  ;;  %v4101_v15 = vsel %vm5687_vm10, %v4821_v57, %v4100_v14  ;;  %v3944_v53 = vld [vmem:[#allocation2 + $0x2c] sm:$0x1] }
 0x109   : > { %v3671_v54 = vsel %vm5721_vm12, %v3666_v38, %v3670_v27  ;;  %v3681_v34 = vsel %vm5721_vm12, %v3676_v40, %v3680_v28  ;;  %v3473_v59 = vor.u32 %v3472_v50, %v3469_v47  ;;  %v4103_v58 = vrot.slane %v3968_v26, 5  ;;  %v1881_v57 = vld [vmem:[#allocation2 + $0x80] sm:$0x1]  ;;  %v1855_v22 = vld [vmem:[#allocation2 + $0x18] sm:$0xe] }
 0x10a   : > { %v4805_v9 = vcombine.low %v3671_v54, %v3681_v34  ;;  %v3483_v35 = vor.u32 %v3482_v20, %v3478_v51  ;;  %v4813_v8 = vrot.slane %v3942_v60, 9  ;;  %v4044_v6 = vrot.slane %v3943_v5, 5  ;;  %v1857_v39 = vld [vmem:[#allocation2 + $0x20] sm:$0x1]  ;;  %v2380_v29 = vld [vmem:[#allocation2 + $0x84] sm:$0xf] }
 0x10b   : > { %v3474_v30 = vrot.slane %v3473_v59, 4  ;;  %v4104_v3 = vsel %vm5687_vm10, %v4102_v21, %v4103_v58  ;;  %v4047_v45 = vrot.slane %v3944_v53, 5  ;;  %v1408_v14 = vrot.slane %v1407_v52, 4  ;;  %v1856_v52 = vld [vmem:[#allocation2 + $0x1c] sm:$0xf] }
 0x10c   : > { %3892 = vrot.lane.b32.xlu1 %v4805_v9, %s5411_s16  ;;  %v3484_v27 = vrot.slane %v3483_v35, 4  ;;  %v4837_v10 = vcombine.low %v4101_v15, %v4104_v3  ;;  %v4045_v12 = vsel %vm5687_vm10, %v4813_v8, %v4044_v6  ;;  %v4046_v18 = vrot.slane %v4044_v6, 4  ;;  %v2381_v33 = vld [vmem:[#allocation2 + $0x88] sm:$0xf]  ;;  %v2382_v44 = vld [vmem:[#allocation2 + $0x8c] sm:$0x1] }
 0x10d   : > { %v3479_v24 = vsel %vm5721_vm12, %v3474_v30, %v3478_v51  ;;  %v1413_v21 = vsel %vm5721_vm12, %v1408_v14, %v6041_v42  ;;  %v1418_v36 = vrot.slane %v1417_v4, 4  ;;  %v1422_v43 = vrot.slane %v1420_v41, 5  ;;  %v2356_v31 = vld [vmem:[#allocation2 + $0x24] sm:$0xf]  ;;  %v2357_v51 = vld [vmem:[#allocation2 + $0x28] sm:$0xf] }
 0x10e   : > { %v3489_v25 = vsel %vm5721_vm12, %v3484_v27, %v3488_v46  ;;  %v4048_v61 = vsel %vm5687_vm10, %v4046_v18, %v4047_v45  ;;  %v2022_v26 = vrot.slane %v2020_v23, 4  ;;  %v2023_v28 = vrot.slane %v1881_v57, 5  ;;  %v2358_v54 = vld [vmem:[#allocation2 + $0x2c] sm:$0x1]  ;;  %v2925_v35 = vld [vmem:[#allocation2 + $0x84] sm:$0xe] }
 0x10f   : > { %v4797_v37 = vcombine.low %v3479_v24, %v3489_v25  ;;  %v4829_v42 = vcombine.low %v4045_v12, %v4048_v61  ;;  %v1423_v13 = vsel %vm5721_vm12, %v1418_v36, %v1422_v43  ;;  %v4686_v41 = vrot.slane %v1855_v22, 9  ;;  %v2926_v3 = vld [vmem:[#allocation2 + $0x88] sm:$0xf] }
 0x110   : > { %4213 = vrot.lane.b32.xlu1 %v4837_v10, %s5409_s8  ;;  %v4670_v4 = vcombine.low %v1413_v21, %v1423_v13  ;;  %v2024_v60 = vsel %vm5687_vm10, %v2022_v26, %v2023_v28  ;;  %v1964_v38 = vrot.slane %v1856_v52, 5  ;;  %v1967_v40 = vrot.slane %v1857_v39, 5  ;;  %v2927_v10 = vld [vmem:[#allocation2 + $0x8c] sm:$0x1]  ;;  %v2901_v21 = vld [vmem:[#allocation2 + $0x24] sm:$0xe] }
 0x111   : > { %3876 = vrot.lane.b32.xlu0 %v4797_v37, %s5411_s16  ;;  %v4710_v23 = vcombine.low %v6068_v56, %v2024_v60  ;;  %v2639_v47 = vshrl.u32 %v2380_v29, 16  ;;  %v2642_v50 = vshll.u32 %v2380_v29, 16  ;;  %v2648_v5 = vshll.u32 %v2381_v33, 16  ;;  %v2902_v39 = vld [vmem:[#allocation2 + $0x28] sm:$0xf] }
 0x112   : > { %v1965_v20 = vsel %vm5687_vm10, %v4686_v41, %v1964_v38  ;;  %v1966_v46 = vrot.slane %v1964_v38, 4  ;;  %v2652_v15 = vshrl.u32 %v2381_v33, 16  ;;  %v2658_v53 = vshll.u32 %v2382_v44, 16  ;;  %v5101_v25 = vld [vmem:[#allocation2 + $0x84] sm:$0xff]   ;;  %v2903_v33 = vld [vmem:[#allocation2 + $0x2c] sm:$0x1] }
 0x113   : > { %v2641_v34 = vrot.slane %v2639_v47, 4  ;;  %v2644_v59 = vrot.slane %v2642_v50, 5  ;;  %v2650_v58 = vrot.slane %v2648_v5, 5  ;;  %v2447_v9 = vshrl.u32 %v2356_v31, 16 }
 0x114   : > { %1804 = vrot.lane.b32.xlu1 %v6060_v55, %s5405_s29  ;;  %v1968_v56 = vsel %vm5687_vm10, %v1966_v46, %v1967_v40  ;;  %v2654_v8 = vrot.slane %v2652_v15, 4  ;;  %v2660_v6 = vrot.slane %v2658_v53, 5  ;;  %v2450_v30 = vshll.u32 %v2356_v31, 16  ;;  %v565_v31 = vld [vmem:[#allocation2 + $0x90] sm:$0x1] }
 0x115   : > { %4197 = vrot.lane.b32.xlu0 %v4829_v42, %s5409_s8  ;;  %v4702_v45 = vcombine.low %v1965_v20, %v1968_v56  ;;  %v2645_v14 = vor.u32 %v2644_v59, %v2641_v34  ;;  %v2449_v57 = vrot.slane %v2447_v9, 4  ;;  %v2456_v27 = vshll.u32 %v2357_v51, 16  ;;  %v541_v15 = vld [vmem:[#allocation2 + $0x30] sm:$0x1]  ;;  %v621_v53 = vld [vmem:[#allocation2 + $0x98] sm:$0x1] }
 0x116   : > { %v2655_v12 = vor.u32 %v2654_v8, %v2650_v58  ;;  %v2452_v18 = vrot.slane %v2450_v30, 5  ;;  %v2460_v22 = vshrl.u32 %v2357_v51, 16  ;;  %v2466_v24 = vshll.u32 %v2358_v54, 16  ;;  %v5102_v54 = vld [vmem:[#allocation2 + $0x24] sm:$0xff]  }
 0x117   : > { %v2646_v55 = vrot.slane %v2645_v14, 4  ;;  %v2458_v36 = vrot.slane %v2456_v27, 5  ;;  %v4758_v43 = vrot.slane %v2925_v35, 9  ;;  %v3063_v52 = vrot.slane %v2926_v3, 5  ;;  %v1334_v14 = vld [vmem:[#allocation2 + $0x84] sm:$0xf] }
 0x118   : > { %2128 = vrot.lane.b32.xlu1 %v4710_v23, %s5404_s27  ;;  %v2656_v61 = vrot.slane %v2655_v12, 4  ;;  %v2453_v26 = vor.u32 %v2452_v18, %v2449_v57  ;;  %v2462_v28 = vrot.slane %v2460_v22, 4  ;;  %v2468_v29 = vrot.slane %v2466_v24, 5 }
 0x119   : > { %1788 = vrot.lane.b32.xlu0 %v4670_v4, %s5405_s29  ;;  %v2651_v37 = vsel %vm5721_vm12, %v2646_v55, %v2650_v58  ;;  %v3064_v42 = vsel %vm5687_vm10, %v4758_v43, %v3063_v52  ;;  %v3065_v13 = vrot.slane %v3063_v52, 4  ;;  %v3066_v41 = vrot.slane %v2927_v10, 5 }
 0x11a   : > { %v2661_v44 = vsel %vm5721_vm12, %v2656_v61, %v2660_v6  ;;  %v2454_v60 = vrot.slane %v2453_v26, 4  ;;  %v2463_v38 = vor.u32 %v2462_v28, %v2458_v36  ;;  %v4750_v40 = vrot.slane %v2901_v21, 9  ;;  %v597_v6 = vld [vmem:[#allocation2 + $0x38] sm:$0x1]  ;;  %v6171_v61 = vpop.permute.xlu1 %2108 }
 0x11b   : > { %v4742_v23 = vcombine.low %v2651_v37, %v2661_v44  ;;  %v3067_v47 = vsel %vm5687_vm10, %v3065_v13, %v3066_v41  ;;  %v3007_v4 = vrot.slane %v2902_v39, 5  ;;  %v3010_v50 = vrot.slane %v2903_v33, 5  ;;  %v1336_v33 = vld [vmem:[#allocation2 + $0x8c] sm:$0x1]  ;;  %v6174_v13 = vpop.permute.xlu0 %1784 }
 0x11c   : > { %2305 = vrot.lane.b32.xlu1 %v5101_v25, %s5406_s20  ;;  %v2459_v5 = vsel %vm5721_vm12, %v2454_v60, %v2458_v36  ;;  %v2464_v51 = vrot.slane %v2463_v38, 4  ;;  %v4774_v20 = vcombine.low %v3064_v42, %v3067_v47  ;;  %v491_v46 = vmax.f32 %v6075_v0, 0.0  ;;  %v1310_v42 = vld [vmem:[#allocation2 + $0x24] sm:$0xf] }
 0x11d   : > { %2112 = vrot.lane.b32.xlu0 %v4702_v45, %s5404_s27  ;;  %v6147_v34 = vsel %vm5687_vm10, %v4750_v40, %v3007_v4  ;;  %v3009_v59 = vrot.slane %v3007_v4, 4  ;;  %v492_v58 = vmax.f32 %v6078_v7, 0.0  ;;  %v566_v9 = vsel %vm5667_vm4, 0, %v565_v31 }
 0x11e   : > { %v2469_v35 = vsel %vm5721_vm12, %v2464_v51, %v2468_v29  ;;  %567 = vst [vmem:[#allocation2 + $0x90] sm:$0x1] %v566_v9  ;;  %v4878_v0 = vpack.c.bf16 %v491_v46, %v491_v46  ;;  %v406_v56 = vmul.f32 %v6055_v32, %v4905_v17  ;;  %v443_v8 = vadd.f32 %v6071_v63, %v6084_v48  ;;  %v1335_v48 = vld [vmem:[#allocation2 + $0x88] sm:$0xf] }
 0x11f   : > { %v4734_v30 = vcombine.low %v2459_v5, %v2469_v35  ;;  %v3011_v7 = vsel %vm5687_vm10, %v3009_v59, %v3010_v50  ;;  %v4879_v3 = vpack.c.bf16 %v492_v58, %v492_v58  ;;  %v542_v45 = vsel %vm5667_vm4, 0, %v541_v15 }
 0x120   : > { %2850 = vrot.lane.b32.xlu1 %v4742_v23, %s5410_s11  ;;  %v4766_v57 = vcombine.low %v6147_v34, %v3011_v7  ;;  %v909_v49 = vshrl.u32 %v4878_v0, 16  ;;  %v912_v27 = vshll.u32 %v4878_v0, 16  ;;  %v444_v17 = vadd.f32 %v6071_v63, %v406_v56  ;;  %543 = vst [vmem:[#allocation2 + $0x30] sm:$0x1] %v542_v45  ;;  %v6184_v34 = vld [vmem:[#allocation2 + $0x28] sm:$0xf] }
 0x121   : > { %2289 = vrot.lane.b32.xlu0 %v5102_v54, %s5406_s20  ;;  %v917_v10 = vshrl.u32 %v4879_v3, 16  ;;  %v920_v12 = vshll.u32 %v4879_v3, 16  ;;  %v475_v18 = vmax.f32 %v443_v8, 0.0  ;;  %v622_v22 = vsel %vm5672_vm5, 0, %v621_v53  ;;  %v6187_v8 = vpop.permute.xlu1 %2301 }
 0x122   : > { %v911_v24 = vrot.slane %v909_v49, 7  ;;  %v476_v21 = vmax.f32 %v444_v17, 0.0  ;;  %623 = vst [vmem:[#allocation2 + $0x98] sm:$0x1] %v622_v22  ;;  %v598_v55 = vsel %vm5672_vm5, 0, %v597_v6  ;;  %v1617_v36 = vshrl.u32 %v1334_v14, 16  ;;  %v6193_v49 = vpop.permute.xlu0 %2285 }
 0x123   : > { %v919_v43 = vrot.slane %v917_v10, 7  ;;  %v4862_v52 = vpack.c.bf16 %v475_v18, %v475_v18  ;;  %599 = vst [vmem:[#allocation2 + $0x38] sm:$0x1] %v598_v55  ;;  %v1620_v39 = vshll.u32 %v1334_v14, 16  ;;  %v1626_v25 = vshll.u32 %v1335_v48, 16  ;;  %v6199_v10 = vld [vmem:[%s5648_s9 + $0x60] sm:$0xff]  }
 0x124   : > { %3171 = vrot.lane.b32.xlu1 %v4774_v20, %s5408_s30  ;;  %v914_v26 = vor.u32 %v912_v27, %v911_v24  ;;  %v915_v28 = vrot.slane %v911_v24, 4  ;;  %v4863_v29 = vpack.c.bf16 %v476_v21, %v476_v21  ;;  %v1619_v37 = vrot.slane %v1617_v36, 4  ;;  %v6191_v14 = vld [vmem:[#allocation2 + $0x2c] sm:$0x1]  ;;  %v6206_v24 = vld [vmem:[%s5648_s9 + $0x20] sm:$0xff]  }
 0x125   : > { %2834 = vrot.lane.b32.xlu0 %v4734_v30, %s5410_s11  ;;  %v922_v41 = vor.u32 %v920_v12, %v919_v43  ;;  %v924_v44 = vrot.slane %v919_v43, 4  ;;  %v1121_v60 = vld [vmem:[#allocation2 + $0x90] sm:$0xf]  ;;  %v773_v38 = vshrl.u32 %v4862_v52, 16  ;;  %v776_v40 = vshll.u32 %v4862_v52, 16 }
 0x126   : > { %v1122_v31 = vsel %vm5729_vm13, %v914_v26, %v1121_v60  ;;  %v781_v23 = vshrl.u32 %v4863_v29, 16  ;;  %v784_v47 = vshll.u32 %v4863_v29, 16  ;;  %v1622_v4 = vrot.slane %v1620_v39, 5 }
 0x127   : > { %v923_v50 = vsel %vm5739_vm14, %v915_v28, %v922_v41  ;;  %1123 = vst [vmem:[#allocation2 + $0x90] sm:$0xf] %v1122_v31  ;;  %v775_v5 = vrot.slane %v773_v38, 7  ;;  %v6181_v51 = vrot.slane %v1626_v25, 5  ;;  %v1630_v20 = vshrl.u32 %v1335_v48, 16  ;;  %v6221_v38 = vpop.permute.xlu1 %3345 }
 0x128   : > { %1124 = vst.msk [vmem:[#allocation2 + $0x94] sm:$0xf] %vm517_vm0, %v923_v50  ;;  %v783_v46 = vrot.slane %v781_v23, 7  ;;  %v1065_v15 = vld [vmem:[#allocation2 + $0x30] sm:$0xf]  ;;  %v1623_v53 = vor.u32 %v1622_v4, %v1619_v37  ;;  %v1636_v54 = vshll.u32 %v1336_v33, 16  ;;  %v4940_v28 = vunpack.c.l.bf16 %v6199_v10 }
 0x129   : > { %v1425_v59 = vshrl.u32 %v1310_v42, 16  ;;  %3155 = vrot.lane.b32.xlu0 %v4766_v57, %s5408_s30  ;;  %v778_v58 = vor.u32 %v776_v40, %v775_v5  ;;  %v779_v9 = vrot.slane %v775_v5, 4  ;;  %v1125_v35 = vld [vmem:[#allocation2 + $0x98] sm:$0x1]  ;;  %v1632_v0 = vrot.slane %v1630_v20, 4 }
 0x12a   : > { %v1428_v56 = vshll.u32 %v1310_v42, 16  ;;  %v786_v6 = vor.u32 %v784_v47, %v783_v46  ;;  %v788_v30 = vrot.slane %v783_v46, 4  ;;  %v1126_v7 = vsel %vm5667_vm4, %v924_v44, %v1125_v35  ;;  %v1069_v3 = vld [vmem:[#allocation2 + $0x38] sm:$0x1] }
 0x12b   : > { %v1624_v45 = vrot.slane %v1623_v53, 4  ;;  %v1066_v57 = vsel %vm5729_vm13, %v778_v58, %v1065_v15  ;;  %1127 = vst [vmem:[#allocation2 + $0x98] sm:$0x1] %v1126_v7  ;;  %v1633_v27 = vor.u32 %v1632_v0, %v6181_v51  ;;  %v1638_v17 = vrot.slane %v1636_v54, 5 }
 0x12c   : > { %v1427_v48 = vrot.slane %v1425_v59, 4  ;;  %v787_v12 = vsel %vm5739_vm14, %v779_v9, %v786_v6  ;;  %1067 = vst [vmem:[#allocation2 + $0x30] sm:$0xf] %v1066_v57  ;;  %v1070_v18 = vsel %vm5667_vm4, %v788_v30, %v1069_v3  ;;  %v1430_v22 = vrot.slane %v1428_v56, 5 }
 0x12d   : > { %1068 = vst.msk [vmem:[#allocation2 + $0x34] sm:$0xf] %vm517_vm0, %v787_v12  ;;  %1071 = vst [vmem:[#allocation2 + $0x38] sm:$0x1] %v1070_v18  ;;  %v1634_v21 = vrot.slane %v1633_v27, 4  ;;  %v1434_v55 = vshll.u32 %v6184_v34, 16  ;;  %v1629_v25 = vsel %vm5721_vm12, %v1624_v45, %v6181_v51  ;;  %v4941_v29 = vunpack.c.h.bf16 %v6199_v10 }
 0x12e   : > { %v1438_v36 = vshrl.u32 %v6184_v34, 16  ;;  %v1444_v43 = vshll.u32 %v6191_v14, 16  ;;  %v3424_v52 = vld [vmem:[#allocation2 + $0x90] sm:$0xf]  ;;  %v1431_v26 = vor.u32 %v1430_v22, %v1427_v48  ;;  %v4908_v44 = vunpack.c.l.bf16 %v6206_v24  ;;  %v6223_v50 = vpop.permute.xlu0 %3329  ;;  %v1859_v34 = vld [vmem:[#allocation2 + $0x28] sm:$0xf] }
 0x12f   : > { %v3969_v39 = vld [vmem:[#allocation2 + $0x90] sm:$0xe]  ;;  %v3425_v37 = vld [vmem:[#allocation2 + $0x94] sm:$0xf]  ;;  %v3683_v42 = vshrl.u32 %v3424_v52, 16  ;;  %v1639_v41 = vsel %vm5721_vm12, %v1634_v21, %v1638_v17  ;;  %v3686_v40 = vshll.u32 %v3424_v52, 16  ;;  %v6237_v6 = vmul.f32 %v6055_v32, %v4940_v28 }
 0x130   : > { %v5103_v33 = vld [vmem:[#allocation2 + $0x90] sm:$0xff]   ;;  %v3692_v31 = vshll.u32 %v3425_v37, 16  ;;  %v3696_v23 = vshrl.u32 %v3425_v37, 16  ;;  %v4822_v4 = vrot.slane %v3969_v39, 9  ;;  %v6226_v20 = vcombine.low %v1629_v25, %v1639_v41 }
 0x131   : > { %v3970_v47 = vld [vmem:[#allocation2 + $0x94] sm:$0xf]  ;;  %3349 = vrot.lane.b32.xlu1 %v5103_v33, %s5407_s7  ;;  %v3685_v5 = vrot.slane %v3683_v42, 4  ;;  %v6228_v46 = vrot.slane %v1431_v26, 4  ;;  %v3688_v53 = vrot.slane %v3686_v40, 5  ;;  %v6230_v58 = vrot.slane %v1434_v55, 5  ;;  %v6245_v55 = vpop.permute.xlu1 %2303 }
 0x132   : > { %v4107_v51 = vrot.slane %v3970_v47, 5  ;;  %v3426_v15 = vld [vmem:[#allocation2 + $0x98] sm:$0x1]  ;;  %v3694_v54 = vrot.slane %v3692_v31, 5  ;;  %v3698_v59 = vrot.slane %v3696_v23, 4  ;;  %v6243_v17 = vpop.permute.xlu0 %2287  ;;  %v7325_v10 = vunpack.c.h.bf16 %v6206_v24 }
 0x133   : > { %v3702_v9 = vshll.u32 %v3426_v15, 16  ;;  %v3400_v35 = vld [vmem:[#allocation2 + $0x30] sm:$0xf]  ;;  %v3689_v7 = vor.u32 %v3688_v53, %v3685_v5  ;;  %v1437_v27 = vsel %vm5721_vm12, %v6228_v46, %v6230_v58  ;;  %v3971_v28 = vld [vmem:[#allocation2 + $0x98] sm:$0x1]  ;;  %vm2333_vm3 = vcmask 261312  }
 0x134   : > { %v6234_v0 = vsel %vm5687_vm10, %v4822_v4, %v4107_v51  ;;  %v4109_v56 = vrot.slane %v4107_v51, 4  ;;  %v5104_v30 = vld [vmem:[#allocation2 + $0x30] sm:$0xff]   ;;  %v3699_v3 = vor.u32 %v3698_v59, %v3694_v54  ;;  %v3491_v57 = vshrl.u32 %v3400_v35, 16  ;;  %v3402_v12 = vld [vmem:[#allocation2 + $0x38] sm:$0x1] }
 0x135   : > { %v3401_v45 = vld [vmem:[#allocation2 + $0x34] sm:$0xf]  ;;  %v3704_v48 = vrot.slane %v3702_v9, 5  ;;  %v3494_v18 = vshll.u32 %v3400_v35, 16  ;;  %3333 = vrot.lane.b32.xlu0 %v5104_v30, %s5407_s7  ;;  %v3690_v52 = vrot.slane %v3689_v7, 4  ;;  %v3510_v26 = vshll.u32 %v3402_v12, 16 }
 0x136   : > { %v3500_v22 = vshll.u32 %v3401_v45, 16  ;;  %v3504_v21 = vshrl.u32 %v3401_v45, 16  ;;  %v3700_v39 = vrot.slane %v3699_v3, 4  ;;  %v3493_v25 = vrot.slane %v3491_v57, 4  ;;  %v1882_v33 = vld [vmem:[#allocation2 + $0x84] sm:$0xe]  ;;  %v6252_v9 = vpop.permute.xlu0 %3151 }
 0x137   : > { %v3496_v37 = vrot.slane %v3494_v18, 5  ;;  %v4110_v40 = vrot.slane %v3971_v28, 5  ;;  %v3945_v31 = vld [vmem:[#allocation2 + $0x30] sm:$0xe]  ;;  %v1883_v23 = vld [vmem:[#allocation2 + $0x88] sm:$0xf]  ;;  %v3695_v47 = vsel %vm5721_vm12, %v3690_v52, %v3694_v54 }
 0x138   : > { %v3502_v42 = vrot.slane %v3500_v22, 5  ;;  %v3506_v41 = vrot.slane %v3504_v21, 4  ;;  %v3705_v4 = vsel %vm5721_vm12, %v3700_v39, %v3704_v48  ;;  %v3512_v5 = vrot.slane %v3510_v26, 5  ;;  %v3946_v51 = vld [vmem:[#allocation2 + $0x34] sm:$0xf] }
 0x139   : > { %v3947_v15 = vld [vmem:[#allocation2 + $0x38] sm:$0x1]  ;;  %v4814_v53 = vrot.slane %v3945_v31, 9  ;;  %v1884_v59 = vld [vmem:[#allocation2 + $0x8c] sm:$0x1]  ;;  %v4806_v35 = vcombine.low %v3695_v47, %v3705_v4  ;;  %v3497_v30 = vor.u32 %v3496_v37, %v3493_v25  ;;  %v4111_v3 = vsel %vm5687_vm10, %v4109_v56, %v4110_v40 }
 0x13a   : > { %v3507_v7 = vor.u32 %v3506_v41, %v3502_v42  ;;  %v4838_v45 = vcombine.low %v6234_v0, %v4111_v3  ;;  %v4051_v57 = vrot.slane %v3946_v51, 5  ;;  %v4054_v54 = vrot.slane %v3947_v15, 5  ;;  %v1858_v12 = vld [vmem:[#allocation2 + $0x24] sm:$0xe]  ;;  %v6262_v39 = vpop.permute.xlu1 %2124  ;;  %v2384_v41 = vld [vmem:[#allocation2 + $0x94] sm:$0xf]  ;;  %v6271_v40 = vpop.permute.xlu0 %4195 }
 0x13b   : > { %v1440_v48 = vrot.slane %v1438_v36, 4  ;;  %3894 = vrot.lane.b32.xlu1 %v4806_v35, %s5411_s16  ;;  %v3498_v18 = vrot.slane %v3497_v30, 4  ;;  %v1446_v21 = vrot.slane %v1444_v43, 5  ;;  %v4695_v52 = vrot.slane %v1882_v33, 9  ;;  %v1860_v36 = vld [vmem:[#allocation2 + $0x2c] sm:$0x1] }
 0x13c   : > { %v3508_v22 = vrot.slane %v3507_v7, 4  ;;  %v4052_v56 = vsel %vm5687_vm10, %v4814_v53, %v4051_v57  ;;  %v4053_v0 = vrot.slane %v4051_v57, 4  ;;  %v2027_v26 = vrot.slane %v1883_v23, 5  ;;  %v2383_v33 = vld [vmem:[#allocation2 + $0x90] sm:$0xf] }
 0x13d   : > { %v1441_v25 = vor.u32 %v1440_v48, %v6230_v58  ;;  %v3503_v28 = vsel %vm5721_vm12, %v3498_v18, %v3502_v42  ;;  %v2030_v14 = vrot.slane %v1884_v59, 5  ;;  %v4687_v43 = vrot.slane %v1858_v12, 9  ;;  %v2385_v53 = vld [vmem:[#allocation2 + $0x98] sm:$0x1]  ;;  %v2359_v57 = vld [vmem:[#allocation2 + $0x30] sm:$0xf] }
 0x13e   : > { %v3513_v37 = vsel %vm5721_vm12, %v3508_v22, %v3512_v5  ;;  %v4055_v47 = vsel %vm5687_vm10, %v4053_v0, %v4054_v54  ;;  %v2028_v23 = vsel %vm5687_vm10, %v4695_v52, %v2027_v26  ;;  %v2029_v51 = vrot.slane %v2027_v26, 4  ;;  %v6278_v59 = vpop.permute.xlu1 %3167  ;;  %v2360_v18 = vld [vmem:[#allocation2 + $0x34] sm:$0xf]  ;;  %v2361_v0 = vld [vmem:[#allocation2 + $0x38] sm:$0x1] }
 0x13f   : > { %v4798_v31 = vcombine.low %v3503_v28, %v3513_v37  ;;  %v1442_v4 = vrot.slane %v1441_v25, 4  ;;  %4215 = vrot.lane.b32.xlu1 %v4838_v45, %s5409_s8  ;;  %v4830_v42 = vcombine.low %v4052_v56, %v4055_v47  ;;  %v1971_v15 = vrot.slane %v1859_v34, 5  ;;  %v2928_v26 = vld [vmem:[#allocation2 + $0x90] sm:$0xe]  ;;  %v1338_v24 = vld [vmem:[#allocation2 + $0x94] sm:$0xf] }
 0x140   : > { %v1974_v5 = vrot.slane %v1860_v36, 5  ;;  %v2663_v30 = vshrl.u32 %v2383_v33, 16  ;;  %v2666_v7 = vshll.u32 %v2383_v33, 16  ;;  %v2672_v3 = vshll.u32 %v2384_v41, 16  ;;  %v6302_v36 = vpop.permute.xlu0 %2110  ;;  %v2929_v33 = vld [vmem:[#allocation2 + $0x94] sm:$0xf] }
 0x141   : > { %3878 = vrot.lane.b32.xlu0 %v4798_v31, %s5411_s16  ;;  %v1447_v35 = vsel %vm5721_vm12, %v1442_v4, %v1446_v21  ;;  %v2031_v54 = vsel %vm5687_vm10, %v2029_v51, %v2030_v14  ;;  %v6292_v48 = vsel %vm5687_vm10, %v4687_v43, %v1971_v15  ;;  %v1973_v12 = vrot.slane %v1971_v15, 4 }
 0x142   : > { %v4671_v45 = vcombine.low %v1437_v27, %v1447_v35  ;;  %v4711_v22 = vcombine.low %v2028_v23, %v2031_v54  ;;  %v2665_v21 = vrot.slane %v2663_v30, 4  ;;  %v2668_v52 = vrot.slane %v2666_v7, 5  ;;  %v6300_v34 = vpop.permute.xlu1 %4211  ;;  %v2904_v23 = vld [vmem:[#allocation2 + $0x30] sm:$0xe]  ;;  %v2905_v35 = vld [vmem:[#allocation2 + $0x34] sm:$0xf] }
 0x143   : > { %v6294_v56 = vrot.slane %v2672_v3, 5  ;;  %1806 = vrot.lane.b32.xlu1 %v6226_v20, %s5405_s29  ;;  %v1975_v46 = vsel %vm5687_vm10, %v1973_v12, %v1974_v5  ;;  %v2676_v58 = vshrl.u32 %v2384_v41, 16  ;;  %v2682_v27 = vshll.u32 %v2385_v53, 16  ;;  %v2930_v20 = vld [vmem:[#allocation2 + $0x98] sm:$0x1]  ;;  %v5107_v30 = vld [vmem:[#allocation2] sm:$0xff]  }
 0x144   : > { %v2471_v25 = vshrl.u32 %v2359_v57, 16  ;;  %v4703_v28 = vcombine.low %v6292_v48, %v1975_v46  ;;  %v2669_v37 = vor.u32 %v2668_v52, %v2665_v21  ;;  %v2474_v14 = vshll.u32 %v2359_v57, 16  ;;  %v5112_v7 = vld [vmem:[#allocation2 + $0x60] sm:$0xff]   ;;  %v5105_v3 = vld [vmem:[#allocation2 + $0x90] sm:$0xff]   ;;  %v2906_v21 = vld [vmem:[#allocation2 + $0x38] sm:$0x1] }
 0x145   : > { %4199 = vrot.lane.b32.xlu0 %v4830_v42, %s5409_s8  ;;  %v2480_v43 = vshll.u32 %v2360_v18, 16  ;;  %v2678_v31 = vrot.slane %v2676_v58, 4  ;;  %v2684_v47 = vrot.slane %v2682_v27, 5  ;;  %v2484_v41 = vshrl.u32 %v2360_v18, 16  ;;  %v5115_v42 = vld [vmem:[#allocation2 + $0x6c] sm:$0xff]   ;;  %1285 = vst.msk [vmem:[#allocation3] sm:$0xff] %vm7297_vm15, %v5107_v30 }
 0x146   : > { %v2473_v4 = vrot.slane %v2471_v25, 4  ;;  %v2670_v51 = vrot.slane %v2669_v37, 4  ;;  %v2476_v15 = vrot.slane %v2474_v14, 5  ;;  %v2490_v53 = vshll.u32 %v2361_v0, 16  ;;  %v6308_v52 = vpop.permute.xlu1 %2126  ;;  %v5116_v27 = vld [vmem:[#allocation2 + $0xc] sm:$0xff]   ;;  %v5120_v25 = vld [vmem:[#allocation2 + $0x18] sm:$0xff]  }
 0x147   : > { %v2482_v5 = vrot.slane %v2480_v43, 5  ;;  %2130 = vrot.lane.b32.xlu1 %v4711_v22, %s5404_s27  ;;  %v2679_v57 = vor.u32 %v2678_v31, %v6294_v56  ;;  %v2486_v54 = vrot.slane %v2484_v41, 4  ;;  %v4759_v48 = vrot.slane %v2928_v26, 9  ;;  %v5119_v22 = vld [vmem:[#allocation2 + $0x78] sm:$0xff]   ;;  %1293 = vst.msk [vmem:[#allocation3 + $0x40] sm:$0xff] %vm7297_vm15, %v5112_v7  ;;  %1294 = vst.msk [vmem:[#allocation3 + $0x48] sm:$0xff] %vm7297_vm15, %v5115_v42 }
 0x148   : > { %v3070_v12 = vrot.slane %v2929_v33, 5  ;;  %v2675_v18 = vsel %vm5721_vm12, %v2670_v51, %v6294_v56  ;;  %v2477_v0 = vor.u32 %v2476_v15, %v2473_v4  ;;  %v2492_v46 = vrot.slane %v2490_v53, 5  ;;  %v1801_v33 = vpop.permute.xlu0 %1800  ;;  %v568_v51 = vld [vmem:[#allocation2 + $0x9c] sm:$0x1]  ;;  %1286 = vst.msk [vmem:[#allocation3 + $0x8] sm:$0xff] %vm7297_vm15, %v5116_v27  ;;  %1295 = vst.msk [vmem:[#allocation3 + $0x50] sm:$0xff] %vm7297_vm15, %v5119_v22 }
 0x149   : > { %1790 = vrot.lane.b32.xlu0 %v4671_v45, %s5405_s29  ;;  %v3073_v58 = vrot.slane %v2930_v20, 5  ;;  %v2680_v37 = vrot.slane %v2679_v57, 4  ;;  %v2487_v14 = vor.u32 %v2486_v54, %v2482_v5  ;;  %v4751_v45 = vrot.slane %v2904_v23, 9  ;;  %v544_v15 = vld [vmem:[#allocation2 + $0x3c] sm:$0x1]  ;;  %v5106_v57 = vld [vmem:[#allocation2 + $0x30] sm:$0xff]  }
 0x14a   : > { %v6316_v26 = vsel %vm5687_vm10, %v4759_v48, %v3070_v12  ;;  %v3072_v43 = vrot.slane %v3070_v12, 4  ;;  %v2478_v31 = vrot.slane %v2477_v0, 4  ;;  %v3014_v41 = vrot.slane %v2905_v35, 5  ;;  %v6323_v53 = vpop.permute.xlu1 %2846  ;;  %v624_v54 = vld [vmem:[#allocation2 + $0xa4] sm:$0x1]  ;;  %1287 = vst.msk [vmem:[#allocation3 + $0x10] sm:$0xff] %vm7297_vm15, %v5120_v25 }
 0x14b   : > { %v3017_v60 = vrot.slane %v2906_v21, 5  ;;  %2307 = vrot.lane.b32.xlu1 %v5105_v3, %s5406_s20  ;;  %v2685_v56 = vsel %vm5721_vm12, %v2680_v37, %v2684_v47  ;;  %v2488_v20 = vrot.slane %v2487_v14, 4  ;;  %v600_v48 = vld [vmem:[#allocation2 + $0x44] sm:$0x1]  ;;  %1833 = vst.msk [vmem:[#allocation3] sm:$0xff] %vm1832_vm1, %v6174_v13  ;;  %v424_v30 = vmul.f32 %v6055_v32, %v4941_v29  ;;  %1841 = vst.msk [vmem:[#allocation3 + $0x40] sm:$0xff] %vm1832_vm1, %v1801_v33 }
 0x14c   : > { %v3074_v4 = vsel %vm5687_vm10, %v3072_v43, %v3073_v58  ;;  %v4743_v23 = vcombine.low %v2675_v18, %v2685_v56  ;;  %v2483_v35 = vsel %vm5721_vm12, %v2478_v31, %v2482_v5  ;;  %v6331_v47 = vsel %vm5687_vm10, %v4751_v45, %v3014_v41  ;;  %2157 = vst.msk [vmem:[#allocation3] sm:$0xff] %vm2156_vm2, %v6171_v61  ;;  %v1337_v18 = vld [vmem:[#allocation2 + $0x90] sm:$0xf] }
 0x14d   : > { %2114 = vrot.lane.b32.xlu0 %v4703_v28, %s5404_s27  ;;  %v4775_v3 = vcombine.low %v6316_v26, %v3074_v4  ;;  %v2493_v28 = vsel %vm5721_vm12, %v2488_v20, %v2492_v46  ;;  %v3016_v5 = vrot.slane %v3014_v41, 4  ;;  %v461_v7 = vadd.f32 %v6071_v63, %v6237_v6  ;;  %2165 = vst.msk [vmem:[#allocation3 + $0x40] sm:$0xff] %vm2156_vm2, %v6262_v39 }
 0x14e   : > { %v4735_v12 = vcombine.low %v2483_v35, %v2493_v28  ;;  %v569_v42 = vsel %vm5667_vm4, 0, %v568_v51  ;;  %v407_v13 = vmul.f32 %v6055_v32, %v4908_v44  ;;  %v408_v29 = vmul.f32 %v6055_v32, %v7325_v10  ;;  %v6371_v32 = vpop.permute.xlu1 %3890  ;;  %2334 = vst.msk [vmem:[#allocation3] sm:$0xff] %vm2333_vm3, %v6193_v49  ;;  %2342 = vst.msk [vmem:[#allocation3 + $0x40] sm:$0xff] %vm2333_vm3, %v6187_v8 }
 0x14f   : > { %2852 = vrot.lane.b32.xlu1 %v4743_v23, %s5410_s11  ;;  %v3018_v21 = vsel %vm5687_vm10, %v3016_v5, %v3017_v60  ;;  %570 = vst [vmem:[#allocation2 + $0x9c] sm:$0x1] %v569_v42  ;;  %v545_v6 = vsel %vm5667_vm4, 0, %v544_v15  ;;  %v6366_v60 = vpop.permute.xlu0 %2830  ;;  %v462_v0 = vadd.f32 %v6071_v63, %v424_v30  ;;  %v493_v44 = vmax.f32 %v461_v7, 0.0 }
 0x150   : > { %v4767_v61 = vcombine.low %v6331_v47, %v3018_v21  ;;  %546 = vst [vmem:[#allocation2 + $0x3c] sm:$0x1] %v545_v6  ;;  %v445_v46 = vadd.f32 %v6071_v63, %v407_v13  ;;  %v446_v58 = vadd.f32 %v6071_v63, %v408_v29  ;;  %v625_v39 = vsel %vm5672_vm5, 0, %v624_v54  ;;  %v1339_v21 = vld [vmem:[#allocation2 + $0x98] sm:$0x1] }
 0x151   : > { %2291 = vrot.lane.b32.xlu0 %v5106_v57, %s5406_s20  ;;  %v601_v27 = vsel %vm5672_vm5, 0, %v600_v48  ;;  %v494_v22 = vmax.f32 %v462_v0, 0.0  ;;  %v4880_v25 = vpack.c.bf16 %v493_v44, %v493_v44  ;;  %626 = vst [vmem:[#allocation2 + $0xa4] sm:$0x1] %v625_v39  ;;  %v1641_v37 = vshrl.u32 %v1337_v18, 16 }
 0x152   : > { %602 = vst [vmem:[#allocation2 + $0x44] sm:$0x1] %v601_v27  ;;  %v1644_v14 = vshll.u32 %v1337_v18, 16  ;;  %v477_v63 = vmax.f32 %v445_v46, 0.0  ;;  %v478_v26 = vmax.f32 %v446_v58, 0.0  ;;  %v1650_v49 = vshll.u32 %v1338_v24, 16 }
 0x153   : > { %3173 = vrot.lane.b32.xlu1 %v4775_v3, %s5408_s30  ;;  %v1654_v43 = vshrl.u32 %v1338_v24, 16  ;;  %v4881_v33 = vpack.c.bf16 %v494_v22, %v494_v22  ;;  %v926_v31 = vshrl.u32 %v4880_v25, 16  ;;  %v929_v45 = vshll.u32 %v4880_v25, 16  ;;  %v6387_v51 = vpop.permute.xlu0 %3874  ;;  %v6390_v3 = vld [vmem:[%s5648_s9 + $0x68] sm:$0xff]   ;;  %v1313_v0 = vld [vmem:[#allocation2 + $0x30] sm:$0xf] }
 0x154   : > { %v1643_v41 = vrot.slane %v1641_v37, 4  ;;  %v4864_v8 = vpack.c.bf16 %v477_v63, %v477_v63  ;;  %v4865_v56 = vpack.c.bf16 %v478_v26, %v478_v26  ;;  %v1646_v20 = vrot.slane %v1644_v14, 5  ;;  %v1314_v14 = vld [vmem:[#allocation2 + $0x34] sm:$0xf]  ;;  %v1315_v63 = vld [vmem:[#allocation2 + $0x38] sm:$0x1] }
 0x155   : > { %2836 = vrot.lane.b32.xlu0 %v4735_v12, %s5410_s11  ;;  %v6385_v4 = vrot.slane %v1650_v49, 5  ;;  %v928_v15 = vrot.slane %v926_v31, 7  ;;  %v934_v57 = vshrl.u32 %v4881_v33, 16  ;;  %v937_v23 = vshll.u32 %v4881_v33, 16  ;;  %v1885_v31 = vld [vmem:[#allocation2 + $0x90] sm:$0xe] }
 0x156   : > { %v1656_v35 = vrot.slane %v1654_v43, 4  ;;  %v1803_v47 = vpop.permute.xlu1 %1802  ;;  %v1128_v54 = vld [vmem:[#allocation2 + $0x9c] sm:$0xf]  ;;  %v790_v48 = vshrl.u32 %v4864_v8, 16  ;;  %v793_v28 = vshll.u32 %v4864_v8, 16  ;;  %v798_v5 = vshrl.u32 %v4865_v56, 16 }
 0x157   : > { %v801_v12 = vshll.u32 %v4865_v56, 16  ;;  %1842 = vst.msk [vmem:[#allocation3 + $0x48] sm:$0xff] %vm1832_vm1, %v1803_v47  ;;  %v931_v30 = vor.u32 %v929_v45, %v928_v15  ;;  %v932_v7 = vrot.slane %v928_v15, 4  ;;  %v936_v42 = vrot.slane %v934_v57, 7  ;;  %v1072_v58 = vld [vmem:[#allocation2 + $0x3c] sm:$0xf] }
 0x158   : > { %v1647_v13 = vor.u32 %v1646_v20, %v1643_v41  ;;  %2166 = vst.msk [vmem:[#allocation3 + $0x48] sm:$0xff] %vm2156_vm2, %v6308_v52  ;;  %v792_v10 = vrot.slane %v790_v48, 7  ;;  %v800_v29 = vrot.slane %v798_v5, 7  ;;  %v1132_v6 = vld [vmem:[#allocation2 + $0xa4] sm:$0x1]  ;;  %v1657_v18 = vor.u32 %v1656_v35, %v6385_v4 }
 0x159   : > { %3157 = vrot.lane.b32.xlu0 %v4767_v61, %s5408_s30  ;;  %v4944_v44 = vunpack.c.l.bf16 %v6390_v3  ;;  %2343 = vst.msk [vmem:[#allocation3 + $0x48] sm:$0xff] %vm2333_vm3, %v6245_v55  ;;  %v939_v61 = vor.u32 %v937_v23, %v936_v42  ;;  %v941_v24 = vrot.slane %v936_v42, 4  ;;  %v1129_v46 = vsel %vm5729_vm13, %v931_v30, %v1128_v54  ;;  %v1076_v39 = vld [vmem:[#allocation2 + $0x44] sm:$0x1]  ;;  %v1886_v45 = vld [vmem:[#allocation2 + $0x94] sm:$0xf] }
 0x15a   : > { %v4945_v52 = vunpack.c.h.bf16 %v6390_v3  ;;  %1130 = vst [vmem:[#allocation2 + $0x9c] sm:$0xf] %v1129_v46  ;;  %v795_v27 = vor.u32 %v793_v28, %v792_v10  ;;  %v796_v22 = vrot.slane %v792_v10, 4  ;;  %v803_v25 = vor.u32 %v801_v12, %v800_v29  ;;  %v1787_v26 = vpop.permute.xlu0 %1786  ;;  %v1887_v30 = vld [vmem:[#allocation2 + $0x98] sm:$0x1] }
 0x15b   : > { %v805_v37 = vrot.slane %v800_v29, 4  ;;  %v940_v55 = vsel %vm5739_vm14, %v932_v7, %v939_v61  ;;  %v1133_v49 = vsel %vm5667_vm4, %v941_v24, %v1132_v6  ;;  %v1648_v43 = vrot.slane %v1647_v13, 4  ;;  %1834 = vst.msk [vmem:[#allocation3 + $0x8] sm:$0xff] %vm1832_vm1, %v1787_v26  ;;  %v6430_v13 = vld [vmem:[%s5648_s9 + $0x28] sm:$0xff]   ;;  %v6439_v61 = vld [vmem:[#allocation9] ss:$0 sm:$0xff] }
 0x15c   : > { %v1658_v33 = vrot.slane %v1657_v18, 4  ;;  %1131 = vst.msk [vmem:[#allocation2 + $0xa0] sm:$0xf] %vm517_vm0, %v940_v55  ;;  %v804_v41 = vsel %vm5739_vm14, %v796_v22, %v803_v25  ;;  %v1073_v8 = vsel %vm5729_vm13, %v795_v27, %v1072_v58  ;;  %1134 = vst [vmem:[#allocation2 + $0xa4] sm:$0x1] %v1133_v49  ;;  %v1660_v20 = vshll.u32 %v1339_v21, 16 }
 0x15d   : > { %v1077_v56 = vsel %vm5667_vm4, %v805_v37, %v1076_v39  ;;  %2158 = vst.msk [vmem:[#allocation3 + $0x8] sm:$0xff] %vm2156_vm2, %v6302_v36  ;;  %1074 = vst [vmem:[#allocation2 + $0x3c] sm:$0xf] %v1073_v8  ;;  %v1449_v15 = vshrl.u32 %v1313_v0, 16  ;;  %v1452_v57 = vshll.u32 %v1313_v0, 16  ;;  %v1458_v23 = vshll.u32 %v1314_v14, 16 }
 0x15e   : > { %1075 = vst.msk [vmem:[#allocation2 + $0x40] sm:$0xf] %vm517_vm0, %v804_v41  ;;  %1078 = vst [vmem:[#allocation2 + $0x44] sm:$0x1] %v1077_v56  ;;  %v1462_v35 = vshrl.u32 %v1314_v14, 16  ;;  %v1662_v3 = vrot.slane %v1660_v20, 5  ;;  %v1653_v7 = vsel %vm5721_vm12, %v1648_v43, %v6385_v4  ;;  %v425_v4 = vmul.f32 %v6439_v61, %v4944_v44 }
 0x15f   : > { %2335 = vst.msk [vmem:[#allocation3 + $0x8] sm:$0xff] %vm2333_vm3, %v6243_v17  ;;  %v1468_v47 = vshll.u32 %v1315_v63, 16  ;;  %v4696_v54 = vrot.slane %v1885_v31, 9  ;;  %v2034_v48 = vrot.slane %v1886_v45, 5  ;;  %v1451_v28 = vrot.slane %v1449_v15, 4 }
 0x160   : > { %v1454_v5 = vrot.slane %v1452_v57, 5  ;;  %v6420_v12 = vrot.slane %v1458_v23, 5  ;;  %v1464_v36 = vrot.slane %v1462_v35, 4  ;;  %v1663_v42 = vsel %vm5721_vm12, %v1658_v33, %v1662_v3  ;;  %v6448_v63 = vld [vmem:[#allocation10] ss:$0 sm:$0xff] }
 0x161   : > { %v6427_v21 = vrot.slane %v1468_v47, 5  ;;  %v2036_v17 = vrot.slane %v2034_v48, 4  ;;  %v3427_v10 = vld [vmem:[#allocation2 + $0x9c] sm:$0xf]  ;;  %v6437_v0 = vsel %vm5687_vm10, %v4696_v54, %v2034_v48  ;;  %v2037_v39 = vrot.slane %v1887_v30, 5 }
 0x162   : > { %v6432_v29 = vld [vmem:[#allocation2 + $0x9c] sm:$0xe]  ;;  %v1455_v6 = vor.u32 %v1454_v5, %v1451_v28  ;;  %v1465_v18 = vor.u32 %v1464_v36, %v6420_v12  ;;  %v3707_v24 = vshrl.u32 %v3427_v10, 16  ;;  %v3710_v46 = vshll.u32 %v3427_v10, 16 }
 0x163   : > { %v4823_v58 = vrot.slane %v6432_v29, 9  ;;  %v5108_v27 = vld [vmem:[#allocation2 + $0x9c] sm:$0xff]   ;;  %v6443_v25 = vcombine.low %v1653_v7, %v1663_v42  ;;  %v426_v14 = vmul.f32 %v6439_v61, %v4945_v52  ;;  %v6451_v26 = vadd.f32 %v6448_v63, %v425_v4  ;;  %v3429_v31 = vld [vmem:[#allocation2 + $0xa4] sm:$0x1] }
 0x164   : > { %v3428_v22 = vld [vmem:[#allocation2 + $0xa0] sm:$0xf]  ;;  %v6445_v37 = vrot.slane %v1455_v6, 4  ;;  %v3709_v44 = vrot.slane %v3707_v24, 4  ;;  %v6455_v49 = vsel %vm5687_vm10, %v2036_v17, %v2037_v39  ;;  %v4912_v43 = vunpack.c.l.bf16 %v6430_v13  ;;  %3351 = vrot.lane.b32.xlu1 %v5108_v27, %s5407_s7  ;;  %v3403_v20 = vld [vmem:[#allocation2 + $0x3c] sm:$0xf] }
 0x165   : > { %v5109_v55 = vld [vmem:[#allocation2 + $0x3c] sm:$0xff]   ;;  %v4913_v33 = vunpack.c.h.bf16 %v6430_v13  ;;  %v3712_v45 = vrot.slane %v3710_v46, 5  ;;  %v3716_v52 = vshll.u32 %v3428_v22, 16  ;;  %v3720_v41 = vshrl.u32 %v3428_v22, 16  ;;  %v3405_v48 = vld [vmem:[#allocation2 + $0x44] sm:$0x1] }
 0x166   : > { %v1461_v8 = vsel %vm5721_vm12, %v6445_v37, %v6420_v12  ;;  %3335 = vrot.lane.b32.xlu0 %v5109_v55, %s5407_s7  ;;  %v3726_v56 = vshll.u32 %v3429_v31, 16  ;;  %v3404_v15 = vld [vmem:[#allocation2 + $0x40] sm:$0xf]  ;;  %v1466_v57 = vrot.slane %v1465_v18, 4  ;;  %v4712_v23 = vcombine.low %v6437_v0, %v6455_v49  ;;  %v3974_v18 = vld [vmem:[#allocation2 + $0xa4] sm:$0x1] }
 0x167   : > { %v6468_v35 = vadd.f32 %v6448_v63, %v426_v14  ;;  %v3713_v3 = vor.u32 %v3712_v45, %v3709_v44  ;;  %v3718_v47 = vrot.slane %v3716_v52, 5  ;;  %v3722_v54 = vrot.slane %v3720_v41, 4  ;;  %v3973_v42 = vld [vmem:[#allocation2 + $0xa0] sm:$0xf]  ;;  %v3948_v27 = vld [vmem:[#allocation2 + $0x3c] sm:$0xe]  ;;  %v6472_v52 = vpop.permute.xlu1 %2848 }
 0x168   : > { %v3515_v28 = vshrl.u32 %v3403_v20, 16  ;;  %v3728_v5 = vrot.slane %v3726_v56, 5  ;;  %v3518_v36 = vshll.u32 %v3403_v20, 16  ;;  %v3524_v30 = vshll.u32 %v3404_v15, 16  ;;  %v3949_v31 = vld [vmem:[#allocation2 + $0x40] sm:$0xf] }
 0x169   : > { %v3528_v7 = vshrl.u32 %v3404_v15, 16  ;;  %v3714_v17 = vrot.slane %v3713_v3, 4  ;;  %v3723_v10 = vor.u32 %v3722_v54, %v3718_v47  ;;  %v3534_v6 = vshll.u32 %v3405_v48, 16  ;;  %v1861_v45 = vld [vmem:[#allocation2 + $0x30] sm:$0xe] }
 0x16a   : > { %v3517_v29 = vrot.slane %v3515_v28, 4  ;;  %v3520_v4 = vrot.slane %v3518_v36, 5  ;;  %v3526_v24 = vrot.slane %v3524_v30, 5  ;;  %v4114_v39 = vrot.slane %v3973_v42, 5  ;;  %v3950_v3 = vld [vmem:[#allocation2 + $0x44] sm:$0x1] }
 0x16b   : > { %v3530_v46 = vrot.slane %v3528_v7, 4  ;;  %v3719_v22 = vsel %vm5721_vm12, %v3714_v17, %v3718_v47  ;;  %v3724_v14 = vrot.slane %v3723_v10, 4  ;;  %v3536_v55 = vrot.slane %v3534_v6, 5  ;;  %v1862_v54 = vld [vmem:[#allocation2 + $0x34] sm:$0xf]  ;;  %v5125_v30 = vld [vmem:[#allocation2 + $0x84] sm:$0xff]  }
 0x16c   : > { %v4117_v44 = vrot.slane %v3974_v18, 5  ;;  %v3521_v41 = vor.u32 %v3520_v4, %v3517_v29  ;;  %v4115_v20 = vsel %vm5687_vm10, %v4823_v58, %v4114_v39  ;;  %v4116_v15 = vrot.slane %v4114_v39, 4  ;;  %v1863_v29 = vld [vmem:[#allocation2 + $0x38] sm:$0x1]  ;;  %v2386_v4 = vld [vmem:[#allocation2 + $0x9c] sm:$0xf] }
 0x16d   : > { %v3531_v56 = vor.u32 %v3530_v46, %v3526_v24  ;;  %v3729_v48 = vsel %vm5721_vm12, %v3724_v14, %v3728_v5  ;;  %v4815_v28 = vrot.slane %v3948_v27, 9  ;;  %v4058_v47 = vrot.slane %v3949_v31, 5  ;;  %v2387_v46 = vld [vmem:[#allocation2 + $0xa0] sm:$0xf]  ;;  %1296 = vst.msk [vmem:[#allocation3 + $0x58] sm:$0xff] %vm7297_vm15, %v5125_v30  ;;  %v5126_v39 = vld [vmem:[#allocation2 + $0x24] sm:$0xff]  }
 0x16e   : > { %v4061_v36 = vrot.slane %v3950_v3, 5  ;;  %v4807_v7 = vcombine.low %v3719_v22, %v3729_v48  ;;  %v3522_v42 = vrot.slane %v3521_v41, 4  ;;  %v4118_v10 = vsel %vm5687_vm10, %v4116_v15, %v4117_v44  ;;  %v6496_v44 = vpop.permute.xlu0 %2832  ;;  %v6500_v15 = vpop.permute.xlu1 %3169  ;;  %1288 = vst.msk [vmem:[#allocation3 + $0x18] sm:$0xff] %vm7297_vm15, %v5126_v39  ;;  %v2363_v37 = vld [vmem:[#allocation2 + $0x40] sm:$0xf] }
 0x16f   : > { %v3532_v17 = vrot.slane %v3531_v56, 4  ;;  %v4839_v6 = vcombine.low %v4115_v20, %v4118_v10  ;;  %v4059_v58 = vsel %vm5687_vm10, %v4815_v28, %v4058_v47  ;;  %v4060_v18 = vrot.slane %v4058_v47, 4  ;;  %v2364_v47 = vld [vmem:[#allocation2 + $0x44] sm:$0x1] }
 0x170   : > { %v1471_v5 = vsel %vm5721_vm12, %v1466_v57, %v6427_v21  ;;  %3896 = vrot.lane.b32.xlu1 %v4807_v7, %s5411_s16  ;;  %v3527_v27 = vsel %vm5721_vm12, %v3522_v42, %v3526_v24  ;;  %v4688_v21 = vrot.slane %v1861_v45, 9  ;;  %v2388_v57 = vld [vmem:[#allocation2 + $0xa4] sm:$0x1]  ;;  %v1978_v56 = vrot.slane %v1862_v54, 5  ;;  %v2362_v24 = vld [vmem:[#allocation2 + $0x3c] sm:$0xf] }
 0x171   : > { %v3537_v22 = vsel %vm5721_vm12, %v3532_v17, %v3536_v55  ;;  %v4672_v14 = vcombine.low %v1461_v8, %v1471_v5  ;;  %v4062_v41 = vsel %vm5687_vm10, %v4060_v18, %v4061_v36  ;;  %v1981_v20 = vrot.slane %v1863_v29, 5  ;;  %v2931_v17 = vld [vmem:[#allocation2 + $0x9c] sm:$0xe]  ;;  %v2932_v5 = vld [vmem:[#allocation2 + $0xa0] sm:$0xf] }
 0x172   : > { %v4799_v31 = vcombine.low %v3527_v27, %v3537_v22  ;;  %v4831_v55 = vcombine.low %v4059_v58, %v4062_v41  ;;  %v2687_v3 = vshrl.u32 %v2386_v4, 16  ;;  %v2690_v48 = vshll.u32 %v2386_v4, 16  ;;  %v2933_v22 = vld [vmem:[#allocation2 + $0xa4] sm:$0x1] }
 0x173   : > { %v2696_v12 = vshll.u32 %v2387_v46, 16  ;;  %v6506_v8 = vsel %vm5687_vm10, %v4688_v21, %v1978_v56  ;;  %v1980_v45 = vrot.slane %v1978_v56, 4  ;;  %v2700_v28 = vshrl.u32 %v2387_v46, 16  ;;  %v3154_v21 = vpop.permute.xlu0 %3153  ;;  %v2907_v56 = vld [vmem:[#allocation2 + $0x3c] sm:$0xe] }
 0x174   : > { %3880 = vrot.lane.b32.xlu0 %v4799_v31, %s5411_s16  ;;  %v2706_v54 = vshll.u32 %v2388_v57, 16  ;;  %4217 = vrot.lane.b32.xlu1 %v4839_v6, %s5409_s8  ;;  %v2689_v36 = vrot.slane %v2687_v3, 4  ;;  %v2692_v30 = vrot.slane %v2690_v48, 5  ;;  %v2495_v42 = vshrl.u32 %v2362_v24, 16  ;;  %v6513_v3 = vpop.permute.xlu1 %3347 }
 0x175   : > { %v2698_v7 = vrot.slane %v2696_v12, 5  ;;  %v1982_v10 = vsel %vm5687_vm10, %v1980_v45, %v1981_v20  ;;  %v2702_v29 = vrot.slane %v2700_v28, 4  ;;  %v2498_v18 = vshll.u32 %v2362_v24, 16 }
 0x176   : > { %v2708_v58 = vrot.slane %v2706_v54, 5  ;;  %v4704_v4 = vcombine.low %v6506_v8, %v1982_v10  ;;  %v2693_v39 = vor.u32 %v2692_v30, %v2689_v36  ;;  %v2497_v46 = vrot.slane %v2495_v42, 4  ;;  %v2908_v8 = vld [vmem:[#allocation2 + $0x40] sm:$0xf] }
 0x177   : > { %v2504_v27 = vshll.u32 %v2363_v37, 16  ;;  %v2703_v6 = vor.u32 %v2702_v29, %v2698_v7  ;;  %v2500_v57 = vrot.slane %v2498_v18, 5  ;;  %v2508_v31 = vshrl.u32 %v2363_v37, 16 }
 0x178   : > { %4201 = vrot.lane.b32.xlu0 %v4831_v55, %s5409_s8  ;;  %v2514_v41 = vshll.u32 %v2364_v47, 16  ;;  %1808 = vrot.lane.b32.xlu1 %v6443_v25, %s5405_s29  ;;  %v2694_v20 = vrot.slane %v2693_v39, 4  ;;  %v4760_v48 = vrot.slane %v2931_v17, 9  ;;  %v3077_v12 = vrot.slane %v2932_v5, 5  ;;  %v2909_v55 = vld [vmem:[#allocation2 + $0x44] sm:$0x1] }
 0x179   : > { %v2506_v24 = vrot.slane %v2504_v27, 5  ;;  %v2704_v45 = vrot.slane %v2703_v6, 4  ;;  %v2501_v28 = vor.u32 %v2500_v57, %v2497_v46  ;;  %v2510_v54 = vrot.slane %v2508_v31, 4  ;;  %v3332_v27 = vpop.permute.xlu0 %3331  ;;  %v547_v31 = vld [vmem:[#allocation2 + $0x48] sm:$0x1] }
 0x17a   : > { %v2516_v36 = vrot.slane %v2514_v41, 5  ;;  %v2699_v37 = vsel %vm5721_vm12, %v2694_v20, %v2698_v7  ;;  %v6521_v47 = vsel %vm5687_vm10, %v4760_v48, %v3077_v12  ;;  %v3079_v30 = vrot.slane %v3077_v12, 4  ;;  %v5110_v7 = vld [vmem:[#allocation2 + $0x9c] sm:$0xff]   ;;  %v603_v20 = vld [vmem:[#allocation2 + $0x50] sm:$0x1] }
 0x17b   : > { %v3080_v42 = vrot.slane %v2933_v22, 5  ;;  %v2709_v25 = vsel %vm5721_vm12, %v2704_v45, %v2708_v58  ;;  %v2502_v17 = vrot.slane %v2501_v28, 4  ;;  %v2511_v10 = vor.u32 %v2510_v54, %v2506_v24  ;;  %v5111_v41 = vld [vmem:[#allocation2 + $0x3c] sm:$0xff]  }
 0x17c   : > { %1792 = vrot.lane.b32.xlu0 %v4672_v14, %s5405_s29  ;;  %v4752_v29 = vrot.slane %v2907_v56, 9  ;;  %2132 = vrot.lane.b32.xlu1 %v4712_v23, %s5404_s27  ;;  %v4744_v18 = vcombine.low %v2699_v37, %v2709_v25  ;;  %v3021_v39 = vrot.slane %v2908_v8, 5  ;;  %v3024_v46 = vrot.slane %v2909_v55, 5  ;;  %v571_v14 = vld [vmem:[#allocation2 + $0xa8] sm:$0x1] }
 0x17d   : > { %v6532_v5 = vsel %vm5687_vm10, %v3079_v30, %v3080_v42  ;;  %v2507_v58 = vsel %vm5721_vm12, %v2502_v17, %v2506_v24  ;;  %v2512_v22 = vrot.slane %v2511_v10, 4  ;;  %vm2878_vm6 = vcmask 326912   ;;  %v1340_v24 = vld [vmem:[#allocation2 + $0x9c] sm:$0xf]  ;;  %v1341_v17 = vld [vmem:[#allocation2 + $0xa0] sm:$0xf] }
 0x17e   : > { %v4776_v6 = vcombine.low %v6521_v47, %v6532_v5  ;;  %v3893_v0 = vpop.permute.xlu1 %3892  ;;  %v6540_v49 = vsel %vm5687_vm10, %v4752_v29, %v3021_v39  ;;  %v3023_v23 = vrot.slane %v3021_v39, 4  ;;  %vm3199_vm7 = vcmask 392512   ;;  %2887 = vst.msk [vmem:[#allocation3 + $0x40] sm:$0xff] %vm2878_vm6, %v6323_v53  ;;  %2879 = vst.msk [vmem:[#allocation3] sm:$0xff] %vm2878_vm6, %v6366_v60  ;;  %v1342_v10 = vld [vmem:[#allocation2 + $0xa4] sm:$0x1] }
 0x17f   : > { %v495_v57 = vmax.f32 %v6451_v26, 0.0  ;;  %2888 = vst.msk [vmem:[#allocation3 + $0x48] sm:$0xff] %vm2878_vm6, %v6472_v52  ;;  %2880 = vst.msk [vmem:[#allocation3 + $0x8] sm:$0xff] %vm2878_vm6, %v6496_v44  ;;  %v2517_v56 = vsel %vm5721_vm12, %v2512_v22, %v2516_v36  ;;  %v496_v53 = vmax.f32 %v6468_v35, 0.0  ;;  %v572_v60 = vsel %vm5667_vm4, 0, %v571_v14 }
 0x180   : > { %2116 = vrot.lane.b32.xlu0 %v4704_v4, %s5404_s27  ;;  %3208 = vst.msk [vmem:[#allocation3 + $0x40] sm:$0xff] %vm3199_vm7, %v6278_v59  ;;  %3200 = vst.msk [vmem:[#allocation3] sm:$0xff] %vm3199_vm7, %v6252_v9  ;;  %v409_v26 = vmul.f32 %v6439_v61, %v4912_v43  ;;  %2309 = vrot.lane.b32.xlu1 %v5110_v7, %s5406_s20  ;;  %v4736_v59 = vcombine.low %v2507_v58, %v2517_v56  ;;  %v627_v44 = vld [vmem:[#allocation2 + $0xb0] sm:$0x1]  ;;  %vm7296_vm8 = vcmask 458112   ;;  %vm3922_vm9 = vcmask 523712  }
 0x181   : > { %3209 = vst.msk [vmem:[#allocation3 + $0x48] sm:$0xff] %vm3199_vm7, %v6500_v15  ;;  %3201 = vst.msk [vmem:[#allocation3 + $0x8] sm:$0xff] %vm3199_vm7, %v3154_v21  ;;  %v6570_v9 = vsel %vm5687_vm10, %v3023_v23, %v3024_v46  ;;  %v4882_v35 = vpack.c.bf16 %v495_v57, %v495_v57  ;;  %v410_v52 = vmul.f32 %v6439_v61, %v4913_v33  ;;  %v548_v21 = vsel %vm5667_vm4, 0, %v547_v31  ;;  %v6619_v56 = vld [vmem:[%s5648_s9 + $0x70] sm:$0xff]  }
 0x182   : > { %573 = vst [vmem:[#allocation2 + $0xa8] sm:$0x1] %v572_v60  ;;  %v4768_v43 = vcombine.low %v6540_v49, %v6570_v9  ;;  %v4883_v15 = vpack.c.bf16 %v496_v53, %v496_v53  ;;  %v447_v4 = vadd.f32 %v6448_v63, %v409_v26  ;;  %v4214_v48 = vpop.permute.xlu1 %4213  ;;  %549 = vst [vmem:[#allocation2 + $0x48] sm:$0x1] %v548_v21  ;;  %vm7295_vm11 = vcmask 589312  }
 0x183   : > { %v943_v12 = vshrl.u32 %v4882_v35, 16  ;;  %v946_v8 = vshll.u32 %v4882_v35, 16  ;;  %v448_v45 = vadd.f32 %v6448_v63, %v410_v52  ;;  %v3877_v13 = vpop.permute.xlu0 %3876  ;;  %3386 = vst.msk [vmem:[#allocation3 + $0x40] sm:$0xff] %vm7296_vm8, %v6221_v38  ;;  %3378 = vst.msk [vmem:[#allocation3] sm:$0xff] %vm7296_vm8, %v6223_v50  ;;  %v628_v38 = vsel %vm5672_vm5, 0, %v627_v44 }
 0x184   : > { %2293 = vrot.lane.b32.xlu0 %v5111_v41, %s5406_s20  ;;  %v951_v33 = vshrl.u32 %v4883_v15, 16  ;;  %v954_v28 = vshll.u32 %v4883_v15, 16  ;;  %v479_v54 = vmax.f32 %v447_v4, 0.0  ;;  %3387 = vst.msk [vmem:[#allocation3 + $0x48] sm:$0xff] %vm7296_vm8, %v6513_v3  ;;  %3379 = vst.msk [vmem:[#allocation3 + $0x8] sm:$0xff] %vm7296_vm8, %v3332_v27  ;;  %2854 = vrot.lane.b32.xlu1 %v4744_v18, %s5410_s11  ;;  %v1668_v29 = vshll.u32 %v1340_v24, 16 }
 0x185   : > { %v945_v36 = vrot.slane %v943_v12, 7  ;;  %v480_v55 = vmax.f32 %v448_v45, 0.0  ;;  %3931 = vst.msk [vmem:[#allocation3 + $0x40] sm:$0xff] %vm3922_vm9, %v6371_v32  ;;  %3923 = vst.msk [vmem:[#allocation3] sm:$0xff] %vm3922_vm9, %v6387_v51  ;;  %v604_v32 = vsel %vm5672_vm5, 0, %v603_v20  ;;  %v1665_v51 = vshrl.u32 %v1340_v24, 16 }
 0x186   : > { %3932 = vst.msk [vmem:[#allocation3 + $0x48] sm:$0xff] %vm3922_vm9, %v3893_v0  ;;  %3924 = vst.msk [vmem:[#allocation3 + $0x8] sm:$0xff] %vm3922_vm9, %v3877_v13  ;;  %v953_v50 = vrot.slane %v951_v33, 7  ;;  %v4866_v3 = vpack.c.bf16 %v479_v54, %v479_v54  ;;  %v1805_v37 = vpop.permute.xlu1 %1804  ;;  %v1670_v57 = vrot.slane %v1668_v29, 5  ;;  %v1674_v31 = vshll.u32 %v1341_v17, 16 }
 0x187   : > { %4252 = vst.msk [vmem:[#allocation3 + $0x40] sm:$0xff] %vm7295_vm11, %v6300_v34  ;;  %4244 = vst.msk [vmem:[#allocation3] sm:$0xff] %vm7295_vm11, %v6271_v40  ;;  %v948_v30 = vor.u32 %v946_v8, %v945_v36  ;;  %v949_v42 = vrot.slane %v945_v36, 4  ;;  %v4867_v25 = vpack.c.bf16 %v480_v55, %v480_v55  ;;  %v4198_v7 = vpop.permute.xlu0 %4197  ;;  %v1667_v22 = vrot.slane %v1665_v51, 4  ;;  %v6616_v41 = vld [vmem:[#allocation2 + $0x3c] sm:$0xf] }
 0x188   : > { %629 = vst [vmem:[#allocation2 + $0xb0] sm:$0x1] %v628_v38  ;;  %4253 = vst.msk [vmem:[#allocation3 + $0x48] sm:$0xff] %vm7295_vm11, %v4214_v48  ;;  %2838 = vrot.lane.b32.xlu0 %v4736_v59, %s5410_s11  ;;  %v956_v40 = vor.u32 %v954_v28, %v953_v50  ;;  %v958_v34 = vrot.slane %v953_v50, 4  ;;  %v807_v39 = vshrl.u32 %v4866_v3, 16  ;;  %v810_v46 = vshll.u32 %v4866_v3, 16  ;;  %3175 = vrot.lane.b32.xlu1 %v4776_v6, %s5408_s30 }
 0x189   : > { %605 = vst [vmem:[#allocation2 + $0x50] sm:$0x1] %v604_v32  ;;  %1843 = vst.msk [vmem:[#allocation3 + $0x50] sm:$0xff] %vm1832_vm1, %v1805_v37  ;;  %v1135_v18 = vld [vmem:[#allocation2 + $0xa8] sm:$0xf]  ;;  %v815_v27 = vshrl.u32 %v4867_v25, 16  ;;  %v1671_v52 = vor.u32 %v1670_v57, %v1667_v22  ;;  %v4948_v12 = vunpack.c.l.bf16 %v6619_v56 }
 0x18a   : > { %4245 = vst.msk [vmem:[#allocation3 + $0x8] sm:$0xff] %vm7295_vm11, %v4198_v7  ;;  %v1136_v14 = vsel %vm5729_vm13, %v948_v30, %v1135_v18  ;;  %v818_v58 = vshll.u32 %v4867_v25, 16  ;;  %v957_v0 = vsel %vm5739_vm14, %v949_v42, %v956_v40  ;;  %v809_v23 = vrot.slane %v807_v39, 7  ;;  %v2129_v53 = vpop.permute.xlu1 %2128  ;;  %v1079_v5 = vld [vmem:[#allocation2 + $0x48] sm:$0xf] }
 0x18b   : > { %1137 = vst [vmem:[#allocation2 + $0xa8] sm:$0xf] %v1136_v14  ;;  %1138 = vst.msk [vmem:[#allocation2 + $0xac] sm:$0xf] %vm517_vm0, %v957_v0  ;;  %v817_v47 = vrot.slane %v815_v27, 7  ;;  %v1678_v6 = vshrl.u32 %v1341_v17, 16  ;;  %v1789_v26 = vpop.permute.xlu0 %1788  ;;  %v4949_v25 = vunpack.c.h.bf16 %v6619_v56  ;;  %v6660_v7 = vmul.f32 %v6439_v61, %v4948_v12 }
 0x18c   : > { %v1684_v60 = vshll.u32 %v1342_v10, 16  ;;  %vm4277_vm11 = vcmask 588800   ;;  %2167 = vst.msk [vmem:[#allocation3 + $0x50] sm:$0xff] %vm2156_vm2, %v2129_v53  ;;  %3159 = vrot.lane.b32.xlu0 %v4768_v43, %s5408_s30  ;;  %v812_v59 = vor.u32 %v810_v46, %v809_v23  ;;  %v813_v35 = vrot.slane %v809_v23, 4  ;;  %v6629_v15 = vld [vmem:[#allocation2 + $0x40] sm:$0xf] }
 0x18d   : > { %v6627_v44 = vrot.slane %v1674_v31, 5  ;;  %1835 = vst.msk [vmem:[#allocation3 + $0x10] sm:$0xff] %vm1832_vm1, %v1789_v26  ;;  %v820_v4 = vor.u32 %v818_v58, %v817_v47  ;;  %v822_v21 = vrot.slane %v817_v47, 4  ;;  %v1680_v24 = vrot.slane %v1678_v6, 4  ;;  %v6645_v55 = vld [vmem:[%s5648_s9 + $0x30] sm:$0xff]  }
 0x18e   : > { %v4269_v48 = vld [vmem:[#allocation3 + $0x40] sm:$0xff]  ;;  %v1080_v49 = vsel %vm5729_vm13, %v812_v59, %v1079_v5  ;;  %v1672_v8 = vrot.slane %v1671_v52, 4  ;;  %v1473_v45 = vshrl.u32 %v6616_v41, 16  ;;  %v2306_v13 = vpop.permute.xlu1 %2305  ;;  %v1686_v36 = vrot.slane %v1684_v60, 5 }
 0x18f   : > { %v1139_v20 = vld [vmem:[#allocation2 + $0xb0] sm:$0x1]  ;;  %4987 = vmatprep.subr.msk.bf16.mxu0 %vm4277_vm11, %v4269_v48  ;;  %v821_v33 = vsel %vm5739_vm14, %v813_v35, %v820_v4  ;;  %1081 = vst [vmem:[#allocation2 + $0x48] sm:$0xf] %v1080_v49  ;;  %v1681_v54 = vor.u32 %v1680_v24, %v6627_v44  ;;  %v2113_v38 = vpop.permute.xlu0 %2112  ;;  %2344 = vst.msk [vmem:[#allocation3 + $0x50] sm:$0xff] %vm2333_vm3, %v2306_v13  ;;  %v1476_v3 = vshll.u32 %v6616_v41, 16  ;;  %v4916_v40 = vunpack.c.l.bf16 %v6645_v55 }
 0x190   : > { %v1140_v9 = vsel %vm5667_vm4, %v958_v34, %v1139_v20  ;;  %v1083_v43 = vld [vmem:[#allocation2 + $0x50] sm:$0x1]  ;;  %1082 = vst.msk [vmem:[#allocation2 + $0x4c] sm:$0xf] %vm517_vm0, %v821_v33  ;;  %v6649_v50 = vrot.slane %v1473_v45, 4  ;;  %v1482_v32 = vshll.u32 %v6629_v15, 16  ;;  %v1677_v42 = vsel %vm5721_vm12, %v1672_v8, %v6627_v44 }
 0x191   : > { %1141 = vst [vmem:[#allocation2 + $0xb0] sm:$0x1] %v1140_v9  ;;  %v1084_v28 = vsel %vm5667_vm4, %v822_v21, %v1083_v43  ;;  %v1486_v51 = vshrl.u32 %v6629_v15, 16  ;;  %2159 = vst.msk [vmem:[#allocation3 + $0x10] sm:$0xff] %vm2156_vm2, %v2113_v38  ;;  %v4917_v34 = vunpack.c.h.bf16 %v6645_v55  ;;  %v1682_v57 = vrot.slane %v1681_v54, 4 }
 0x192   : > { %1085 = vst [vmem:[#allocation2 + $0x50] sm:$0x1] %v1084_v28  ;;  %v3430_v37 = vld [vmem:[#allocation2 + $0xa8] sm:$0xf]  ;;  %v3431_v10 = vld [vmem:[#allocation2 + $0xac] sm:$0xf]  ;;  %v2851_v18 = vpop.permute.xlu1 %2850  ;;  %v6677_v35 = vmul.f32 %v6439_v61, %v4949_v25 }
 0x193   : > { %v3975_v30 = vld [vmem:[#allocation2 + $0xa8] sm:$0xe]  ;;  %v3731_v29 = vshrl.u32 %v3430_v37, 16  ;;  %v3734_v39 = vshll.u32 %v3430_v37, 16  ;;  %v3740_v46 = vshll.u32 %v3431_v10, 16  ;;  %v3744_v14 = vshrl.u32 %v3431_v10, 16  ;;  %v2290_v22 = vpop.permute.xlu0 %2289 }
 0x194   : > { %v5113_v17 = vld [vmem:[#allocation2 + $0xa8] sm:$0xff]   ;;  %v4824_v58 = vrot.slane %v3975_v30, 9  ;;  %2889 = vst.msk [vmem:[#allocation3 + $0x50] sm:$0xff] %vm2878_vm6, %v2851_v18  ;;  %v1478_v31 = vrot.slane %v1476_v3, 5  ;;  %v6667_v47 = vrot.slane %v1482_v32, 5  ;;  %v1687_v26 = vsel %vm5721_vm12, %v1682_v57, %v1686_v36 }
 0x195   : > { %v3976_v27 = vld [vmem:[#allocation2 + $0xac] sm:$0xf]  ;;  %3353 = vrot.lane.b32.xlu1 %v5113_v17, %s5407_s7  ;;  %v3733_v0 = vrot.slane %v3731_v29, 4  ;;  %2336 = vst.msk [vmem:[#allocation3 + $0x10] sm:$0xff] %vm2333_vm3, %v2290_v22  ;;  %v3736_v41 = vrot.slane %v3734_v39, 5  ;;  %v3742_v56 = vrot.slane %v3740_v46, 5  ;;  %v6679_v48 = vcombine.low %v1677_v42, %v1687_v26 }
 0x196   : > { %v4121_v23 = vrot.slane %v3976_v27, 5  ;;  %v3746_v53 = vrot.slane %v3744_v14, 4  ;;  %v3406_v6 = vld [vmem:[#allocation2 + $0x48] sm:$0xf]  ;;  %v1479_v59 = vor.u32 %v1478_v31, %v6649_v50  ;;  %v3172_v52 = vpop.permute.xlu1 %3171  ;;  %v1318_v29 = vld [vmem:[#allocation2 + $0x44] sm:$0x1] }
 0x197   : > { %v5114_v44 = vld [vmem:[#allocation2 + $0x48] sm:$0xff]   ;;  %v3737_v4 = vor.u32 %v3736_v41, %v3733_v0  ;;  %v2835_v12 = vpop.permute.xlu0 %2834  ;;  %3210 = vst.msk [vmem:[#allocation3 + $0x50] sm:$0xff] %vm3199_vm7, %v3172_v52  ;;  %v3539_v9 = vshrl.u32 %v3406_v6, 16  ;;  %v3542_v43 = vshll.u32 %v3406_v6, 16  ;;  %v1889_v41 = vld [vmem:[#allocation2 + $0xa0] sm:$0xf] }
 0x198   : > { %v3432_v5 = vld [vmem:[#allocation2 + $0xb0] sm:$0x1]  ;;  %v6671_v60 = vsel %vm5687_vm10, %v4824_v58, %v4121_v23  ;;  %v3747_v21 = vor.u32 %v3746_v53, %v3742_v56  ;;  %v3407_v24 = vld [vmem:[#allocation2 + $0x4c] sm:$0xf]  ;;  %2881 = vst.msk [vmem:[#allocation3 + $0x10] sm:$0xff] %vm2878_vm6, %v2835_v12  ;;  %3337 = vrot.lane.b32.xlu0 %v5114_v44, %s5407_s7  ;;  %v4123_v25 = vrot.slane %v4121_v23, 4 }
 0x199   : > { %v3750_v20 = vshll.u32 %v3432_v5, 16  ;;  %v3408_v49 = vld [vmem:[#allocation2 + $0x50] sm:$0x1]  ;;  %v3548_v8 = vshll.u32 %v3407_v24, 16  ;;  %v3552_v45 = vshrl.u32 %v3407_v24, 16  ;;  %v3738_v61 = vrot.slane %v3737_v4, 4 }
 0x19a   : > { %v3748_v13 = vrot.slane %v3747_v21, 4  ;;  %v3558_v28 = vshll.u32 %v3408_v49, 16  ;;  %v3977_v54 = vld [vmem:[#allocation2 + $0xb0] sm:$0x1]  ;;  %v3541_v36 = vrot.slane %v3539_v9, 4  ;;  %v3544_v38 = vrot.slane %v3542_v43, 5 }
 0x19b   : > { %v3752_v33 = vrot.slane %v3750_v20, 5  ;;  %v3550_v50 = vrot.slane %v3548_v8, 5  ;;  %v3554_v3 = vrot.slane %v3552_v45, 4  ;;  %v3951_v32 = vld [vmem:[#allocation2 + $0x48] sm:$0xe]  ;;  %v3743_v37 = vsel %vm5721_vm12, %v3738_v61, %v3742_v56  ;;  %v3156_v18 = vpop.permute.xlu0 %3155  ;;  %v5131_v56 = vld [vmem:[#allocation2 + $0x90] sm:$0xff]  }
 0x19c   : > { %v3560_v42 = vrot.slane %v3558_v28, 5  ;;  %v3952_v17 = vld [vmem:[#allocation2 + $0x4c] sm:$0xf]  ;;  %v3953_v10 = vld [vmem:[#allocation2 + $0x50] sm:$0x1]  ;;  %v3545_v46 = vor.u32 %v3544_v38, %v3541_v36  ;;  %v4124_v27 = vrot.slane %v3977_v54, 5 }
 0x19d   : > { %v3753_v30 = vsel %vm5721_vm12, %v3748_v13, %v3752_v33  ;;  %v3555_v14 = vor.u32 %v3554_v3, %v3550_v50  ;;  %v1888_v58 = vld [vmem:[#allocation2 + $0x9c] sm:$0xe]  ;;  %3202 = vst.msk [vmem:[#allocation3 + $0x10] sm:$0xff] %vm3199_vm7, %v3156_v18  ;;  %v4816_v22 = vrot.slane %v3951_v32, 9  ;;  %v4065_v0 = vrot.slane %v3952_v17, 5  ;;  %v5132_v52 = vld [vmem:[#allocation2 + $0x30] sm:$0xff]  }
 0x19e   : > { %v4808_v39 = vcombine.low %v3743_v37, %v3753_v30  ;;  %v4068_v57 = vrot.slane %v3953_v10, 5  ;;  %v1480_v31 = vrot.slane %v1479_v59, 4  ;;  %v3546_v23 = vrot.slane %v3545_v46, 4  ;;  %v4261_v26 = vld [vmem:[#allocation3] sm:$0xff]  ;;  %v1890_v20 = vld [vmem:[#allocation2 + $0xa4] sm:$0x1] }
 0x19f   : > { %v3556_v53 = vrot.slane %v3555_v14, 4  ;;  %v4125_v5 = vsel %vm5687_vm10, %v4123_v25, %v4124_v27  ;;  %v1488_v6 = vrot.slane %v1486_v51, 4  ;;  %v4066_v4 = vsel %vm5687_vm10, %v4816_v22, %v4065_v0  ;;  %v1864_v24 = vld [vmem:[#allocation2 + $0x3c] sm:$0xe]  ;;  %1297 = vst.msk [vmem:[#allocation3 + $0x60] sm:$0xff] %vm7297_vm15, %v5131_v56  ;;  %v4270_v43 = vld [vmem:[#allocation3 + $0x48] sm:$0xff] }
 0x1a0   : > { %3898 = vrot.lane.b32.xlu1 %v4808_v39, %s5411_s16  ;;  %v4840_v44 = vcombine.low %v6671_v60, %v4125_v5  ;;  %v4067_v59 = vrot.slane %v4065_v0, 4  ;;  %v1485_v21 = vsel %vm5721_vm12, %v1480_v31, %v6667_v47  ;;  %v3551_v15 = vsel %vm5721_vm12, %v3546_v23, %v3550_v50  ;;  %v1865_v49 = vld [vmem:[#allocation2 + $0x40] sm:$0xf]  ;;  %v1866_v9 = vld [vmem:[#allocation2 + $0x44] sm:$0x1]  ;;  %1289 = vst.msk [vmem:[#allocation3 + $0x20] sm:$0xff] %vm7297_vm15, %v5132_v52 }
 0x1a1   : > { %v3561_v51 = vsel %vm5721_vm12, %v3556_v53, %v3560_v42  ;;  %v1489_v60 = vor.u32 %v1488_v6, %v6667_v47  ;;  %v1492_v12 = vshll.u32 %v1318_v29, 16  ;;  %v4282_v61 = vsel %vm4277_vm11, %v4261_v26, 0  ;;  %v2389_v33 = vld [vmem:[#allocation2 + $0xa8] sm:$0xf]  ;;  %v2390_v37 = vld [vmem:[#allocation2 + $0xac] sm:$0xf] }
 0x1a2   : > { %v4800_v8 = vcombine.low %v3551_v15, %v3561_v51  ;;  %v4069_v45 = vsel %vm5687_vm10, %v4067_v59, %v4068_v57  ;;  %v4697_v13 = vrot.slane %v1888_v58, 9  ;;  %4970 = vmatpush3.bf16.xpose.msra.mxu0 %v4282_v61  ;;  %v2041_v47 = vrot.slane %v1889_v41, 5  ;;  %v2391_v10 = vld [vmem:[#allocation2 + $0xb0] sm:$0x1]  ;;  %v2365_v27 = vld [vmem:[#allocation2 + $0x48] sm:$0xf] }
 0x1a3   : > { %v4832_v28 = vcombine.low %v4066_v4, %v4069_v45  ;;  %v1490_v54 = vrot.slane %v1489_v60, 4  ;;  %v1494_v36 = vrot.slane %v1492_v12, 5  ;;  %v2044_v38 = vrot.slane %v1890_v20, 5  ;;  %4988 = vmatprep.subr.msk.bf16.mxu0 %vm4277_vm11, %v4270_v43  ;;  %v3350_v30 = vpop.permute.xlu1 %3349  ;;  %v2366_v31 = vld [vmem:[#allocation2 + $0x4c] sm:$0xf]  ;;  %v5135_v41 = vld [vmem:[#allocation2 + $0x9c] sm:$0xff]  }
 0x1a4   : > { %4219 = vrot.lane.b32.xlu1 %v4840_v44, %s5409_s8  ;;  %3882 = vrot.lane.b32.xlu0 %v4800_v8, %s5411_s16  ;;  %v4689_v50 = vrot.slane %v1864_v24, 9  ;;  %v1985_v3 = vrot.slane %v1865_v49, 5  ;;  %v1988_v32 = vrot.slane %v1866_v9, 5  ;;  %v2042_v25 = vsel %vm5687_vm10, %v4697_v13, %v2041_v47  ;;  %3388 = vst.msk [vmem:[#allocation3 + $0x50] sm:$0xff] %vm7296_vm8, %v3350_v30  ;;  %v2367_v6 = vld [vmem:[#allocation2 + $0x50] sm:$0x1] }
 0x1a5   : > { %v1495_v42 = vsel %vm5721_vm12, %v1490_v54, %v1494_v36  ;;  %v2043_v17 = vrot.slane %v2041_v47, 4  ;;  %v2711_v29 = vshrl.u32 %v2389_v33, 16  ;;  %v2714_v14 = vshll.u32 %v2389_v33, 16  ;;  %v2934_v26 = vld [vmem:[#allocation2 + $0xa8] sm:$0xe]  ;;  %1298 = vst.msk [vmem:[#allocation3 + $0x68] sm:$0xff] %vm7297_vm15, %v5135_v41 }
 0x1a6   : > { %v4673_v18 = vcombine.low %v1485_v21, %v1495_v42  ;;  %v1986_v39 = vsel %vm5687_vm10, %v4689_v50, %v1985_v3  ;;  %v1987_v46 = vrot.slane %v1985_v3, 4  ;;  %v2720_v0 = vshll.u32 %v2390_v37, 16  ;;  %v2935_v59 = vld [vmem:[#allocation2 + $0xac] sm:$0xf]  ;;  %v5136_v20 = vld [vmem:[#allocation2 + $0x3c] sm:$0xff]  }
 0x1a7   : > { %v2045_v58 = vsel %vm5687_vm10, %v2043_v17, %v2044_v38  ;;  %v2713_v22 = vrot.slane %v2711_v29, 4  ;;  %v2724_v57 = vshrl.u32 %v2390_v37, 16  ;;  %v2716_v53 = vrot.slane %v2714_v14, 5  ;;  %v3334_v21 = vpop.permute.xlu0 %3333  ;;  %v2936_v12 = vld [vmem:[#allocation2 + $0xb0] sm:$0x1]  ;;  %v5117_v49 = vld [vmem:[#allocation2 + $0xa8] sm:$0xff]  }
 0x1a8   : > { %1810 = vrot.lane.b32.xlu1 %v6679_v48, %s5405_s29  ;;  %4203 = vrot.lane.b32.xlu0 %v4832_v28, %s5409_s8  ;;  %v4713_v56 = vcombine.low %v2042_v25, %v2045_v58  ;;  %v1989_v23 = vsel %vm5687_vm10, %v1987_v46, %v1988_v32  ;;  %v2730_v5 = vshll.u32 %v2391_v10, 16  ;;  %v2722_v48 = vrot.slane %v2720_v0, 5  ;;  %3380 = vst.msk [vmem:[#allocation3 + $0x10] sm:$0xff] %vm7296_vm8, %v3334_v21  ;;  %v2910_v61 = vld [vmem:[#allocation2 + $0x48] sm:$0xe] }
 0x1a9   : > { %v4705_v52 = vcombine.low %v1986_v39, %v1989_v23  ;;  %v2726_v44 = vrot.slane %v2724_v57, 4  ;;  %v2519_v4 = vshrl.u32 %v2365_v27, 16  ;;  %v2717_v24 = vor.u32 %v2716_v53, %v2713_v22  ;;  %1290 = vst.msk [vmem:[#allocation3 + $0x28] sm:$0xff] %vm7297_vm15, %v5136_v20  ;;  %v2911_v36 = vld [vmem:[#allocation2 + $0x4c] sm:$0xf] }
 0x1aa   : > { %v2732_v15 = vrot.slane %v2730_v5, 5  ;;  %v2522_v51 = vshll.u32 %v2365_v27, 16  ;;  %v2528_v60 = vshll.u32 %v2366_v31, 16  ;;  %v2532_v8 = vshrl.u32 %v2366_v31, 16  ;;  %v2912_v32 = vld [vmem:[#allocation2 + $0x50] sm:$0x1] }
 0x1ab   : > { %v2727_v9 = vor.u32 %v2726_v44, %v2722_v48  ;;  %v2521_v43 = vrot.slane %v2519_v4, 4  ;;  %v2538_v45 = vshll.u32 %v2367_v6, 16  ;;  %v2718_v13 = vrot.slane %v2717_v24, 4  ;;  %v5118_v46 = vld [vmem:[#allocation2 + $0x48] sm:$0xff]   ;;  %v574_v0 = vld [vmem:[#allocation2 + $0xb4] sm:$0x1] }
 0x1ac   : > { %2134 = vrot.lane.b32.xlu1 %v4713_v56, %s5404_s27  ;;  %1794 = vrot.lane.b32.xlu0 %v4673_v18, %s5405_s29  ;;  %v2524_v33 = vrot.slane %v2522_v51, 5  ;;  %v2530_v28 = vrot.slane %v2528_v60, 5  ;;  %v4761_v54 = vrot.slane %v2934_v26, 9  ;;  %v2534_v38 = vrot.slane %v2532_v8, 4  ;;  %v550_v26 = vld [vmem:[#allocation2 + $0x54] sm:$0x1] }
 0x1ad   : > { %v2728_v47 = vrot.slane %v2727_v9, 4  ;;  %v2540_v50 = vrot.slane %v2538_v45, 5  ;;  %v3084_v3 = vrot.slane %v2935_v59, 5  ;;  %v2723_v37 = vsel %vm5721_vm12, %v2718_v13, %v2722_v48  ;;  %v3895_v17 = vpop.permute.xlu1 %3894  ;;  %v6762_v24 = vld [vmem:[#allocation9] ss:$0 sm:$0xff] }
 0x1ae   : > { %v2525_v30 = vor.u32 %v2524_v33, %v2521_v43  ;;  %v3087_v42 = vrot.slane %v2936_v12, 5  ;;  %v4753_v25 = vrot.slane %v2910_v61, 9  ;;  %v2535_v29 = vor.u32 %v2534_v38, %v2530_v28  ;;  %3933 = vst.msk [vmem:[#allocation3 + $0x50] sm:$0xff] %vm3922_vm9, %v3895_v17  ;;  %v4262_v43 = vld [vmem:[#allocation3 + $0x8] sm:$0xff]  ;;  %v1343_v8 = vld [vmem:[#allocation2 + $0xa8] sm:$0xf] }
 0x1af   : > { %v2733_v10 = vsel %vm5721_vm12, %v2728_v47, %v2732_v15  ;;  %v3085_v18 = vsel %vm5687_vm10, %v4761_v54, %v3084_v3  ;;  %v3086_v39 = vrot.slane %v3084_v3, 4  ;;  %v3028_v58 = vrot.slane %v2911_v36, 5  ;;  %v6774_v45 = vld [vmem:[#allocation10] ss:$0 sm:$0xff]  ;;  %v1344_v13 = vld [vmem:[#allocation2 + $0xac] sm:$0xf] }
 0x1b0   : > { %2311 = vrot.lane.b32.xlu1 %v5117_v49, %s5406_s20  ;;  %2118 = vrot.lane.b32.xlu0 %v4705_v52, %s5404_s27  ;;  %v4745_v14 = vcombine.low %v2723_v37, %v2733_v10  ;;  %v2526_v27 = vrot.slane %v2525_v30, 4  ;;  %v3031_v22 = vrot.slane %v2912_v32, 5  ;;  %v2536_v57 = vrot.slane %v2535_v29, 4  ;;  %v630_v52 = vld [vmem:[#allocation2 + $0xbc] sm:$0x1] }
 0x1b1   : > { %v3088_v31 = vsel %vm5687_vm10, %v3086_v39, %v3087_v42  ;;  %v465_v41 = vadd.f32 %v6448_v63, %v6660_v7  ;;  %v466_v56 = vadd.f32 %v6448_v63, %v6677_v35  ;;  %v6751_v5 = vsel %vm5687_vm10, %v4753_v25, %v3028_v58  ;;  %v4216_v48 = vpop.permute.xlu1 %4215  ;;  %v606_v35 = vld [vmem:[#allocation2 + $0x5c] sm:$0x1] }
 0x1b2   : > { %v2531_v23 = vsel %vm5721_vm12, %v2526_v27, %v2530_v28  ;;  %v4777_v53 = vcombine.low %v3085_v18, %v3088_v31  ;;  %v3030_v6 = vrot.slane %v3028_v58, 4  ;;  %v2541_v7 = vsel %vm5721_vm12, %v2536_v57, %v2540_v50 }
 0x1b3   : > { %v497_v44 = vmax.f32 %v465_v41, 0.0  ;;  %v498_v4 = vmax.f32 %v466_v56, 0.0  ;;  %v575_v63 = vsel %vm5667_vm4, 0, %v574_v0  ;;  %v3879_v59 = vpop.permute.xlu0 %3878  ;;  %vm7326_vm8 = vcmask 589312   ;;  %v6788_v41 = vld [vmem:[%s5648_s9 + $0x78] sm:$0xff]  }
 0x1b4   : > { %2856 = vrot.lane.b32.xlu1 %v4745_v14, %s5410_s11  ;;  %4254 = vst.msk [vmem:[#allocation3 + $0x50] sm:$0xff] %vm7326_vm8, %v4216_v48  ;;  %2295 = vrot.lane.b32.xlu0 %v5118_v46, %s5406_s20  ;;  %v4737_v21 = vcombine.low %v2531_v23, %v2541_v7  ;;  %v3032_v20 = vsel %vm5687_vm10, %v3030_v6, %v3031_v22  ;;  %576 = vst [vmem:[#allocation2 + $0xb4] sm:$0x1] %v575_v63  ;;  %v551_v9 = vsel %vm5667_vm4, 0, %v550_v26  ;;  %v1345_v6 = vld [vmem:[#allocation2 + $0xb0] sm:$0x1] }
 0x1b5   : > { %v411_v15 = vmul.f32 %v6762_v24, %v4916_v40  ;;  %v412_v51 = vmul.f32 %v6762_v24, %v4917_v34  ;;  %3925 = vst.msk [vmem:[#allocation3 + $0x10] sm:$0xff] %vm3922_vm9, %v3879_v59  ;;  %v4769_v60 = vcombine.low %v6751_v5, %v3032_v20  ;;  %v4884_v12 = vpack.c.bf16 %v497_v44, %v497_v44  ;;  %v1807_v33 = vpop.permute.xlu1 %1806 }
 0x1b6   : > { %v4885_v49 = vpack.c.bf16 %v498_v4, %v498_v4  ;;  %552 = vst [vmem:[#allocation2 + $0x54] sm:$0x1] %v551_v9  ;;  %v631_v55 = vsel %vm5672_vm5, 0, %v630_v52  ;;  %v607_v34 = vsel %vm5672_vm5, 0, %v606_v35  ;;  %1844 = vst.msk [vmem:[#allocation3 + $0x58] sm:$0xff] %vm1832_vm1, %v1807_v33  ;;  %v4285_v32 = vsel %vm4277_vm11, %v4262_v43, 0 }
 0x1b7   : > { %v449_v61 = vadd.f32 %v6774_v45, %v411_v15  ;;  %v450_v40 = vadd.f32 %v6774_v45, %v412_v51  ;;  %v960_v28 = vshrl.u32 %v4884_v12, 16  ;;  %v963_v54 = vshll.u32 %v4884_v12, 16  ;;  %632 = vst [vmem:[#allocation2 + $0xbc] sm:$0x1] %v631_v55  ;;  %608 = vst [vmem:[#allocation2 + $0x5c] sm:$0x1] %v607_v34  ;;  %v4200_v38 = vpop.permute.xlu0 %4199  ;;  %4972 = vmatpush3.bf16.xpose.msra.mxu0 %v4285_v32 }
 0x1b8   : > { %3177 = vrot.lane.b32.xlu1 %v4777_v53, %s5408_s30  ;;  %v968_v36 = vshrl.u32 %v4885_v49, 16  ;;  %v971_v47 = vshll.u32 %v4885_v49, 16  ;;  %2840 = vrot.lane.b32.xlu0 %v4737_v21, %s5410_s11  ;;  %v1689_v37 = vshrl.u32 %v1343_v8, 16  ;;  %4246 = vst.msk [vmem:[#allocation3 + $0x10] sm:$0xff] %vm7326_vm8, %v4200_v38  ;;  %v1692_v25 = vshll.u32 %v1343_v8, 16 }
 0x1b9   : > { %v481_v50 = vmax.f32 %v449_v61, 0.0  ;;  %v482_v3 = vmax.f32 %v450_v40, 0.0  ;;  %v962_v30 = vrot.slane %v960_v28, 7  ;;  %v1698_v17 = vshll.u32 %v1344_v13, 16  ;;  %v2131_v46 = vpop.permute.xlu1 %2130  ;;  %v1319_v35 = vld [vmem:[#allocation2 + $0x48] sm:$0xf] }
 0x1ba   : > { %v970_v42 = vrot.slane %v968_v36, 7  ;;  %v1691_v18 = vrot.slane %v1689_v37, 4  ;;  %v1702_v39 = vshrl.u32 %v1344_v13, 16  ;;  %2168 = vst.msk [vmem:[#allocation3 + $0x58] sm:$0xff] %vm2156_vm2, %v2131_v46  ;;  %v1694_v48 = vrot.slane %v1692_v25, 5 }
 0x1bb   : > { %v4868_v10 = vpack.c.bf16 %v481_v50, %v481_v50  ;;  %v4869_v29 = vpack.c.bf16 %v482_v3, %v482_v3  ;;  %v4271_v14 = vld [vmem:[#allocation3 + $0x50] sm:$0xff]  ;;  %v965_v27 = vor.u32 %v963_v54, %v962_v30  ;;  %v966_v58 = vrot.slane %v962_v30, 4  ;;  %v1142_v57 = vld [vmem:[#allocation2 + $0xb4] sm:$0xf]  ;;  %v1791_v31 = vpop.permute.xlu0 %1790  ;;  %v6809_v33 = vld [vmem:[#allocation2 + $0x50] sm:$0x1] }
 0x1bc   : > { %v973_v22 = vor.u32 %v971_v47, %v970_v42  ;;  %v975_v0 = vrot.slane %v970_v42, 4  ;;  %4989 = vmatprep.subr.msk.bf16.mxu0 %vm4277_vm11, %v4271_v14  ;;  %3161 = vrot.lane.b32.xlu0 %v4769_v60, %s5408_s30  ;;  %1836 = vst.msk [vmem:[#allocation3 + $0x18] sm:$0xff] %vm1832_vm1, %v1791_v31  ;;  %v6798_v7 = vrot.slane %v1698_v17, 5  ;;  %v4952_v59 = vunpack.c.l.bf16 %v6788_v41  ;;  %v6807_v13 = vld [vmem:[#allocation2 + $0x4c] sm:$0xf] }
 0x1bd   : > { %v824_v56 = vshrl.u32 %v4868_v10, 16  ;;  %v827_v23 = vshll.u32 %v4868_v10, 16  ;;  %v832_v53 = vshrl.u32 %v4869_v29, 16  ;;  %v835_v5 = vshll.u32 %v4869_v29, 16  ;;  %v2308_v21 = vpop.permute.xlu1 %2307  ;;  %v1086_v20 = vld [vmem:[#allocation2 + $0x54] sm:$0xf] }
 0x1be   : > { %v974_v26 = vsel %vm5739_vm14, %v966_v58, %v973_v22  ;;  %v1143_v52 = vsel %vm5729_vm13, %v965_v27, %v1142_v57  ;;  %v1146_v63 = vld [vmem:[#allocation2 + $0xbc] sm:$0x1]  ;;  %v1695_v60 = vor.u32 %v1694_v48, %v1691_v18  ;;  %v1704_v12 = vrot.slane %v1702_v39, 4  ;;  %2345 = vst.msk [vmem:[#allocation3 + $0x58] sm:$0xff] %vm2333_vm3, %v2308_v21  ;;  %v6818_v3 = vld [vmem:[#allocation2 + $0xa8] sm:$0xe] }
 0x1bf   : > { %1144 = vst [vmem:[#allocation2 + $0xb4] sm:$0xf] %v1143_v52  ;;  %1145 = vst.msk [vmem:[#allocation2 + $0xb8] sm:$0xf] %vm517_vm0, %v974_v26  ;;  %v826_v44 = vrot.slane %v824_v56, 7  ;;  %v834_v4 = vrot.slane %v832_v53, 7  ;;  %v1147_v15 = vsel %vm5667_vm4, %v975_v0, %v1146_v63  ;;  %v2115_v9 = vpop.permute.xlu0 %2114  ;;  %v4953_v54 = vunpack.c.h.bf16 %v6788_v41 }
 0x1c0   : > { %v1090_v51 = vld [vmem:[#allocation2 + $0x5c] sm:$0x1]  ;;  %v1708_v49 = vshll.u32 %v1345_v6, 16  ;;  %1148 = vst [vmem:[#allocation2 + $0xbc] sm:$0x1] %v1147_v15  ;;  %2160 = vst.msk [vmem:[#allocation3 + $0x18] sm:$0xff] %vm2156_vm2, %v2115_v9  ;;  %v1705_v34 = vor.u32 %v1704_v12, %v6798_v7  ;;  %v429_v0 = vmul.f32 %v6762_v24, %v4952_v59 }
 0x1c1   : > { %v829_v43 = vor.u32 %v827_v23, %v826_v44  ;;  %v830_v8 = vrot.slane %v826_v44, 4  ;;  %v837_v61 = vor.u32 %v835_v5, %v834_v4  ;;  %v839_v40 = vrot.slane %v834_v4, 4  ;;  %v2853_v32 = vpop.permute.xlu1 %2852 }
 0x1c2   : > { %v1696_v55 = vrot.slane %v1695_v60, 4  ;;  %v1497_v28 = vshrl.u32 %v1319_v35, 16  ;;  %v1500_v50 = vshll.u32 %v1319_v35, 16  ;;  %v1706_v37 = vrot.slane %v1705_v34, 4  ;;  %2890 = vst.msk [vmem:[#allocation3 + $0x58] sm:$0xff] %vm2878_vm6, %v2853_v32 }
 0x1c3   : > { %v838_v36 = vsel %vm5739_vm14, %v830_v8, %v837_v61  ;;  %v1087_v47 = vsel %vm5729_vm13, %v829_v43, %v1086_v20  ;;  %v1091_v38 = vsel %vm5667_vm4, %v839_v40, %v1090_v51  ;;  %v1710_v30 = vrot.slane %v1708_v49, 5  ;;  %v2292_v25 = vpop.permute.xlu0 %2291 }
 0x1c4   : > { %1088 = vst [vmem:[#allocation2 + $0x54] sm:$0xf] %v1087_v47  ;;  %1089 = vst.msk [vmem:[#allocation2 + $0x58] sm:$0xf] %vm517_vm0, %v838_v36  ;;  %v6821_v42 = vrot.slane %v1497_v28, 4  ;;  %v6824_v17 = vrot.slane %v1500_v50, 5  ;;  %v1701_v22 = vsel %vm5721_vm12, %v1696_v55, %v6798_v7  ;;  %v430_v57 = vmul.f32 %v6762_v24, %v4953_v54 }
 0x1c5   : > { %1092 = vst [vmem:[#allocation2 + $0x5c] sm:$0x1] %v1091_v38  ;;  %v1506_v10 = vshll.u32 %v6807_v13, 16  ;;  %v1510_v29 = vshrl.u32 %v6807_v13, 16  ;;  %v1516_v18 = vshll.u32 %v6809_v33, 16  ;;  %2337 = vst.msk [vmem:[#allocation3 + $0x18] sm:$0xff] %vm2333_vm3, %v2292_v25  ;;  %v3174_v31 = vpop.permute.xlu1 %3173  ;;  %v1711_v7 = vsel %vm5721_vm12, %v1706_v37, %v1710_v30 }
 0x1c6   : > { %v5121_v39 = vld [vmem:[#allocation2 + $0xb4] sm:$0xff]   ;;  %v4698_v46 = vrot.slane %v6818_v3, 9  ;;  %3211 = vst.msk [vmem:[#allocation3 + $0x58] sm:$0xff] %vm3199_vm7, %v3174_v31  ;;  %v6844_v20 = vadd.f32 %v6774_v45, %v429_v0  ;;  %v6847_v15 = vadd.f32 %v6774_v45, %v430_v57  ;;  %v6849_v43 = vcombine.low %v1701_v22, %v1711_v7  ;;  %v1893_v7 = vld [vmem:[#allocation2 + $0xb0] sm:$0x1] }
 0x1c7   : > { %v3433_v14 = vld [vmem:[#allocation2 + $0xb4] sm:$0xf]  ;;  %v3434_v27 = vld [vmem:[#allocation2 + $0xb8] sm:$0xf]  ;;  %3355 = vrot.lane.b32.xlu1 %v5121_v39, %s5407_s7  ;;  %v3435_v41 = vld [vmem:[#allocation2 + $0xbc] sm:$0x1]  ;;  %v2837_v6 = vpop.permute.xlu0 %2836  ;;  %v1503_v8 = vor.u32 %v6824_v17, %v6821_v42 }
 0x1c8   : > { %v3978_v58 = vld [vmem:[#allocation2 + $0xb4] sm:$0xe]  ;;  %v3755_v56 = vshrl.u32 %v3433_v14, 16  ;;  %v3758_v23 = vshll.u32 %v3433_v14, 16  ;;  %v3764_v53 = vshll.u32 %v3434_v27, 16  ;;  %v3768_v5 = vshrl.u32 %v3434_v27, 16 }
 0x1c9   : > { %v3774_v26 = vshll.u32 %v3435_v41, 16  ;;  %v3979_v52 = vld [vmem:[#allocation2 + $0xb8] sm:$0xf]  ;;  %v4825_v48 = vrot.slane %v3978_v58, 9  ;;  %v6840_v44 = vrot.slane %v1506_v10, 5  ;;  %2882 = vst.msk [vmem:[#allocation3 + $0x18] sm:$0xff] %vm2878_vm6, %v2837_v6 }
 0x1ca   : > { %v3757_v24 = vrot.slane %v3755_v56, 4  ;;  %v3760_v4 = vrot.slane %v3758_v23, 5  ;;  %v3766_v63 = vrot.slane %v3764_v53, 5  ;;  %v3770_v35 = vrot.slane %v3768_v5, 4  ;;  %v3980_v54 = vld [vmem:[#allocation2 + $0xbc] sm:$0x1] }
 0x1cb   : > { %v5122_v59 = vld [vmem:[#allocation2 + $0x54] sm:$0xff]   ;;  %v3776_v21 = vrot.slane %v3774_v26, 5  ;;  %v3158_v61 = vpop.permute.xlu0 %3157  ;;  %v4128_v50 = vrot.slane %v3979_v52, 5  ;;  %v4131_v31 = vrot.slane %v3980_v54, 5  ;;  %v1892_v53 = vld [vmem:[#allocation2 + $0xac] sm:$0xf] }
 0x1cc   : > { %v3761_v51 = vor.u32 %v3760_v4, %v3757_v24  ;;  %v3771_v60 = vor.u32 %v3770_v35, %v3766_v63  ;;  %v3409_v12 = vld [vmem:[#allocation2 + $0x54] sm:$0xf]  ;;  %v3410_v49 = vld [vmem:[#allocation2 + $0x58] sm:$0xf]  ;;  %v3411_v9 = vld [vmem:[#allocation2 + $0x5c] sm:$0x1]  ;;  %3339 = vrot.lane.b32.xlu0 %v5122_v59, %s5407_s7 }
 0x1cd   : > { %v3563_v40 = vshrl.u32 %v3409_v12, 16  ;;  %v3566_v55 = vshll.u32 %v3409_v12, 16  ;;  %v3572_v34 = vshll.u32 %v3410_v49, 16  ;;  %v3576_v28 = vshrl.u32 %v3410_v49, 16  ;;  %v3954_v45 = vld [vmem:[#allocation2 + $0x54] sm:$0xe] }
 0x1ce   : > { %3203 = vst.msk [vmem:[#allocation3 + $0x18] sm:$0xff] %vm3199_vm7, %v3158_v61  ;;  %v3762_v36 = vrot.slane %v3761_v51, 4  ;;  %v3772_v47 = vrot.slane %v3771_v60, 4  ;;  %v3582_v38 = vshll.u32 %v3411_v9, 16  ;;  %v3955_v32 = vld [vmem:[#allocation2 + $0x58] sm:$0xf]  ;;  %v4129_v27 = vsel %vm5687_vm10, %v4825_v48, %v4128_v50 }
 0x1cf   : > { %v3565_v37 = vrot.slane %v3563_v40, 4  ;;  %v3568_v30 = vrot.slane %v3566_v55, 5  ;;  %v3574_v25 = vrot.slane %v3572_v34, 5  ;;  %v3578_v42 = vrot.slane %v3576_v28, 4  ;;  %v3956_v17 = vld [vmem:[#allocation2 + $0x5c] sm:$0x1] }
 0x1d0   : > { %v3767_v10 = vsel %vm5721_vm12, %v3762_v36, %v3766_v63  ;;  %v3777_v39 = vsel %vm5721_vm12, %v3772_v47, %v3776_v21  ;;  %v3584_v14 = vrot.slane %v3582_v38, 5  ;;  %v4130_v57 = vrot.slane %v4128_v50, 4  ;;  %v1867_v35 = vld [vmem:[#allocation2 + $0x48] sm:$0xe]  ;;  %v1868_v59 = vld [vmem:[#allocation2 + $0x4c] sm:$0xf] }
 0x1d1   : > { %v4809_v58 = vcombine.low %v3767_v10, %v3777_v39  ;;  %v3569_v22 = vor.u32 %v3568_v30, %v3565_v37  ;;  %v3579_v0 = vor.u32 %v3578_v42, %v3574_v25  ;;  %v4817_v41 = vrot.slane %v3954_v45, 9  ;;  %v1869_v60 = vld [vmem:[#allocation2 + $0x50] sm:$0x1]  ;;  %v2392_v9 = vld [vmem:[#allocation2 + $0xb4] sm:$0xf]  ;;  %v5138_v54 = vld [vmem:[#allocation2 + $0x48] sm:$0xff]  }
 0x1d2   : > { %v4072_v56 = vrot.slane %v3955_v32, 5  ;;  %v4075_v23 = vrot.slane %v3956_v17, 5  ;;  %v1504_v26 = vrot.slane %v1503_v8, 4  ;;  %v1512_v52 = vrot.slane %v1510_v29, 4  ;;  %v5137_v8 = vld [vmem:[#allocation2 + $0xa8] sm:$0xff]   ;;  %1291 = vst.msk [vmem:[#allocation3 + $0x30] sm:$0xff] %vm7297_vm15, %v5138_v54 }
 0x1d3   : > { %3900 = vrot.lane.b32.xlu1 %v4809_v58, %s5411_s16  ;;  %v3570_v5 = vrot.slane %v3569_v22, 4  ;;  %v3580_v6 = vrot.slane %v3579_v0, 4  ;;  %v4132_v48 = vsel %vm5687_vm10, %v4130_v57, %v4131_v31  ;;  %v1518_v63 = vrot.slane %v1516_v18, 5  ;;  %v2393_v28 = vld [vmem:[#allocation2 + $0xb8] sm:$0xf]  ;;  %1299 = vst.msk [vmem:[#allocation3 + $0x70] sm:$0xff] %vm7297_vm15, %v5137_v8 }
 0x1d4   : > { %v4073_v24 = vsel %vm5687_vm10, %v4817_v41, %v4072_v56  ;;  %v4074_v4 = vrot.slane %v4072_v56, 4  ;;  %v4841_v29 = vcombine.low %v4129_v27, %v4132_v48  ;;  %v1509_v51 = vsel %vm5721_vm12, %v1504_v26, %v6840_v44  ;;  %v2394_v32 = vld [vmem:[#allocation2 + $0xbc] sm:$0x1]  ;;  %v2368_v17 = vld [vmem:[#allocation2 + $0x54] sm:$0xf] }
 0x1d5   : > { %v3575_v21 = vsel %vm5721_vm12, %v3570_v5, %v3574_v25  ;;  %v3585_v13 = vsel %vm5721_vm12, %v3580_v6, %v3584_v14  ;;  %v1513_v33 = vor.u32 %v1512_v52, %v6840_v44  ;;  %v2048_v18 = vrot.slane %v1892_v53, 5  ;;  %v2369_v10 = vld [vmem:[#allocation2 + $0x58] sm:$0xf]  ;;  %v2370_v0 = vld [vmem:[#allocation2 + $0x5c] sm:$0x1] }
 0x1d6   : > { %v4801_v12 = vcombine.low %v3575_v21, %v3585_v13  ;;  %v4076_v49 = vsel %vm5687_vm10, %v4074_v4, %v4075_v23  ;;  %v2051_v40 = vrot.slane %v1893_v7, 5  ;;  %v4690_v55 = vrot.slane %v1867_v35, 9  ;;  %v3352_v39 = vpop.permute.xlu1 %3351  ;;  %v2937_v52 = vld [vmem:[#allocation2 + $0xb4] sm:$0xe]  ;;  %v2939_v35 = vld [vmem:[#allocation2 + $0xbc] sm:$0x1] }
 0x1d7   : > { %4221 = vrot.lane.b32.xlu1 %v4841_v29, %s5409_s8  ;;  %v4833_v61 = vcombine.low %v4073_v24, %v4076_v49  ;;  %v1992_v34 = vrot.slane %v1868_v59, 5  ;;  %v1514_v45 = vrot.slane %v1513_v33, 4  ;;  %v2049_v36 = vsel %vm5687_vm10, %v4698_v46, %v2048_v18 }
 0x1d8   : > { %3884 = vrot.lane.b32.xlu0 %v4801_v12, %s5411_s16  ;;  %v2050_v44 = vrot.slane %v2048_v18, 4  ;;  %v1995_v47 = vrot.slane %v1869_v60, 5  ;;  %v2735_v37 = vshrl.u32 %v2392_v9, 16  ;;  %v2738_v30 = vshll.u32 %v2392_v9, 16  ;;  %v3336_v57 = vpop.permute.xlu0 %3335  ;;  %v2914_v18 = vld [vmem:[#allocation2 + $0x58] sm:$0xf] }
 0x1d9   : > { %v6889_v38 = vsel %vm5687_vm10, %v4690_v55, %v1992_v34  ;;  %v1994_v50 = vrot.slane %v1992_v34, 4  ;;  %v1519_v3 = vsel %vm5721_vm12, %v1514_v45, %v1518_v63  ;;  %v2744_v25 = vshll.u32 %v2393_v28, 16  ;;  %v2938_v63 = vld [vmem:[#allocation2 + $0xb8] sm:$0xf]  ;;  %v577_v9 = vld [vmem:[#allocation2 + $0xc0] sm:$0x1] }
 0x1da   : > { %v2052_v46 = vsel %vm5687_vm10, %v2050_v44, %v2051_v40  ;;  %v2748_v42 = vshrl.u32 %v2393_v28, 16  ;;  %v4674_v14 = vcombine.low %v1509_v51, %v1519_v3  ;;  %v2737_v22 = vrot.slane %v2735_v37, 4  ;;  %v2913_v51 = vld [vmem:[#allocation2 + $0x54] sm:$0xe]  ;;  %v2915_v34 = vld [vmem:[#allocation2 + $0x5c] sm:$0x1] }
 0x1db   : > { %1812 = vrot.lane.b32.xlu1 %v6849_v43, %s5405_s29  ;;  %v4714_v27 = vcombine.low %v2049_v36, %v2052_v46  ;;  %v1996_v58 = vsel %vm5687_vm10, %v1994_v50, %v1995_v47  ;;  %vm7327_vm8 = vcmask 458112   ;;  %v2740_v41 = vrot.slane %v2738_v30, 5  ;;  %v5123_v43 = vld [vmem:[#allocation2 + $0xb4] sm:$0xff]   ;;  %v633_v44 = vld [vmem:[#allocation2 + $0xc8] sm:$0x1] }
 0x1dc   : > { %3389 = vst.msk [vmem:[#allocation3 + $0x58] sm:$0xff] %vm7327_vm8, %v3352_v39  ;;  %4205 = vrot.lane.b32.xlu0 %v4833_v61, %s5409_s8  ;;  %v4706_v31 = vcombine.low %v6889_v38, %v1996_v58  ;;  %v2746_v56 = vrot.slane %v2744_v25, 5  ;;  %v2750_v23 = vrot.slane %v2748_v42, 4  ;;  %vm7328_vm15 = vmmov %vm7327_vm8  ;;  %v2754_v53 = vshll.u32 %v2394_v32, 16  ;;  %v5124_v37 = vld [vmem:[#allocation2 + $0x54] sm:$0xff]  }
 0x1dd   : > { %3381 = vst.msk [vmem:[#allocation3 + $0x18] sm:$0xff] %vm7328_vm15, %v3336_v57  ;;  %v2543_v5 = vshrl.u32 %v2368_v17, 16  ;;  %v2546_v6 = vshll.u32 %v2368_v17, 16  ;;  %v2552_v26 = vshll.u32 %v2369_v10, 16  ;;  %v2741_v7 = vor.u32 %v2740_v41, %v2737_v22 }
 0x1de   : > { %v2751_v48 = vor.u32 %v2750_v23, %v2746_v56  ;;  %v2556_v24 = vshrl.u32 %v2369_v10, 16  ;;  %v2562_v4 = vshll.u32 %v2370_v0, 16  ;;  %v2756_v59 = vrot.slane %v2754_v53, 5  ;;  %v3414_v23 = vld [vmem:[#allocation2 + $0x68] sm:$0x1] }
 0x1df   : > { %2136 = vrot.lane.b32.xlu1 %v4714_v27, %s5404_s27  ;;  %v2545_v21 = vrot.slane %v2543_v5, 4  ;;  %v2548_v13 = vrot.slane %v2546_v6, 5  ;;  %v2554_v29 = vrot.slane %v2552_v26, 5  ;;  %v2742_v60 = vrot.slane %v2741_v7, 4  ;;  %v3413_v27 = vld [vmem:[#allocation2 + $0x64] sm:$0xf] }
 0x1e0   : > { %1796 = vrot.lane.b32.xlu0 %v4674_v14, %s5405_s29  ;;  %v2752_v12 = vrot.slane %v2751_v48, 4  ;;  %v2558_v49 = vrot.slane %v2556_v24, 4  ;;  %v2564_v33 = vrot.slane %v2562_v4, 5  ;;  %v4762_v61 = vrot.slane %v2937_v52, 9  ;;  %v3412_v14 = vld [vmem:[#allocation2 + $0x60] sm:$0xf] }
 0x1e1   : > { %v2549_v8 = vor.u32 %v2548_v13, %v2545_v21  ;;  %v3091_v40 = vrot.slane %v2938_v63, 5  ;;  %v3094_v55 = vrot.slane %v2939_v35, 5  ;;  %v2747_v28 = vsel %vm5721_vm12, %v2742_v60, %v2746_v56  ;;  %v3957_v26 = vld [vmem:[#allocation2 + $0x60] sm:$0xe]  ;;  %v4263_v63 = vld [vmem:[#allocation3 + $0x10] sm:$0xff] }
 0x1e2   : > { %v2757_v54 = vsel %vm5721_vm12, %v2752_v12, %v2756_v59  ;;  %v2559_v45 = vor.u32 %v2558_v49, %v2554_v29  ;;  %v4754_v36 = vrot.slane %v2913_v51, 9  ;;  %v3035_v3 = vrot.slane %v2914_v18, 5  ;;  %v3897_v58 = vpop.permute.xlu1 %3896  ;;  %v3958_v35 = vld [vmem:[#allocation2 + $0x64] sm:$0xf] }
 0x1e3   : > { %2313 = vrot.lane.b32.xlu1 %v5123_v43, %s5406_s20  ;;  %v4746_v47 = vcombine.low %v2747_v28, %v2757_v54  ;;  %v2550_v38 = vrot.slane %v2549_v8, 4  ;;  %v3092_v50 = vsel %vm5687_vm10, %v4762_v61, %v3091_v40  ;;  %v3093_v32 = vrot.slane %v3091_v40, 4  ;;  %3934 = vst.msk [vmem:[#allocation3 + $0x58] sm:$0xff] %vm3922_vm9, %v3897_v58  ;;  %v3959_v8 = vld [vmem:[#allocation2 + $0x68] sm:$0x1] }
 0x1e4   : > { %2120 = vrot.lane.b32.xlu0 %v4706_v31, %s5404_s27  ;;  %v2560_v30 = vrot.slane %v2559_v45, 4  ;;  %v3038_v46 = vrot.slane %v2915_v34, 5  ;;  %v499_v25 = vmax.f32 %v6844_v20, 0.0  ;;  %v500_v10 = vmax.f32 %v6847_v15, 0.0 }
 0x1e5   : > { %v2555_v42 = vsel %vm5721_vm12, %v2550_v38, %v2554_v29  ;;  %v3095_v17 = vsel %vm5687_vm10, %v3093_v32, %v3094_v55  ;;  %v578_v39 = vsel %vm5667_vm4, 0, %v577_v9  ;;  %v3036_v20 = vsel %vm5687_vm10, %v4754_v36, %v3035_v3  ;;  %v1347_v32 = vld [vmem:[#allocation2 + $0xb8] sm:$0xf] }
 0x1e6   : > { %v2565_v22 = vsel %vm5721_vm12, %v2560_v30, %v2564_v33  ;;  %v4778_v0 = vcombine.low %v3092_v50, %v3095_v17  ;;  %v3037_v57 = vrot.slane %v3035_v3, 4  ;;  %579 = vst [vmem:[#allocation2 + $0xc0] sm:$0x1] %v578_v39  ;;  %v4886_v31 = vpack.c.bf16 %v499_v25, %v499_v25  ;;  %v3881_v52 = vpop.permute.xlu0 %3880  ;;  %v4218_v59 = vpop.permute.xlu1 %4217  ;;  %v5128_v17 = vld [vmem:[#allocation2 + $0x60] sm:$0xff]  }
 0x1e7   : > { %2858 = vrot.lane.b32.xlu1 %v4746_v47, %s5410_s11  ;;  %v4738_v15 = vcombine.low %v2555_v42, %v2565_v22  ;;  %v4887_v41 = vpack.c.bf16 %v500_v10, %v500_v10  ;;  %v634_v56 = vsel %vm5672_vm5, 0, %v633_v44  ;;  %v3587_v53 = vshrl.u32 %v3412_v14, 16  ;;  %3926 = vst.msk [vmem:[#allocation3 + $0x18] sm:$0xff] %vm3922_vm9, %v3881_v52  ;;  %v1346_v44 = vld [vmem:[#allocation2 + $0xb4] sm:$0xf] }
 0x1e8   : > { %2297 = vrot.lane.b32.xlu0 %v5124_v37, %s5406_s20  ;;  %v3039_v43 = vsel %vm5687_vm10, %v3037_v57, %v3038_v46  ;;  %635 = vst [vmem:[#allocation2 + $0xc8] sm:$0x1] %v634_v56  ;;  %v3590_v5 = vshll.u32 %v3412_v14, 16  ;;  %v3596_v6 = vshll.u32 %v3413_v27, 16  ;;  %v977_v48 = vshrl.u32 %v4886_v31, 16 }
 0x1e9   : > { %v4770_v7 = vcombine.low %v3036_v20, %v3039_v43  ;;  %v980_v24 = vshll.u32 %v4886_v31, 16  ;;  %v985_v4 = vshrl.u32 %v4887_v41, 16  ;;  %v988_v21 = vshll.u32 %v4887_v41, 16  ;;  %v1348_v42 = vld [vmem:[#allocation2 + $0xbc] sm:$0x1] }
 0x1ea   : > { %v3589_v13 = vrot.slane %v3587_v53, 4  ;;  %v3592_v29 = vrot.slane %v3590_v5, 5  ;;  %v6934_v51 = vrot.slane %v3596_v6, 5  ;;  %vm7329_vm15 = vcmask 589312   ;;  %v4202_v55 = vpop.permute.xlu0 %4201  ;;  %v1809_v47 = vpop.permute.xlu1 %1808  ;;  %v6955_v57 = vld [vmem:[#allocation2 + $0x58] sm:$0xf] }
 0x1eb   : > { %4255 = vst.msk [vmem:[#allocation3 + $0x58] sm:$0xff] %vm7329_vm15, %v4218_v59  ;;  %3179 = vrot.lane.b32.xlu1 %v4778_v0, %s5408_s30  ;;  %v979_v60 = vrot.slane %v977_v48, 7  ;;  %v987_v12 = vrot.slane %v985_v4, 7  ;;  %v3600_v49 = vshrl.u32 %v3413_v27, 16  ;;  %v3606_v33 = vshll.u32 %v3414_v23, 16  ;;  %vm7330_vm8 = vmmov %vm7329_vm15 }
 0x1ec   : > { %2842 = vrot.lane.b32.xlu0 %v4738_v15, %s5410_s11  ;;  %v3593_v18 = vor.u32 %v3592_v29, %v3589_v13  ;;  %v4288_v9 = vsel %vm4277_vm11, %v4263_v63, 0  ;;  %v4818_v61 = vrot.slane %v3957_v26, 9  ;;  %v4079_v40 = vrot.slane %v3958_v35, 5  ;;  %4247 = vst.msk [vmem:[#allocation3 + $0x18] sm:$0xff] %vm7330_vm8, %v4202_v55  ;;  %v1322_v27 = vld [vmem:[#allocation2 + $0x54] sm:$0xf] }
 0x1ed   : > { %v982_v34 = vor.u32 %v980_v24, %v979_v60  ;;  %v983_v28 = vrot.slane %v979_v60, 4  ;;  %v990_v54 = vor.u32 %v988_v21, %v987_v12  ;;  %v992_v45 = vrot.slane %v987_v12, 4  ;;  %v1149_v36 = vld [vmem:[#allocation2 + $0xc0] sm:$0xf]  ;;  %4974 = vmatpush3.bf16.xpose.msra.mxu0 %v4288_v9  ;;  %1845 = vst.msk [vmem:[#allocation3 + $0x60] sm:$0xff] %vm1832_vm1, %v1809_v47 }
 0x1ee   : > { %v3594_v38 = vrot.slane %v3593_v18, 4  ;;  %v3602_v50 = vrot.slane %v3600_v49, 4  ;;  %v4081_v46 = vrot.slane %v4079_v40, 4  ;;  %v4082_v25 = vrot.slane %v3959_v8, 5  ;;  %v1793_v11 = vpop.permute.xlu0 %1792  ;;  %v2133_v15 = vpop.permute.xlu1 %2132  ;;  %v6967_v26 = vld [vmem:[#allocation2 + $0x5c] sm:$0x1] }
 0x1ef   : > { %v991_v37 = vsel %vm5739_vm14, %v983_v28, %v990_v54  ;;  %v1150_v30 = vsel %vm5729_vm13, %v982_v34, %v1149_v36  ;;  %v1153_v3 = vld [vmem:[#allocation2 + $0xc8] sm:$0x1]  ;;  %v3608_v19 = vrot.slane %v3606_v33, 5  ;;  %v1713_v14 = vshrl.u32 %v1346_v44, 16  ;;  %1837 = vst.msk [vmem:[#allocation3 + $0x20] sm:$0xff] %vm1832_vm1, %v1793_v11 }
 0x1f0   : > { %3163 = vrot.lane.b32.xlu0 %v4770_v7, %s5408_s30  ;;  %1151 = vst [vmem:[#allocation2 + $0xc0] sm:$0xf] %v1150_v30  ;;  %1152 = vst.msk [vmem:[#allocation2 + $0xc4] sm:$0xf] %vm517_vm0, %v991_v37  ;;  %v1154_v10 = vsel %vm5667_vm4, %v992_v45, %v1153_v3  ;;  %v3603_v39 = vor.u32 %v3602_v50, %v6934_v51  ;;  %v6953_v58 = vsel %vm5687_vm10, %v4818_v61, %v4079_v40  ;;  %vm7331_vm0 = vcmask 64512  }
 0x1f1   : > { %1155 = vst [vmem:[#allocation2 + $0xc8] sm:$0x1] %v1154_v10  ;;  %v1716_v22 = vshll.u32 %v1346_v44, 16  ;;  %v1722_v0 = vshll.u32 %v1347_v32, 16  ;;  %v1726_v20 = vshrl.u32 %v1347_v32, 16  ;;  %v3599_v41 = vsel %vm5721_vm12, %v3594_v38, %v6934_v51  ;;  %2169 = vst.msk [vmem:[#allocation3 + $0x60] sm:$0xff] %vm2156_vm2, %v2133_v15 }
 0x1f2   : > { %v4272_v31 = vld [vmem:[#allocation3 + $0x58] sm:$0xff]  ;;  %v3604_v56 = vrot.slane %v3603_v39, 4  ;;  %v1715_v23 = vrot.slane %v1713_v14, 4  ;;  %v1732_v43 = vshll.u32 %v1348_v42, 16  ;;  %v4083_v53 = vsel %vm5687_vm10, %v4081_v46, %v4082_v25  ;;  %v2117_v63 = vpop.permute.xlu0 %2116  ;;  %v2310_v29 = vpop.permute.xlu1 %2309  ;;  %v1895_v39 = vld [vmem:[#allocation2 + $0xb8] sm:$0xf]  ;;  %vm7332_vm13 = vmmov %vm7331_vm0 }
 0x1f3   : > { %4990 = vmatprep.subr.msk.bf16.mxu0 %vm4277_vm11, %v4272_v31  ;;  %v1718_v5 = vrot.slane %v1716_v22, 5  ;;  %v6965_v6 = vrot.slane %v1722_v0, 5  ;;  %v1521_v52 = vshrl.u32 %v1322_v27, 16  ;;  %v1728_v48 = vrot.slane %v1726_v20, 4  ;;  %2161 = vst.msk [vmem:[#allocation3 + $0x20] sm:$0xff] %vm2156_vm2, %v2117_v63  ;;  %v4264_v1 = vld [vmem:[#allocation3 + $0x18] sm:$0xff] }
 0x1f4   : > { %3341 = vrot.lane.b32.xlu0 %v5128_v17, %s5407_s7  ;;  %v3609_v7 = vsel %vm5721_vm12, %v3604_v56, %v3608_v19  ;;  %v1524_v24 = vshll.u32 %v1322_v27, 16  ;;  %v1530_v4 = vshll.u32 %v6955_v57, 16  ;;  %v1734_v21 = vrot.slane %v1732_v43, 5  ;;  %2346 = vst.msk [vmem:[#allocation3 + $0x60] sm:$0xff] %vm2333_vm3, %v2310_v29  ;;  %v1894_v10 = vld [vmem:[#allocation2 + $0xb4] sm:$0xe] }
 0x1f5   : > { %v4802_v35 = vcombine.low %v3599_v41, %v3609_v7  ;;  %v1719_v59 = vor.u32 %v1718_v5, %v1715_v23  ;;  %v1523_v13 = vrot.slane %v1521_v52, 4  ;;  %v1534_v12 = vshrl.u32 %v6955_v57, 16  ;;  %v1896_v15 = vld [vmem:[#allocation2 + $0xbc] sm:$0x1]  ;;  %v5139_v41 = vld [vmem:[#allocation2 + $0xb4] sm:$0xff]  }
 0x1f6   : > { %v1526_v51 = vrot.slane %v1524_v24, 5  ;;  %v6974_v60 = vrot.slane %v1530_v4, 5  ;;  %v1540_v49 = vshll.u32 %v6967_v26, 16  ;;  %v4834_v40 = vcombine.low %v6953_v58, %v4083_v53  ;;  %v2294_v28 = vpop.permute.xlu0 %2293  ;;  %v2855_v38 = vpop.permute.xlu1 %2854  ;;  %v1870_v53 = vld [vmem:[#allocation2 + $0x54] sm:$0xe]  ;;  %1300 = vst.msk [vmem:[#allocation3 + $0x78] sm:$0xff] %vm7331_vm0, %v5139_v41 }
 0x1f7   : > { %v5127_v33 = vld [vmem:[#allocation2 + $0xc0] sm:$0xff]   ;;  %v1720_v18 = vrot.slane %v1719_v59, 4  ;;  %v1729_v55 = vor.u32 %v1728_v48, %v6965_v6  ;;  %2338 = vst.msk [vmem:[#allocation3 + $0x20] sm:$0xff] %vm2333_vm3, %v2294_v28  ;;  %v1536_v57 = vrot.slane %v1534_v12, 4  ;;  %v1871_v5 = vld [vmem:[#allocation2 + $0x58] sm:$0xf] }
 0x1f8   : > { %v3436_v9 = vld [vmem:[#allocation2 + $0xc0] sm:$0xf]  ;;  %v3437_v8 = vld [vmem:[#allocation2 + $0xc4] sm:$0xf]  ;;  %v3438_v61 = vld [vmem:[#allocation2 + $0xc8] sm:$0x1]  ;;  %3886 = vrot.lane.b32.xlu0 %v4802_v35, %s5411_s16  ;;  %v1527_v34 = vor.u32 %v1526_v51, %v1523_v13  ;;  %3357 = vrot.lane.b32.xlu1 %v5127_v33, %s5407_s7 }
 0x1f9   : > { %v3779_v54 = vshrl.u32 %v3436_v9, 16  ;;  %v3782_v45 = vshll.u32 %v3436_v9, 16  ;;  %v3788_v36 = vshll.u32 %v3437_v8, 16  ;;  %v3792_v44 = vshrl.u32 %v3437_v8, 16  ;;  %v3981_v47 = vld [vmem:[#allocation2 + $0xc0] sm:$0xe] }
 0x1fa   : > { %v3798_v50 = vshll.u32 %v3438_v61, 16  ;;  %v3982_v32 = vld [vmem:[#allocation2 + $0xc4] sm:$0xf]  ;;  %v3983_v37 = vld [vmem:[#allocation2 + $0xc8] sm:$0x1]  ;;  %v4826_v30 = vrot.slane %v3981_v47, 9  ;;  %v1725_v3 = vsel %vm5721_vm12, %v1720_v18, %v6965_v6  ;;  %v2839_v58 = vpop.permute.xlu0 %2838  ;;  %v3176_v31 = vpop.permute.xlu1 %3175  ;;  %v1537_v4 = vor.u32 %v1536_v57, %v6974_v60 }
 0x1fb   : > { %2891 = vst.msk [vmem:[#allocation3 + $0x60] sm:$0xff] %vm2878_vm6, %v2855_v38  ;;  %v3781_v46 = vrot.slane %v3779_v54, 4  ;;  %v3784_v25 = vrot.slane %v3782_v45, 5  ;;  %v3790_v42 = vrot.slane %v3788_v36, 5  ;;  %v3794_v17 = vrot.slane %v3792_v44, 4  ;;  %2883 = vst.msk [vmem:[#allocation3 + $0x20] sm:$0xff] %vm2878_vm6, %v2839_v58 }
 0x1fc   : > { %v3800_v19 = vrot.slane %v3798_v50, 5  ;;  %v4135_v14 = vrot.slane %v3982_v32, 5  ;;  %v4138_v27 = vrot.slane %v3983_v37, 5  ;;  %4207 = vrot.lane.b32.xlu0 %v4834_v40, %s5409_s8  ;;  %v1730_v11 = vrot.slane %v1729_v55, 4  ;;  %3212 = vst.msk [vmem:[#allocation3 + $0x60] sm:$0xff] %vm3199_vm7, %v3176_v31  ;;  %v5140_v13 = vld [vmem:[#allocation2 + $0x54] sm:$0xff]  }
 0x1fd   : > { %v3785_v22 = vor.u32 %v3784_v25, %v3781_v46  ;;  %v3795_v0 = vor.u32 %v3794_v17, %v3790_v42  ;;  %v1528_v20 = vrot.slane %v1527_v34, 4  ;;  %v1542_v7 = vrot.slane %v1540_v49, 5  ;;  %v1872_v48 = vld [vmem:[#allocation2 + $0x5c] sm:$0x1]  ;;  %v2395_v59 = vld [vmem:[#allocation2 + $0xc0] sm:$0xf] }
 0x1fe   : > { %v4136_v56 = vsel %vm5687_vm10, %v4826_v30, %v4135_v14  ;;  %v4137_v23 = vrot.slane %v4135_v14, 4  ;;  %v1735_v43 = vsel %vm5721_vm12, %v1730_v11, %v1734_v21  ;;  %v4699_v63 = vrot.slane %v1894_v10, 9  ;;  %v3160_v21 = vpop.permute.xlu0 %3159  ;;  %v2396_v33 = vld [vmem:[#allocation2 + $0xc4] sm:$0xf]  ;;  %1292 = vst.msk [vmem:[#allocation3 + $0x38] sm:$0xff] %vm7332_vm13, %v5140_v13 }
 0x1ff   : > { %v3786_v6 = vrot.slane %v3785_v22, 4  ;;  %v3796_v26 = vrot.slane %v3795_v0, 4  ;;  %v6995_v52 = vcombine.low %v1725_v3, %v1735_v43  ;;  %v2055_v35 = vrot.slane %v1895_v39, 5  ;;  %3204 = vst.msk [vmem:[#allocation3 + $0x20] sm:$0xff] %vm3199_vm7, %v3160_v21  ;;  %v2397_v45 = vld [vmem:[#allocation2 + $0xc8] sm:$0x1] }
 0x200   : > { %v4139_v24 = vsel %vm5687_vm10, %v4137_v23, %v4138_v27  ;;  %v1533_v12 = vsel %vm5721_vm12, %v1528_v20, %v6974_v60  ;;  %v2058_v49 = vrot.slane %v1896_v15, 5  ;;  %v1538_v8 = vrot.slane %v1537_v4, 4  ;;  %v2371_v47 = vld [vmem:[#allocation2 + $0x60] sm:$0xf]  ;;  %v2372_v30 = vld [vmem:[#allocation2 + $0x64] sm:$0xf] }
 0x201   : > { %v3791_v29 = vsel %vm5721_vm12, %v3786_v6, %v3790_v42  ;;  %v3801_v51 = vsel %vm5721_vm12, %v3796_v26, %v3800_v19  ;;  %v4842_v9 = vcombine.low %v4136_v56, %v4139_v24  ;;  %v2057_v61 = vrot.slane %v2055_v35, 4  ;;  %v2373_v39 = vld [vmem:[#allocation2 + $0x68] sm:$0x1]  ;;  %v7027_v0 = vld [vmem:[#allocation2 + $0xc4] sm:$0xf] }
 0x202   : > { %v4810_v18 = vcombine.low %v3791_v29, %v3801_v51  ;;  %v4691_v40 = vrot.slane %v1870_v53, 9  ;;  %v1999_v55 = vrot.slane %v1871_v5, 5  ;;  %v2002_v34 = vrot.slane %v1872_v48, 5  ;;  %v7029_v56 = vld [vmem:[#allocation2 + $0xc0] sm:$0xe] }
 0x203   : > { %v2759_v28 = vshrl.u32 %v2395_v59, 16  ;;  %v1543_v54 = vsel %vm5721_vm12, %v1538_v8, %v1542_v7  ;;  %v7015_v60 = vsel %vm5687_vm10, %v4699_v63, %v2055_v35  ;;  %v2762_v36 = vshll.u32 %v2395_v59, 16  ;;  %v5130_v23 = vld [vmem:[#allocation2 + $0x60] sm:$0xff]   ;;  %v2918_v63 = vld [vmem:[#allocation2 + $0x68] sm:$0x1] }
 0x204   : > { %3902 = vrot.lane.b32.xlu1 %v4810_v18, %s5411_s16  ;;  %v2768_v44 = vshll.u32 %v2396_v33, 16  ;;  %v4675_v38 = vcombine.low %v1533_v12, %v1543_v54  ;;  %v7019_v50 = vsel %vm5687_vm10, %v2057_v61, %v2058_v49  ;;  %v2000_v32 = vsel %vm5687_vm10, %v4691_v40, %v1999_v55  ;;  %v2916_v26 = vld [vmem:[#allocation2 + $0x60] sm:$0xe]  ;;  %v2917_v4 = vld [vmem:[#allocation2 + $0x64] sm:$0xf] }
 0x205   : > { %v2001_v37 = vrot.slane %v1999_v55, 4  ;;  %v2761_v3 = vrot.slane %v2759_v28, 4  ;;  %v2764_v46 = vrot.slane %v2762_v36, 5  ;;  %v2772_v42 = vshrl.u32 %v2396_v33, 16  ;;  %v2942_v21 = vld [vmem:[#allocation2 + $0xc8] sm:$0x1] }
 0x206   : > { %v2770_v25 = vrot.slane %v2768_v44, 5  ;;  %1798 = vrot.lane.b32.xlu0 %v4675_v38, %s5405_s29  ;;  %v2778_v10 = vshll.u32 %v2397_v45, 16  ;;  %v2567_v19 = vshrl.u32 %v2371_v47, 16  ;;  %v2570_v14 = vshll.u32 %v2371_v47, 16  ;;  %v580_v33 = vld [vmem:[#allocation2 + $0xcc] sm:$0x1] }
 0x207   : > { %v2003_v17 = vsel %vm5687_vm10, %v2001_v37, %v2002_v34  ;;  %v2765_v11 = vor.u32 %v2764_v46, %v2761_v3  ;;  %v2774_v58 = vrot.slane %v2772_v42, 4  ;;  %v2576_v22 = vshll.u32 %v2372_v30, 16  ;;  %v3354_v20 = vpop.permute.xlu1 %3353  ;;  %v636_v18 = vld [vmem:[#allocation2 + $0xd4] sm:$0x1]  ;;  %v3440_v55 = vld [vmem:[#allocation2 + $0xd0] sm:$0xf] }
 0x208   : > { %4223 = vrot.lane.b32.xlu1 %v4842_v9, %s5409_s8  ;;  %v4707_v27 = vcombine.low %v2000_v32, %v2003_v17  ;;  %v2780_v57 = vrot.slane %v2778_v10, 5  ;;  %v2569_v15 = vrot.slane %v2567_v19, 4  ;;  %v2572_v31 = vrot.slane %v2570_v14, 5  ;;  %v3415_v45 = vld [vmem:[#allocation2 + $0x6c] sm:$0xf]  ;;  %v5129_v36 = vld [vmem:[#allocation2 + $0xc0] sm:$0xff]  }
 0x209   : > { %v2580_v41 = vshrl.u32 %v2372_v30, 16  ;;  %vm7333_vm14 = vcmask 458112   ;;  %v2766_v43 = vrot.slane %v2765_v11, 4  ;;  %v2775_v53 = vor.u32 %v2774_v58, %v2770_v25  ;;  %v3416_v32 = vld [vmem:[#allocation2 + $0x70] sm:$0xf] }
 0x20a   : > { %3390 = vst.msk [vmem:[#allocation3 + $0x60] sm:$0xff] %vm7333_vm14, %v3354_v20  ;;  %v2578_v5 = vrot.slane %v2576_v22, 5  ;;  %v2586_v6 = vshll.u32 %v2373_v39, 16  ;;  %2122 = vrot.lane.b32.xlu0 %v4707_v27, %s5404_s27  ;;  %v2573_v7 = vor.u32 %v2572_v31, %v2569_v15  ;;  %v3098_v24 = vrot.slane %v7027_v0, 5  ;;  %v3338_v9 = vpop.permute.xlu0 %3337  ;;  %vm7334_vm15 = vmmov %vm7333_vm14  ;;  %v7060_v22 = vld [vmem:[#allocation2 + $0xd0] sm:$0xf] }
 0x20b   : > { %v2582_v48 = vrot.slane %v2580_v41, 4  ;;  %v4715_v35 = vcombine.low %v7015_v60, %v7019_v50  ;;  %v2776_v59 = vrot.slane %v2775_v53, 4  ;;  %v4763_v13 = vrot.slane %v7029_v56, 9  ;;  %3382 = vst.msk [vmem:[#allocation3 + $0x20] sm:$0xff] %vm7334_vm15, %v3338_v9  ;;  %v3961_v15 = vld [vmem:[#allocation2 + $0x70] sm:$0xf] }
 0x20c   : > { %1814 = vrot.lane.b32.xlu1 %v6995_v52, %s5405_s29  ;;  %v2771_v29 = vsel %vm5721_vm12, %v2766_v43, %v2770_v25  ;;  %v2574_v51 = vrot.slane %v2573_v7, 4  ;;  %v2588_v49 = vrot.slane %v2586_v6, 5  ;;  %v4755_v52 = vrot.slane %v2916_v26, 9  ;;  %v3417_v25 = vld [vmem:[#allocation2 + $0x74] sm:$0x1]  ;;  %v5134_v7 = vld [vmem:[#allocation2 + $0x6c] sm:$0xff]  }
 0x20d   : > { %v2583_v12 = vor.u32 %v2582_v48, %v2578_v5  ;;  %v2781_v8 = vsel %vm5721_vm12, %v2776_v59, %v2780_v57  ;;  %v3042_v61 = vrot.slane %v2917_v4, 5  ;;  %v3045_v40 = vrot.slane %v2918_v63, 5  ;;  %v3960_v43 = vld [vmem:[#allocation2 + $0x6c] sm:$0xe]  ;;  %v3962_v6 = vld [vmem:[#allocation2 + $0x74] sm:$0x1] }
 0x20e   : > { %2299 = vrot.lane.b32.xlu0 %v5130_v23, %s5406_s20  ;;  %v2579_v34 = vsel %vm5721_vm12, %v2574_v51, %v2578_v5  ;;  %v3100_v54 = vrot.slane %v3098_v24, 4  ;;  %v3101_v60 = vrot.slane %v2942_v21, 5  ;;  %v4747_v44 = vcombine.low %v2771_v29, %v2781_v8  ;;  %v3984_v63 = vld [vmem:[#allocation2 + $0xcc] sm:$0xe]  ;;  %s4415_s29 = sshll.u32 %s311_s12, 4  ;;  %s4416_s29 = int_to_ptr.vmem [resolvable:$true] %s4415_s29 }
 0x20f   : > { %v2584_v28 = vrot.slane %v2583_v12, 4  ;;  %v3043_v47 = vsel %vm5687_vm10, %v4755_v52, %v3042_v61  ;;  %v3044_v38 = vrot.slane %v3042_v61, 4  ;;  %v581_v50 = vsel %vm5667_vm4, 0, %v580_v33  ;;  %vm7335_vm4 = vmmov %vm7330_vm8 }
 0x210   : > { %2138 = vrot.lane.b32.xlu1 %v4715_v35, %s5404_s27  ;;  %582 = vst [vmem:[#allocation2 + $0xcc] sm:$0x1] %v581_v50  ;;  %v637_v30 = vsel %vm5672_vm5, 0, %v636_v18  ;;  %v3812_v3 = vshll.u32 %v3440_v55, 16  ;;  %v3816_v46 = vshrl.u32 %v3440_v55, 16  ;;  %v3611_v10 = vshrl.u32 %v3415_v45, 16  ;;  %vm7336_vm5 = vmmov %vm7335_vm4  ;;  %s7174_s27 = scalar_lea.hbm %s7289_s4, %s7168_s19 }
 0x211   : > { %v2589_v37 = vsel %vm5721_vm12, %v2584_v28, %v2588_v49  ;;  %v3046_v17 = vsel %vm5687_vm10, %v3044_v38, %v3045_v40  ;;  %638 = vst [vmem:[#allocation2 + $0xd4] sm:$0x1] %v637_v30  ;;  %v3614_v39 = vshll.u32 %v3415_v45, 16  ;;  %v3620_v58 = vshll.u32 %v3416_v32, 16  ;;  %vm7339_vm8 = vmmov %vm7335_vm4 }
 0x212   : > { %v4739_v42 = vcombine.low %v2579_v34, %v2589_v37  ;;  %v3899_v19 = vpop.permute.xlu1 %3898  ;;  %v4771_v14 = vcombine.low %v3043_v47, %v3046_v17  ;;  %v7058_v27 = vrot.slane %v3812_v3, 5  ;;  %v3818_v11 = vrot.slane %v3816_v46, 4  ;;  %vm7340_vm0 = vmmov %vm7335_vm4 }
 0x213   : > { %3935 = vst.msk [vmem:[#allocation3 + $0x60] sm:$0xff] %vm3922_vm9, %v3899_v19  ;;  %v3613_v2 = vrot.slane %v3611_v10, 4  ;;  %v3616_v0 = vrot.slane %v3614_v39, 5  ;;  %v3624_v20 = vshrl.u32 %v3416_v32, 16  ;;  %v3630_v57 = vshll.u32 %v3417_v25, 16  ;;  %vm7343_vm15 = vmmov %vm7340_vm0 }
 0x214   : > { %2315 = vrot.lane.b32.xlu1 %v5129_v36, %s5406_s20  ;;  %2844 = vrot.lane.b32.xlu0 %v4739_v42, %s5410_s11  ;;  %v3099_v31 = vsel %vm5687_vm10, %v4763_v13, %v3098_v24  ;;  %v3102_v41 = vsel %vm5687_vm10, %v3100_v54, %v3101_v60  ;;  %v3622_v56 = vrot.slane %v3620_v58, 5  ;;  %v4291_v23 = vsel %vm4277_vm11, %v4264_v1, 0  ;;  %s4391_s20 = scalar_lea.sflag [#allocation6], %s5644_s17 }
 0x215   : > { %v3617_v53 = vor.u32 %v3616_v0, %v3613_v2  ;;  %v3626_v5 = vrot.slane %v3624_v20, 4  ;;  %4976 = vmatpush3.bf16.xpose.msra.mxu0 %v4291_v23  ;;  %v3819_v48 = vor.u32 %v3818_v11, %v7058_v27  ;;  %v3632_v4 = vrot.slane %v3630_v57, 5 }
 0x216   : > { %v4220_v26 = vpop.permute.xlu1 %4219  ;;  %v4142_v35 = vrot.slane %v7060_v22, 5  ;;  %v4086_v24 = vrot.slane %v3961_v15, 5  ;;  %v3883_v59 = vpop.permute.xlu0 %3882  ;;  %v4779_v21 = vcombine.low %v3099_v31, %v3102_v41  ;;  %v4819_v12 = vrot.slane %v3960_v43, 9 }
 0x217   : > { %4256 = vst.msk [vmem:[#allocation3 + $0x60] sm:$0xff] %vm7335_vm4, %v4220_v26  ;;  %v3439_v13 = vld [vmem:[#allocation2 + $0xcc] sm:$0xf]  ;;  %v3618_v29 = vrot.slane %v3617_v53, 4  ;;  %v3627_v51 = vor.u32 %v3626_v5, %v3622_v56  ;;  %v4089_v9 = vrot.slane %v3962_v6, 5  ;;  %v4827_v55 = vrot.slane %v3984_v63, 9  ;;  %vm7344_vm4 = vmmov %vm7340_vm0 }
 0x218   : > { %2860 = vrot.lane.b32.xlu1 %v4747_v44, %s5410_s11  ;;  %3165 = vrot.lane.b32.xlu0 %v4771_v14, %s5408_s30  ;;  %3927 = vst.msk [vmem:[#allocation3 + $0x20] sm:$0xff] %vm3922_vm9, %v3883_v59  ;;  %v3441_v49 = vld [vmem:[#allocation2 + $0xd4] sm:$0x1]  ;;  %v3803_v33 = vshrl.u32 %v3439_v13, 16  ;;  %v3806_v18 = vshll.u32 %v3439_v13, 16  ;;  %v3820_v60 = vrot.slane %v3819_v48, 4  ;;  %v4087_v32 = vsel %vm5687_vm10, %v4819_v12, %v4086_v24 }
 0x219   : > { %v3822_v8 = vshll.u32 %v3441_v49, 16  ;;  %v3623_v52 = vsel %vm5721_vm12, %v3618_v29, %v3622_v56  ;;  %v3628_v61 = vrot.slane %v3627_v51, 4  ;;  %v3986_v40 = vld [vmem:[#allocation2 + $0xd4] sm:$0x1]  ;;  %v4088_v45 = vrot.slane %v4086_v24, 4  ;;  %v5133_v44 = vld [vmem:[#allocation2 + $0xcc] sm:$0xff]  }
 0x21a   : > { %v1811_v34 = vpop.permute.xlu1 %1810  ;;  %v3805_v28 = vrot.slane %v3803_v33, 4  ;;  %v3808_v54 = vrot.slane %v3806_v18, 5  ;;  %v4204_v36 = vpop.permute.xlu0 %4203  ;;  %v4144_v50 = vrot.slane %v4142_v35, 4  ;;  %v4145_v3 = vrot.slane %v3986_v40, 5 }
 0x21b   : > { %1846 = vst.msk [vmem:[#allocation3 + $0x68] sm:$0xff] %vm1832_vm1, %v1811_v34  ;;  %v3824_v47 = vrot.slane %v3822_v8, 5  ;;  %v3633_v38 = vsel %vm5721_vm12, %v3628_v61, %v3632_v4  ;;  %v4090_v46 = vsel %vm5687_vm10, %v4088_v45, %v4089_v9  ;;  %v4143_v14 = vsel %vm5687_vm10, %v4827_v55, %v4142_v35 }
 0x21c   : > { %3181 = vrot.lane.b32.xlu1 %v4779_v21, %s5408_s30  ;;  %3343 = vrot.lane.b32.xlu0 %v5134_v7, %s5407_s7  ;;  %4248 = vst.msk [vmem:[#allocation3 + $0x20] sm:$0xff] %vm7336_vm5, %v4204_v36  ;;  %v3809_v37 = vor.u32 %v3808_v54, %v3805_v28  ;;  %v4803_v30 = vcombine.low %v3623_v52, %v3633_v38  ;;  %s5412_s30 = smov [#allocation12]  }
 0x21d   : > { %v3825_v10 = vsel %vm5721_vm12, %v3820_v60, %v3824_v47  ;;  %v4835_v1 = vcombine.low %v4087_v32, %v4090_v46  ;;  %v4146_v11 = vsel %vm5687_vm10, %v4144_v50, %v4145_v3  ;;  %vm7337_vm10 = vmmov %vm7333_vm14 }
 0x21e   : > { %v2135_v25 = vpop.permute.xlu1 %2134  ;;  %v4273_v42 = vld [vmem:[#allocation3 + $0x60] sm:$0xff]  ;;  %v3810_v17 = vrot.slane %v3809_v37, 4  ;;  %v1795_v39 = vpop.permute.xlu0 %1794  ;;  %v4843_v20 = vcombine.low %v4143_v14, %v4146_v11  ;;  %vm7341_vm13 = vmmov %vm7337_vm10 }
 0x21f   : > { %2170 = vst.msk [vmem:[#allocation3 + $0x68] sm:$0xff] %vm2156_vm2, %v2135_v25  ;;  %4991 = vmatprep.subr.msk.bf16.mxu0 %vm4277_vm11, %v4273_v42  ;;  %vm7342_vm14 = vmmov %vm7337_vm10 }
 0x220   : > { %3359 = vrot.lane.b32.xlu1 %v5133_v44, %s5407_s7  ;;  %3888 = vrot.lane.b32.xlu0 %v4803_v30, %s5411_s16  ;;  %1838 = vst.msk [vmem:[#allocation3 + $0x28] sm:$0xff] %vm1832_vm1, %v1795_v39  ;;  %v3815_v19 = vsel %vm5721_vm12, %v3810_v17, %v7058_v27  ;;  %v7107_v27 = vld [vmem:[#allocation7] sm:$0xf]  ;;  %vm7338_vm12 = vmmov %vm7337_vm10  ;;  %s5261_s7 = scalar_lea.vmem %s4416_s29, 128 }
 0x221   : > { %v4811_v58 = vcombine.low %v3815_v19, %v3825_v10  ;;  %4985 = vmatprep.mubr.msk.bf16.mxu0 %vm4277_vm11, %v7107_v27  ;;  %p5262_p1 = scmp.ne.s32.totalorder %s4416_s29, %s5261_s7 }
 0x222   : > { %v2312_v22 = vpop.permute.xlu1 %2311  ;;  %v2119_v2 = vpop.permute.xlu0 %2118 }
 0x223   : > { %v4265_v0 = vld [vmem:[#allocation3 + $0x20] sm:$0xff]  ;;  %2347 = vst.msk [vmem:[#allocation3 + $0x68] sm:$0xff] %vm2333_vm3, %v2312_v22  ;;  %p5263_p4 = pnand %p5262_p1, %p5596_p6 }
 0x224   : > { %3904 = vrot.lane.b32.xlu1 %v4811_v58, %s5411_s16  ;;  %4209 = vrot.lane.b32.xlu0 %v4835_v1, %s5409_s8  ;;  %2162 = vst.msk [vmem:[#allocation3 + $0x28] sm:$0xff] %vm2156_vm2, %v2119_v2  ;;  %v4294_v62 = vsel %vm4277_vm11, %v4265_v0, 0 }
 0x225   : > { %4978 = vmatpush3.bf16.xpose.msra.mxu0 %v4294_v62  ;;  %p5264_p8 = pneg %p5263_p4 }
 0x226   : > { %v2857_v16 = vpop.permute.xlu1 %2856  ;;  %v2296_v57 = vpop.permute.xlu0 %2295 }
 0x227   : > { %2892 = vst.msk [vmem:[#allocation3 + $0x68] sm:$0xff] %vm2878_vm6, %v2857_v16 }
 0x228   : > { %4225 = vrot.lane.b32.xlu1 %v4843_v20, %s5409_s8  ;;  %2339 = vst.msk [vmem:[#allocation3 + $0x28] sm:$0xff] %vm2333_vm3, %v2296_v57  ;;  %s5265_s8 = sshll.u32 %s5412_s30, 4  ;;  %s5266_s8 = int_to_ptr.vmem [resolvable:$false] %s5265_s8 }
 0x229   : > { %s5267_s11 = scalar_lea.vmem %s5266_s8, 256  ;;  %p5268_p3 = scmp.lt.s32.totalorder %s4416_s29, %s5266_s8 }
 0x22a   : > { %v3178_v15 = vpop.permute.xlu1 %3177  ;;  %v2841_v31 = vpop.permute.xlu0 %2840  ;;  %p5269_p7 = scmp.lt.s32.totalorder %s5267_s11, %s5261_s7 }
 0x22b   : > { %3213 = vst.msk [vmem:[#allocation3 + $0x68] sm:$0xff] %vm3199_vm7, %v3178_v15 }
 0x22c   : > { %2884 = vst.msk [vmem:[#allocation3 + $0x28] sm:$0xff] %vm2878_vm6, %v2841_v31  ;;  %p5270_p10 = por %p5269_p7, %p5268_p3 }
 0x22e   : > { %v3162_v41 = vpop.permute.xlu0 %3161  ;;  %p5271_p13 = pnand %p5270_p10, %p5264_p8 }
 0x22f   : > { %3205 = vst.msk [vmem:[#allocation3 + $0x28] sm:$0xff] %vm3199_vm7, %v3162_v41 }
 0x239   : > { %v3356_v56 = vpop.permute.xlu1 %3355 }
 0x23a   : > { %3391 = vst.msk [vmem:[#allocation3 + $0x68] sm:$0xff] %vm7337_vm10, %v3356_v56 }
 0x23e   : > { %v3340_v23 = vpop.permute.xlu0 %3339 }
 0x23f   : > { %3383 = vst.msk [vmem:[#allocation3 + $0x28] sm:$0xff] %vm7338_vm12, %v3340_v23 }
 0x245   : > { %v3901_v43 = vpop.permute.xlu1 %3900 }
 0x246   : > { %3936 = vst.msk [vmem:[#allocation3 + $0x68] sm:$0xff] %vm3922_vm9, %v3901_v43 }
 0x249   : > { %v4222_v53 = vpop.permute.xlu1 %4221 }
 0x24a   : > { %v3885_v5 = vpop.permute.xlu0 %3884  ;;  %4257 = vst.msk [vmem:[#allocation3 + $0x68] sm:$0xff] %vm7339_vm8, %v4222_v53 }
 0x24b   : > { %3928 = vst.msk [vmem:[#allocation3 + $0x28] sm:$0xff] %vm3922_vm9, %v3885_v5 }
 0x24d   : > { %v1813_v6 = vpop.permute.xlu1 %1812 }
 0x24e   : > { %v4206_v26 = vpop.permute.xlu0 %4205  ;;  %1847 = vst.msk [vmem:[#allocation3 + $0x70] sm:$0xff] %vm1832_vm1, %v1813_v6 }
 0x24f   : > { %4249 = vst.msk [vmem:[#allocation3 + $0x28] sm:$0xff] %vm7340_vm0, %v4206_v26 }
 0x251   : > { %v2137_v7 = vpop.permute.xlu1 %2136  ;;  %v4274_v48 = vld [vmem:[#allocation3 + $0x68] sm:$0xff] }
 0x252   : > { %v1797_v4 = vpop.permute.xlu0 %1796  ;;  %2171 = vst.msk [vmem:[#allocation3 + $0x70] sm:$0xff] %vm2156_vm2, %v2137_v7  ;;  %4992 = vmatprep.subr.msk.bf16.mxu0 %vm4277_vm11, %v4274_v48 }
 0x253   : > { %1839 = vst.msk [vmem:[#allocation3 + $0x30] sm:$0xff] %vm1832_vm1, %v1797_v4 }
 0x255   : > { %v2314_v63 = vpop.permute.xlu1 %2313 }
 0x256   : > { %v2121_v35 = vpop.permute.xlu0 %2120  ;;  %v4266_v24 = vld [vmem:[#allocation3 + $0x28] sm:$0xff]  ;;  %2348 = vst.msk [vmem:[#allocation3 + $0x70] sm:$0xff] %vm2333_vm3, %v2314_v63 }
 0x257   : > { %2163 = vst.msk [vmem:[#allocation3 + $0x30] sm:$0xff] %vm2156_vm2, %v2121_v35  ;;  %v4297_v59 = vsel %vm4277_vm11, %v4266_v24, 0 }
 0x258   : > { %4980 = vmatpush3.bf16.xpose.msra.mxu0 %v4297_v59 }
 0x259   : > { %v2859_v21 = vpop.permute.xlu1 %2858 }
 0x25a   : > { %v2298_v13 = vpop.permute.xlu0 %2297  ;;  %2893 = vst.msk [vmem:[#allocation3 + $0x70] sm:$0xff] %vm2878_vm6, %v2859_v21 }
 0x25b   : > { %2340 = vst.msk [vmem:[#allocation3 + $0x30] sm:$0xff] %vm2333_vm3, %v2298_v13 }
 0x25d   : > { %v3180_v29 = vpop.permute.xlu1 %3179 }
 0x25e   : > { %v2843_v51 = vpop.permute.xlu0 %2842  ;;  %3214 = vst.msk [vmem:[#allocation3 + $0x70] sm:$0xff] %vm3199_vm7, %v3180_v29 }
 0x25f   : > { %2885 = vst.msk [vmem:[#allocation3 + $0x30] sm:$0xff] %vm2878_vm6, %v2843_v51 }
 0x262   : > { %v3164_v12 = vpop.permute.xlu0 %3163 }
 0x263   : > { %3206 = vst.msk [vmem:[#allocation3 + $0x30] sm:$0xff] %vm3199_vm7, %v3164_v12 }
 0x266   : > { %v3342_v49 = vpop.permute.xlu0 %3341 }
 0x267   : > { %3384 = vst.msk [vmem:[#allocation3 + $0x30] sm:$0xff] %vm7341_vm13, %v3342_v49 }
 0x26a   : > { %v3887_v33 = vpop.permute.xlu0 %3886  ;;  %v3358_v18 = vpop.permute.xlu1 %3357 }
 0x26b   : > { %3929 = vst.msk [vmem:[#allocation3 + $0x30] sm:$0xff] %vm3922_vm9, %v3887_v33 }
 0x26c   : > { %3392 = vst.msk [vmem:[#allocation3 + $0x70] sm:$0xff] %vm7342_vm14, %v3358_v18 }
 0x26e   : > { %v4208_v9 = vpop.permute.xlu0 %4207 }
 0x26f   : > { %4250 = vst.msk [vmem:[#allocation3 + $0x30] sm:$0xff] %vm7343_vm15, %v4208_v9 }
 0x276   : > { %v3903_v8 = vpop.permute.xlu1 %3902  ;;  %v4267_v34 = vld [vmem:[#allocation3 + $0x30] sm:$0xff] }
 0x277   : > { %3937 = vst.msk [vmem:[#allocation3 + $0x70] sm:$0xff] %vm3922_vm9, %v3903_v8  ;;  %v4300_v28 = vsel %vm4277_vm11, %v4267_v34, 0 }
 0x278   : > { %v1799_v52 = vpop.permute.xlu0 %1798 }
 0x279   : > { %1840 = vst.msk [vmem:[#allocation3 + $0x38] sm:$0xff] %vm1832_vm1, %v1799_v52 }
 0x27a   : > { %v4224_v61 = vpop.permute.xlu1 %4223 }
 0x27b   : > { %4258 = vst.msk [vmem:[#allocation3 + $0x70] sm:$0xff] %vm7344_vm4, %v4224_v61 }
 0x27c   : > { %v2123_v40 = vpop.permute.xlu0 %2122 }
 0x27d   : > { %2164 = vst.msk [vmem:[#allocation3 + $0x38] sm:$0xff] %vm2156_vm2, %v2123_v40 }
 0x27e   : > { %v1815_v55 = vpop.permute.xlu1 %1814 }
 0x27f   : > { %1848 = vst.msk [vmem:[#allocation3 + $0x78] sm:$0xff] %vm1832_vm1, %v1815_v55  ;;  %vm7345_vm1 = vmmov %vm7337_vm10 }
 0x280   : > { %v2300_v54 = vpop.permute.xlu0 %2299 }
 0x281   : > { %2341 = vst.msk [vmem:[#allocation3 + $0x38] sm:$0xff] %vm2333_vm3, %v2300_v54 }
 0x282   : > { %v2139_v60 = vpop.permute.xlu1 %2138  ;;  %v4275_v45 = vld [vmem:[#allocation3 + $0x70] sm:$0xff] }
 0x283   : > { %2172 = vst.msk [vmem:[#allocation3 + $0x78] sm:$0xff] %vm2156_vm2, %v2139_v60  ;;  %4993 = vmatprep.subr.msk.bf16.mxu0 %vm4277_vm11, %v4275_v45  ;;  %vm7346_vm2 = vmmov %vm7345_vm1 }
 0x284   : > { %4982 = vmatpush3.bf16.xpose.msra.mxu0 %v4300_v28 }
 0x286   : > { %v2316_v36 = vpop.permute.xlu1 %2315  ;;  %v2845_v44 = vpop.permute.xlu0 %2844 }
 0x287   : > { %2349 = vst.msk [vmem:[#allocation3 + $0x78] sm:$0xff] %vm2333_vm3, %v2316_v36  ;;  %vm7347_vm3 = vmmov %vm7340_vm0 }
 0x288   : > { %2886 = vst.msk [vmem:[#allocation3 + $0x38] sm:$0xff] %vm2878_vm6, %v2845_v44 }
 0x28a   : > { %v2861_v47 = vpop.permute.xlu1 %2860  ;;  %v3166_v38 = vpop.permute.xlu0 %3165 }
 0x28b   : > { %2894 = vst.msk [vmem:[#allocation3 + $0x78] sm:$0xff] %vm2878_vm6, %v2861_v47  ;;  %vm7348_vm6 = vmmov %vm7340_vm0 }
 0x28c   : > { %3207 = vst.msk [vmem:[#allocation3 + $0x38] sm:$0xff] %vm3199_vm7, %v3166_v38 }
 0x28e   : > { %v3182_v50 = vpop.permute.xlu1 %3181  ;;  %v3344_v32 = vpop.permute.xlu0 %3343 }
 0x28f   : > { %3215 = vst.msk [vmem:[#allocation3 + $0x78] sm:$0xff] %vm3199_vm7, %v3182_v50 }
 0x290   : > { %3385 = vst.msk [vmem:[#allocation3 + $0x38] sm:$0xff] %vm7345_vm1, %v3344_v32 }
 0x292   : > { %v3360_v37 = vpop.permute.xlu1 %3359  ;;  %v3889_v30 = vpop.permute.xlu0 %3888 }
 0x293   : > { %3393 = vst.msk [vmem:[#allocation3 + $0x78] sm:$0xff] %vm7346_vm2, %v3360_v37 }
 0x294   : > { %3930 = vst.msk [vmem:[#allocation3 + $0x38] sm:$0xff] %vm3922_vm9, %v3889_v30 }
 0x296   : > { %v3905_v3 = vpop.permute.xlu1 %3904  ;;  %v4210_v46 = vpop.permute.xlu0 %4209 }
 0x297   : > { %3938 = vst.msk [vmem:[#allocation3 + $0x78] sm:$0xff] %vm3922_vm9, %v3905_v3 }
 0x298   : > { %4251 = vst.msk [vmem:[#allocation3 + $0x38] sm:$0xff] %vm7347_vm3, %v4210_v46 }
 0x29a   : > { %v4226_v25 = vpop.permute.xlu1 %4225 }
 0x29b   : > { %4259 = vst.msk [vmem:[#allocation3 + $0x78] sm:$0xff] %vm7348_vm6, %v4226_v25 }
 0x29f   : > { %v4268_v42 = vld [vmem:[#allocation3 + $0x38] sm:$0xff] }
 0x2a0   : > { %v4303_v17 = vsel %vm4277_vm11, %v4268_v42, 0 }
 0x2a2   : > { %v4276_v10 = vld [vmem:[#allocation3 + $0x78] sm:$0xff] }
 0x2a3   : > { %4994 = vmatprep.subr.msk.bf16.mxu0 %vm4277_vm11, %v4276_v10 }
 0x2a4   : > { %4984 = vmatpush3.bf16.xpose.msra.mxu0 %v4303_v17 }
 0x2ab   : > { %4986 = vmatmul.mubr.msk.bf16.vlgmr.msra.gmra.mrb[0].mxu0 %vm4277_vm11, %v7107_v27 }
 0x37e   : > { %v4363_v39 = vpop.f32.mrb[0].mxu0 }
 0x37f   : > { %v4384_v1 = vmul.f32 %v4363_v39, %v4363_v39  ;;  %v4365_v19 = vpop.f32.mrb[1].mxu0 }
 0x380   : > { %v4888_v14 = vpack.c.bf16 %v4365_v19, %v4363_v39  ;;  %v4379_v11 = vadd.f32 %v4365_v19, %v4363_v39  ;;  %v4385_v58 = vmul.f32 %v4365_v19, %v4365_v19  ;;  %v4367_v22 = vpop.f32.mrb[2].mxu0 }
 0x381   : > { %v4368_v2 = vpop.f32.mrb[3].mxu0 }
 0x382   : > { %4380 = vadd.xlane.f32.xlu0 %v4379_v11  ;;  %v4386_v0 = vadd.f32 %v4385_v58, %v4384_v1  ;;  %4378 = vst [vmem:[%s311_s12] sm:$0xff] %v4888_v14 }
 0x384   : > { %4387 = vadd.xlane.f32.xlu1 %v4386_v0 }
 0x385   : > { %5274 = shalt.err (!%p5271_p13)
}
 0x386   : > { %s5275_s17 = scalar_lea.hbm %s7174_s27, 128  ;;  %s5279_s15 = scalar_lea.hbm %s7289_s4, 256 }
 0x387   : > { %p5276_p0 = scmp.ne.s32.totalorder %s7174_s27, %s5275_s17  ;;  %p5280_p9 = scmp.lt.u32.totalorder %s7174_s27, %s7289_s4 }
 0x388   : > { %p5281_p12 = scmp.lt.u32.totalorder %s5279_s15, %s5275_s17  ;;  %p5283_p1 = scmp.lt.u32.totalorder %s5275_s17, %s7174_s27 }
 0x389   : > { %p5277_p5 = pnand %p5276_p0, %p5596_p6 }
 0x38a   : > { %p5282_p2 = por %p5281_p12, %p5280_p9 }
 0x38b   : > { %p5278_p11 = pneg %p5277_p5 }
 0x38c   : > { %p5284_p4 = por %p5283_p1, %p5282_p2 }
 0x38e   : > { %p5285_p8 = pnand %p5284_p4, %p5278_p11 }
 0x390   : > { %5288 = shalt.err (!%p5285_p8)
}
 0x391   : > { %5009 = dma.vmem_to_hbm [thread:$0]  (%p5596_p6), %s4416_s29, 128, %s7174_s27, %s4391_s20   ;;  %vm4382_vm7 = vcmask 7168  }
 0x392   : > { %s4395_s7 = sand.u32 1, %s5471_s25   ;;  %s318_s8 = scalar_lea.vmem [#allocation13], %s7164_s10 }
 0x393   : > { %s4428_s11 = sshll.u32 %s318_s8, 4  ;;  %s325_s16 = scalar_lea.vmem [#allocation15], %s7164_s10  ;;  %s7205_s11 = int_to_ptr.vmem [resolvable:$true] %s4428_s11 }
 0x394   : > { %s4441_s17 = sshll.u32 %s325_s16, 4  ;;  %s7203_s9 = scalar_lea.hbm %s7290_s5, %s7168_s19  ;;  %s7214_s17 = int_to_ptr.vmem [resolvable:$true] %s4441_s17 }
 0x395   : > { %s7212_s29 = scalar_lea.hbm %s7291_s6, %s7168_s19  ;;  %s7216_s20 = scalar_lea.sflag [#allocation14], %s4395_s7 }
 0x396   : > { %s5289_s30 = scalar_lea.vmem %s7205_s11, 128  ;;  %s5413_s12 = smov [#allocation13]  }
 0x397   : > { %p5290_p3 = scmp.ne.s32.totalorder %s7205_s11, %s5289_s30  ;;  %s5293_s15 = sshll.u32 %s5413_s12, 4  ;;  %s5294_s15 = int_to_ptr.vmem [resolvable:$false] %s5293_s15 }
 0x398   : > { %s5295_s26 = scalar_lea.vmem %s5294_s15, 256  ;;  %p5296_p13 = scmp.lt.s32.totalorder %s7205_s11, %s5294_s15 }
 0x399   : > { %p5291_p7 = pnand %p5290_p3, %p5596_p6  ;;  %p5297_p0 = scmp.lt.s32.totalorder %s5295_s26, %s5289_s30 }
 0x39b   : > { %p5292_p10 = pneg %p5291_p7  ;;  %p5298_p5 = por %p5297_p0, %p5296_p13 }
 0x39d   : > { %p5299_p11 = pnand %p5298_p5, %p5292_p10 }
 0x40f   : > { %v4381_v20 = vpop.xlane.xlu0 %4380 }
 0x410   : > { %4383 = vst.msk [vmem:[%s318_s8] sm:$0xff] %vm4382_vm7, %v4381_v20 }
 0x411   : > { %v4388_v62 = vpop.xlane.xlu1 %4387 }
 0x412   : > { %5302 = shalt.err (!%p5299_p11)
}
 0x413   : > { %s5303_s19 = scalar_lea.hbm %s7203_s9, 128  ;;  %s5307_s25 = scalar_lea.hbm %s7290_s5, 256 }
 0x414   : > { %p5304_p9 = scmp.ne.s32.totalorder %s7203_s9, %s5303_s19  ;;  %p5308_p1 = scmp.lt.u32.totalorder %s7203_s9, %s7290_s5 }
 0x415   : > { %p5309_p4 = scmp.lt.u32.totalorder %s5307_s25, %s5303_s19  ;;  %p5311_p3 = scmp.lt.u32.totalorder %s5303_s19, %s7203_s9 }
 0x416   : > { %p5305_p12 = pnand %p5304_p9, %p5596_p6 }
 0x417   : > { %p5310_p8 = por %p5309_p4, %p5308_p1 }
 0x418   : > { %p5306_p2 = pneg %p5305_p12 }
 0x419   : > { %p5312_p7 = por %p5311_p3, %p5310_p8 }
 0x41b   : > { %p5313_p10 = pnand %p5312_p7, %p5306_p2 }
 0x41d   : > { %5316 = shalt.err (!%p5313_p10)
}
 0x41e   : > { %5010 = dma.vmem_to_hbm [thread:$0]  (%p5596_p6), %s7205_s11, 128, %s7203_s9, %s7216_s20   ;;  %4389 = vst.msk [vmem:[%s325_s16] sm:$0xff] %vm4382_vm7, %v4388_v62 }
 0x41f   : > { %s5317_s26 = scalar_lea.vmem %s7214_s17, 128  ;;  %s5414_s30 = smov [#allocation15]  }
 0x420   : > { %p5318_p13 = scmp.ne.s32.totalorder %s7214_s17, %s5317_s26  ;;  %s5321_s15 = sshll.u32 %s5414_s30, 4  ;;  %s5322_s15 = int_to_ptr.vmem [resolvable:$false] %s5321_s15 }
 0x421   : > { %s5323_s19 = scalar_lea.vmem %s5322_s15, 256  ;;  %p5324_p11 = scmp.lt.s32.totalorder %s7214_s17, %s5322_s15 }
 0x422   : > { %p5319_p0 = pnand %p5318_p13, %p5596_p6  ;;  %p5325_p9 = scmp.lt.s32.totalorder %s5323_s19, %s5317_s26 }
 0x424   : > { %p5320_p5 = pneg %p5319_p0  ;;  %p5326_p12 = por %p5325_p9, %p5324_p11 }
 0x426   : > { %p5327_p2 = pnand %p5326_p12, %p5320_p5 }
 0x428   : > { %5330 = shalt.err (!%p5327_p2)
}
 0x429   : > { %s5331_s10 = scalar_lea.hbm %s7212_s29, 128  ;;  %s5335_s9 = scalar_lea.hbm %s7291_s6, 256 }
 0x42a   : > { %p5332_p1 = scmp.ne.s32.totalorder %s7212_s29, %s5331_s10  ;;  %p5336_p3 = scmp.lt.u32.totalorder %s7212_s29, %s7291_s6 }
 0x42b   : > { %p5337_p7 = scmp.lt.u32.totalorder %s5335_s9, %s5331_s10  ;;  %p5339_p13 = scmp.lt.u32.totalorder %s5331_s10, %s7212_s29 }
 0x42c   : > { %p5333_p4 = pnand %p5332_p1, %p5596_p6 }
 0x42d   : > { %p5338_p10 = por %p5337_p7, %p5336_p3 }
 0x42e   : > { %p5334_p8 = pneg %p5333_p4 }
 0x42f   : > { %p5340_p0 = por %p5339_p13, %p5338_p10 }
 0x431   : > { %p5341_p5 = pnand %p5340_p0, %p5334_p8 }
 0x433   : > { %5344 = shalt.err (!%p5341_p5)
}
 0x434   : > { %5011 = dma.vmem_to_hbm [thread:$0]  (%p5596_p6), %s7214_s17, 128, %s7212_s29, %s7216_s20  }
 0x435 PF: > { %s4453_s25 = sand.u32 1, %s5383_s21   ;;  %p7349_p11 = scmp.ne.s32.totalorder %s7300_s28, 0 }
 0x436   : > { %p7350_p9 = scmp.ge.s32.totalorder %s5395_s24, 2  ;;  %s4454_s27 = scalar_lea.sflag [#allocation6], %s4453_s25 }
 0x438   : > { %p5030_p12 = pnand %p7350_p9, %p7349_p11 }
 0x43a   : > { %5374 = dma.done.wait (!%p5030_p12), %s4454_s27, 128  }
 0x43b   : > { %5376 = vsyncadd (!%p5030_p12), %s4454_s27, 4294967168  ;;  %s7351_s12 = sadd.s32 4294967294, %s5395_s24  }
 0x43c   : > { %s4462_s26 = sand.u32 1, %s7351_s12  }
 0x43d   : > { %s4463_s30 = scalar_lea.sflag [#allocation14], %s4462_s26 }
 0x43e   : > { %5378 = dma.done.wait (!%p5030_p12), %s4463_s30, 256  }
 0x43f   : > { %5380 = vsyncadd (!%p5030_p12), %s4463_s30, 4294967040  ;;  %p25_p6 = scmp.ge.s32.totalorder %s5582_s18, 4   ;;  %s7352_s21 = smov %s5387_s22 }
 0x440   : > { %s7353_s22 = smov %s5391_s23  ;;  %s7354_s23 = smov %s5592_s13 }
 0x441   : > { %s7355_s24 = smov %s5582_s18  ;;  %27 = sbr.rel (!%p25_p6) target bundleno = 9 (0x9), region = 128 }
 0x448   :  { %4477 = vsyncpa [#allocation5], 1 }
 0x449   :  { %4479 = vsyncpa [#allocation5 + $0x1], 1 }
 0x44a   :  { %4480 = vsyncpa [#allocation8], 1 }
 0x44b   :  { %4481 = vsyncpa [#allocation11], 1 }
 0x44c   :  { %4482 = vsyncpa [#allocation6], 1 }
 0x44d   :  { %4484 = vsyncpa [#allocation6 + $0x1], 1 }
 0x44e   :  { %4485 = vsyncpa [#allocation14], 1 }
 0x44f   :  { %4487 = vsyncpa [#allocation14 + $0x1], 1 }

</bundles_post_ra>
